<compile_context>
chip_gen: v5e
topology: v5e:2x2
jax: 0.10.0
libtpu: 0.0.40
codegen_flags: <defaults>
</compile_context>

<pallas_src>
import jax
import jax.numpy as jnp
from jax import lax
from jax.experimental import pallas as pl
from jax.experimental.pallas import tpu as pltpu

LANE = 128
SUBLANE = 8
COMPUTE_DTYPE = jnp.bfloat16     # MXU operand dtype (accumulation is f32)
COL0 = 8                         # sublane-aligned column where image col 0 lives


def _round_up(x, m):
    return ((x + m - 1) // m) * m


def _pick_batch_block(n, hw, target_m=512, keep_steps=2):
    """Largest divisor nb of n with nb*hw <= max(target_m, hw), keeping >= keep_steps steps."""
    best, cap = 1, max(target_m, hw)
    for nb in range(1, n + 1):
        if n % nb:
            continue
        if nb > 1 and n // nb < keep_steps:
            continue
        if nb * hw <= cap:
            best = nb
    return best


# ----------------------------- Pallas kernel -------------------------------

def make_resnet_block_kernel(nb, H, W, Cp, CoutP, Ws, compute_dtype):
    """Fused conv1(3x3)+bn1+relu -> conv2(3x3)+bn2+residual+relu for one batch block."""
    HW = nb * H * W

    def zero_halo(ref, ch):
        # Only the 1-px halo must be zero; the interior is fully overwritten
        # every grid step.  Re-zeroed per step (2 rows + 2 cols, cheap) so the
        # kernel is correct under megacore sharding of the parallel batch axis.
        zrow = jnp.zeros((nb, 1, Ws, ch), compute_dtype)
        ref[:, 0:1, :, :] = zrow
        ref[:, H + 1:H + 2, :, :] = zrow
        zcol = jnp.zeros((nb, H + 2, 1, ch), compute_dtype)
        ref[:, :, COL0 - 1:COL0, :] = zcol
        ref[:, :, COL0 + W:COL0 + W + 1, :] = zcol

    def conv3x3(src_ref, w_ref, kc):
        # K-fused 3x3 conv: per kh, concatenate the three kw-shifted taps along
        # channels -> one (HW, 3*kc) x (3*kc, CoutP) MXU matmul (K = 3*kc).
        acc = None
        for kh in range(3):
            tap = jnp.concatenate(
                [src_ref[:, kh:kh + H, COL0 - 1 + kw:COL0 - 1 + kw + W, :]
                 for kw in range(3)],
                axis=-1).reshape(HW, 3 * kc)
            part = jnp.dot(tap, w_ref[kh], preferred_element_type=jnp.float32)
            acc = part if acc is None else acc + part
        return acc                                          # (HW, CoutP) f32

    def kernel(x_ref, w1_ref, w2_ref, s1_ref, b1_ref, s2_ref, b2_ref,
               o_ref, xs_ref, h1_ref):
        # ---- stage halo-padded bf16 input in VMEM (sublane-aligned store) ----
        zero_halo(xs_ref, Cp)
        xs_ref[:, 1:H + 1, COL0:COL0 + W, :] = x_ref[...].astype(compute_dtype)

        # ---- conv1 + bn1 + relu (f32 epilogue) ----
        acc1 = conv3x3(xs_ref, w1_ref, Cp)
        h1 = jnp.maximum(acc1 * s1_ref[...] + b1_ref[...], 0.0)

        # ---- stage h1 in bf16 VMEM; the intermediate never touches HBM ----
        zero_halo(h1_ref, CoutP)
        h1_ref[:, 1:H + 1, COL0:COL0 + W, :] = (
            h1.reshape(nb, H, W, CoutP).astype(compute_dtype))

        # ---- conv2 + bn2 + residual + relu ----
        acc2 = conv3x3(h1_ref, w2_ref, CoutP)
        identity = x_ref[...].astype(jnp.float32).reshape(HW, Cp)   # f32 residual
        y = acc2 * s2_ref[...] + b2_ref[...] + identity
        o_ref[...] = jnp.maximum(y, 0.0).reshape(
            nb, H, W, CoutP).astype(o_ref.dtype)

    return kernel


# ------------------------------- JAX glue ----------------------------------

def conv_weight_to_kfused(w_oihw, cin_p, cout_p, dtype):
    """torch [Cout,Cin,3,3] -> per-kh K-fused matrices (3, 3*cin_p, cout_p).

    K-axis row order is (kw, cin) to match the lane order of the concatenated
    taps built inside the kernel."""
    cout, cin, kh, kw = w_oihw.shape
    w = jnp.transpose(w_oihw, (2, 3, 1, 0))                 # (3, 3, Cin, Cout)
    w = jnp.pad(w, ((0, 0), (0, 0), (0, cin_p - cin), (0, cout_p - cout)))
    return w.reshape(kh, kw * cin_p, cout_p).astype(dtype)


def fold_bn(gamma, beta, running_mean, running_var, cout_p, eps=1e-5):
    # Zero-padding scale AND shift (plus zero-padded weights / residual) keeps
    # the padded output channels exactly 0 -- do not change this contract.
    scale = gamma / jnp.sqrt(running_var + eps)
    shift = beta - running_mean * scale
    scale = jnp.pad(scale, (0, cout_p - scale.shape[0]))
    shift = jnp.pad(shift, (0, cout_p - shift.shape[0]))
    return (scale.reshape(1, cout_p).astype(jnp.float32),
            shift.reshape(1, cout_p).astype(jnp.float32))


def resnet_block_forward(x_nchw, params, out_dtype=jnp.float32):
    """ResNetBlock(in_c, out_c, stride=1, downsample=None) forward.

    Pass out_dtype=jnp.bfloat16 when the downstream consumer accepts it, to
    halve the kernel's output HBM writes (the epilogue math stays f32)."""
    x = jnp.transpose(x_nchw, (0, 2, 3, 1)).astype(jnp.float32)   # NCHW -> NHWC
    N, H, W, C = x.shape
    Cout = params["conv1_w"].shape[0]
    assert params["conv1_w"].shape[1] == C and Cout == C, \
        "only the downsample=None / Cin==Cout / stride=1 path is implemented"
    assert W % SUBLANE == 0, "W must be a multiple of 8 for clean sublane tiling"

    Cp = _round_up(C, LANE)
    CoutP = _round_up(Cout, LANE)
    assert Cp == CoutP

    # TODO(synk): move the channel pad into the kernel (or fold W pairs into
    # lanes at C=64) to remove the Cp/C-inflated activation copy in HBM.
    if Cp != C:
        x = jnp.pad(x, ((0, 0), (0, 0), (0, 0), (0, Cp - C)))     # (N,H,W,Cp)

    nb = _pick_batch_block(N, H * W)
    grid = (N // nb,)
    Ws = _round_up(COL0 + W + 1, SUBLANE)   # scratch width (halo at COL0-1 / COL0+W)

    w1 = conv_weight_to_kfused(params["conv1_w"], Cp, CoutP, COMPUTE_DTYPE)
    w2 = conv_weight_to_kfused(params["conv2_w"], CoutP, CoutP, COMPUTE_DTYPE)
    s1, b1 = fold_bn(params["bn1_gamma"], params["bn1_beta"],
                     params["bn1_mean"], params["bn1_var"], CoutP)
    s2, b2 = fold_bn(params["bn2_gamma"], params["bn2_beta"],
                     params["bn2_mean"], params["bn2_var"], CoutP)

    kernel = make_resnet_block_kernel(nb, H, W, Cp, CoutP, Ws, COMPUTE_DTYPE)

    out = pl.pallas_call(
        kernel,
        out_shape=jax.ShapeDtypeStruct((N, H, W, CoutP), out_dtype),
        grid=grid,
        in_specs=[
            # activation block: halo built in VMEM, also reused as the residual
            pl.BlockSpec((nb, H, W, Cp), lambda n: (n, 0, 0, 0)),
            # K-fused weights & folded BN constants: constant index_map ->
            # DMA'd once, kept resident in VMEM across the whole grid.
            pl.BlockSpec((3, 3 * Cp, CoutP), lambda n: (0, 0, 0)),
            pl.BlockSpec((3, 3 * CoutP, CoutP), lambda n: (0, 0, 0)),
            pl.BlockSpec((1, CoutP), lambda n: (0, 0)),
            pl.BlockSpec((1, CoutP), lambda n: (0, 0)),
            pl.BlockSpec((1, CoutP), lambda n: (0, 0)),
            pl.BlockSpec((1, CoutP), lambda n: (0, 0)),
        ],
        out_specs=pl.BlockSpec((nb, H, W, CoutP), lambda n: (n, 0, 0, 0)),
        scratch_shapes=[
            pltpu.VMEM((nb, H + 2, Ws, Cp), COMPUTE_DTYPE),       # padded x
            pltpu.VMEM((nb, H + 2, Ws, CoutP), COMPUTE_DTYPE),    # padded h1
        ],
        compiler_params=pltpu.CompilerParams(
            dimension_semantics=("parallel",),
            # Plenty for these tiles on every generation (v5e scoped default is
            # only 16 MiB).  When growing plane / H tiles: 64-96 MiB is safe on
            # v5e/v6e (128 MiB physical); keep <= ~48 MiB on v7x (64 MiB).
            vmem_limit_bytes=32 * 1024 * 1024,
        ),
    )(x, w1, w2, s1, b1, s2, b2)

    out = out[..., :Cout].astype(jnp.float32)                    # (N,H,W,Cout)
    return jnp.transpose(out, (0, 3, 1, 2))                      # NHWC -> NCHW


# ------------------------------ reference ----------------------------------

def reference_forward(x_nchw, params, eps=1e-5):
    """Pure-JAX reference (lax.conv, f32) for numerical verification."""
    def conv3x3(x, w_oihw):
        w_hwio = jnp.transpose(w_oihw, (2, 3, 1, 0))
        return lax.conv_general_dilated(
            x, w_hwio, window_strides=(1, 1), padding=((1, 1), (1, 1)),
            dimension_numbers=("NHWC", "HWIO", "NHWC"))

    def bn(x, g, b, m, v):
        return (x - m) / jnp.sqrt(v + eps) * g + b

    x = jnp.transpose(x_nchw, (0, 2, 3, 1))
    h = conv3x3(x, params["conv1_w"])
    h = bn(h, params["bn1_gamma"], params["bn1_beta"],
           params["bn1_mean"], params["bn1_var"])
    h = jnp.maximum(h, 0.0)
    h = conv3x3(h, params["conv2_w"])
    h = bn(h, params["bn2_gamma"], params["bn2_beta"],
           params["bn2_mean"], params["bn2_var"])
    h = jnp.maximum(h + x, 0.0)
    return jnp.transpose(h, (0, 3, 1, 2))


# --------------------------------- main -------------------------------------

if __name__ == "__main__":
    N, C, H, W = 2, 4, 16, 16            # in_channels == out_channels, stride=1
    Cout = C

    key = jax.random.PRNGKey(0)
    ks = jax.random.split(key, 11)

    x = jax.random.normal(ks[0], (N, C, H, W), dtype=jnp.float32)

    params = {
        "conv1_w":  0.1 * jax.random.normal(ks[1], (Cout, C, 3, 3), jnp.float32),
        "conv2_w":  0.1 * jax.random.normal(ks[2], (Cout, Cout, 3, 3), jnp.float32),
        "bn1_gamma": 1.0 + 0.1 * jax.random.normal(ks[3], (Cout,), jnp.float32),
        "bn1_beta":  0.1 * jax.random.normal(ks[4], (Cout,), jnp.float32),
        "bn1_mean":  0.05 * jax.random.normal(ks[5], (Cout,), jnp.float32),
        "bn1_var":   jnp.abs(1.0 + 0.1 * jax.random.normal(ks[6], (Cout,), jnp.float32)),
        "bn2_gamma": 1.0 + 0.1 * jax.random.normal(ks[7], (Cout,), jnp.float32),
        "bn2_beta":  0.1 * jax.random.normal(ks[8], (Cout,), jnp.float32),
        "bn2_mean":  0.05 * jax.random.normal(ks[9], (Cout,), jnp.float32),
        "bn2_var":   jnp.abs(1.0 + 0.1 * jax.random.normal(ks[10], (Cout,), jnp.float32)),
    }

    fwd = jax.jit(resnet_block_forward)
    out = jax.block_until_ready(fwd(x, params))

    ref = jax.block_until_ready(reference_forward(x, params))
    assert out.shape == (N, Cout, H, W)
    # bf16 MXU operands with f32 accumulation -> loosened tolerance vs f32 ref.
    max_err = jnp.max(jnp.abs(out - ref))
    assert jnp.allclose(out, ref, atol=3e-2, rtol=3e-2), f"max err {max_err}"

    print("KERNEL_OK")
</pallas_src>

<mosaic_0001>
module attributes {stable_mosaic.version = 11 : i64} {
  func.func @kernel(%arg0: i32, %arg1: memref<1x16x16x128xf32, #tpu.memory_space<vmem>>, %arg2: memref<3x384x128xbf16, #tpu.memory_space<vmem>>, %arg3: memref<3x384x128xbf16, #tpu.memory_space<vmem>>, %arg4: memref<1x128xf32, #tpu.memory_space<vmem>>, %arg5: memref<1x128xf32, #tpu.memory_space<vmem>>, %arg6: memref<1x128xf32, #tpu.memory_space<vmem>>, %arg7: memref<1x128xf32, #tpu.memory_space<vmem>>, %arg8: memref<1x16x16x128xf32, #tpu.memory_space<vmem>>, %arg9: memref<1x18x32x128xbf16, #tpu.memory_space<vmem>>, %arg10: memref<1x18x32x128xbf16, #tpu.memory_space<vmem>>) attributes {dimension_semantics = [#tpu.dimension_semantics<parallel>], iteration_bounds = array<i64: 2>, scalar_prefetch = 0 : i64, scratch_operands = 2 : i64, tpu.core_type = #tpu.core_type<tc>, window_params = [{transform_indices = @transform_0, window_bounds = array<i64: 1, 16, 16, 128>}, {pipeline_mode = #tpu.pipeline_mode<synchronous>, transform_indices = @transform_1, window_bounds = array<i64: 3, 384, 128>}, {pipeline_mode = #tpu.pipeline_mode<synchronous>, transform_indices = @transform_2, window_bounds = array<i64: 3, 384, 128>}, {pipeline_mode = #tpu.pipeline_mode<synchronous>, transform_indices = @transform_3, window_bounds = array<i64: 1, 128>}, {pipeline_mode = #tpu.pipeline_mode<synchronous>, transform_indices = @transform_4, window_bounds = array<i64: 1, 128>}, {pipeline_mode = #tpu.pipeline_mode<synchronous>, transform_indices = @transform_5, window_bounds = array<i64: 1, 128>}, {pipeline_mode = #tpu.pipeline_mode<synchronous>, transform_indices = @transform_6, window_bounds = array<i64: 1, 128>}, {transform_indices = @transform_7, window_bounds = array<i64: 1, 16, 16, 128>}]} {
    %cst = arith.constant 0.000000e+00 : bf16
    %0 = vector.broadcast %cst : bf16 to vector<1x1x32x128xbf16>
    %c0 = arith.constant 0 : index
    %c0_0 = arith.constant 0 : index
    %c0_1 = arith.constant 0 : index
    %c0_2 = arith.constant 0 : index
    %1 = vector.load %arg9[%c0, %c0_0, %c0_1, %c0_2] : memref<1x18x32x128xbf16, #tpu.memory_space<vmem>>, vector<1x1x32x128xbf16>
    tpu.vector_store %arg9[%c0, %c0_0, %c0_1, %c0_2], %0 {strides = array<i32>} : memref<1x18x32x128xbf16, #tpu.memory_space<vmem>>, vector<1x1x32x128xbf16>,
    %c0_3 = arith.constant 0 : index
    %c17 = arith.constant 17 : index
    %c0_4 = arith.constant 0 : index
    %c0_5 = arith.constant 0 : index
    %2 = vector.load %arg9[%c0_3, %c17, %c0_4, %c0_5] : memref<1x18x32x128xbf16, #tpu.memory_space<vmem>>, vector<1x1x32x128xbf16>
    tpu.vector_store %arg9[%c0_3, %c17, %c0_4, %c0_5], %0 {strides = array<i32>} : memref<1x18x32x128xbf16, #tpu.memory_space<vmem>>, vector<1x1x32x128xbf16>,
    %cst_6 = arith.constant 0.000000e+00 : bf16
    %3 = vector.broadcast %cst_6 : bf16 to vector<1x18x1x128xbf16>
    %c0_7 = arith.constant 0 : index
    %c0_8 = arith.constant 0 : index
    %c7 = arith.constant 7 : index
    %c0_9 = arith.constant 0 : index
    %4 = vector.load %arg9[%c0_7, %c0_8, %c7, %c0_9] : memref<1x18x32x128xbf16, #tpu.memory_space<vmem>>, vector<1x18x1x128xbf16>
    tpu.vector_store %arg9[%c0_7, %c0_8, %c7, %c0_9], %3 {strides = array<i32>} : memref<1x18x32x128xbf16, #tpu.memory_space<vmem>>, vector<1x18x1x128xbf16>,
    %c0_10 = arith.constant 0 : index
    %c0_11 = arith.constant 0 : index
    %c24 = arith.constant 24 : index
    %c0_12 = arith.constant 0 : index
    %5 = vector.load %arg9[%c0_10, %c0_11, %c24, %c0_12] : memref<1x18x32x128xbf16, #tpu.memory_space<vmem>>, vector<1x18x1x128xbf16>
    tpu.vector_store %arg9[%c0_10, %c0_11, %c24, %c0_12], %3 {strides = array<i32>} : memref<1x18x32x128xbf16, #tpu.memory_space<vmem>>, vector<1x18x1x128xbf16>,
    %c0_13 = arith.constant 0 : index
    %c0_14 = arith.constant 0 : index
    %c0_15 = arith.constant 0 : index
    %c0_16 = arith.constant 0 : index
    %6 = vector.load %arg1[%c0_13, %c0_14, %c0_15, %c0_16] : memref<1x16x16x128xf32, #tpu.memory_space<vmem>>, vector<1x16x16x128xf32>
    %7 = arith.truncf %6 : vector<1x16x16x128xf32> to vector<1x16x16x128xbf16>
    %c0_17 = arith.constant 0 : index
    %c1 = arith.constant 1 : index
    %c8 = arith.constant 8 : index
    %c0_18 = arith.constant 0 : index
    %8 = vector.load %arg9[%c0_17, %c1, %c8, %c0_18] : memref<1x18x32x128xbf16, #tpu.memory_space<vmem>>, vector<1x16x16x128xbf16>
    tpu.vector_store %arg9[%c0_17, %c1, %c8, %c0_18], %7 {strides = array<i32>} : memref<1x18x32x128xbf16, #tpu.memory_space<vmem>>, vector<1x16x16x128xbf16>,
    %c0_19 = arith.constant 0 : index
    %c0_20 = arith.constant 0 : index
    %c7_21 = arith.constant 7 : index
    %c0_22 = arith.constant 0 : index
    %9 = vector.load %arg9[%c0_19, %c0_20, %c7_21, %c0_22] : memref<1x18x32x128xbf16, #tpu.memory_space<vmem>>, vector<1x16x16x128xbf16>
    %c0_23 = arith.constant 0 : index
    %c0_24 = arith.constant 0 : index
    %c8_25 = arith.constant 8 : index
    %c0_26 = arith.constant 0 : index
    %10 = vector.load %arg9[%c0_23, %c0_24, %c8_25, %c0_26] : memref<1x18x32x128xbf16, #tpu.memory_space<vmem>>, vector<1x16x16x128xbf16>
    %c0_27 = arith.constant 0 : index
    %c0_28 = arith.constant 0 : index
    %c9 = arith.constant 9 : index
    %c0_29 = arith.constant 0 : index
    %11 = vector.load %arg9[%c0_27, %c0_28, %c9, %c0_29] : memref<1x18x32x128xbf16, #tpu.memory_space<vmem>>, vector<1x16x16x128xbf16>
    %12 = tpu.concatenate %9, %10, %11 in 3 : vector<1x16x16x128xbf16>, vector<1x16x16x128xbf16>, vector<1x16x16x128xbf16> -> vector<1x16x16x384xbf16>
    %13 = vector.shape_cast %12 : vector<1x16x16x384xbf16> to vector<256x384xbf16>
    %c0_30 = arith.constant 0 : index
    %c0_31 = arith.constant 0 : index
    %c0_32 = arith.constant 0 : index
    %14 = vector.load %arg2[%c0_30, %c0_31, %c0_32] : memref<3x384x128xbf16, #tpu.memory_space<vmem>>, vector<1x384x128xbf16>
    %15 = vector.shape_cast %14 : vector<1x384x128xbf16> to vector<384x128xbf16>
    %cst_33 = arith.constant dense<0.000000e+00> : vector<256x128xf32>
    %16 = tpu.matmul %13, %15, %cst_33 {dimension_numbers = #tpu.dot_dimension_numbers<[1], [0], [0], [1], [0, 0, 1, 1], [], []>} : vector<256x384xbf16>, vector<384x128xbf16>, vector<256x128xf32> -> vector<256x128xf32>
    %c0_34 = arith.constant 0 : index
    %c1_35 = arith.constant 1 : index
    %c7_36 = arith.constant 7 : index
    %c0_37 = arith.constant 0 : index
    %17 = vector.load %arg9[%c0_34, %c1_35, %c7_36, %c0_37] : memref<1x18x32x128xbf16, #tpu.memory_space<vmem>>, vector<1x16x16x128xbf16>
    %c0_38 = arith.constant 0 : index
    %c1_39 = arith.constant 1 : index
    %c8_40 = arith.constant 8 : index
    %c0_41 = arith.constant 0 : index
    %18 = vector.load %arg9[%c0_38, %c1_39, %c8_40, %c0_41] : memref<1x18x32x128xbf16, #tpu.memory_space<vmem>>, vector<1x16x16x128xbf16>
    %c0_42 = arith.constant 0 : index
    %c1_43 = arith.constant 1 : index
    %c9_44 = arith.constant 9 : index
    %c0_45 = arith.constant 0 : index
    %19 = vector.load %arg9[%c0_42, %c1_43, %c9_44, %c0_45] : memref<1x18x32x128xbf16, #tpu.memory_space<vmem>>, vector<1x16x16x128xbf16>
    %20 = tpu.concatenate %17, %18, %19 in 3 : vector<1x16x16x128xbf16>, vector<1x16x16x128xbf16>, vector<1x16x16x128xbf16> -> vector<1x16x16x384xbf16>
    %21 = vector.shape_cast %20 : vector<1x16x16x384xbf16> to vector<256x384xbf16>
    %c1_46 = arith.constant 1 : index
    %c0_47 = arith.constant 0 : index
    %c0_48 = arith.constant 0 : index
    %22 = vector.load %arg2[%c1_46, %c0_47, %c0_48] : memref<3x384x128xbf16, #tpu.memory_space<vmem>>, vector<1x384x128xbf16>
    %23 = vector.shape_cast %22 : vector<1x384x128xbf16> to vector<384x128xbf16>
    %cst_49 = arith.constant dense<0.000000e+00> : vector<256x128xf32>
    %24 = tpu.matmul %21, %23, %cst_49 {dimension_numbers = #tpu.dot_dimension_numbers<[1], [0], [0], [1], [0, 0, 1, 1], [], []>} : vector<256x384xbf16>, vector<384x128xbf16>, vector<256x128xf32> -> vector<256x128xf32>
    %25 = arith.addf %16, %24 : vector<256x128xf32>
    %c0_50 = arith.constant 0 : index
    %c2 = arith.constant 2 : index
    %c7_51 = arith.constant 7 : index
    %c0_52 = arith.constant 0 : index
    %26 = vector.load %arg9[%c0_50, %c2, %c7_51, %c0_52] : memref<1x18x32x128xbf16, #tpu.memory_space<vmem>>, vector<1x16x16x128xbf16>
    %c0_53 = arith.constant 0 : index
    %c2_54 = arith.constant 2 : index
    %c8_55 = arith.constant 8 : index
    %c0_56 = arith.constant 0 : index
    %27 = vector.load %arg9[%c0_53, %c2_54, %c8_55, %c0_56] : memref<1x18x32x128xbf16, #tpu.memory_space<vmem>>, vector<1x16x16x128xbf16>
    %c0_57 = arith.constant 0 : index
    %c2_58 = arith.constant 2 : index
    %c9_59 = arith.constant 9 : index
    %c0_60 = arith.constant 0 : index
    %28 = vector.load %arg9[%c0_57, %c2_58, %c9_59, %c0_60] : memref<1x18x32x128xbf16, #tpu.memory_space<vmem>>, vector<1x16x16x128xbf16>
    %29 = tpu.concatenate %26, %27, %28 in 3 : vector<1x16x16x128xbf16>, vector<1x16x16x128xbf16>, vector<1x16x16x128xbf16> -> vector<1x16x16x384xbf16>
    %30 = vector.shape_cast %29 : vector<1x16x16x384xbf16> to vector<256x384xbf16>
    %c2_61 = arith.constant 2 : index
    %c0_62 = arith.constant 0 : index
    %c0_63 = arith.constant 0 : index
    %31 = vector.load %arg2[%c2_61, %c0_62, %c0_63] : memref<3x384x128xbf16, #tpu.memory_space<vmem>>, vector<1x384x128xbf16>
    %32 = vector.shape_cast %31 : vector<1x384x128xbf16> to vector<384x128xbf16>
    %cst_64 = arith.constant dense<0.000000e+00> : vector<256x128xf32>
    %33 = tpu.matmul %30, %32, %cst_64 {dimension_numbers = #tpu.dot_dimension_numbers<[1], [0], [0], [1], [0, 0, 1, 1], [], []>} : vector<256x384xbf16>, vector<384x128xbf16>, vector<256x128xf32> -> vector<256x128xf32>
    %34 = arith.addf %25, %33 : vector<256x128xf32>
    %c0_65 = arith.constant 0 : index
    %c0_66 = arith.constant 0 : index
    %35 = vector.load %arg4[%c0_65, %c0_66] : memref<1x128xf32, #tpu.memory_space<vmem>>, vector<1x128xf32>
    %36 = vector.broadcast %35 : vector<1x128xf32> to vector<256x128xf32>
    %37 = arith.mulf %34, %36 : vector<256x128xf32>
    %c0_67 = arith.constant 0 : index
    %c0_68 = arith.constant 0 : index
    %38 = vector.load %arg5[%c0_67, %c0_68] : memref<1x128xf32, #tpu.memory_space<vmem>>, vector<1x128xf32>
    %39 = vector.broadcast %38 : vector<1x128xf32> to vector<256x128xf32>
    %40 = arith.addf %37, %39 : vector<256x128xf32>
    %cst_69 = arith.constant 0.000000e+00 : f32
    %41 = vector.broadcast %cst_69 : f32 to vector<256x128xf32>
    %42 = arith.maximumf %40, %41 : vector<256x128xf32>
    %cst_70 = arith.constant 0.000000e+00 : bf16
    %43 = vector.broadcast %cst_70 : bf16 to vector<1x1x32x128xbf16>
    %c0_71 = arith.constant 0 : index
    %c0_72 = arith.constant 0 : index
    %c0_73 = arith.constant 0 : index
    %c0_74 = arith.constant 0 : index
    %44 = vector.load %arg10[%c0_71, %c0_72, %c0_73, %c0_74] : memref<1x18x32x128xbf16, #tpu.memory_space<vmem>>, vector<1x1x32x128xbf16>
    tpu.vector_store %arg10[%c0_71, %c0_72, %c0_73, %c0_74], %43 {strides = array<i32>} : memref<1x18x32x128xbf16, #tpu.memory_space<vmem>>, vector<1x1x32x128xbf16>,
    %c0_75 = arith.constant 0 : index
    %c17_76 = arith.constant 17 : index
    %c0_77 = arith.constant 0 : index
    %c0_78 = arith.constant 0 : index
    %45 = vector.load %arg10[%c0_75, %c17_76, %c0_77, %c0_78] : memref<1x18x32x128xbf16, #tpu.memory_space<vmem>>, vector<1x1x32x128xbf16>
    tpu.vector_store %arg10[%c0_75, %c17_76, %c0_77, %c0_78], %43 {strides = array<i32>} : memref<1x18x32x128xbf16, #tpu.memory_space<vmem>>, vector<1x1x32x128xbf16>,
    %cst_79 = arith.constant 0.000000e+00 : bf16
    %46 = vector.broadcast %cst_79 : bf16 to vector<1x18x1x128xbf16>
    %c0_80 = arith.constant 0 : index
    %c0_81 = arith.constant 0 : index
    %c7_82 = arith.constant 7 : index
    %c0_83 = arith.constant 0 : index
    %47 = vector.load %arg10[%c0_80, %c0_81, %c7_82, %c0_83] : memref<1x18x32x128xbf16, #tpu.memory_space<vmem>>, vector<1x18x1x128xbf16>
    tpu.vector_store %arg10[%c0_80, %c0_81, %c7_82, %c0_83], %46 {strides = array<i32>} : memref<1x18x32x128xbf16, #tpu.memory_space<vmem>>, vector<1x18x1x128xbf16>,
    %c0_84 = arith.constant 0 : index
    %c0_85 = arith.constant 0 : index
    %c24_86 = arith.constant 24 : index
    %c0_87 = arith.constant 0 : index
    %48 = vector.load %arg10[%c0_84, %c0_85, %c24_86, %c0_87] : memref<1x18x32x128xbf16, #tpu.memory_space<vmem>>, vector<1x18x1x128xbf16>
    tpu.vector_store %arg10[%c0_84, %c0_85, %c24_86, %c0_87], %46 {strides = array<i32>} : memref<1x18x32x128xbf16, #tpu.memory_space<vmem>>, vector<1x18x1x128xbf16>,
    %49 = vector.shape_cast %42 : vector<256x128xf32> to vector<1x16x16x128xf32>
    %50 = arith.truncf %49 : vector<1x16x16x128xf32> to vector<1x16x16x128xbf16>
    %c0_88 = arith.constant 0 : index
    %c1_89 = arith.constant 1 : index
    %c8_90 = arith.constant 8 : index
    %c0_91 = arith.constant 0 : index
    %51 = vector.load %arg10[%c0_88, %c1_89, %c8_90, %c0_91] : memref<1x18x32x128xbf16, #tpu.memory_space<vmem>>, vector<1x16x16x128xbf16>
    tpu.vector_store %arg10[%c0_88, %c1_89, %c8_90, %c0_91], %50 {strides = array<i32>} : memref<1x18x32x128xbf16, #tpu.memory_space<vmem>>, vector<1x16x16x128xbf16>,
    %c0_92 = arith.constant 0 : index
    %c0_93 = arith.constant 0 : index
    %c7_94 = arith.constant 7 : index
    %c0_95 = arith.constant 0 : index
    %52 = vector.load %arg10[%c0_92, %c0_93, %c7_94, %c0_95] : memref<1x18x32x128xbf16, #tpu.memory_space<vmem>>, vector<1x16x16x128xbf16>
    %c0_96 = arith.constant 0 : index
    %c0_97 = arith.constant 0 : index
    %c8_98 = arith.constant 8 : index
    %c0_99 = arith.constant 0 : index
    %53 = vector.load %arg10[%c0_96, %c0_97, %c8_98, %c0_99] : memref<1x18x32x128xbf16, #tpu.memory_space<vmem>>, vector<1x16x16x128xbf16>
    %c0_100 = arith.constant 0 : index
    %c0_101 = arith.constant 0 : index
    %c9_102 = arith.constant 9 : index
    %c0_103 = arith.constant 0 : index
    %54 = vector.load %arg10[%c0_100, %c0_101, %c9_102, %c0_103] : memref<1x18x32x128xbf16, #tpu.memory_space<vmem>>, vector<1x16x16x128xbf16>
    %55 = tpu.concatenate %52, %53, %54 in 3 : vector<1x16x16x128xbf16>, vector<1x16x16x128xbf16>, vector<1x16x16x128xbf16> -> vector<1x16x16x384xbf16>
    %56 = vector.shape_cast %55 : vector<1x16x16x384xbf16> to vector<256x384xbf16>
    %c0_104 = arith.constant 0 : index
    %c0_105 = arith.constant 0 : index
    %c0_106 = arith.constant 0 : index
    %57 = vector.load %arg3[%c0_104, %c0_105, %c0_106] : memref<3x384x128xbf16, #tpu.memory_space<vmem>>, vector<1x384x128xbf16>
    %58 = vector.shape_cast %57 : vector<1x384x128xbf16> to vector<384x128xbf16>
    %cst_107 = arith.constant dense<0.000000e+00> : vector<256x128xf32>
    %59 = tpu.matmul %56, %58, %cst_107 {dimension_numbers = #tpu.dot_dimension_numbers<[1], [0], [0], [1], [0, 0, 1, 1], [], []>} : vector<256x384xbf16>, vector<384x128xbf16>, vector<256x128xf32> -> vector<256x128xf32>
    %c0_108 = arith.constant 0 : index
    %c1_109 = arith.constant 1 : index
    %c7_110 = arith.constant 7 : index
    %c0_111 = arith.constant 0 : index
    %60 = vector.load %arg10[%c0_108, %c1_109, %c7_110, %c0_111] : memref<1x18x32x128xbf16, #tpu.memory_space<vmem>>, vector<1x16x16x128xbf16>
    %c0_112 = arith.constant 0 : index
    %c1_113 = arith.constant 1 : index
    %c8_114 = arith.constant 8 : index
    %c0_115 = arith.constant 0 : index
    %61 = vector.load %arg10[%c0_112, %c1_113, %c8_114, %c0_115] : memref<1x18x32x128xbf16, #tpu.memory_space<vmem>>, vector<1x16x16x128xbf16>
    %c0_116 = arith.constant 0 : index
    %c1_117 = arith.constant 1 : index
    %c9_118 = arith.constant 9 : index
    %c0_119 = arith.constant 0 : index
    %62 = vector.load %arg10[%c0_116, %c1_117, %c9_118, %c0_119] : memref<1x18x32x128xbf16, #tpu.memory_space<vmem>>, vector<1x16x16x128xbf16>
    %63 = tpu.concatenate %60, %61, %62 in 3 : vector<1x16x16x128xbf16>, vector<1x16x16x128xbf16>, vector<1x16x16x128xbf16> -> vector<1x16x16x384xbf16>
    %64 = vector.shape_cast %63 : vector<1x16x16x384xbf16> to vector<256x384xbf16>
    %c1_120 = arith.constant 1 : index
    %c0_121 = arith.constant 0 : index
    %c0_122 = arith.constant 0 : index
    %65 = vector.load %arg3[%c1_120, %c0_121, %c0_122] : memref<3x384x128xbf16, #tpu.memory_space<vmem>>, vector<1x384x128xbf16>
    %66 = vector.shape_cast %65 : vector<1x384x128xbf16> to vector<384x128xbf16>
    %cst_123 = arith.constant dense<0.000000e+00> : vector<256x128xf32>
    %67 = tpu.matmul %64, %66, %cst_123 {dimension_numbers = #tpu.dot_dimension_numbers<[1], [0], [0], [1], [0, 0, 1, 1], [], []>} : vector<256x384xbf16>, vector<384x128xbf16>, vector<256x128xf32> -> vector<256x128xf32>
    %68 = arith.addf %59, %67 : vector<256x128xf32>
    %c0_124 = arith.constant 0 : index
    %c2_125 = arith.constant 2 : index
    %c7_126 = arith.constant 7 : index
    %c0_127 = arith.constant 0 : index
    %69 = vector.load %arg10[%c0_124, %c2_125, %c7_126, %c0_127] : memref<1x18x32x128xbf16, #tpu.memory_space<vmem>>, vector<1x16x16x128xbf16>
    %c0_128 = arith.constant 0 : index
    %c2_129 = arith.constant 2 : index
    %c8_130 = arith.constant 8 : index
    %c0_131 = arith.constant 0 : index
    %70 = vector.load %arg10[%c0_128, %c2_129, %c8_130, %c0_131] : memref<1x18x32x128xbf16, #tpu.memory_space<vmem>>, vector<1x16x16x128xbf16>
    %c0_132 = arith.constant 0 : index
    %c2_133 = arith.constant 2 : index
    %c9_134 = arith.constant 9 : index
    %c0_135 = arith.constant 0 : index
    %71 = vector.load %arg10[%c0_132, %c2_133, %c9_134, %c0_135] : memref<1x18x32x128xbf16, #tpu.memory_space<vmem>>, vector<1x16x16x128xbf16>
    %72 = tpu.concatenate %69, %70, %71 in 3 : vector<1x16x16x128xbf16>, vector<1x16x16x128xbf16>, vector<1x16x16x128xbf16> -> vector<1x16x16x384xbf16>
    %73 = vector.shape_cast %72 : vector<1x16x16x384xbf16> to vector<256x384xbf16>
    %c2_136 = arith.constant 2 : index
    %c0_137 = arith.constant 0 : index
    %c0_138 = arith.constant 0 : index
    %74 = vector.load %arg3[%c2_136, %c0_137, %c0_138] : memref<3x384x128xbf16, #tpu.memory_space<vmem>>, vector<1x384x128xbf16>
    %75 = vector.shape_cast %74 : vector<1x384x128xbf16> to vector<384x128xbf16>
    %cst_139 = arith.constant dense<0.000000e+00> : vector<256x128xf32>
    %76 = tpu.matmul %73, %75, %cst_139 {dimension_numbers = #tpu.dot_dimension_numbers<[1], [0], [0], [1], [0, 0, 1, 1], [], []>} : vector<256x384xbf16>, vector<384x128xbf16>, vector<256x128xf32> -> vector<256x128xf32>
    %77 = arith.addf %68, %76 : vector<256x128xf32>
    %c0_140 = arith.constant 0 : index
    %c0_141 = arith.constant 0 : index
    %c0_142 = arith.constant 0 : index
    %c0_143 = arith.constant 0 : index
    %78 = vector.load %arg1[%c0_140, %c0_141, %c0_142, %c0_143] : memref<1x16x16x128xf32, #tpu.memory_space<vmem>>, vector<1x16x16x128xf32>
    %79 = vector.shape_cast %78 : vector<1x16x16x128xf32> to vector<256x128xf32>
    %c0_144 = arith.constant 0 : index
    %c0_145 = arith.constant 0 : index
    %80 = vector.load %arg6[%c0_144, %c0_145] : memref<1x128xf32, #tpu.memory_space<vmem>>, vector<1x128xf32>
    %81 = vector.broadcast %80 : vector<1x128xf32> to vector<256x128xf32>
    %82 = arith.mulf %77, %81 : vector<256x128xf32>
    %c0_146 = arith.constant 0 : index
    %c0_147 = arith.constant 0 : index
    %83 = vector.load %arg7[%c0_146, %c0_147] : memref<1x128xf32, #tpu.memory_space<vmem>>, vector<1x128xf32>
    %84 = vector.broadcast %83 : vector<1x128xf32> to vector<256x128xf32>
    %85 = arith.addf %82, %84 : vector<256x128xf32>
    %86 = arith.addf %85, %79 : vector<256x128xf32>
    %cst_148 = arith.constant 0.000000e+00 : f32
    %87 = vector.broadcast %cst_148 : f32 to vector<256x128xf32>
    %88 = arith.maximumf %86, %87 : vector<256x128xf32>
    %89 = vector.shape_cast %88 : vector<256x128xf32> to vector<1x16x16x128xf32>
    %c0_149 = arith.constant 0 : index
    %c0_150 = arith.constant 0 : index
    %c0_151 = arith.constant 0 : index
    %c0_152 = arith.constant 0 : index
    %90 = vector.load %arg8[%c0_149, %c0_150, %c0_151, %c0_152] : memref<1x16x16x128xf32, #tpu.memory_space<vmem>>, vector<1x16x16x128xf32>
    tpu.vector_store %arg8[%c0_149, %c0_150, %c0_151, %c0_152], %89 {strides = array<i32>} : memref<1x16x16x128xf32, #tpu.memory_space<vmem>>, vector<1x16x16x128xf32>,
    return
  }
  func.func @transform_0(%arg0: i32) -> (i32, i32, i32, i32) {
    %c0_i32 = arith.constant 0 : i32
    %c0_i32_0 = arith.constant 0 : i32
    %c0_i32_1 = arith.constant 0 : i32
    %c0_i32_2 = arith.constant 0 : i32
    return %arg0, %c0_i32, %c0_i32_0, %c0_i32_1 : i32, i32, i32, i32
  }
  func.func @transform_1(%arg0: i32) -> (i32, i32, i32) {
    %c0_i32 = arith.constant 0 : i32
    %c0_i32_0 = arith.constant 0 : i32
    %c0_i32_1 = arith.constant 0 : i32
    %c0_i32_2 = arith.constant 0 : i32
    return %c0_i32, %c0_i32_0, %c0_i32_1 : i32, i32, i32
  }
  func.func @transform_2(%arg0: i32) -> (i32, i32, i32) {
    %c0_i32 = arith.constant 0 : i32
    %c0_i32_0 = arith.constant 0 : i32
    %c0_i32_1 = arith.constant 0 : i32
    %c0_i32_2 = arith.constant 0 : i32
    return %c0_i32, %c0_i32_0, %c0_i32_1 : i32, i32, i32
  }
  func.func @transform_3(%arg0: i32) -> (i32, i32) {
    %c0_i32 = arith.constant 0 : i32
    %c0_i32_0 = arith.constant 0 : i32
    %c0_i32_1 = arith.constant 0 : i32
    return %c0_i32, %c0_i32_0 : i32, i32
  }
  func.func @transform_4(%arg0: i32) -> (i32, i32) {
    %c0_i32 = arith.constant 0 : i32
    %c0_i32_0 = arith.constant 0 : i32
    %c0_i32_1 = arith.constant 0 : i32
    return %c0_i32, %c0_i32_0 : i32, i32
  }
  func.func @transform_5(%arg0: i32) -> (i32, i32) {
    %c0_i32 = arith.constant 0 : i32
    %c0_i32_0 = arith.constant 0 : i32
    %c0_i32_1 = arith.constant 0 : i32
    return %c0_i32, %c0_i32_0 : i32, i32
  }
  func.func @transform_6(%arg0: i32) -> (i32, i32) {
    %c0_i32 = arith.constant 0 : i32
    %c0_i32_0 = arith.constant 0 : i32
    %c0_i32_1 = arith.constant 0 : i32
    return %c0_i32, %c0_i32_0 : i32, i32
  }
  func.func @transform_7(%arg0: i32) -> (i32, i32, i32, i32) {
    %c0_i32 = arith.constant 0 : i32
    %c0_i32_0 = arith.constant 0 : i32
    %c0_i32_1 = arith.constant 0 : i32
    %c0_i32_2 = arith.constant 0 : i32
    return %arg0, %c0_i32, %c0_i32_0, %c0_i32_1 : i32, i32, i32, i32
  }
}

</mosaic_0001>

<bundles_post_ra>
// kernel: resnet_block_forward.1
= control target key start
LH: loop header
LB: loop body
LE: loop exit
PB: predicated region body
PF: predicated region fallthrough
CT: control target
= control target key end

     0   :  { %s12364_s24 = smov 0   ;;  %s15707_s0 = inlined_call_operand.vmem [shape: f32[2,16,16,128], index: 0, kind: input, shape index: {}]   ;;  %s15708_s1 = inlined_call_operand.vmem [shape: bf16[3,384,128], index: 1, kind: input, shape index: {}]   ;;  %s15709_s2 = inlined_call_operand.vmem [shape: bf16[3,384,128], index: 2, kind: input, shape index: {}]   ;;  %s15710_s3 = inlined_call_operand.vmem [shape: f32[1,128], index: 3, kind: input, shape index: {}]   ;;  %s15711_s4 = inlined_call_operand.vmem [shape: f32[1,128], index: 4, kind: input, shape index: {}]   ;;  %s15712_s5 = inlined_call_operand.vmem [shape: f32[1,128], index: 5, kind: input, shape index: {}]   ;;  %s15713_s6 = inlined_call_operand.vmem [shape: f32[1,128], index: 6, kind: input, shape index: {}]   ;;  %s15714_s7 = inlined_call_operand.vmem [shape: f32[2,16,16,128], index: 7, kind: output, shape index: {}]  }
   0x1 LB: > { %s10875_s25 = sadd.s32 4294967295, %s12321_s24   ;;  %p10879_p0 = scmp.ge.s32.totalorder %s12321_s24, 1  ;;  %s12321_s24 = sphi %s12364_s24, %s17_s24  }
   0x2   : > { %p237_p1 = scmp.lt.s32.totalorder %s12321_s24, 3 }
   0x4   : > { %p238_p2 = pnand %p10879_p0, %p237_p1 }
   0x6   : > { %241 = sbr.rel (%p238_p2) target bundleno = 1524 (0x5f4), region = 48 }
   0xb   : > { %v11687_v0 = vld [vmem:[%s15708_s1 + $0xf8] sm:$0xff]  ;;  %p269_p3 = scmp.lt.s32.totalorder %s10875_s25, 1  ;;  %v11686_v2 = vld [vmem:[%s15708_s1 + $0xf0] sm:$0xff]  ;;  %vm289_vm0 = vcmask 1043459   ;;  %vm290_vm1 = vsmask.f32 7950 }
   0xc   : > { %v11695_v1 = vld [vmem:[%s15708_s1 + $0x138] sm:$0xff]  ;;  %3079 = vmatpush.bf16.msra.mxu0 %v11687_v0  ;;  %11800 = vmatpush.bf16.msra.mxu2 %v11687_v0  ;;  %v11694_v3 = vld [vmem:[%s15708_s1 + $0x130] sm:$0xff]  ;;  %v11685_v4 = vld [vmem:[%s15708_s1 + $0xe8] sm:$0xff]  ;;  %v15739_v6 = vmov 0  ;;  %vm933_vm3 = vsmask.f32 4352 }
   0xd   : > { %s16004_s25 = smov (!%p269_p3, %s10875_s25), 1  ;;  %3168 = vmatpush.bf16.msra.mxu1 %v11695_v1  ;;  %11808 = vmatpush.bf16.msra.mxu3 %v11695_v1  ;;  %v11693_v5 = vld [vmem:[%s15708_s1 + $0x128] sm:$0xff]  ;;  %vm12400_vm2 = vmand %vm289_vm0, %vm290_vm1  ;;  %v295_v7 = vld [vmem:[#allocation2 + $0x10] sm:$0x8]  ;;  %vm346_vm4 = vcmask 1040384   ;;  %vm884_vm7 = vcmask 1042432  }
   0xe   : > { %s11654_s13 = sshll.u32 %s16004_s25, 8  ;;  %v15740_v6 = vsel %vm12400_vm2, 4294967295, %v15739_v6  ;;  %v296_v8 = vsel %vm12400_vm2, 0, %v295_v7  ;;  %v319_v11 = vld [vmem:[#allocation2 + $0x90] sm:$0x8]  ;;  %v11684_v22 = vld [vmem:[%s15708_s1 + $0xe0] sm:$0xff] }
   0xf   : > { %s12398_s18 = scalar_lea.vmem %s15707_s0, %s11654_s13  ;;  %15741 = vst [vmem:[#allocation4_spill] sm:$0xff] %v15740_v6  ;;  %v320_v14 = vsel %vm12400_vm2, 0, %v319_v11  ;;  %v298_v20 = vld [vmem:[#allocation2 + $0x20] sm:$0x8]  ;;  %v11683_v32 = vld [vmem:[%s15708_s1 + $0xd8] sm:$0xff]  ;;  %v11682_v46 = vld [vmem:[%s15708_s1 + $0xd0] sm:$0xff]  ;;  %s15428_s30 = scalar_lea.vmem %s15714_s7, %s11654_s13 }
  0x10   : > { %3080 = vmatpush.bf16.msra.mxu0 %v11686_v2  ;;  %11801 = vmatpush.bf16.msra.mxu2 %v11686_v2  ;;  %v403_v9 = vld [vmem:[%s12398_s18] sm:$0xff]  ;;  %v404_v10 = vld [vmem:[%s12398_s18 + $0x8] sm:$0xff]  ;;  %297 = vst [vmem:[#allocation2 + $0x10] sm:$0x8] %v296_v8  ;;  %v405_v17 = vld [vmem:[%s12398_s18 + $0x10] sm:$0xff]  ;;  %v299_v25 = vsel %vm12400_vm2, 0, %v298_v20 }
  0x11   : > { %3169 = vmatpush.bf16.msra.mxu1 %v11694_v3  ;;  %11809 = vmatpush.bf16.msra.mxu3 %v11694_v3  ;;  %v435_v12 = vpack.c.bf16 %v403_v9, %v403_v9  ;;  %v436_v13 = vpack.c.bf16 %v404_v10, %v404_v10  ;;  %v419_v15 = vld [vmem:[%s12398_s18 + $0x80] sm:$0xff]  ;;  %v420_v16 = vld [vmem:[%s12398_s18 + $0x88] sm:$0xff]  ;;  %321 = vst [vmem:[#allocation2 + $0x90] sm:$0x8] %v320_v14  ;;  %v406_v21 = vld [vmem:[%s12398_s18 + $0x18] sm:$0xff] }
  0x12   : > { %v451_v18 = vpack.c.bf16 %v419_v15, %v419_v15  ;;  %v452_v19 = vpack.c.bf16 %v420_v16, %v420_v16  ;;  %v11692_v23 = vld [vmem:[%s15708_s1 + $0x120] sm:$0xff]  ;;  %v421_v24 = vld [vmem:[%s12398_s18 + $0x90] sm:$0xff]  ;;  %v437_v26 = vpack.c.bf16 %v405_v17, %v405_v17  ;;  %v422_v28 = vld [vmem:[%s12398_s18 + $0x98] sm:$0xff]  ;;  %v438_v29 = vpack.c.bf16 %v406_v21, %v406_v21  ;;  %300 = vst [vmem:[#allocation2 + $0x20] sm:$0x8] %v299_v25 }
  0x13   : > { %468 = vst [vmem:[#allocation2 + $0x14] sm:$0xf] %v435_v12  ;;  %v322_v27 = vld [vmem:[#allocation2 + $0xa0] sm:$0x8]  ;;  %v453_v31 = vpack.c.bf16 %v421_v24, %v421_v24  ;;  %v454_v34 = vpack.c.bf16 %v422_v28, %v422_v28  ;;  %v11691_v35 = vld [vmem:[%s15708_s1 + $0x118] sm:$0xff]  ;;  %v408_v37 = vld [vmem:[%s12398_s18 + $0x28] sm:$0xff] }
  0x14   : > { %3081 = vmatpush.bf16.msra.mxu0 %v11685_v4  ;;  %11802 = vmatpush.bf16.msra.mxu2 %v11685_v4  ;;  %469 = vst [vmem:[#allocation2 + $0x18] sm:$0xf] %v436_v13  ;;  %v323_v30 = vsel %vm12400_vm2, 0, %v322_v27  ;;  %v407_v36 = vld [vmem:[%s12398_s18 + $0x20] sm:$0xff]  ;;  %v440_v40 = vpack.c.bf16 %v408_v37, %v408_v37  ;;  %v424_v42 = vld [vmem:[%s12398_s18 + $0xa8] sm:$0xff]  ;;  %v11690_v48 = vld [vmem:[%s15708_s1 + $0x110] sm:$0xff] }
  0x15   : > { %3170 = vmatpush.bf16.msra.mxu1 %v11693_v5  ;;  %11810 = vmatpush.bf16.msra.mxu3 %v11693_v5  ;;  %484 = vst [vmem:[#allocation2 + $0x94] sm:$0xf] %v451_v18  ;;  %v439_v39 = vpack.c.bf16 %v407_v36, %v407_v36  ;;  %v423_v41 = vld [vmem:[%s12398_s18 + $0xa0] sm:$0xff]  ;;  %v456_v51 = vpack.c.bf16 %v424_v42, %v424_v42  ;;  %v11681_v56 = vld [vmem:[%s15708_s1 + $0xc8] sm:$0xff]  ;;  %v11663_v27 = vld [vmem:[%s15708_s1 + $0x38] sm:$0xff] }
  0x16   : > { %485 = vst [vmem:[#allocation2 + $0x98] sm:$0xf] %v452_v19  ;;  %v455_v45 = vpack.c.bf16 %v423_v41, %v423_v41  ;;  %v11689_v61 = vld [vmem:[%s15708_s1 + $0x108] sm:$0xff]  ;;  %v11680_v13 = vld [vmem:[%s15708_s1 + $0xc0] sm:$0xff]  ;;  %v11671_v37 = vld [vmem:[%s15708_s1 + $0x78] sm:$0xff] }
  0x17   : > { %v12001_v33 = vld [vmem:[#allocation2 + $0x10] sm:$0x8]  ;;  %470 = vst [vmem:[#allocation2 + $0x24] sm:$0xf] %v437_v26  ;;  %v11688_v19 = vld [vmem:[%s15708_s1 + $0x100] sm:$0xff]  ;;  %v11703_v26 = vld [vmem:[%s15708_s1 + $0x178] sm:$0xff] }
  0x18   : > { %3082 = vmatpush.bf16.msra.mxu0 %v11684_v22  ;;  %11803 = vmatpush.bf16.msra.mxu2 %v11684_v22  ;;  %471 = vst [vmem:[#allocation2 + $0x28] sm:$0xf] %v438_v29  ;;  %v12005_v38 = vld [vmem:[#allocation2 + $0x90] sm:$0x8]  ;;  %vm347_vm5 = vsmask.f32 256 }
  0x19   : > { %3171 = vmatpush.bf16.msra.mxu1 %v11692_v23  ;;  %11811 = vmatpush.bf16.msra.mxu3 %v11692_v23  ;;  %324 = vst [vmem:[#allocation2 + $0xa0] sm:$0x8] %v323_v30  ;;  %v12447_v54 = vld [vmem:[#allocation2 + $0x20] sm:$0x8]  ;;  %vm12675_vm6 = vmand %vm346_vm4, %vm347_vm5  ;;  %v376_v6 = vld [vmem:[#allocation2 + $0x9c] sm:$0x1] }
  0x1a   : > { %v12263_v44 = vld [vmem:[#allocation2 + $0x10] sm:$0xf0]   ;;  %486 = vst [vmem:[#allocation2 + $0xa4] sm:$0xf] %v453_v31 }
  0x1b   : > { %v12436_v43 = vld [vmem:[#allocation2 + $0x14] sm:$0xff]   ;;  %487 = vst [vmem:[#allocation2 + $0xa8] sm:$0xf] %v454_v34  ;;  %v12002_v52 = vor.u32 %v12263_v44, %v12001_v33 }
  0x1c   : > { %3083 = vmatpush.bf16.msra.mxu0 %v11683_v32  ;;  %11804 = vmatpush.bf16.msra.mxu2 %v11683_v32  ;;  %v1832_v47 = vunpack.c.h.b16 %v12436_v43  ;;  %v12264_v50 = vld [vmem:[#allocation2 + $0x90] sm:$0xf0]   ;;  %472 = vst [vmem:[#allocation2 + $0x34] sm:$0xf] %v439_v39  ;;  %v1927_v0 = vshrl.u32 %v12436_v43, 16  ;;  %v1930_v1 = vshll.u32 %v12436_v43, 16 }
  0x1d   : > { %3172 = vmatpush.bf16.msra.mxu1 %v11691_v35  ;;  %11812 = vmatpush.bf16.msra.mxu3 %v11691_v35  ;;  %v12445_v49 = vld [vmem:[#allocation2 + $0x94] sm:$0xff]   ;;  %473 = vst [vmem:[#allocation2 + $0x38] sm:$0xf] %v440_v40  ;;  %v2151_v57 = vshrl.u32 %v12002_v52, 16  ;;  %v2154_v58 = vshll.u32 %v12002_v52, 16  ;;  %v12006_v62 = vor.u32 %v12264_v50, %v12005_v38 }
  0x1e   : > { %v1879_v53 = vpack.c.b16 %v1832_v47, %v1832_v47  ;;  %v1856_v55 = vunpack.c.h.b16 %v12445_v49  ;;  %488 = vst [vmem:[#allocation2 + $0xb4] sm:$0xf] %v455_v45  ;;  %v12265_v12 = vld [vmem:[#allocation2 + $0x20] sm:$0xf0]   ;;  %v1929_v16 = vrot.slane %v1927_v0, 4  ;;  %v1932_v17 = vrot.slane %v1930_v1, 5 }
  0x1f   : > { %489 = vst [vmem:[#allocation2 + $0xb8] sm:$0xf] %v456_v51  ;;  %v2153_v2 = vrot.slane %v2151_v57, 3  ;;  %v2156_v3 = vrot.slane %v2154_v58, 4  ;;  %v2495_v7 = vshrl.u32 %v12006_v62, 16  ;;  %v2498_v8 = vshll.u32 %v12006_v62, 16 }
  0x20   : > { %3084 = vmatpush.bf16.msra.mxu0 %v11682_v46  ;;  %11805 = vmatpush.bf16.msra.mxu2 %v11682_v46  ;;  %v2159_v59 = vshrl.u32 %v1879_v53, 16  ;;  %v2162_v60 = vshll.u32 %v1879_v53, 16  ;;  %v1895_v63 = vpack.c.b16 %v1856_v55, %v1856_v55  ;;  %v12458_v11 = vld [vmem:[#allocation2 + $0x24] sm:$0xff]   ;;  %v12013_v18 = vld [vmem:[#allocation2 + $0xa0] sm:$0x8]  ;;  %v1933_v25 = vor.u32 %v1932_v17, %v1929_v16  ;;  %v11702_v46 = vld [vmem:[%s15708_s1 + $0x170] sm:$0xff] }
  0x21   : > { %3173 = vmatpush.bf16.msra.mxu1 %v11690_v48  ;;  %11813 = vmatpush.bf16.msra.mxu3 %v11690_v48  ;;  %v2157_v14 = vor.u32 %v2156_v3, %v2153_v2  ;;  %v2497_v20 = vrot.slane %v2495_v7, 3  ;;  %v2500_v21 = vrot.slane %v2498_v8, 4  ;;  %v12266_v29 = vld [vmem:[#allocation2 + $0xa0] sm:$0xf0]   ;;  %v1835_v32 = vunpack.c.h.b16 %v12458_v11  ;;  %v11662_v52 = vld [vmem:[%s15708_s1 + $0x30] sm:$0xff] }
  0x22   : > { %v2161_v4 = vrot.slane %v2159_v59, 3  ;;  %v2164_v5 = vrot.slane %v2162_v60, 4  ;;  %v2503_v9 = vshrl.u32 %v1895_v63, 16  ;;  %v2506_v10 = vshll.u32 %v1895_v63, 16  ;;  %v12473_v28 = vld [vmem:[#allocation2 + $0xa4] sm:$0xff]   ;;  %v11670_v57 = vld [vmem:[%s15708_s1 + $0x70] sm:$0xff] }
  0x23   : > { %v2501_v30 = vor.u32 %v2500_v21, %v2497_v20  ;;  %v2168_v33 = vshrl.u32 %v1933_v25, 16  ;;  %v2171_v34 = vshll.u32 %v1933_v25, 16  ;;  %v1991_v35 = vshrl.u32 %v12445_v49, 16  ;;  %v12497_v17 = vld [vmem:[#allocation2 + $0x30] sm:$0xf0]  }
  0x24   : > { %3085 = vmatpush.bf16.msra.mxu0 %v11681_v56  ;;  %11806 = vmatpush.bf16.msra.mxu2 %v11681_v56  ;;  %v2165_v15 = vor.u32 %v2164_v5, %v2161_v4  ;;  %v2505_v22 = vrot.slane %v2503_v9, 3  ;;  %v2508_v23 = vrot.slane %v2506_v10, 4  ;;  %v1994_v36 = vshll.u32 %v12445_v49, 16  ;;  %v301_v10 = vld [vmem:[#allocation2 + $0x30] sm:$0x8]  ;;  %v12495_v16 = vld [vmem:[#allocation2 + $0x34] sm:$0xff]  }
  0x25   : > { %3174 = vmatpush.bf16.msra.mxu1 %v11689_v61  ;;  %11814 = vmatpush.bf16.msra.mxu3 %v11689_v61  ;;  %v12010_v39 = vor.u32 %v12265_v12, %v12447_v54  ;;  %v1881_v40 = vpack.c.b16 %v1835_v32, %v1835_v32  ;;  %v2170_v41 = vrot.slane %v2168_v33, 3  ;;  %v2173_v42 = vrot.slane %v2171_v34, 4  ;;  %v325_v21 = vld [vmem:[#allocation2 + $0xb0] sm:$0x8]  ;;  %v11701_v33 = vld [vmem:[%s15708_s1 + $0x168] sm:$0xff] }
  0x26   : > { %v2166_v24 = vsel %vm933_vm3, %v2157_v14, %v2165_v15  ;;  %v2509_v31 = vor.u32 %v2508_v23, %v2505_v22  ;;  %v1993_v44 = vrot.slane %v1991_v35, 4  ;;  %v1996_v45 = vrot.slane %v1994_v36, 5  ;;  %v12500_v22 = vld [vmem:[#allocation2 + $0xb4] sm:$0xff]  }
  0x27   : > { %v2194_v47 = vshrl.u32 %v12010_v39, 16  ;;  %v2197_v48 = vshll.u32 %v12010_v39, 16  ;;  %v2202_v50 = vshrl.u32 %v1881_v40, 16  ;;  %v2205_v51 = vshll.u32 %v1881_v40, 16  ;;  %v12502_v23 = vld [vmem:[#allocation2 + $0xb0] sm:$0xf0]  }
  0x28   : > { %3086 = vmatpush.bf16.msra.mxu0 %v11680_v13  ;;  %11807 = vmatpush.bf16.msra.mxu2 %v11680_v13  ;;  %v2510_v38 = vsel %vm933_vm3, %v2501_v30, %v2509_v31  ;;  %v2174_v53 = vor.u32 %v2173_v42, %v2170_v41  ;;  %v1997_v54 = vor.u32 %v1996_v45, %v1993_v44  ;;  %v1859_v55 = vunpack.c.h.b16 %v12473_v28 }
  0x29   : > { %3175 = vmatpush.bf16.msra.mxu1 %v11688_v19  ;;  %11815 = vmatpush.bf16.msra.mxu3 %v11688_v19  ;;  %v12014_v56 = vor.u32 %v12266_v29, %v12013_v18  ;;  %v2196_v58 = vrot.slane %v2194_v47, 3  ;;  %v2199_v59 = vrot.slane %v2197_v48, 4  ;;  %v2204_v60 = vrot.slane %v2202_v50, 3  ;;  %v304_v29 = vld [vmem:[#allocation2 + $0x40] sm:$0x8] }
  0x2a   : > { %v2207_v61 = vrot.slane %v2205_v51, 4  ;;  %v2512_v62 = vshrl.u32 %v1997_v54, 16  ;;  %v2515_v63 = vshll.u32 %v1997_v54, 16  ;;  %v1897_v0 = vpack.c.b16 %v1859_v55, %v1859_v55 }
  0x2b   : > { %3087 = vmatmul.bf16.vlgmr.msra.gmra.mxu0 %v2166_v24  ;;  %3127 = vmatmul.bf16.vlgmr.msra.gmra.mxu2 %v2510_v38  ;;  %v2538_v1 = vshrl.u32 %v12014_v56, 16  ;;  %v2200_v2 = vor.u32 %v2199_v59, %v2196_v58  ;;  %v2541_v4 = vshll.u32 %v12014_v56, 16  ;;  %v1935_v15 = vshrl.u32 %v12458_v11, 16  ;;  %v11669_v38 = vld [vmem:[%s15708_s1 + $0x68] sm:$0xff] }
  0x2c   : > { %3257 = vmatpush.bf16.msrb.mxu2 %v11703_v26  ;;  %3579 = vmatpush.bf16.msrb.mxu0 %v11671_v37  ;;  %v2208_v3 = vor.u32 %v2207_v61, %v2204_v60  ;;  %v2514_v5 = vrot.slane %v2512_v62, 3  ;;  %v2517_v7 = vrot.slane %v2515_v63, 4  ;;  %v2546_v9 = vshrl.u32 %v1897_v0, 16  ;;  %v11661_v37 = vld [vmem:[%s15708_s1 + $0x28] sm:$0xff] }
  0x2d   : > { %3490 = vmatpush.bf16.msrb.mxu3 %v11663_v27  ;;  %3176 = vmatmul.bf16.vlgmr.msra.gmra.mxu1 %v2174_v53  ;;  %v2540_v8 = vrot.slane %v2538_v1, 3  ;;  %v2543_v13 = vrot.slane %v2541_v4, 4  ;;  %v2549_v14 = vshll.u32 %v1897_v0, 16  ;;  %v1938_v20 = vshll.u32 %v12458_v11, 16  ;;  %v409_v4 = vld [vmem:[%s12398_s18 + $0x30] sm:$0xff] }
  0x2e   : > { %v2209_v12 = vsel %vm933_vm3, %v2200_v2, %v2208_v3  ;;  %v2518_v18 = vor.u32 %v2517_v7, %v2514_v5  ;;  %v2548_v19 = vrot.slane %v2546_v9, 3  ;;  %v1937_v26 = vrot.slane %v1935_v15, 4  ;;  %v410_v5 = vld [vmem:[%s12398_s18 + $0x38] sm:$0xff]  ;;  %v328_v15 = vld [vmem:[#allocation2 + $0xc0] sm:$0x8] }
  0x2f   : > { %v2544_v24 = vor.u32 %v2543_v13, %v2540_v8  ;;  %v2551_v25 = vrot.slane %v2549_v14, 4  ;;  %v302_v27 = vsel %vm12400_vm2, 0, %v301_v10  ;;  %v1940_v30 = vrot.slane %v1938_v20, 5 }
  0x30   : > { %3258 = vmatpush.bf16.msrb.mxu2 %v11702_v46  ;;  %3580 = vmatpush.bf16.msrb.mxu0 %v11670_v57  ;;  %v1999_v31 = vshrl.u32 %v12473_v28, 16  ;;  %v2002_v32 = vshll.u32 %v12473_v28, 16  ;;  %303 = vst [vmem:[#allocation2 + $0x30] sm:$0x8] %v302_v27  ;;  %v1838_v35 = vunpack.c.h.b16 %v12495_v16  ;;  %v326_v36 = vsel %vm12400_vm2, 0, %v325_v21 }
  0x31   : > { %3491 = vmatpush.bf16.msrb.mxu3 %v11662_v52  ;;  %v2552_v34 = vor.u32 %v2551_v25, %v2548_v19  ;;  %v1941_v39 = vor.u32 %v1940_v30, %v1937_v26  ;;  %327 = vst [vmem:[#allocation2 + $0xb0] sm:$0x8] %v326_v36  ;;  %v1862_v42 = vunpack.c.h.b16 %v12500_v22  ;;  %v305_v46 = vsel %vm12400_vm2, 0, %v304_v29  ;;  %v425_v29 = vld [vmem:[%s12398_s18 + $0xb0] sm:$0xff] }
  0x32   : > { %3216 = vmatmul.bf16.vlgmr.msra.gmra.mxu3 %v2518_v18  ;;  %v2001_v40 = vrot.slane %v1999_v31, 4  ;;  %v2004_v41 = vrot.slane %v2002_v32, 5  ;;  %v1883_v45 = vpack.c.b16 %v1838_v35, %v1838_v35  ;;  %306 = vst [vmem:[#allocation2 + $0x40] sm:$0x8] %v305_v46  ;;  %v1943_v54 = vshrl.u32 %v12495_v16, 16 }
  0x33   : > { %v2553_v44 = vsel %vm933_vm3, %v2544_v24, %v2552_v34  ;;  %v2211_v47 = vshrl.u32 %v1941_v39, 16  ;;  %v2214_v48 = vshll.u32 %v1941_v39, 16  ;;  %v1899_v51 = vpack.c.b16 %v1862_v42, %v1862_v42  ;;  %v307_v34 = vld [vmem:[#allocation2 + $0x50] sm:$0x8] }
  0x34   : > { %3259 = vmatpush.bf16.msrb.mxu2 %v11701_v33  ;;  %3581 = vmatpush.bf16.msrb.mxu0 %v11669_v38  ;;  %v2005_v50 = vor.u32 %v2004_v41, %v2001_v40  ;;  %v2245_v52 = vshrl.u32 %v1883_v45, 16  ;;  %v2248_v53 = vshll.u32 %v1883_v45, 16  ;;  %v1946_v55 = vshll.u32 %v12495_v16, 16  ;;  %v426_v33 = vld [vmem:[%s12398_s18 + $0xb8] sm:$0xff]  ;;  %v411_v38 = vld [vmem:[%s12398_s18 + $0x40] sm:$0xff] }
  0x35   : > { %3492 = vmatpush.bf16.msrb.mxu3 %v11661_v37  ;;  %v2213_v56 = vrot.slane %v2211_v47, 3  ;;  %v2216_v57 = vrot.slane %v2214_v48, 4  ;;  %v2589_v63 = vshrl.u32 %v1899_v51, 16  ;;  %v2592_v0 = vshll.u32 %v1899_v51, 16  ;;  %v11700_v48 = vld [vmem:[%s15708_s1 + $0x160] sm:$0xff] }
  0x36   : > { %v2555_v58 = vshrl.u32 %v2005_v50, 16  ;;  %v2558_v59 = vshll.u32 %v2005_v50, 16  ;;  %v12526_v61 = vrot.slane %v2245_v52, 3  ;;  %v12528_v62 = vrot.slane %v2248_v53, 4  ;;  %v11660_v50 = vld [vmem:[%s15708_s1 + $0x20] sm:$0xff] }
  0x37   : > { %v11837_v60 = vld [vmem:[#allocation2 + $0x30] sm:$0x8]  ;;  %v2217_v1 = vor.u32 %v2216_v57, %v2213_v56  ;;  %v12532_v8 = vrot.slane %v2589_v63, 3  ;;  %v12534_v9 = vrot.slane %v2592_v0, 4  ;;  %v1945_v10 = vrot.slane %v1943_v54, 4  ;;  %v11668_v51 = vld [vmem:[%s15708_s1 + $0x60] sm:$0xff] }
  0x38   : > { %v2557_v2 = vrot.slane %v2555_v58, 3  ;;  %v2560_v3 = vrot.slane %v2558_v59, 4  ;;  %v11841_v7 = vld [vmem:[#allocation2 + $0xb0] sm:$0x8]  ;;  %v2251_v13 = vor.u32 %v12528_v62, %v12526_v61  ;;  %v1948_v14 = vrot.slane %v1946_v55, 5  ;;  %v412_v54 = vld [vmem:[%s12398_s18 + $0x48] sm:$0xff]  ;;  %3260 = vmatpush.bf16.msrb.mxu2 %v11700_v48  ;;  %3582 = vmatpush.bf16.msrb.mxu0 %v11668_v51 }
  0x39   : > { %v441_v19 = vpack.c.bf16 %v409_v4, %v409_v4  ;;  %v442_v20 = vpack.c.bf16 %v410_v5, %v410_v5  ;;  %v11842_v25 = vor.u32 %v12502_v23, %v11841_v7  ;;  %v12540_v27 = vld [vmem:[#allocation2 + $0x40] sm:$0x8]  ;;  %v2007_v30 = vshrl.u32 %v12500_v22, 16  ;;  %v331_v55 = vld [vmem:[#allocation2 + $0xd0] sm:$0x8]  ;;  %3493 = vmatpush.bf16.msrb.mxu3 %v11660_v50  ;;  %v428_v61 = vld [vmem:[%s12398_s18 + $0xc8] sm:$0xff] }
  0x3a   : > { %v2561_v18 = vor.u32 %v2560_v3, %v2557_v2  ;;  %v1949_v26 = vor.u32 %v1948_v14, %v1945_v10  ;;  %v2010_v31 = vshll.u32 %v12500_v22, 16  ;;  %v329_v32 = vsel %vm12400_vm2, 0, %v328_v15  ;;  %v427_v56 = vld [vmem:[%s12398_s18 + $0xc0] sm:$0xff] }
  0x3b   : > { %3092 = vmatmul.bf16.gmra.mxu0 %v2209_v12  ;;  %3132 = vmatmul.bf16.gmra.mxu2 %v2553_v44  ;;  %v11838_v12 = vor.u32 %v12497_v17, %v11837_v60  ;;  %v2595_v17 = vor.u32 %v12534_v9, %v12532_v8  ;;  %474 = vst [vmem:[#allocation2 + $0x44] sm:$0xf] %v441_v19  ;;  %v2581_v36 = vshrl.u32 %v11842_v25, 16  ;;  %v2584_v37 = vshll.u32 %v11842_v25, 16  ;;  %v414_v19 = vld [vmem:[%s12398_s18 + $0x58] sm:$0xff] }
  0x3c   : > { %475 = vst [vmem:[#allocation2 + $0x48] sm:$0xf] %v442_v20  ;;  %v2254_v39 = vshrl.u32 %v1949_v26, 16  ;;  %v2257_v40 = vshll.u32 %v1949_v26, 16  ;;  %v2009_v41 = vrot.slane %v2007_v30, 4  ;;  %v2012_v42 = vrot.slane %v2010_v31, 5 }
  0x3d   : > { %3181 = vmatmul.bf16.gmra.mxu1 %v2217_v1  ;;  %v2237_v21 = vshrl.u32 %v11838_v12, 16  ;;  %v2240_v24 = vshll.u32 %v11838_v12, 16  ;;  %330 = vst [vmem:[#allocation2 + $0xc0] sm:$0x8] %v329_v32  ;;  %v2583_v45 = vrot.slane %v2581_v36, 3  ;;  %v2586_v46 = vrot.slane %v2584_v37, 4 }
  0x3e   : > { %v457_v47 = vpack.c.bf16 %v425_v29, %v425_v29  ;;  %v2013_v52 = vor.u32 %v2012_v42, %v2009_v41  ;;  %v458_v53 = vpack.c.bf16 %v426_v33, %v426_v33  ;;  %v2256_v58 = vrot.slane %v2254_v39, 3  ;;  %v429_v20 = vld [vmem:[%s12398_s18 + $0xd0] sm:$0xff] }
  0x3f   : > { %v2239_v35 = vrot.slane %v2237_v21, 3  ;;  %v2242_v23 = vrot.slane %v2240_v24, 4  ;;  %v2587_v57 = vor.u32 %v2586_v46, %v2583_v45  ;;  %v2259_v59 = vrot.slane %v2257_v40, 4  ;;  %v430_v24 = vld [vmem:[%s12398_s18 + $0xd8] sm:$0xff] }
  0x40   : > { %490 = vst [vmem:[#allocation2 + $0xc4] sm:$0xf] %v457_v47  ;;  %v308_v60 = vsel %vm12400_vm2, 0, %v307_v34  ;;  %v2598_v63 = vshrl.u32 %v2013_v52, 16  ;;  %v2601_v0 = vshll.u32 %v2013_v52, 16  ;;  %v443_v1 = vpack.c.bf16 %v411_v38, %v411_v38 }
  0x41   : > { %v2243_v44 = vor.u32 %v2242_v23, %v2239_v35  ;;  %491 = vst [vmem:[#allocation2 + $0xc8] sm:$0xf] %v458_v53  ;;  %v2596_v2 = vsel %vm933_vm3, %v2587_v57, %v2595_v17  ;;  %v444_v3 = vpack.c.bf16 %v412_v54, %v412_v54  ;;  %v332_v4 = vsel %vm12400_vm2, 0, %v331_v55 }
  0x42   : > { %3221 = vmatmul.bf16.gmra.mxu3 %v2561_v18  ;;  %309 = vst [vmem:[#allocation2 + $0x50] sm:$0x8] %v308_v60  ;;  %v459_v5 = vpack.c.bf16 %v427_v56, %v427_v56  ;;  %v2600_v7 = vrot.slane %v2598_v63, 3  ;;  %v2603_v8 = vrot.slane %v2601_v0, 4  ;;  %v12267_v10 = vld [vmem:[#allocation2 + $0x40] sm:$0xf0]   ;;  %v460_v12 = vpack.c.bf16 %v428_v61, %v428_v61 }
  0x43   : > { %v2252_v62 = vsel %vm933_vm3, %v2243_v44, %v2251_v13  ;;  %v12569_v9 = vld [vmem:[#allocation2 + $0x44] sm:$0xff]   ;;  %476 = vst [vmem:[#allocation2 + $0x54] sm:$0xf] %v443_v1  ;;  %v413_v13 = vld [vmem:[%s12398_s18 + $0x50] sm:$0xff]  ;;  %v2260_v14 = vor.u32 %v2259_v59, %v2256_v58  ;;  %v12020_v26 = vor.u32 %v12267_v10, %v12540_v27  ;;  %v446_v17 = vpack.c.bf16 %v414_v19, %v414_v19  ;;  %v11699_v63 = vld [vmem:[%s15708_s1 + $0x158] sm:$0xff] }
  0x44   : > { %v1841_v15 = vunpack.c.h.b16 %v12569_v9  ;;  %v12023_v18 = vld [vmem:[#allocation2 + $0xc0] sm:$0x8]  ;;  %477 = vst [vmem:[#allocation2 + $0x58] sm:$0xf] %v444_v3  ;;  %v445_v21 = vpack.c.bf16 %v413_v13, %v413_v13  ;;  %v2604_v25 = vor.u32 %v2603_v8, %v2600_v7  ;;  %v461_v30 = vpack.c.bf16 %v429_v20, %v429_v20  ;;  %v11659_v0 = vld [vmem:[%s15708_s1 + $0x18] sm:$0xff]  ;;  %3261 = vmatpush.bf16.msrb.mxu2 %v11699_v63 }
  0x45   : > { %333 = vst [vmem:[#allocation2 + $0xd0] sm:$0x8] %v332_v4  ;;  %v462_v31 = vpack.c.bf16 %v430_v24, %v430_v24  ;;  %v2280_v32 = vshrl.u32 %v12020_v26, 16  ;;  %v2283_v33 = vshll.u32 %v12020_v26, 16  ;;  %v1951_v38 = vshrl.u32 %v12569_v9, 16  ;;  %3494 = vmatpush.bf16.msrb.mxu3 %v11659_v0 }
  0x46   : > { %v1885_v29 = vpack.c.b16 %v1841_v15, %v1841_v15  ;;  %492 = vst [vmem:[#allocation2 + $0xd4] sm:$0xf] %v459_v5  ;;  %v1954_v27 = vshll.u32 %v12569_v9, 16  ;;  %v11667_v5 = vld [vmem:[%s15708_s1 + $0x58] sm:$0xff]  ;;  %v334_v0 = vld [vmem:[#allocation2 + $0xe0] sm:$0x8] }
  0x47   : > { %493 = vst [vmem:[#allocation2 + $0xd8] sm:$0xf] %v460_v12  ;;  %v12268_v36 = vld [vmem:[#allocation2 + $0xc0] sm:$0xf0]   ;;  %v2282_v40 = vrot.slane %v2280_v32, 3  ;;  %v2285_v41 = vrot.slane %v2283_v33, 4  ;;  %3583 = vmatpush.bf16.msrb.mxu0 %v11667_v5 }
  0x48   : > { %v2288_v34 = vshrl.u32 %v1885_v29, 16  ;;  %v2291_v35 = vshll.u32 %v1885_v29, 16  ;;  %v12577_v23 = vld [vmem:[#allocation2 + $0xc4] sm:$0xff]   ;;  %478 = vst [vmem:[#allocation2 + $0x64] sm:$0xf] %v445_v21  ;;  %v12024_v45 = vor.u32 %v12268_v36, %v12023_v18  ;;  %v1953_v47 = vrot.slane %v1951_v38, 4 }
  0x49   : > { %v1865_v37 = vunpack.c.h.b16 %v12577_v23  ;;  %v12027_v39 = vld [vmem:[#allocation2 + $0x50] sm:$0x8]  ;;  %v1956_v48 = vrot.slane %v1954_v27, 5  ;;  %479 = vst [vmem:[#allocation2 + $0x68] sm:$0xf] %v446_v17  ;;  %v2286_v50 = vor.u32 %v2285_v41, %v2282_v40  ;;  %v2015_v60 = vshrl.u32 %v12577_v23, 16 }
  0x4a   : > { %v2290_v42 = vrot.slane %v2288_v34, 3  ;;  %v2293_v44 = vrot.slane %v2291_v35, 4  ;;  %v12269_v53 = vld [vmem:[#allocation2 + $0x50] sm:$0xf0]   ;;  %494 = vst [vmem:[#allocation2 + $0xe4] sm:$0xf] %v461_v30 }
  0x4b   : > { %3097 = vmatmul.bf16.gmra.mxu0 %v2252_v62  ;;  %3137 = vmatmul.bf16.gmra.mxu2 %v2596_v2  ;;  %v1901_v46 = vpack.c.b16 %v1865_v37, %v1865_v37  ;;  %v12582_v52 = vld [vmem:[#allocation2 + $0x54] sm:$0xff]   ;;  %v2624_v54 = vshrl.u32 %v12024_v45, 16  ;;  %v2627_v55 = vshll.u32 %v12024_v45, 16  ;;  %495 = vst [vmem:[#allocation2 + $0xe8] sm:$0xf] %v462_v31  ;;  %v1957_v59 = vor.u32 %v1956_v48, %v1953_v47 }
  0x4c   : > { %v2294_v51 = vor.u32 %v2293_v44, %v2290_v42  ;;  %v2018_v61 = vshll.u32 %v12577_v23, 16  ;;  %v12031_v62 = vld [vmem:[#allocation2 + $0xd0] sm:$0x8]  ;;  %v2017_v10 = vrot.slane %v2015_v60, 4  ;;  %v1844_v19 = vunpack.c.h.b16 %v12582_v52 }
  0x4d   : > { %3186 = vmatmul.bf16.gmra.mxu1 %v2260_v14  ;;  %v2632_v56 = vshrl.u32 %v1901_v46, 16  ;;  %v2635_v57 = vshll.u32 %v1901_v46, 16  ;;  %v2626_v1 = vrot.slane %v2624_v54, 3  ;;  %v2629_v2 = vrot.slane %v2627_v55, 4  ;;  %v12270_v14 = vld [vmem:[#allocation2 + $0xd0] sm:$0xf0]  }
  0x4e   : > { %v2295_v58 = vsel %vm933_vm3, %v2286_v50, %v2294_v51  ;;  %v2297_v7 = vshrl.u32 %v1957_v59, 16  ;;  %v2300_v8 = vshll.u32 %v1957_v59, 16  ;;  %v2020_v12 = vrot.slane %v2018_v61, 5  ;;  %v12596_v13 = vld [vmem:[#allocation2 + $0xd4] sm:$0xff]   ;;  %v310_v54 = vld [vmem:[#allocation2 + $0x60] sm:$0x8] }
  0x4f   : > { %v2634_v3 = vrot.slane %v2632_v56, 3  ;;  %v2637_v4 = vrot.slane %v2635_v57, 4  ;;  %v2630_v15 = vor.u32 %v2629_v2, %v2626_v1  ;;  %v12028_v26 = vor.u32 %v12269_v53, %v12027_v39  ;;  %v12033_v59 = vld [vmem:[#allocation2 + $0x60] sm:$0xf0]  }
  0x50   : > { %v2299_v20 = vrot.slane %v2297_v7, 3  ;;  %v2302_v21 = vrot.slane %v2300_v8, 4  ;;  %v2021_v24 = vor.u32 %v2020_v12, %v2017_v10  ;;  %v1887_v29 = vpack.c.b16 %v1844_v19, %v1844_v19 }
  0x51   : > { %v2638_v18 = vor.u32 %v2637_v4, %v2634_v3  ;;  %v1868_v32 = vunpack.c.h.b16 %v12596_v13  ;;  %v2323_v33 = vshrl.u32 %v12028_v26, 16  ;;  %v2326_v34 = vshll.u32 %v12028_v26, 16  ;;  %v12034_v7 = vld [vmem:[#allocation2 + $0xe0] sm:$0xf0]  }
  0x52   : > { %3226 = vmatmul.bf16.gmra.mxu3 %v2604_v25  ;;  %v2303_v17 = vor.u32 %v2302_v21, %v2299_v20  ;;  %v2641_v30 = vshrl.u32 %v2021_v24, 16  ;;  %v2644_v31 = vshll.u32 %v2021_v24, 16  ;;  %v2331_v35 = vshrl.u32 %v1887_v29, 16  ;;  %v12610_v5 = vld [vmem:[#allocation2 + $0xe4] sm:$0xff]   ;;  %v11698_v21 = vld [vmem:[%s15708_s1 + $0x150] sm:$0xff] }
  0x53   : > { %v2639_v25 = vsel %vm933_vm3, %v2630_v15, %v2638_v18  ;;  %v2334_v36 = vshll.u32 %v1887_v29, 16  ;;  %v12032_v27 = vor.u32 %v12270_v14, %v12031_v62  ;;  %v1903_v40 = vpack.c.b16 %v1868_v32, %v1868_v32  ;;  %v313_v14 = vld [vmem:[#allocation2 + $0x70] sm:$0x8]  ;;  %3262 = vmatpush.bf16.msrb.mxu2 %v11698_v21 }
  0x54   : > { %v2643_v37 = vrot.slane %v2641_v30, 3  ;;  %v2646_v38 = vrot.slane %v2644_v31, 4  ;;  %v2325_v41 = vrot.slane %v2323_v33, 3  ;;  %v2328_v42 = vrot.slane %v2326_v34, 4  ;;  %v11658_v24 = vld [vmem:[%s15708_s1 + $0x10] sm:$0xff] }
  0x55   : > { %v2333_v44 = vrot.slane %v2331_v35, 3  ;;  %v2336_v39 = vrot.slane %v2334_v36, 4  ;;  %v2667_v46 = vshrl.u32 %v12032_v27, 16  ;;  %v2670_v47 = vshll.u32 %v12032_v27, 16  ;;  %3495 = vmatpush.bf16.msrb.mxu3 %v11658_v24 }
  0x56   : > { %v2647_v45 = vor.u32 %v2646_v38, %v2643_v37  ;;  %v2675_v48 = vshrl.u32 %v1903_v40, 16  ;;  %v2329_v50 = vor.u32 %v2328_v42, %v2325_v41  ;;  %v2678_v53 = vshll.u32 %v1903_v40, 16 }
  0x57   : > { %v2337_v51 = vor.u32 %v2336_v39, %v2333_v44  ;;  %v2669_v55 = vrot.slane %v2667_v46, 3  ;;  %v2672_v56 = vrot.slane %v2670_v47, 4  ;;  %v1959_v62 = vshrl.u32 %v12582_v52, 16 }
  0x58   : > { %v2677_v57 = vrot.slane %v2675_v48, 3  ;;  %v2680_v61 = vrot.slane %v2678_v53, 4  ;;  %v1962_v63 = vshll.u32 %v12582_v52, 16  ;;  %v2023_v2 = vshrl.u32 %v12596_v13, 16 }
  0x59   : > { %v2338_v60 = vsel %vm933_vm3, %v2329_v50, %v2337_v51  ;;  %v2673_v1 = vor.u32 %v2672_v56, %v2669_v55  ;;  %v2026_v3 = vshll.u32 %v12596_v13, 16  ;;  %v311_v4 = vsel %vm12400_vm2, 0, %v310_v54  ;;  %v415_v50 = vld [vmem:[%s12398_s18 + $0x60] sm:$0xff] }
  0x5a   : > { %v2681_v8 = vor.u32 %v2680_v61, %v2677_v57  ;;  %v1961_v10 = vrot.slane %v1959_v62, 4  ;;  %v1964_v12 = vrot.slane %v1962_v63, 5  ;;  %312 = vst [vmem:[#allocation2 + $0x60] sm:$0x8] %v311_v4  ;;  %v2025_v15 = vrot.slane %v2023_v2, 4  ;;  %v416_v62 = vld [vmem:[%s12398_s18 + $0x68] sm:$0xff] }
  0x5b   : > { %3102 = vmatmul.bf16.gmra.mxu0 %v2295_v58  ;;  %3142 = vmatmul.bf16.gmra.mxu2 %v2639_v25  ;;  %v12601_v58 = vld [vmem:[#allocation2 + $0x64] sm:$0xff]   ;;  %v2028_v18 = vrot.slane %v2026_v3, 5  ;;  %v335_v20 = vsel %vm12400_vm2, 0, %v334_v0  ;;  %v11666_v25 = vld [vmem:[%s15708_s1 + $0x50] sm:$0xff]  ;;  %v314_v32 = vsel %vm12400_vm2, 0, %v313_v14  ;;  %v447_v2 = vpack.c.bf16 %v415_v50, %v415_v50 }
  0x5c   : > { %v1847_v19 = vunpack.c.h.b16 %v12601_v58  ;;  %v2682_v26 = vsel %vm933_vm3, %v2673_v1, %v2681_v8  ;;  %v1965_v29 = vor.u32 %v1964_v12, %v1961_v10  ;;  %336 = vst [vmem:[#allocation2 + $0xe0] sm:$0x8] %v335_v20  ;;  %3584 = vmatpush.bf16.msrb.mxu0 %v11666_v25  ;;  %v1967_v55 = vshrl.u32 %v12601_v58, 16  ;;  %v337_v12 = vld [vmem:[#allocation2 + $0xf0] sm:$0x8]  ;;  %v432_v20 = vld [vmem:[%s12398_s18 + $0xe8] sm:$0xff] }
  0x5d   : > { %3191 = vmatmul.bf16.gmra.mxu1 %v2303_v17  ;;  %v1871_v17 = vunpack.c.h.b16 %v12610_v5  ;;  %v2029_v30 = vor.u32 %v2028_v18, %v2025_v15  ;;  %315 = vst [vmem:[#allocation2 + $0x70] sm:$0x8] %v314_v32  ;;  %v1970_v56 = vshll.u32 %v12601_v58, 16  ;;  %v2034_v1 = vshll.u32 %v12610_v5, 16 }
  0x5e   : > { %v1889_v31 = vpack.c.b16 %v1847_v19, %v1847_v19  ;;  %v2340_v33 = vshrl.u32 %v1965_v29, 16  ;;  %v2343_v34 = vshll.u32 %v1965_v29, 16  ;;  %v1969_v63 = vrot.slane %v1967_v55, 4  ;;  %480 = vst [vmem:[#allocation2 + $0x74] sm:$0xf] %v447_v2  ;;  %v431_v19 = vld [vmem:[%s12398_s18 + $0xe0] sm:$0xff] }
  0x5f   : > { %v1905_v35 = vpack.c.b16 %v1871_v17, %v1871_v17  ;;  %v2684_v36 = vshrl.u32 %v2029_v30, 16  ;;  %v2687_v37 = vshll.u32 %v2029_v30, 16  ;;  %v1972_v0 = vrot.slane %v1970_v56, 5  ;;  %v316_v29 = vld [vmem:[#allocation2 + $0x80] sm:$0x8]  ;;  %v417_v17 = vld [vmem:[%s12398_s18 + $0x70] sm:$0xff] }
  0x60   : > { %v2374_v38 = vshrl.u32 %v1889_v31, 16  ;;  %v2377_v27 = vshll.u32 %v1889_v31, 16  ;;  %v2342_v40 = vrot.slane %v2340_v33, 3  ;;  %v2345_v41 = vrot.slane %v2343_v34, 4  ;;  %v418_v33 = vld [vmem:[%s12398_s18 + $0x78] sm:$0xff] }
  0x61   : > { %v2718_v42 = vshrl.u32 %v1905_v35, 16  ;;  %v2721_v44 = vshll.u32 %v1905_v35, 16  ;;  %v2686_v39 = vrot.slane %v2684_v36, 3  ;;  %v2689_v47 = vrot.slane %v2687_v37, 4 }
  0x62   : > { %3231 = vmatmul.bf16.gmra.mxu3 %v2647_v45  ;;  %v11845_v45 = vld [vmem:[#allocation2 + $0x60] sm:$0x8]  ;;  %v2346_v46 = vor.u32 %v2345_v41, %v2342_v40  ;;  %v12628_v48 = vrot.slane %v2374_v38, 3  ;;  %v12631_v51 = vrot.slane %v2377_v27, 4  ;;  %v1973_v14 = vor.u32 %v1972_v0, %v1969_v63  ;;  %v433_v38 = vld [vmem:[%s12398_s18 + $0xf0] sm:$0xff]  ;;  %v434_v27 = vld [vmem:[%s12398_s18 + $0xf8] sm:$0xff] }
  0x63   : > { %v11849_v53 = vld [vmem:[#allocation2 + $0xe0] sm:$0x8]  ;;  %v12633_v54 = vrot.slane %v2718_v42, 3  ;;  %v11846_v57 = vor.u32 %v12033_v59, %v11845_v45  ;;  %v12637_v61 = vrot.slane %v2721_v44, 4  ;;  %v2690_v59 = vor.u32 %v2689_v47, %v2686_v39  ;;  %v11697_v39 = vld [vmem:[%s15708_s1 + $0x148] sm:$0xff] }
  0x64   : > { %v11850_v8 = vor.u32 %v12034_v7, %v11849_v53  ;;  %v2036_v15 = vrot.slane %v2034_v1, 5  ;;  %v448_v18 = vpack.c.bf16 %v416_v62, %v416_v62  ;;  %v2383_v30 = vshrl.u32 %v1973_v14, 16  ;;  %v12037_v36 = vld [vmem:[#allocation2 + $0x70] sm:$0x8]  ;;  %v11657_v45 = vld [vmem:[%s15708_s1 + $0x8] sm:$0xff]  ;;  %3263 = vmatpush.bf16.msrb.mxu2 %v11697_v39 }
  0x65   : > { %v2366_v3 = vshrl.u32 %v11846_v57, 16  ;;  %v2369_v4 = vshll.u32 %v11846_v57, 16  ;;  %v2386_v7 = vshll.u32 %v1973_v14, 16  ;;  %v338_v32 = vsel %vm12400_vm2, 0, %v337_v12  ;;  %3496 = vmatpush.bf16.msrb.mxu3 %v11657_v45 }
  0x66   : > { %v2710_v25 = vshrl.u32 %v11850_v8, 16  ;;  %481 = vst [vmem:[#allocation2 + $0x78] sm:$0xf] %v448_v18  ;;  %v463_v37 = vpack.c.bf16 %v431_v19, %v431_v19  ;;  %v2380_v41 = vor.u32 %v12631_v51, %v12628_v48  ;;  %v2724_v42 = vor.u32 %v12637_v61, %v12633_v54  ;;  %v11665_v48 = vld [vmem:[%s15708_s1 + $0x48] sm:$0xff]  ;;  %v11679_v51 = vld [vmem:[%s15708_s1 + $0xb8] sm:$0xff] }
  0x67   : > { %v2368_v21 = vrot.slane %v2366_v3, 3  ;;  %v2371_v24 = vrot.slane %v2369_v4, 4  ;;  %339 = vst [vmem:[#allocation2 + $0xf0] sm:$0x8] %v338_v32  ;;  %v464_v53 = vpack.c.bf16 %v432_v20, %v432_v20  ;;  %v317_v54 = vsel %vm12400_vm2, 0, %v316_v29  ;;  %3585 = vmatpush.bf16.msrb.mxu0 %v11665_v48  ;;  %3668 = vmatpush.bf16.msrb.mxu1 %v11679_v51  ;;  %v11678_v51 = vld [vmem:[%s15708_s1 + $0xb0] sm:$0xff] }
  0x68   : > { %v2712_v34 = vrot.slane %v2710_v25, 3  ;;  %496 = vst [vmem:[#allocation2 + $0xf4] sm:$0xf] %v463_v37  ;;  %v2385_v55 = vrot.slane %v2383_v30, 3  ;;  %v2388_v56 = vrot.slane %v2386_v7, 4  ;;  %v449_v57 = vpack.c.bf16 %v417_v17, %v417_v17 }
  0x69   : > { %v2372_v40 = vor.u32 %v2371_v24, %v2368_v21  ;;  %318 = vst [vmem:[#allocation2 + $0x80] sm:$0x8] %v317_v54  ;;  %v450_v61 = vpack.c.bf16 %v418_v33, %v418_v33  ;;  %v465_v0 = vpack.c.bf16 %v433_v38, %v433_v38  ;;  %v466_v1 = vpack.c.bf16 %v434_v27, %v434_v27  ;;  %v352_v19 = vld [vmem:[#allocation2 + $0x1c] sm:$0x1] }
  0x6a   : > { %497 = vst [vmem:[#allocation2 + $0xf8] sm:$0xf] %v464_v53  ;;  %v15742_v18 = vmov 0  ;;  %v353_v21 = vsel %vm12675_vm6, 0, %v352_v19  ;;  %v12323_v24 = vmov 0  }
  0x6b   : > { %3107 = vmatmul.bf16.gmra.mxu0 %v2338_v60  ;;  %3147 = vmatmul.bf16.gmra.mxu2 %v2682_v26  ;;  %v2031_v60 = vshrl.u32 %v12610_v5, 16  ;;  %v2713_v26 = vshll.u32 %v11850_v8, 16  ;;  %v2381_v62 = vsel %vm933_vm3, %v2372_v40, %v2380_v41  ;;  %482 = vst [vmem:[#allocation2 + $0x84] sm:$0xf] %v449_v57  ;;  %v12271_v8 = vld [vmem:[#allocation2 + $0x70] sm:$0xf0]  }
  0x6c   : > { %483 = vst [vmem:[#allocation2 + $0x88] sm:$0xf] %v450_v61  ;;  %v12038_v14 = vor.u32 %v12271_v8, %v12037_v36  ;;  %v15743_v18 = vsel %vm12675_vm6, 4294967295, %v15742_v18  ;;  %3669 = vmatpush.bf16.msrb.mxu1 %v11678_v51  ;;  %v11664_v8 = vld [vmem:[%s15708_s1 + $0x40] sm:$0xff] }
  0x6d   : > { %3196 = vmatmul.bf16.gmra.mxu1 %v2346_v46  ;;  %v2033_v10 = vrot.slane %v2031_v60, 4  ;;  %v2715_v35 = vrot.slane %v2713_v26, 4  ;;  %v340_v46 = vld [vmem:[#allocation2 + $0x100] sm:$0x8]  ;;  %v12672_v4 = vld [vmem:[#allocation2 + $0x74] sm:$0xff]   ;;  %15744 = vst [vmem:[#allocation5_spill] sm:$0xff] %v15743_v18  ;;  %3586 = vmatpush.bf16.msrb.mxu0 %v11664_v8 }
  0x6e   : > { %v341_v60 = vsel %vm12400_vm2, 0, %v340_v46  ;;  %v1850_v12 = vunpack.c.h.b16 %v12672_v4  ;;  %498 = vst [vmem:[#allocation2 + $0x104] sm:$0xf] %v465_v0  ;;  %v2409_v25 = vshrl.u32 %v12038_v14, 16  ;;  %v2412_v26 = vshll.u32 %v12038_v14, 16 }
  0x6f   : > { %v2037_v31 = vor.u32 %v2036_v15, %v2033_v10  ;;  %v2716_v47 = vor.u32 %v2715_v35, %v2712_v34  ;;  %v2389_v10 = vor.u32 %v2388_v56, %v2385_v55  ;;  %342 = vst [vmem:[#allocation2 + $0x100] sm:$0x8] %v341_v60  ;;  %v12272_v7 = vld [vmem:[#allocation2 + $0xf0] sm:$0xf0]   ;;  %v1975_v32 = vshrl.u32 %v12672_v4, 16  ;;  %v11696_v60 = vld [vmem:[%s15708_s1 + $0x140] sm:$0xff] }
  0x70   : > { %v1891_v15 = vpack.c.b16 %v1850_v12, %v1850_v12  ;;  %499 = vst [vmem:[#allocation2 + $0x108] sm:$0xf] %v466_v1  ;;  %v1978_v33 = vshll.u32 %v12672_v4, 16  ;;  %v12045_v34 = vld [vmem:[#allocation2 + $0x80] sm:$0x8]  ;;  %v2411_v35 = vrot.slane %v2409_v25, 3  ;;  %3264 = vmatpush.bf16.msrb.mxu2 %v11696_v60 }
  0x71   : > { %v2727_v44 = vshrl.u32 %v2037_v31, 16  ;;  %v2730_v50 = vshll.u32 %v2037_v31, 16  ;;  %v2725_v63 = vsel %vm933_vm3, %v2716_v47, %v2724_v42  ;;  %280 = vst [vmem:[#allocation2] sm:$0xf] %v12323_v24  ;;  %v12682_v30 = vld [vmem:[#allocation2 + $0xf4] sm:$0xff]   ;;  %v2414_v36 = vrot.slane %v2412_v26, 4 }
  0x72   : > { %3236 = vmatmul.bf16.gmra.mxu3 %v2690_v59  ;;  %v12041_v59 = vld [vmem:[#allocation2 + $0xf0] sm:$0x8]  ;;  %v2417_v29 = vshrl.u32 %v1891_v15, 16  ;;  %v2420_v17 = vshll.u32 %v1891_v15, 16  ;;  %v1874_v31 = vunpack.c.h.b16 %v12682_v30  ;;  %354 = vst [vmem:[#allocation2 + $0x1c] sm:$0x1] %v353_v21 }
  0x73   : > { %v2729_v2 = vrot.slane %v2727_v44, 3  ;;  %v2732_v3 = vrot.slane %v2730_v50, 4  ;;  %v12042_v27 = vor.u32 %v12272_v7, %v12041_v59  ;;  %v1977_v41 = vrot.slane %v1975_v32, 4  ;;  %281 = vst [vmem:[#allocation2 + $0x4] sm:$0xf] %v12323_v24  ;;  %v12689_v53 = vld [vmem:[#allocation2 + $0x84] sm:$0xff]  }
  0x74   : > { %v2419_v37 = vrot.slane %v2417_v29, 3  ;;  %v2422_v38 = vrot.slane %v2420_v17, 4  ;;  %v1907_v40 = vpack.c.b16 %v1874_v31, %v1874_v31  ;;  %v1980_v42 = vrot.slane %v1978_v33, 5  ;;  %282 = vst [vmem:[#allocation2 + $0x8] sm:$0xf] %v12323_v24  ;;  %v11676_v33 = vld [vmem:[%s15708_s1 + $0xa0] sm:$0xff] }
  0x75   : > { %v2733_v20 = vor.u32 %v2732_v3, %v2729_v2  ;;  %v2415_v44 = vor.u32 %v2414_v36, %v2411_v35  ;;  %v2753_v45 = vshrl.u32 %v12042_v27, 16  ;;  %v2756_v46 = vshll.u32 %v12042_v27, 16  ;;  %v12273_v48 = vld [vmem:[#allocation2 + $0x80] sm:$0xf0]   ;;  %v11677_v3 = vld [vmem:[%s15708_s1 + $0xa8] sm:$0xff] }
  0x76   : > { %v2423_v39 = vor.u32 %v2422_v38, %v2419_v37  ;;  %v2761_v47 = vshrl.u32 %v1907_v40, 16  ;;  %v2764_v50 = vshll.u32 %v1907_v40, 16  ;;  %v1981_v55 = vor.u32 %v1980_v42, %v1977_v41  ;;  %v12049_v61 = vld [vmem:[#allocation2 + $0x100] sm:$0x8]  ;;  %v12274_v19 = vld [vmem:[#allocation2 + $0x100] sm:$0xf0]   ;;  %3670 = vmatpush.bf16.msrb.mxu1 %v11677_v3 }
  0x77   : > { %v2039_v56 = vshrl.u32 %v12682_v30, 16  ;;  %v2042_v57 = vshll.u32 %v12682_v30, 16  ;;  %v2758_v0 = vrot.slane %v2756_v46, 4  ;;  %v12709_v15 = vld [vmem:[#allocation2 + $0x104] sm:$0xff]   ;;  %v1853_v25 = vunpack.c.h.b16 %v12689_v53  ;;  %283 = vst [vmem:[#allocation2 + $0xc] sm:$0xf] %v12323_v24 }
  0x78   : > { %v2424_v54 = vsel %vm933_vm3, %v2415_v44, %v2423_v39  ;;  %v2763_v1 = vrot.slane %v2761_v47, 3  ;;  %v2766_v2 = vrot.slane %v2764_v50, 4  ;;  %v2429_v12 = vshll.u32 %v1981_v55, 16  ;;  %285 = vst [vmem:[#allocation2 + $0x110] sm:$0xf] %v12323_v24  ;;  %v11675_v46 = vld [vmem:[%s15708_s1 + $0x98] sm:$0xff] }
  0x79   : > { %v2041_v59 = vrot.slane %v2039_v56, 4  ;;  %v2044_v14 = vrot.slane %v2042_v57, 5  ;;  %v12046_v31 = vor.u32 %v12273_v48, %v12045_v34  ;;  %v1893_v32 = vpack.c.b16 %v1853_v25, %v1853_v25  ;;  %286 = vst [vmem:[#allocation2 + $0x114] sm:$0xf] %v12323_v24 }
  0x7a   : > { %v2767_v21 = vor.u32 %v2766_v2, %v2763_v1  ;;  %v2431_v29 = vrot.slane %v2429_v12, 4  ;;  %v1877_v38 = vunpack.c.h.b16 %v12709_v15  ;;  %287 = vst [vmem:[#allocation2 + $0x118] sm:$0xf] %v12323_v24  ;;  %v12050_v39 = vor.u32 %v12274_v19, %v12049_v61  ;;  %3671 = vmatpush.bf16.msrb.mxu1 %v11676_v33  ;;  %v1766_v61 = vld [vmem:[#allocation2 + $0x1c] sm:$0x1] }
  0x7b   : > { %3112 = vmatmul.bf16.gmra.mxu0 %v2381_v62  ;;  %3152 = vmatmul.bf16.gmra.mxu2 %v2725_v63  ;;  %v11656_v62 = vld [vmem:[%s15708_s1] sm:$0xff]  ;;  %v2755_v63 = vrot.slane %v2753_v45, 3  ;;  %v2045_v17 = vor.u32 %v2044_v14, %v2041_v59  ;;  %v2452_v27 = vshrl.u32 %v12046_v31, 16  ;;  %v2455_v40 = vshll.u32 %v12046_v31, 16  ;;  %288 = vst [vmem:[#allocation2 + $0x11c] sm:$0xf] %v12323_v24 }
  0x7c   : > { %3497 = vmatpush.bf16.msrb.mxu3 %v11656_v62  ;;  %v2460_v34 = vshrl.u32 %v1893_v32, 16  ;;  %v2463_v41 = vshll.u32 %v1893_v32, 16  ;;  %v1909_v45 = vpack.c.b16 %v1877_v38, %v1877_v38  ;;  %5522 = vst [vmem:[#allocation3] sm:$0xf] %v12323_v24  ;;  %v2799_v56 = vshll.u32 %v12050_v39, 16  ;;  %v11674_v32 = vld [vmem:[%s15708_s1 + $0x90] sm:$0xff] }
  0x7d   : > { %3201 = vmatmul.bf16.gmra.mxu1 %v2389_v10  ;;  %v2426_v10 = vshrl.u32 %v1981_v55, 16  ;;  %v2770_v36 = vshrl.u32 %v2045_v17, 16  ;;  %v2773_v37 = vshll.u32 %v2045_v17, 16  ;;  %v2454_v47 = vrot.slane %v2452_v27, 3  ;;  %5523 = vst [vmem:[#allocation3 + $0x4] sm:$0xf] %v12323_v24 }
  0x7e   : > { %v2457_v50 = vrot.slane %v2455_v40, 4  ;;  %v2462_v48 = vrot.slane %v2460_v34, 3  ;;  %v2465_v51 = vrot.slane %v2463_v41, 4  ;;  %v2796_v55 = vshrl.u32 %v12050_v39, 16  ;;  %5524 = vst [vmem:[#allocation3 + $0x8] sm:$0xf] %v12323_v24  ;;  %3672 = vmatpush.bf16.msrb.mxu1 %v11675_v46 }
  0x7f   : > { %v2428_v26 = vrot.slane %v2426_v10, 3  ;;  %v2772_v42 = vrot.slane %v2770_v36, 3  ;;  %v2775_v44 = vrot.slane %v2773_v37, 4  ;;  %v2804_v57 = vshrl.u32 %v1909_v45, 16  ;;  %5525 = vst [vmem:[#allocation3 + $0xc] sm:$0xf] %v12323_v24 }
  0x80   : > { %v2458_v60 = vor.u32 %v2457_v50, %v2454_v47  ;;  %v2466_v62 = vor.u32 %v2465_v51, %v2462_v48  ;;  %v2798_v1 = vrot.slane %v2796_v55, 3  ;;  %v2801_v2 = vrot.slane %v2799_v56, 4  ;;  %5527 = vst [vmem:[#allocation3 + $0x110] sm:$0xf] %v12323_v24  ;;  %v12738_v25 = vld [vmem:[#allocation2] sm:$0xf0]  }
  0x81   : > { %v2432_v35 = vor.u32 %v2431_v29, %v2428_v26  ;;  %v2806_v3 = vrot.slane %v2804_v57, 3  ;;  %v1983_v12 = vshrl.u32 %v12689_v53, 16  ;;  %v1986_v59 = vshll.u32 %v12689_v53, 16  ;;  %5528 = vst [vmem:[#allocation3 + $0x114] sm:$0xf] %v12323_v24  ;;  %v11711_v38 = vld [vmem:[%s15708_s1 + $0x1b8] sm:$0xff] }
  0x82   : > { %3241 = vmatmul.bf16.gmra.mxu3 %v2733_v20  ;;  %v2759_v20 = vor.u32 %v2758_v0, %v2755_v63  ;;  %v2807_v63 = vshll.u32 %v1909_v45, 16  ;;  %v292_v0 = vld [vmem:[#allocation2] sm:$0x8]  ;;  %v2467_v8 = vsel %vm933_vm3, %v2458_v60, %v2466_v62  ;;  %v2802_v14 = vor.u32 %v2801_v2, %v2798_v1  ;;  %5529 = vst [vmem:[#allocation3 + $0x118] sm:$0xf] %v12323_v24  ;;  %v11673_v47 = vld [vmem:[%s15708_s1 + $0x88] sm:$0xff] }
  0x83   : > { %v2047_v19 = vshrl.u32 %v12709_v15, 16  ;;  %v349_v26 = vld [vmem:[#allocation2 + $0xc] sm:$0x1]  ;;  %v1985_v17 = vrot.slane %v1983_v12, 4  ;;  %v2070_v31 = vunpack.c.l.b16 %v1766_v61  ;;  %5530 = vst [vmem:[#allocation3 + $0x11c] sm:$0xf] %v12323_v24  ;;  %3673 = vmatpush.bf16.msrb.mxu1 %v11674_v32  ;;  %5119 = vmatpush.bf16.msra.mxu2 %v11711_v38 }
  0x84   : > { %v2768_v7 = vsel %vm933_vm3, %v2759_v20, %v2767_v21  ;;  %v2809_v10 = vrot.slane %v2807_v63, 4  ;;  %v2050_v20 = vshll.u32 %v12709_v15, 16  ;;  %v12736_v21 = vld [vmem:[#allocation2 + $0x4] sm:$0xff]   ;;  %v2102_v36 = vrot.slane %v12436_v43, 5  ;;  %v11719_v24 = vld [vmem:[%s15708_s1 + $0x1f8] sm:$0xff] }
  0x85   : > { %v2049_v33 = vrot.slane %v2047_v19, 4  ;;  %v293_v37 = vsel %vm12400_vm2, 0, %v292_v0  ;;  %v2086_v34 = vpack.c.b16 %v2070_v31, %v2070_v31  ;;  %5208 = vmatpush.bf16.msra.mxu3 %v11719_v24  ;;  %v350_v50 = vsel %vm12675_vm6, 0, %v349_v26  ;;  %v355_v48 = vld [vmem:[#allocation2 + $0x2c] sm:$0x1]  ;;  %v11727_v57 = vld [vmem:[%s15708_s1 + $0x238] sm:$0xff] }
  0x86   : > { %v2810_v29 = vor.u32 %v2809_v10, %v2806_v3  ;;  %294 = vst [vmem:[#allocation2] sm:$0x8] %v293_v37  ;;  %v2180_v43 = vshll.u32 %v2102_v36, 16  ;;  %v11672_v0 = vld [vmem:[%s15708_s1 + $0x80] sm:$0xff]  ;;  %5297 = vmatpush.bf16.msra.mxu0 %v11727_v57  ;;  %v12054_v19 = vld [vmem:[#allocation2 + $0x10] sm:$0x8] }
  0x87   : > { %v2103_v46 = vrot.slane %v2086_v34, 5  ;;  %3674 = vmatpush.bf16.msrb.mxu1 %v11673_v47  ;;  %351 = vst [vmem:[#allocation2 + $0xc] sm:$0x1] %v350_v50  ;;  %v2105_v37 = vrot.slane %v12458_v11, 5 }
  0x88   : > { %v2811_v27 = vsel %vm933_vm3, %v2802_v14, %v2810_v29  ;;  %v2182_v56 = vrot.slane %v2180_v43, 4 }
  0x89   : > { %v2104_v62 = vsel %vm884_vm7, %v2102_v36, %v2103_v46 }
  0x8a   : > { %v2185_v10 = vshrl.u32 %v2104_v62, 16 }
  0x8b   : > { %3117 = vmatmul.bf16.gmra.mxu0 %v2424_v54  ;;  %3157 = vmatmul.bf16.gmra.mxu2 %v2768_v7  ;;  %v2776_v54 = vor.u32 %v2775_v44, %v2772_v42  ;;  %v1988_v7 = vrot.slane %v1986_v59, 5  ;;  %v2177_v42 = vshrl.u32 %v2102_v36, 16  ;;  %v614_v44 = vunpack.c.h.b16 %v12736_v21 }
  0x8c   : > { %v2188_v59 = vshll.u32 %v2104_v62, 16  ;;  %v2187_v26 = vrot.slane %v2185_v10, 3  ;;  %3675 = vmatpush.bf16.msrb.mxu1 %v11672_v0  ;;  %v885_v36 = vrot.slane %v12736_v21, 5 }
  0x8d   : > { %3206 = vmatmul.bf16.gmra.mxu1 %v2432_v35  ;;  %v2052_v35 = vrot.slane %v2050_v20, 5  ;;  %v1989_v40 = vor.u32 %v1988_v7, %v1985_v17  ;;  %v2179_v55 = vrot.slane %v2177_v42, 3  ;;  %v661_v63 = vpack.c.b16 %v614_v44, %v614_v44  ;;  %v11853_v29 = vld [vmem:[#allocation2] sm:$0x8] }
  0x8e   : > { %v356_v7 = vsel %vm12675_vm6, 0, %v355_v48  ;;  %v2190_v31 = vrot.slane %v2188_v59, 4  ;;  %v11854_v24 = vor.u32 %v12738_v25, %v11853_v29  ;;  %v961_v42 = vshrl.u32 %v885_v36, 16  ;;  %v12776_v25 = vld [vmem:[#allocation2 + $0x14] sm:$0xff]  }
  0x8f   : > { %v2053_v41 = vor.u32 %v2052_v35, %v2049_v33  ;;  %v2469_v39 = vshrl.u32 %v1989_v40, 16  ;;  %v2472_v45 = vshll.u32 %v1989_v40, 16  ;;  %v2183_v3 = vor.u32 %v2182_v56, %v2179_v55  ;;  %357 = vst [vmem:[#allocation2 + $0x2c] sm:$0x1] %v356_v7  ;;  %v12275_v56 = vld [vmem:[#allocation2 + $0x10] sm:$0xf0]  }
  0x90   : > { %v943_v14 = vshrl.u32 %v661_v63, 16  ;;  %v946_v17 = vshll.u32 %v661_v63, 16  ;;  %v709_v33 = vshrl.u32 %v12736_v21, 16  ;;  %v712_v35 = vshll.u32 %v12736_v21, 16 }
  0x91   : > { %v2813_v51 = vshrl.u32 %v2053_v41, 16  ;;  %v2471_v61 = vrot.slane %v2469_v39, 3  ;;  %v2474_v60 = vrot.slane %v2472_v45, 4  ;;  %v2191_v38 = vor.u32 %v2190_v31, %v2187_v26 }
  0x92   : > { %3246 = vmatmul.bf16.gmra.mxu3 %v2776_v54  ;;  %v2816_v54 = vshll.u32 %v2053_v41, 16  ;;  %v945_v32 = vrot.slane %v943_v14, 3  ;;  %v714_v34 = vrot.slane %v712_v35, 5  ;;  %v548_v41 = vld [vmem:[#allocation2 + $0xc] sm:$0x1]  ;;  %v964_v43 = vshll.u32 %v885_v36, 16 }
  0x93   : > { %v2815_v1 = vrot.slane %v2813_v51, 3  ;;  %v2475_v12 = vor.u32 %v2474_v60, %v2471_v61  ;;  %v2192_v44 = vsel %vm933_vm3, %v2183_v3, %v2191_v38  ;;  %v935_v39 = vshrl.u32 %v11854_v24, 16  ;;  %v549_v14 = vld [vmem:[#allocation2 + $0x1c] sm:$0x1] }
  0x94   : > { %v2818_v2 = vrot.slane %v2816_v54, 4  ;;  %v938_v45 = vshll.u32 %v11854_v24, 16  ;;  %v852_v46 = vunpack.c.l.b16 %v548_v41  ;;  %v963_v50 = vrot.slane %v961_v42, 3 }
  0x95   : > { %v966_v48 = vrot.slane %v964_v43, 4  ;;  %v2220_v21 = vshrl.u32 %v2105_v37, 16  ;;  %v937_v51 = vrot.slane %v935_v39, 3  ;;  %v2223_v55 = vshll.u32 %v2105_v37, 16 }
  0x96   : > { %v2819_v20 = vor.u32 %v2818_v2, %v2815_v1  ;;  %v940_v11 = vrot.slane %v938_v45, 4  ;;  %v868_v54 = vpack.c.b16 %v852_v46, %v852_v46  ;;  %v1767_v62 = vld [vmem:[#allocation2 + $0x2c] sm:$0x1]  ;;  %v617_v59 = vunpack.c.h.b16 %v12776_v25 }
  0x97   : > { %v967_v60 = vor.u32 %v966_v48, %v963_v50  ;;  %v12778_v63 = vrot.slane %v2220_v21, 3  ;;  %v2071_v2 = vunpack.c.l.b16 %v1767_v62  ;;  %v2225_v3 = vrot.slane %v2223_v55, 4 }
  0x98   : > { %v941_v0 = vor.u32 %v940_v11, %v937_v51  ;;  %v886_v1 = vrot.slane %v868_v54, 5  ;;  %v663_v38 = vpack.c.b16 %v617_v59, %v617_v59  ;;  %v853_v24 = vunpack.c.l.b16 %v549_v14  ;;  %v358_v54 = vld [vmem:[#allocation2 + $0x3c] sm:$0x1]  ;;  %v12276_v14 = vld [vmem:[#allocation2 + $0x20] sm:$0xf0]  }
  0x99   : > { %v717_v45 = vshrl.u32 %v12776_v25, 16  ;;  %v12794_v59 = vrot.slane %v12495_v16, 5 }
  0x9a   : > { %v887_v29 = vsel %vm884_vm7, %v885_v36, %v886_v1  ;;  %v989_v39 = vshll.u32 %v663_v38, 16  ;;  %v869_v1 = vpack.c.b16 %v853_v24, %v853_v24 }
  0x9b   : > { %3122 = vmatmul.bf16.gmra.mxu0 %v2467_v8  ;;  %3162 = vmatmul.bf16.gmra.mxu2 %v2811_v27  ;;  %v948_v8 = vrot.slane %v946_v17, 4  ;;  %v711_v27 = vrot.slane %v709_v33, 4  ;;  %v2226_v17 = vor.u32 %v2225_v3, %v12778_v63  ;;  %v972_v33 = vshll.u32 %v887_v29, 16 }
  0x9c   : > { %v991_v11 = vrot.slane %v989_v39, 4 }
  0x9d   : > { %3211 = vmatmul.bf16.gmra.mxu1 %v2475_v12  ;;  %v949_v40 = vor.u32 %v948_v8, %v945_v32  ;;  %v715_v47 = vor.u32 %v714_v34, %v711_v27  ;;  %v969_v32 = vshrl.u32 %v887_v29, 16  ;;  %v12055_v8 = vor.u32 %v12275_v56, %v12054_v19 }
  0x9e   : > { %v974_v34 = vrot.slane %v972_v33, 4 }
  0x9f   : > { %v952_v57 = vshrl.u32 %v715_v47, 16  ;;  %v955_v61 = vshll.u32 %v715_v47, 16  ;;  %v950_v26 = vsel %vm933_vm3, %v941_v0, %v949_v40  ;;  %v971_v27 = vrot.slane %v969_v32, 3 }
  0xa0   : > { %v978_v41 = vshrl.u32 %v12055_v8, 16  ;;  %v981_v42 = vshll.u32 %v12055_v8, 16  ;;  %v986_v40 = vshrl.u32 %v663_v38, 16  ;;  %v720_v0 = vshll.u32 %v12776_v25, 16 }
  0xa1   : > { %v954_v10 = vrot.slane %v952_v57, 3  ;;  %v957_v12 = vrot.slane %v955_v61, 4  ;;  %v975_v47 = vor.u32 %v974_v34, %v971_v27  ;;  %v12058_v61 = vld [vmem:[#allocation2 + $0x20] sm:$0x8]  ;;  %v2266_v38 = vshll.u32 %v12794_v59, 16 }
  0xa2   : > { %3251 = vmatmul.bf16.gmra.mxu3 %v2819_v20  ;;  %v2087_v20 = vpack.c.b16 %v2071_v2, %v2071_v2  ;;  %v980_v48 = vrot.slane %v978_v41, 3  ;;  %v983_v21 = vrot.slane %v981_v42, 4  ;;  %v988_v51 = vrot.slane %v986_v40, 3  ;;  %v11718_v42 = vld [vmem:[%s15708_s1 + $0x1f0] sm:$0xff] }
  0xa3   : > { %v958_v31 = vor.u32 %v957_v12, %v954_v10  ;;  %v888_v10 = vrot.slane %v12776_v25, 5  ;;  %v359_v12 = vsel %vm12675_vm6, 0, %v358_v54  ;;  %v2263_v25 = vshrl.u32 %v12794_v59, 16  ;;  %5209 = vmatpush.bf16.msra.mxu3 %v11718_v42 }
  0xa4   : > { %v2106_v35 = vrot.slane %v2087_v20, 5  ;;  %v984_v62 = vor.u32 %v983_v21, %v980_v48  ;;  %v992_v63 = vor.u32 %v991_v11, %v988_v51  ;;  %v722_v20 = vrot.slane %v720_v0, 5  ;;  %360 = vst [vmem:[#allocation2 + $0x3c] sm:$0x1] %v359_v12 }
  0xa5   : > { %v1004_v32 = vshrl.u32 %v888_v10, 16  ;;  %v1007_v33 = vshll.u32 %v888_v10, 16  ;;  %v12813_v39 = vrot.slane %v2263_v25, 3  ;;  %v12059_v54 = vor.u32 %v12276_v14, %v12058_v61  ;;  %v550_v61 = vld [vmem:[#allocation2 + $0x2c] sm:$0x1] }
  0xa6   : > { %v2107_v36 = vsel %vm884_vm7, %v2105_v37, %v2106_v35  ;;  %v719_v37 = vrot.slane %v717_v45, 4  ;;  %v12799_v29 = vsel %vm933_vm3, %v984_v62, %v992_v63  ;;  %v11726_v63 = vld [vmem:[%s15708_s1 + $0x230] sm:$0xff]  ;;  %v854_v42 = vunpack.c.l.b16 %v550_v61 }
  0xa7   : > { %v2228_v19 = vshrl.u32 %v2107_v36, 16  ;;  %v2231_v50 = vshll.u32 %v2107_v36, 16  ;;  %v1006_v27 = vrot.slane %v1004_v32, 3  ;;  %v1009_v34 = vrot.slane %v1007_v33, 4  ;;  %5298 = vmatpush.bf16.msra.mxu0 %v11726_v63  ;;  %v12062_v61 = vld [vmem:[#allocation2 + $0x30] sm:$0x8] }
  0xa8   : > { %v3088_v7 = vpop.f32.mrf.mxu0  ;;  %v723_v35 = vor.u32 %v722_v20, %v719_v37 }
  0xa9   : > { %v2230_v56 = vrot.slane %v2228_v19, 3  ;;  %v2233_v57 = vrot.slane %v2231_v50, 4  ;;  %v12815_v19 = vrot.slane %v2266_v38, 4 }
  0xaa   : > { %v3177_v43 = vpop.f32.mrf.mxu1  ;;  %v998_v36 = vshll.u32 %v723_v35, 16 }
  0xab   : > { %3265 = vmatmul.bf16.vlgmr.msrb.gmra.mxu2 %v2192_v44  ;;  %3587 = vmatmul.bf16.vlgmr.msrb.gmra.mxu0 %v958_v31  ;;  %v12786_v46 = vadd.f32 %v3177_v43, %v3088_v7  ;;  %v976_v44 = vsel %vm933_vm3, %v967_v60, %v975_v47  ;;  %v2234_v3 = vor.u32 %v2233_v57, %v2230_v56  ;;  %v12796_v60 = vld [vmem:[#allocation2 + $0x24] sm:$0xff]   ;;  %v889_v7 = vrot.slane %v869_v1, 5  ;;  %v1768_v57 = vld [vmem:[#allocation2 + $0x3c] sm:$0x1] }
  0xac   : > { %v995_v43 = vshrl.u32 %v723_v35, 16  ;;  %v620_v50 = vunpack.c.h.b16 %v12796_v60  ;;  %v1000_v51 = vrot.slane %v998_v36, 4  ;;  %v2269_v37 = vor.u32 %v12815_v19, %v12813_v39 }
  0xad   : > { %3676 = vmatmul.bf16.vlgmr.msrb.gmra.mxu1 %v976_v44  ;;  %v2235_v31 = vsel %vm933_vm3, %v2226_v17, %v2234_v3  ;;  %v890_v16 = vsel %vm884_vm7, %v888_v10, %v889_v7  ;;  %v11710_v17 = vld [vmem:[%s15708_s1 + $0x1b0] sm:$0xff]  ;;  %v1021_v3 = vshrl.u32 %v12059_v54, 16  ;;  %v1024_v10 = vshll.u32 %v12059_v54, 16 }
  0xae   : > { %v3128_v55 = vpop.f32.mrf.mxu2  ;;  %v1012_v41 = vshrl.u32 %v890_v16, 16  ;;  %v1015_v40 = vshll.u32 %v890_v16, 16  ;;  %5120 = vmatpush.bf16.msra.mxu2 %v11710_v17  ;;  %v997_v21 = vrot.slane %v995_v43, 3  ;;  %v665_v62 = vpack.c.b16 %v620_v50, %v620_v50 }
  0xaf   : > { %v1023_v33 = vrot.slane %v1021_v3, 3  ;;  %v728_v25 = vshll.u32 %v12796_v60, 16  ;;  %v1026_v16 = vrot.slane %v1024_v10, 4 }
  0xb0   : > { %v3090_v2 = vpop.f32.mrf.mxu0  ;;  %v1014_v47 = vrot.slane %v1012_v41, 3  ;;  %v1017_v11 = vrot.slane %v1015_v40, 4  ;;  %v1001_v0 = vor.u32 %v1000_v51, %v997_v21  ;;  %v1029_v12 = vshrl.u32 %v665_v62, 16 }
  0xb1   : > { %v1032_v20 = vshll.u32 %v665_v62, 16  ;;  %v730_v17 = vrot.slane %v728_v25, 5  ;;  %v1027_v36 = vor.u32 %v1026_v16, %v1023_v33  ;;  %v891_v40 = vrot.slane %v12796_v60, 5  ;;  %v510_v25 = vld [vmem:[#allocation2 + $0x34] sm:$0xff]   ;;  %v364_v16 = vld [vmem:[#allocation2 + $0x5c] sm:$0x1] }
  0xb2   : > { %v3179_v8 = vpop.f32.mrf.mxu1  ;;  %3498 = vmatmul.bf16.vlgmr.msrb.gmra.mxu3 %v950_v26  ;;  %v1010_v26 = vor.u32 %v1009_v34, %v1006_v27  ;;  %v1018_v1 = vor.u32 %v1017_v11, %v1014_v47  ;;  %v1031_v38 = vrot.slane %v1029_v12, 3  ;;  %v870_v21 = vpack.c.b16 %v854_v42, %v854_v42 }
  0xb3   : > { %v12805_v24 = vadd.f32 %v3179_v8, %v3090_v2  ;;  %v2072_v2 = vunpack.c.l.b16 %v1768_v57  ;;  %v361_v8 = vld [vmem:[#allocation2 + $0x4c] sm:$0x1]  ;;  %v1034_v27 = vrot.slane %v1032_v20, 4  ;;  %v12836_v51 = vrot.slane %v12569_v9, 5 }
  0xb4   : > { %v1019_v7 = vsel %vm933_vm3, %v1010_v26, %v1018_v1  ;;  %v362_v26 = vsel %vm12675_vm6, 0, %v361_v8  ;;  %v1047_v1 = vshrl.u32 %v891_v40, 16  ;;  %v1050_v3 = vshll.u32 %v891_v40, 16  ;;  %v12277_v8 = vld [vmem:[#allocation2 + $0x30] sm:$0xf0]  }
  0xb5   : > { %v3217_v48 = vpop.f32.mrf.mxu3  ;;  %v2088_v32 = vpack.c.b16 %v2072_v2, %v2072_v2  ;;  %363 = vst [vmem:[#allocation2 + $0x4c] sm:$0x1] %v362_v26  ;;  %v2306_v10 = vshrl.u32 %v12836_v51, 16 }
  0xb6   : > { %v3130_v45 = vpop.f32.mrf.mxu2  ;;  %v12818_v44 = vadd.f32 %v3217_v48, %v3128_v55  ;;  %v725_v55 = vshrl.u32 %v12796_v60, 16 }
  0xb7   : > { %v2109_v34 = vrot.slane %v2088_v32, 5  ;;  %v1052_v32 = vrot.slane %v1050_v3, 4 }
  0xb8   : > { %v3093_v56 = vpop.f32.mrf.mxu0  ;;  %v727_v41 = vrot.slane %v725_v55, 4  ;;  %v1049_v55 = vrot.slane %v1047_v1, 3 }
  0xb9   : > { %v2110_v50 = vsel %vm884_vm7, %v12794_v59, %v2109_v34  ;;  %v12848_v34 = vrot.slane %v2306_v10, 3 }
  0xba   : > { %v3182_v14 = vpop.f32.mrf.mxu1  ;;  %v731_v48 = vor.u32 %v730_v17, %v727_v41  ;;  %v2274_v57 = vshll.u32 %v2110_v50, 16  ;;  %v2309_v41 = vshll.u32 %v12836_v51, 16  ;;  %v551_v17 = vld [vmem:[#allocation2 + $0x3c] sm:$0x1] }
  0xbb   : > { %3270 = vmatmul.bf16.gmra.mxu2 %v2235_v31  ;;  %3592 = vmatmul.bf16.gmra.mxu0 %v1001_v0  ;;  %v12828_v35 = vadd.f32 %v3182_v14, %v3093_v56  ;;  %v1035_v31 = vor.u32 %v1034_v27, %v1031_v38  ;;  %v2271_v56 = vshrl.u32 %v2110_v50, 16  ;;  %v892_v0 = vrot.slane %v870_v21, 5 }
  0xbc   : > { %v1038_v62 = vshrl.u32 %v731_v48, 16  ;;  %v1041_v63 = vshll.u32 %v731_v48, 16  ;;  %v2276_v59 = vrot.slane %v2274_v57, 4  ;;  %v12855_v48 = vrot.slane %v2309_v41, 4 }
  0xbd   : > { %v3219_v47 = vpop.f32.mrf.mxu3  ;;  %3681 = vmatmul.bf16.gmra.mxu1 %v1019_v7  ;;  %v12841_v60 = vsel %vm933_vm3, %v1027_v36, %v1035_v31  ;;  %v2273_v2 = vrot.slane %v2271_v56, 3  ;;  %v1053_v36 = vor.u32 %v1052_v32, %v1049_v55  ;;  %v623_v56 = vunpack.c.h.b16 %v510_v25 }
  0xbe   : > { %v3133_v43 = vpop.f32.mrf.mxu2  ;;  %v12838_v11 = vadd.f32 %v3219_v47, %v3130_v45  ;;  %v1040_v9 = vrot.slane %v1038_v62, 3  ;;  %v1043_v20 = vrot.slane %v1041_v63, 4  ;;  %v893_v45 = vsel %vm884_vm7, %v891_v40, %v892_v0  ;;  %v1769_v40 = vld [vmem:[#allocation2 + $0x4c] sm:$0x1] }
  0xbf   : > { %v2277_v7 = vor.u32 %v2276_v59, %v2273_v2  ;;  %v1055_v33 = vshrl.u32 %v893_v45, 16  ;;  %v1058_v27 = vshll.u32 %v893_v45, 16  ;;  %v2073_v50 = vunpack.c.l.b16 %v1769_v40 }
  0xc0   : > { %v3095_v54 = vpop.f32.mrf.mxu0  ;;  %v1044_v38 = vor.u32 %v1043_v20, %v1040_v9  ;;  %v855_v57 = vunpack.c.l.b16 %v551_v17  ;;  %v365_v62 = vsel %vm12675_vm6, 0, %v364_v16  ;;  %v2312_v19 = vor.u32 %v12855_v48, %v12848_v34 }
  0xc1   : > { %v1057_v31 = vrot.slane %v1055_v33, 3  ;;  %v1060_v47 = vrot.slane %v1058_v27, 4  ;;  %v2089_v39 = vpack.c.b16 %v2073_v50, %v2073_v50  ;;  %366 = vst [vmem:[#allocation2 + $0x5c] sm:$0x1] %v365_v62  ;;  %v667_v0 = vpack.c.b16 %v623_v56, %v623_v56 }
  0xc2   : > { %v3184_v12 = vpop.f32.mrf.mxu1  ;;  %3503 = vmatmul.bf16.gmra.mxu3 %v12799_v29  ;;  %v2278_v29 = vsel %vm933_vm3, %v2269_v37, %v2277_v7  ;;  %v12063_v37 = vor.u32 %v12277_v8, %v12062_v61  ;;  %v871_v1 = vpack.c.b16 %v855_v57, %v855_v57  ;;  %v12864_v2 = vrot.slane %v12582_v52, 5 }
  0xc3   : > { %v12846_v14 = vadd.f32 %v3184_v12, %v3095_v54  ;;  %v1061_v63 = vor.u32 %v1060_v47, %v1057_v31  ;;  %v2112_v3 = vrot.slane %v2089_v39, 5  ;;  %v1072_v20 = vshrl.u32 %v667_v0, 16 }
  0xc4   : > { %v1064_v10 = vshrl.u32 %v12063_v37, 16  ;;  %v1067_v12 = vshll.u32 %v12063_v37, 16  ;;  %v1075_v45 = vshll.u32 %v667_v0, 16  ;;  %v733_v55 = vshrl.u32 %v510_v25, 16 }
  0xc5   : > { %v3222_v26 = vpop.f32.mrf.mxu3  ;;  %v1062_v59 = vsel %vm933_vm3, %v1053_v36, %v1061_v63  ;;  %v2113_v61 = vsel %vm884_vm7, %v12836_v51, %v2112_v3  ;;  %v736_v52 = vshll.u32 %v510_v25, 16  ;;  %v894_v36 = vrot.slane %v510_v25, 5 }
  0xc6   : > { %v3135_v42 = vpop.f32.mrf.mxu2  ;;  %v12857_v21 = vadd.f32 %v3222_v26, %v3133_v43  ;;  %v1066_v7 = vrot.slane %v1064_v10, 3  ;;  %v1069_v32 = vrot.slane %v1067_v12, 4  ;;  %v2314_v8 = vshrl.u32 %v2113_v61, 16 }
  0xc7   : > { %v2317_v16 = vshll.u32 %v2113_v61, 16  ;;  %v1077_v27 = vrot.slane %v1075_v45, 4  ;;  %v735_v17 = vrot.slane %v733_v55, 4  ;;  %v1090_v56 = vshrl.u32 %v894_v36, 16  ;;  %v11709_v45 = vld [vmem:[%s15708_s1 + $0x1a8] sm:$0xff] }
  0xc8   : > { %v3098_v54 = vpop.f32.mrf.mxu0  ;;  %v1070_v41 = vor.u32 %v1069_v32, %v1066_v7  ;;  %v2316_v26 = vrot.slane %v2314_v8, 3  ;;  %v1770_v50 = vld [vmem:[#allocation2 + $0x5c] sm:$0x1]  ;;  %v1093_v57 = vshll.u32 %v894_v36, 16  ;;  %v2349_v37 = vshrl.u32 %v12864_v2, 16  ;;  %v11717_v55 = vld [vmem:[%s15708_s1 + $0x1e8] sm:$0xff]  ;;  %5121 = vmatpush.bf16.msra.mxu2 %v11709_v45 }
  0xc9   : > { %v2319_v47 = vrot.slane %v2317_v16, 4  ;;  %v2074_v39 = vunpack.c.l.b16 %v1770_v50  ;;  %v12278_v8 = vld [vmem:[#allocation2 + $0x40] sm:$0xf0]   ;;  %v367_v16 = vld [vmem:[#allocation2 + $0x6c] sm:$0x1]  ;;  %5210 = vmatpush.bf16.msra.mxu3 %v11717_v55 }
  0xca   : > { %v3187_v43 = vpop.f32.mrf.mxu1  ;;  %v1095_v10 = vrot.slane %v1093_v57, 4 }
  0xcb   : > { %3275 = vmatmul.bf16.gmra.mxu2 %v2278_v29  ;;  %3597 = vmatmul.bf16.gmra.mxu0 %v1044_v38  ;;  %v12867_v9 = vadd.f32 %v3187_v43, %v3098_v54  ;;  %v1074_v38 = vrot.slane %v1072_v20, 3  ;;  %v738_v29 = vrot.slane %v736_v52, 5  ;;  %v895_v54 = vrot.slane %v871_v1, 5  ;;  %v12066_v20 = vld [vmem:[#allocation2 + $0x40] sm:$0x8] }
  0xcc   : > { %v2320_v62 = vor.u32 %v2319_v47, %v2316_v26  ;;  %v2090_v52 = vpack.c.b16 %v2074_v39, %v2074_v39  ;;  %v368_v39 = vsel %vm12675_vm6, 0, %v367_v16 }
  0xcd   : > { %v3224_v34 = vpop.f32.mrf.mxu3  ;;  %3686 = vmatmul.bf16.gmra.mxu1 %v1062_v59  ;;  %v1078_v51 = vor.u32 %v1077_v27, %v1074_v38  ;;  %v739_v48 = vor.u32 %v738_v29, %v735_v17  ;;  %v896_v43 = vsel %vm884_vm7, %v894_v36, %v895_v54  ;;  %v1092_v59 = vrot.slane %v1090_v56, 3  ;;  %v552_v17 = vld [vmem:[#allocation2 + $0x4c] sm:$0x1]  ;;  %369 = vst [vmem:[#allocation2 + $0x6c] sm:$0x1] %v368_v39 }
  0xce   : > { %v3138_v33 = vpop.f32.mrf.mxu2  ;;  %v12871_v31 = vadd.f32 %v3224_v34, %v3135_v42  ;;  %v2321_v1 = vsel %vm933_vm3, %v2312_v19, %v2320_v62  ;;  %v1098_v12 = vshrl.u32 %v896_v43, 16  ;;  %v1101_v32 = vshll.u32 %v896_v43, 16  ;;  %v11725_v54 = vld [vmem:[%s15708_s1 + $0x228] sm:$0xff] }
  0xcf   : > { %v12874_v63 = vsel %vm933_vm3, %v1070_v41, %v1078_v51  ;;  %v1081_v25 = vshrl.u32 %v739_v48, 16  ;;  %v1084_v42 = vshll.u32 %v739_v48, 16  ;;  %v1096_v19 = vor.u32 %v1095_v10, %v1092_v59  ;;  %5299 = vmatpush.bf16.msra.mxu0 %v11725_v54 }
  0xd0   : > { %v3100_v40 = vpop.f32.mrf.mxu0  ;;  %v1100_v27 = vrot.slane %v1098_v12, 3  ;;  %v2351_v34 = vrot.slane %v2349_v37, 3  ;;  %v2352_v41 = vshll.u32 %v12864_v2, 16  ;;  %v2115_v26 = vrot.slane %v2090_v52, 5 }
  0xd1   : > { %v1083_v61 = vrot.slane %v1081_v25, 3  ;;  %v1086_v7 = vrot.slane %v1084_v42, 4  ;;  %v856_v62 = vunpack.c.l.b16 %v552_v17  ;;  %v12900_v10 = vrot.slane %v12601_v58, 5 }
  0xd2   : > { %v3189_v0 = vpop.f32.mrf.mxu1  ;;  %3508 = vmatmul.bf16.gmra.mxu3 %v12841_v60  ;;  %v513_v60 = vld [vmem:[#allocation2 + $0x44] sm:$0xff]   ;;  %v2354_v50 = vrot.slane %v2352_v41, 4  ;;  %v2116_v57 = vsel %vm884_vm7, %v12864_v2, %v2115_v26 }
  0xd3   : > { %v12879_v3 = vadd.f32 %v3189_v0, %v3100_v40  ;;  %v1087_v36 = vor.u32 %v1086_v7, %v1083_v61  ;;  %v1103_v40 = vrot.slane %v1101_v32, 4  ;;  %v626_v48 = vunpack.c.h.b16 %v513_v60 }
  0xd4   : > { %v2355_v37 = vor.u32 %v2354_v50, %v2351_v34  ;;  %v2357_v0 = vshrl.u32 %v2116_v57, 16  ;;  %v2360_v25 = vshll.u32 %v2116_v57, 16  ;;  %v2392_v57 = vshrl.u32 %v12900_v10, 16 }
  0xd5   : > { %v3227_v29 = vpop.f32.mrf.mxu3  ;;  %v1104_v56 = vor.u32 %v1103_v40, %v1100_v27  ;;  %v669_v59 = vpack.c.b16 %v626_v48, %v626_v48  ;;  %v872_v27 = vpack.c.b16 %v856_v62, %v856_v62 }
  0xd6   : > { %v3140_v38 = vpop.f32.mrf.mxu2  ;;  %v12889_v47 = vadd.f32 %v3227_v29, %v3138_v33  ;;  %v12067_v33 = vor.u32 %v12278_v8, %v12066_v20  ;;  %v2359_v12 = vrot.slane %v2357_v0, 3  ;;  %v2362_v45 = vrot.slane %v2360_v25, 4 }
  0xd7   : > { %v1105_v43 = vsel %vm933_vm3, %v1096_v19, %v1104_v56  ;;  %v1115_v7 = vshrl.u32 %v669_v59, 16  ;;  %v1118_v32 = vshll.u32 %v669_v59, 16  ;;  %v741_v20 = vshrl.u32 %v513_v60, 16  ;;  %v1771_v56 = vld [vmem:[#allocation2 + $0x6c] sm:$0x1] }
  0xd8   : > { %v3103_v51 = vpop.f32.mrf.mxu0  ;;  %v1107_v55 = vshrl.u32 %v12067_v33, 16  ;;  %v1110_v61 = vshll.u32 %v12067_v33, 16  ;;  %v2363_v8 = vor.u32 %v2362_v45, %v2359_v12  ;;  %v898_v54 = vrot.slane %v872_v27, 5 }
  0xd9   : > { %v1117_v41 = vrot.slane %v1115_v7, 3  ;;  %v1120_v58 = vrot.slane %v1118_v32, 4  ;;  %v743_v17 = vrot.slane %v741_v20, 4  ;;  %v2075_v25 = vunpack.c.l.b16 %v1771_v56 }
  0xda   : > { %v3192_v42 = vpop.f32.mrf.mxu1  ;;  %v1109_v16 = vrot.slane %v1107_v55, 3  ;;  %v1112_v19 = vrot.slane %v1110_v61, 4  ;;  %v2364_v40 = vsel %vm933_vm3, %v2355_v37, %v2363_v8  ;;  %v12070_v37 = vld [vmem:[#allocation2 + $0x50] sm:$0x8]  ;;  %v516_v8 = vld [vmem:[#allocation2 + $0x54] sm:$0xff]  }
  0xdb   : > { %3280 = vmatmul.bf16.gmra.mxu2 %v2321_v1  ;;  %3602 = vmatmul.bf16.gmra.mxu0 %v1087_v36  ;;  %v12902_v2 = vadd.f32 %v3192_v42, %v3103_v51  ;;  %v744_v1 = vshll.u32 %v513_v60, 16  ;;  %v897_v51 = vrot.slane %v513_v60, 5  ;;  %v1121_v48 = vor.u32 %v1120_v58, %v1117_v41  ;;  %v553_v41 = vld [vmem:[#allocation2 + $0x5c] sm:$0x1] }
  0xdc   : > { %v1113_v50 = vor.u32 %v1112_v19, %v1109_v16  ;;  %v2395_v60 = vshll.u32 %v12900_v10, 16  ;;  %v2091_v20 = vpack.c.b16 %v2075_v25, %v2075_v25  ;;  %v12279_v16 = vld [vmem:[#allocation2 + $0x50] sm:$0xf0]  }
  0xdd   : > { %v3229_v34 = vpop.f32.mrf.mxu3  ;;  %3691 = vmatmul.bf16.gmra.mxu1 %v1105_v43  ;;  %v746_v26 = vrot.slane %v744_v1, 5  ;;  %v1133_v39 = vshrl.u32 %v897_v51, 16  ;;  %v1136_v0 = vshll.u32 %v897_v51, 16  ;;  %v12912_v43 = vrot.slane %v2392_v57, 3 }
  0xde   : > { %v3143_v52 = vpop.f32.mrf.mxu2  ;;  %v12904_v29 = vadd.f32 %v3229_v34, %v3140_v38  ;;  %v12909_v42 = vsel %vm933_vm3, %v1113_v50, %v1121_v48  ;;  %v899_v38 = vsel %vm884_vm7, %v897_v51, %v898_v54  ;;  %v2397_v19 = vrot.slane %v2395_v60, 4  ;;  %v370_v51 = vld [vmem:[#allocation2 + $0x7c] sm:$0x1] }
  0xdf   : > { %v747_v62 = vor.u32 %v746_v26, %v743_v17  ;;  %v1135_v55 = vrot.slane %v1133_v39, 3  ;;  %v1138_v61 = vrot.slane %v1136_v0, 4  ;;  %v1141_v7 = vshrl.u32 %v899_v38, 16 }
  0xe0   : > { %v3105_v36 = vpop.f32.mrf.mxu0  ;;  %v1144_v32 = vshll.u32 %v899_v38, 16  ;;  %v2398_v56 = vor.u32 %v2397_v19, %v12912_v43  ;;  %v629_v39 = vunpack.c.h.b16 %v516_v8  ;;  %v857_v0 = vunpack.c.l.b16 %v553_v41 }
  0xe1   : > { %v1124_v12 = vshrl.u32 %v747_v62, 16  ;;  %v1127_v45 = vshll.u32 %v747_v62, 16  ;;  %v1139_v17 = vor.u32 %v1138_v61, %v1135_v55  ;;  %v1143_v26 = vrot.slane %v1141_v7, 3 }
  0xe2   : > { %v3194_v33 = vpop.f32.mrf.mxu1  ;;  %3513 = vmatmul.bf16.gmra.mxu3 %v12874_v63  ;;  %v1146_v63 = vrot.slane %v1144_v32, 4  ;;  %v12071_v38 = vor.u32 %v12279_v16, %v12070_v37  ;;  %v371_v60 = vsel %vm12675_vm6, 0, %v370_v51  ;;  %v752_v19 = vshll.u32 %v516_v8, 16 }
  0xe3   : > { %v12916_v59 = vadd.f32 %v3194_v33, %v3105_v36  ;;  %v1126_v27 = vrot.slane %v1124_v12, 3  ;;  %v1129_v34 = vrot.slane %v1127_v45, 4  ;;  %v2118_v36 = vrot.slane %v2091_v20, 5  ;;  %372 = vst [vmem:[#allocation2 + $0x7c] sm:$0x1] %v371_v60 }
  0xe4   : > { %v1147_v57 = vor.u32 %v1146_v63, %v1143_v26  ;;  %v671_v45 = vpack.c.b16 %v629_v39, %v629_v39  ;;  %v1153_v7 = vshll.u32 %v12071_v38, 16  ;;  %v873_v41 = vpack.c.b16 %v857_v0, %v857_v0 }
  0xe5   : > { %v3232_v58 = vpop.f32.mrf.mxu3  ;;  %v1130_v54 = vor.u32 %v1129_v34, %v1126_v27  ;;  %v2119_v62 = vsel %vm884_vm7, %v12900_v10, %v2118_v36  ;;  %v1150_v10 = vshrl.u32 %v12071_v38, 16  ;;  %v749_v27 = vshrl.u32 %v516_v8, 16  ;;  %v12074_v36 = vld [vmem:[#allocation2 + $0x60] sm:$0x8] }
  0xe6   : > { %v3145_v1 = vpop.f32.mrf.mxu2  ;;  %v12918_v50 = vadd.f32 %v3232_v58, %v3143_v52  ;;  %v2400_v25 = vshrl.u32 %v2119_v62, 16  ;;  %v2403_v33 = vshll.u32 %v2119_v62, 16  ;;  %v1148_v52 = vsel %vm933_vm3, %v1139_v17, %v1147_v57 }
  0xe7   : > { %v1158_v32 = vshrl.u32 %v671_v45, 16  ;;  %v1161_v20 = vshll.u32 %v671_v45, 16  ;;  %v1152_v34 = vrot.slane %v1150_v10, 3  ;;  %v1155_v58 = vrot.slane %v1153_v7, 4 }
  0xe8   : > { %15745 = vst [vmem:[#allocation6_spill] sm:$0xff] %v12918_v50  ;;  %v3108_v48 = vpop.f32.mrf.mxu0  ;;  %v2402_v55 = vrot.slane %v2400_v25, 3  ;;  %v2405_v61 = vrot.slane %v2403_v33, 4  ;;  %v751_v63 = vrot.slane %v749_v27, 4  ;;  %v754_v57 = vrot.slane %v752_v19, 5 }
  0xe9   : > { %v1160_v17 = vrot.slane %v1158_v32, 3  ;;  %v1163_v26 = vrot.slane %v1161_v20, 4  ;;  %v900_v62 = vrot.slane %v516_v8, 5  ;;  %v1156_v39 = vor.u32 %v1155_v58, %v1152_v34  ;;  %v11716_v20 = vld [vmem:[%s15708_s1 + $0x1e0] sm:$0xff] }
  0xea   : > { %v3197_v12 = vpop.f32.mrf.mxu1  ;;  %v2406_v16 = vor.u32 %v2405_v61, %v2402_v55  ;;  %v901_v33 = vrot.slane %v873_v41, 5  ;;  %v2120_v38 = vrot.slane %v12672_v4, 5  ;;  %v755_v0 = vor.u32 %v754_v57, %v751_v63  ;;  %v11708_v4 = vld [vmem:[%s15708_s1 + $0x1a0] sm:$0xff]  ;;  %5211 = vmatpush.bf16.msra.mxu3 %v11716_v20 }
  0xeb   : > { %3285 = vmatmul.bf16.gmra.mxu2 %v2364_v40  ;;  %3607 = vmatmul.bf16.gmra.mxu0 %v1130_v54  ;;  %v12926_v43 = vadd.f32 %v3197_v12, %v3108_v48  ;;  %v1164_v25 = vor.u32 %v1163_v26, %v1160_v17  ;;  %v1176_v60 = vshrl.u32 %v900_v62, 16  ;;  %v1179_v12 = vshll.u32 %v900_v62, 16  ;;  %v519_v41 = vld [vmem:[#allocation2 + $0x64] sm:$0xff]  }
  0xec   : > { %v2407_v54 = vsel %vm933_vm3, %v2398_v56, %v2406_v16  ;;  %v2435_v10 = vshrl.u32 %v2120_v38, 16  ;;  %v1167_v56 = vshrl.u32 %v755_v0, 16  ;;  %v1170_v7 = vshll.u32 %v755_v0, 16  ;;  %5122 = vmatpush.bf16.msra.mxu2 %v11708_v4 }
  0xed   : > { %v3234_v40 = vpop.f32.mrf.mxu3  ;;  %3696 = vmatmul.bf16.gmra.mxu1 %v1148_v52  ;;  %v1772_v52 = vld [vmem:[#allocation2 + $0x7c] sm:$0x1]  ;;  %v12933_v55 = vsel %vm933_vm3, %v1156_v39, %v1164_v25  ;;  %v1178_v32 = vrot.slane %v1176_v60, 3  ;;  %v1181_v27 = vrot.slane %v1179_v12, 4  ;;  %v2438_v63 = vshll.u32 %v2120_v38, 16 }
  0xee   : > { %v3148_v37 = vpop.f32.mrf.mxu2  ;;  %v12928_v51 = vadd.f32 %v3234_v40, %v3145_v1  ;;  %v902_v1 = vsel %vm884_vm7, %v900_v62, %v901_v33  ;;  %v2076_v61 = vunpack.c.l.b16 %v1772_v52  ;;  %v12280_v40 = vld [vmem:[#allocation2 + $0x60] sm:$0xf0]   ;;  %v1169_v58 = vrot.slane %v1167_v56, 3 }
  0xef   : > { %v1184_v16 = vshrl.u32 %v902_v1, 16  ;;  %v1187_v34 = vshll.u32 %v902_v1, 16  ;;  %v1172_v17 = vrot.slane %v1170_v7, 4  ;;  %v2437_v26 = vrot.slane %v2435_v10, 3  ;;  %v373_v1 = vld [vmem:[#allocation2 + $0x8c] sm:$0x1] }
  0xf0   : > { %15746 = vst [vmem:[#allocation7_spill] sm:$0xff] %v12928_v51  ;;  %v3110_v48 = vpop.f32.mrf.mxu0  ;;  %v2092_v19 = vpack.c.b16 %v2076_v61, %v2076_v61  ;;  %v1182_v62 = vor.u32 %v1181_v27, %v1178_v32  ;;  %v2440_v52 = vrot.slane %v2438_v63, 4  ;;  %v632_v56 = vunpack.c.h.b16 %v519_v41 }
  0xf1   : > { %v1186_v39 = vrot.slane %v1184_v16, 3  ;;  %v1189_v25 = vrot.slane %v1187_v34, 4  ;;  %v1173_v12 = vor.u32 %v1172_v17, %v1169_v58  ;;  %v12075_v27 = vor.u32 %v12280_v40, %v12074_v36 }
  0xf2   : > { %v3199_v45 = vpop.f32.mrf.mxu1  ;;  %3518 = vmatmul.bf16.gmra.mxu3 %v12909_v42  ;;  %v2121_v33 = vrot.slane %v2092_v19, 5  ;;  %v2441_v4 = vor.u32 %v2440_v52, %v2437_v26  ;;  %v673_v34 = vpack.c.b16 %v632_v56, %v632_v56  ;;  %v374_v19 = vsel %vm12675_vm6, 0, %v373_v1  ;;  %v12078_v1 = vld [vmem:[#allocation2 + $0x70] sm:$0x8] }
  0xf3   : > { %v12937_v8 = vadd.f32 %v3199_v45, %v3110_v48  ;;  %v554_v48 = vld [vmem:[#allocation2 + $0x6c] sm:$0x1]  ;;  %v11724_v45 = vld [vmem:[%s15708_s1 + $0x220] sm:$0xff]  ;;  %v1190_v61 = vor.u32 %v1189_v25, %v1186_v39  ;;  %v1193_v63 = vshrl.u32 %v12075_v27, 16  ;;  %375 = vst [vmem:[#allocation2 + $0x8c] sm:$0x1] %v374_v19 }
  0xf4   : > { %v2122_v10 = vsel %vm884_vm7, %v2120_v38, %v2121_v33  ;;  %v858_v7 = vunpack.c.l.b16 %v554_v48  ;;  %5300 = vmatpush.bf16.msra.mxu0 %v11724_v45  ;;  %v1196_v26 = vshll.u32 %v12075_v27, 16  ;;  %v1201_v48 = vshrl.u32 %v673_v34, 16 }
  0xf5   : > { %v3237_v57 = vpop.f32.mrf.mxu3  ;;  %v2443_v32 = vshrl.u32 %v2122_v10, 16  ;;  %v2446_v20 = vshll.u32 %v2122_v10, 16  ;;  %v1191_v16 = vsel %vm933_vm3, %v1182_v62, %v1190_v61  ;;  %v757_v36 = vshrl.u32 %v519_v41, 16 }
  0xf6   : > { %v3150_v42 = vpop.f32.mrf.mxu2  ;;  %v12945_v0 = vadd.f32 %v3237_v57, %v3148_v37  ;;  %v1204_v57 = vshll.u32 %v673_v34, 16  ;;  %v760_v25 = vshll.u32 %v519_v41, 16  ;;  %v874_v33 = vpack.c.b16 %v858_v7, %v858_v7 }
  0xf7   : > { %v2445_v17 = vrot.slane %v2443_v32, 3  ;;  %v2448_v38 = vrot.slane %v2446_v20, 4  ;;  %v1203_v52 = vrot.slane %v1201_v48, 3  ;;  %v903_v20 = vrot.slane %v519_v41, 5 }
  0xf8   : > { %15747 = vst [vmem:[#allocation8_spill] sm:$0xff] %v12945_v0  ;;  %v3113_v60 = vpop.f32.mrf.mxu0  ;;  %v1206_v45 = vrot.slane %v1204_v57, 4  ;;  %v762_v32 = vrot.slane %v760_v25, 5  ;;  %v904_v34 = vrot.slane %v874_v33, 5  ;;  %v2123_v19 = vrot.slane %v12689_v53, 5 }
  0xf9   : > { %v2449_v39 = vor.u32 %v2448_v38, %v2445_v17  ;;  %v1219_v17 = vshrl.u32 %v903_v20, 16 }
  0xfa   : > { %v3202_v37 = vpop.f32.mrf.mxu1  ;;  %v2478_v48 = vshrl.u32 %v2123_v19, 16  ;;  %v2481_v57 = vshll.u32 %v2123_v19, 16 }
  0xfb   : > { %3290 = vmatmul.bf16.gmra.mxu2 %v2407_v54  ;;  %3612 = vmatmul.bf16.gmra.mxu0 %v1173_v12  ;;  %v12954_v58 = vadd.f32 %v3202_v37, %v3113_v60  ;;  %v1195_v54 = vrot.slane %v1193_v63, 3  ;;  %v1198_v12 = vrot.slane %v1196_v26, 4  ;;  %v759_v60 = vrot.slane %v757_v36, 4  ;;  %v1773_v26 = vld [vmem:[#allocation2 + $0x8c] sm:$0x1] }
  0xfc   : > { %v2450_v56 = vsel %vm933_vm3, %v2441_v4, %v2449_v39  ;;  %v1207_v37 = vor.u32 %v1206_v45, %v1203_v52  ;;  %v1221_v39 = vrot.slane %v1219_v17, 3  ;;  %v2077_v33 = vunpack.c.l.b16 %v1773_v26  ;;  %v12969_v26 = vld [vmem:[#allocation2 + $0x80] sm:$0x8] }
  0xfd   : > { %v3239_v62 = vpop.f32.mrf.mxu3  ;;  %3701 = vmatmul.bf16.gmra.mxu1 %v1191_v16  ;;  %v1199_v27 = vor.u32 %v1198_v12, %v1195_v54  ;;  %v763_v7 = vor.u32 %v762_v32, %v759_v60  ;;  %v1222_v16 = vshll.u32 %v903_v20, 16  ;;  %v12281_v12 = vld [vmem:[#allocation2 + $0x70] sm:$0xf0]   ;;  %v2480_v32 = vrot.slane %v2478_v48, 3 }
  0xfe   : > { %v3153_v40 = vpop.f32.mrf.mxu2  ;;  %v12956_v61 = vadd.f32 %v3239_v62, %v3150_v42  ;;  %v905_v42 = vsel %vm884_vm7, %v903_v20, %v904_v34  ;;  %v522_v62 = vld [vmem:[#allocation2 + $0x74] sm:$0xff]   ;;  %v2483_v20 = vrot.slane %v2481_v57, 4  ;;  %v12079_v48 = vor.u32 %v12281_v12, %v12078_v1 }
  0xff   : > { %v12961_v63 = vsel %vm933_vm3, %v1199_v27, %v1207_v37  ;;  %v1210_v4 = vshrl.u32 %v763_v7, 16  ;;  %v1213_v36 = vshll.u32 %v763_v7, 16  ;;  %v1224_v53 = vrot.slane %v1222_v16, 4  ;;  %v555_v27 = vld [vmem:[#allocation2 + $0x7c] sm:$0x1] }
 0x100   : > { %15748 = vst [vmem:[#allocation9_spill] sm:$0xff] %v12956_v61  ;;  %v3115_v10 = vpop.f32.mrf.mxu0  ;;  %v1227_v54 = vshrl.u32 %v905_v42, 16  ;;  %v1230_v25 = vshll.u32 %v905_v42, 16  ;;  %v2484_v42 = vor.u32 %v2483_v20, %v2480_v32  ;;  %v377_v57 = vsel %vm12675_vm6, 0, %v376_v6 }
 0x101   : > { %v1212_v45 = vrot.slane %v1210_v4, 3  ;;  %v1215_v60 = vrot.slane %v1213_v36, 4  ;;  %v1225_v34 = vor.u32 %v1224_v53, %v1221_v39  ;;  %v635_v4 = vunpack.c.h.b16 %v522_v62  ;;  %378 = vst [vmem:[#allocation2 + $0x9c] sm:$0x1] %v377_v57 }
 0x102   : > { %v3204_v38 = vpop.f32.mrf.mxu1  ;;  %3523 = vmatmul.bf16.gmra.mxu3 %v12933_v55  ;;  %v1229_v55 = vrot.slane %v1227_v54, 3  ;;  %v859_v36 = vunpack.c.l.b16 %v555_v27  ;;  %v12974_v39 = vrot.slane %v12445_v49, 5  ;;  %v1236_v1 = vshrl.u32 %v12079_v48, 16 }
 0x103   : > { %v12965_v41 = vadd.f32 %v3204_v38, %v3115_v10  ;;  %v1232_v10 = vrot.slane %v1230_v25, 4  ;;  %v2093_v38 = vpack.c.b16 %v2077_v33, %v2077_v33  ;;  %v1216_v16 = vor.u32 %v1215_v60, %v1212_v45 }
 0x104   : > { %v675_v25 = vpack.c.b16 %v635_v4, %v635_v4  ;;  %v1239_v12 = vshll.u32 %v12079_v48, 16 }
 0x105   : > { %v3242_v37 = vpop.f32.mrf.mxu3  ;;  %v1233_v61 = vor.u32 %v1232_v10, %v1229_v55  ;;  %v2124_v0 = vrot.slane %v2093_v38, 5 }
 0x106   : > { %v3155_v52 = vpop.f32.mrf.mxu2  ;;  %v12967_v7 = vadd.f32 %v3242_v37, %v3153_v40  ;;  %v1244_v32 = vshrl.u32 %v675_v25, 16  ;;  %v1247_v6 = vshll.u32 %v675_v25, 16  ;;  %v765_v37 = vshrl.u32 %v522_v62, 16 }
 0x107   : > { %v1234_v40 = vsel %vm933_vm3, %v1225_v34, %v1233_v61  ;;  %v2125_v54 = vsel %vm884_vm7, %v2123_v19, %v2124_v0  ;;  %v1238_v61 = vrot.slane %v1236_v1, 3  ;;  %v1241_v34 = vrot.slane %v1239_v12, 4 }
 0x108   : > { %15749 = vst [vmem:[#allocation10_spill] sm:$0xff] %v12967_v7  ;;  %v3118_v17 = vpop.f32.mrf.mxu0  ;;  %v2486_v45 = vshrl.u32 %v2125_v54, 16  ;;  %v2489_v60 = vshll.u32 %v2125_v54, 16  ;;  %v1246_v0 = vrot.slane %v1244_v32, 3  ;;  %v1249_v19 = vrot.slane %v1247_v6, 4 }
 0x109   : > { %v1242_v48 = vor.u32 %v1241_v34, %v1238_v61  ;;  %v906_v54 = vrot.slane %v522_v62, 5  ;;  %v2524_v1 = vshll.u32 %v12974_v39, 16  ;;  %v11715_v61 = vld [vmem:[%s15708_s1 + $0x1d8] sm:$0xff] }
 0x10a   : > { %v3207_v53 = vpop.f32.mrf.mxu1  ;;  %v2488_v49 = vrot.slane %v2486_v45, 3  ;;  %v2491_v27 = vrot.slane %v2489_v60, 4  ;;  %v1250_v57 = vor.u32 %v1249_v19, %v1246_v0  ;;  %v1774_v60 = vld [vmem:[#allocation2 + $0x9c] sm:$0x1]  ;;  %5212 = vmatpush.bf16.msra.mxu3 %v11715_v61 }
 0x10b   : > { %3295 = vmatmul.bf16.gmra.mxu2 %v2450_v56  ;;  %3617 = vmatmul.bf16.gmra.mxu0 %v1216_v16  ;;  %v12978_v33 = vadd.f32 %v3207_v53, %v3118_v17  ;;  %v768_v56 = vshll.u32 %v522_v62, 16  ;;  %v767_v16 = vrot.slane %v765_v37, 4  ;;  %v875_v53 = vpack.c.b16 %v859_v36, %v859_v36  ;;  %v12991_v37 = vld [vmem:[#allocation2 + $0x84] sm:$0xff]  }
 0x10c   : > { %v2492_v17 = vor.u32 %v2491_v27, %v2488_v49  ;;  %v1262_v6 = vshrl.u32 %v906_v54, 16  ;;  %v1265_v49 = vshll.u32 %v906_v54, 16 }
 0x10d   : > { %v3244_v55 = vpop.f32.mrf.mxu3  ;;  %3706 = vmatmul.bf16.gmra.mxu1 %v1234_v40  ;;  %v770_v4 = vrot.slane %v768_v56, 5  ;;  %v2521_v40 = vshrl.u32 %v12974_v39, 16  ;;  %v907_v32 = vrot.slane %v875_v53, 5  ;;  %v12282_v56 = vld [vmem:[#allocation2 + $0x80] sm:$0xf0]  }
 0x10e   : > { %v3158_v20 = vpop.f32.mrf.mxu2  ;;  %v12980_v10 = vadd.f32 %v3244_v55, %v3155_v52  ;;  %v2493_v25 = vsel %vm933_vm3, %v2484_v42, %v2492_v17  ;;  %v12986_v52 = vsel %vm933_vm3, %v1242_v48, %v1250_v57  ;;  %v2078_v42 = vunpack.c.l.b16 %v1774_v60  ;;  %v11707_v55 = vld [vmem:[%s15708_s1 + $0x198] sm:$0xff] }
 0x10f   : > { %v771_v45 = vor.u32 %v770_v4, %v767_v16  ;;  %v908_v34 = vsel %vm884_vm7, %v906_v54, %v907_v32  ;;  %v1264_v0 = vrot.slane %v1262_v6, 3  ;;  %v13000_v19 = vrot.slane %v2521_v40, 3  ;;  %5123 = vmatpush.bf16.msra.mxu2 %v11707_v55 }
 0x110   : > { %15750 = vst [vmem:[#allocation11_spill] sm:$0xff] %v12980_v10  ;;  %v3120_v38 = vpop.f32.mrf.mxu0  ;;  %v1270_v4 = vshrl.u32 %v908_v34, 16  ;;  %v1273_v48 = vshll.u32 %v908_v34, 16  ;;  %v2526_v60 = vrot.slane %v2524_v1, 4  ;;  %v379_v10 = vld [vmem:[#allocation2 + $0xac] sm:$0x1]  ;;  %v638_v55 = vunpack.c.h.b16 %v12991_v37 }
 0x111   : > { %v1253_v62 = vshrl.u32 %v771_v45, 16  ;;  %v1256_v36 = vshll.u32 %v771_v45, 16  ;;  %v2094_v45 = vpack.c.b16 %v2078_v42, %v2078_v42  ;;  %v12083_v42 = vor.u32 %v12282_v56, %v12969_v26 }
 0x112   : > { %v3209_v12 = vpop.f32.mrf.mxu1  ;;  %3528 = vmatmul.bf16.gmra.mxu3 %v12961_v63  ;;  %v1267_v63 = vrot.slane %v1265_v49, 4  ;;  %v1272_v6 = vrot.slane %v1270_v4, 3  ;;  %v1275_v40 = vrot.slane %v1273_v48, 4  ;;  %v11723_v49 = vld [vmem:[%s15708_s1 + $0x218] sm:$0xff]  ;;  %v13013_v34 = vrot.slane %v12473_v28, 5 }
 0x113   : > { %v12989_v27 = vadd.f32 %v3209_v12, %v3120_v38  ;;  %v1255_v17 = vrot.slane %v1253_v62, 3  ;;  %v1258_v16 = vrot.slane %v1256_v36, 4  ;;  %v556_v12 = vld [vmem:[#allocation2 + $0x8c] sm:$0x1]  ;;  %v2127_v62 = vrot.slane %v2094_v45, 5  ;;  %5301 = vmatpush.bf16.msra.mxu0 %v11723_v49 }
 0x114   : > { %v1268_v53 = vor.u32 %v1267_v63, %v1264_v0  ;;  %v2527_v36 = vor.u32 %v2526_v60, %v13000_v19  ;;  %v1276_v1 = vor.u32 %v1275_v40, %v1272_v6  ;;  %v860_v61 = vunpack.c.l.b16 %v556_v12 }
 0x115   : > { %v3247_v57 = vpop.f32.mrf.mxu3  ;;  %v1259_v32 = vor.u32 %v1258_v16, %v1255_v17  ;;  %v2128_v63 = vsel %vm884_vm7, %v12974_v39, %v2127_v62  ;;  %v677_v19 = vpack.c.b16 %v638_v55, %v638_v55  ;;  %v1279_v17 = vshrl.u32 %v12083_v42, 16 }
 0x116   : > { %v3160_v38 = vpop.f32.mrf.mxu2  ;;  %v13002_v7 = vadd.f32 %v3247_v57, %v3158_v20  ;;  %v380_v20 = vsel %vm12675_vm6, 0, %v379_v10  ;;  %v1277_v26 = vsel %vm933_vm3, %v1268_v53, %v1276_v1  ;;  %v2529_v56 = vshrl.u32 %v2128_v63, 16 }
 0x117   : > { %v2532_v4 = vshll.u32 %v2128_v63, 16  ;;  %381 = vst [vmem:[#allocation2 + $0xac] sm:$0x1] %v380_v20  ;;  %v1281_v48 = vrot.slane %v1279_v17, 3  ;;  %v1282_v10 = vshll.u32 %v12083_v42, 16  ;;  %v1287_v57 = vshrl.u32 %v677_v19, 16 }
 0x118   : > { %15751 = vst [vmem:[#allocation12_spill] sm:$0xff] %v13002_v7  ;;  %v3123_v54 = vpop.f32.mrf.mxu0  ;;  %v1290_v28 = vshll.u32 %v677_v19, 16  ;;  %v2531_v60 = vrot.slane %v2529_v56, 3  ;;  %v773_v12 = vshrl.u32 %v12991_v37, 16  ;;  %v776_v39 = vshll.u32 %v12991_v37, 16 }
 0x119   : > { %v1289_v6 = vrot.slane %v1287_v57, 3  ;;  %v876_v53 = vpack.c.b16 %v860_v61, %v860_v61  ;;  %v909_v63 = vrot.slane %v12991_v37, 5 }
 0x11a   : > { %v3212_v0 = vpop.f32.mrf.mxu1  ;;  %v1292_v40 = vrot.slane %v1290_v28, 4  ;;  %v775_v42 = vrot.slane %v773_v12, 4  ;;  %v778_v1 = vrot.slane %v776_v39, 5 }
 0x11b   : > { %3300 = vmatmul.bf16.gmra.mxu2 %v2493_v25  ;;  %3622 = vmatmul.bf16.gmra.mxu0 %v1259_v32  ;;  %v13017_v16 = vadd.f32 %v3212_v0, %v3123_v54  ;;  %v2534_v25 = vrot.slane %v2532_v4, 4  ;;  %v1284_v54 = vrot.slane %v1282_v10, 4  ;;  %v910_v19 = vrot.slane %v876_v53, 5  ;;  %v12283_v53 = vld [vmem:[#allocation2 + $0x90] sm:$0xf0]  }
 0x11c   : > { %v1293_v0 = vor.u32 %v1292_v40, %v1289_v6  ;;  %v779_v56 = vor.u32 %v778_v1, %v775_v42  ;;  %v2567_v4 = vshll.u32 %v13013_v34, 16  ;;  %v1305_v57 = vshrl.u32 %v909_v63, 16  ;;  %v12086_v6 = vld [vmem:[#allocation2 + $0x90] sm:$0x8]  ;;  %v528_v40 = vld [vmem:[#allocation2 + $0x94] sm:$0xff]  }
 0x11d   : > { %v3249_v32 = vpop.f32.mrf.mxu3  ;;  %3711 = vmatmul.bf16.gmra.mxu1 %v1277_v26  ;;  %v2535_v55 = vor.u32 %v2534_v25, %v2531_v60  ;;  %v1285_v20 = vor.u32 %v1284_v54, %v1281_v48  ;;  %v2564_v26 = vshrl.u32 %v13013_v34, 16  ;;  %v911_v61 = vsel %vm884_vm7, %v909_v63, %v910_v19 }
 0x11e   : > { %v3163_v45 = vpop.f32.mrf.mxu2  ;;  %v13022_v49 = vadd.f32 %v3249_v32, %v3160_v38  ;;  %v1308_v28 = vshll.u32 %v909_v63, 16  ;;  %v1775_v48 = vld [vmem:[#allocation2 + $0xac] sm:$0x1]  ;;  %v1296_v60 = vshrl.u32 %v779_v56, 16  ;;  %v1313_v25 = vshrl.u32 %v911_v61, 16 }
 0x11f   : > { %v2536_v17 = vsel %vm933_vm3, %v2527_v36, %v2535_v55  ;;  %v13029_v38 = vsel %vm933_vm3, %v1285_v20, %v1293_v0  ;;  %v1299_v36 = vshll.u32 %v779_v56, 16  ;;  %v1307_v12 = vrot.slane %v1305_v57, 3  ;;  %v382_v56 = vld [vmem:[#allocation2 + $0xbc] sm:$0x1] }
 0x120   : > { %15752 = vst [vmem:[#allocation13_spill] sm:$0xff] %v13022_v49  ;;  %v3125_v62 = vpop.f32.mrf.mxu0  ;;  %v1310_v39 = vrot.slane %v1308_v28, 4  ;;  %v1316_v32 = vshll.u32 %v911_v61, 16  ;;  %v2079_v54 = vunpack.c.l.b16 %v1775_v48  ;;  %v1298_v42 = vrot.slane %v1296_v60, 3  ;;  %v557_v49 = vld [vmem:[#allocation2 + $0x9c] sm:$0x1] }
 0x121   : > { %v1301_v1 = vrot.slane %v1299_v36, 4  ;;  %v1315_v20 = vrot.slane %v1313_v25, 3  ;;  %v2566_v0 = vrot.slane %v2564_v26, 3  ;;  %v641_v50 = vunpack.c.h.b16 %v528_v40 }
 0x122   : > { %v3214_v10 = vpop.f32.mrf.mxu1  ;;  %3533 = vmatmul.bf16.gmra.mxu3 %v12986_v52  ;;  %v1311_v19 = vor.u32 %v1310_v39, %v1307_v12  ;;  %v1318_v52 = vrot.slane %v1316_v32, 4  ;;  %v12087_v60 = vor.u32 %v12283_v53, %v12086_v6  ;;  %v861_v36 = vunpack.c.l.b16 %v557_v49 }
 0x123   : > { %v13033_v37 = vadd.f32 %v3214_v10, %v3125_v62  ;;  %v2095_v62 = vpack.c.b16 %v2079_v54, %v2079_v54  ;;  %v2569_v10 = vrot.slane %v2567_v4, 4  ;;  %v1302_v61 = vor.u32 %v1301_v1, %v1298_v42 }
 0x124   : > { %v1319_v28 = vor.u32 %v1318_v52, %v1315_v20  ;;  %v383_v26 = vsel %vm12675_vm6, 0, %v382_v56  ;;  %v13042_v25 = vrot.slane %v12500_v22, 5  ;;  %v679_v12 = vpack.c.b16 %v641_v50, %v641_v50 }
 0x125   : > { %v3252_v63 = vpop.f32.mrf.mxu3  ;;  %v2130_v48 = vrot.slane %v2095_v62, 5  ;;  %v2570_v51 = vor.u32 %v2569_v10, %v2566_v0  ;;  %384 = vst [vmem:[#allocation2 + $0xbc] sm:$0x1] %v383_v26  ;;  %v1322_v49 = vshrl.u32 %v12087_v60, 16  ;;  %v1325_v6 = vshll.u32 %v12087_v60, 16 }
 0x126   : > { %v3165_v55 = vpop.f32.mrf.mxu2  ;;  %v13035_v7 = vadd.f32 %v3252_v63, %v3163_v45  ;;  %v1320_v45 = vsel %vm933_vm3, %v1311_v19, %v1319_v28  ;;  %v1330_v53 = vshrl.u32 %v679_v12, 16  ;;  %v1333_v42 = vshll.u32 %v679_v12, 16 }
 0x127   : > { %v2131_v4 = vsel %vm884_vm7, %v13013_v34, %v2130_v48  ;;  %v877_v1 = vpack.c.b16 %v861_v36, %v861_v36  ;;  %v1324_v0 = vrot.slane %v1322_v49, 3  ;;  %v781_v63 = vshrl.u32 %v528_v40, 16 }
 0x128   : > { %v13037_v57 = vpop.f32.mrf.mxu0  ;;  %v2572_v32 = vshrl.u32 %v2131_v4, 16  ;;  %v2575_v54 = vshll.u32 %v2131_v4, 16  ;;  %v1327_v50 = vrot.slane %v1325_v6, 4  ;;  %v1332_v34 = vrot.slane %v1330_v53, 3 }
 0x129   : > { %v1335_v62 = vrot.slane %v1333_v42, 4  ;;  %v783_v28 = vrot.slane %v781_v63, 4  ;;  %v784_v48 = vshll.u32 %v528_v40, 16  ;;  %v912_v26 = vrot.slane %v528_v40, 5 }
 0x12a   : > { %v13047_v39 = vpop.f32.mrf.mxu1  ;;  %v2574_v20 = vrot.slane %v2572_v32, 3  ;;  %v1328_v60 = vor.u32 %v1327_v50, %v1324_v0  ;;  %v913_v4 = vrot.slane %v877_v1, 5 }
 0x12b   : > { %3305 = vmatmul.bf16.gmra.mxu2 %v2536_v17  ;;  %3627 = vmatmul.bf16.gmra.mxu0 %v1302_v61  ;;  %v2577_v17 = vrot.slane %v2575_v54, 4  ;;  %v1336_v36 = vor.u32 %v1335_v62, %v1332_v34  ;;  %v786_v32 = vrot.slane %v784_v48, 5  ;;  %v1348_v6 = vshrl.u32 %v912_v26, 16  ;;  %v12284_v34 = vld [vmem:[#allocation2 + $0xa0] sm:$0xf0]  }
 0x12c   : > { %v1776_v54 = vld [vmem:[#allocation2 + $0xbc] sm:$0x1]  ;;  %v914_v49 = vsel %vm884_vm7, %v912_v26, %v913_v4  ;;  %v1351_v53 = vshll.u32 %v912_v26, 16 }
 0x12d   : > { %v3254_v19 = vpop.f32.mrf.mxu3  ;;  %3716 = vmatmul.bf16.gmra.mxu1 %v1320_v45  ;;  %v2578_v61 = vor.u32 %v2577_v17, %v2574_v20  ;;  %v2610_v45 = vshll.u32 %v13042_v25, 16  ;;  %v787_v42 = vor.u32 %v786_v32, %v783_v28  ;;  %v1356_v1 = vshrl.u32 %v914_v49, 16  ;;  %v11706_v20 = vld [vmem:[%s15708_s1 + $0x190] sm:$0xff] }
 0x12e   : > { %v3266_v22 = vpop.f32.mrf.mxu2  ;;  %v13050_v10 = vadd.f32 %v3254_v19, %v3165_v55  ;;  %v13058_v55 = vsel %vm933_vm3, %v1328_v60, %v1336_v36  ;;  %v11714_v17 = vld [vmem:[%s15708_s1 + $0x1d0] sm:$0xff]  ;;  %v1350_v0 = vrot.slane %v1348_v6, 3  ;;  %v1353_v63 = vrot.slane %v1351_v53, 4  ;;  %v12090_v36 = vld [vmem:[#allocation2 + $0xa0] sm:$0x8]  ;;  %5124 = vmatpush.bf16.msra.mxu2 %v11706_v20 }
 0x12f   : > { %v3267_v52 = vadd.f32 %v3266_v22, %v12786_v46  ;;  %v2579_v12 = vsel %vm933_vm3, %v2570_v51, %v2578_v61  ;;  %v2607_v46 = vshrl.u32 %v13042_v25, 16  ;;  %v1359_v51 = vshll.u32 %v914_v49, 16  ;;  %5213 = vmatpush.bf16.msra.mxu3 %v11714_v17 }
 0x130   : > { %15753 = vst [vmem:[#allocation14_spill] sm:$0xff] %v13050_v10  ;;  %v13052_v56 = vpop.f32.mrf.mxu0  ;;  %v2080_v22 = vunpack.c.l.b16 %v1776_v54  ;;  %v13072_v50 = vrot.slane %v2610_v45, 4  ;;  %v1339_v61 = vshrl.u32 %v787_v42, 16  ;;  %v1342_v28 = vshll.u32 %v787_v42, 16  ;;  %v558_v45 = vld [vmem:[#allocation2 + $0xac] sm:$0x1] }
 0x131   : > { %v13070_v19 = vrot.slane %v2607_v46, 3  ;;  %v1358_v48 = vrot.slane %v1356_v1, 3  ;;  %v1361_v60 = vrot.slane %v1359_v51, 4  ;;  %v1354_v32 = vor.u32 %v1353_v63, %v1350_v0  ;;  %v11722_v1 = vld [vmem:[%s15708_s1 + $0x210] sm:$0xff] }
 0x132   : > { %3538 = vmatmul.bf16.gmra.mxu3 %v13029_v38  ;;  %v13062_v40 = vpop.f32.mrf.mxu1  ;;  %v531_v38 = vld [vmem:[#allocation2 + $0xa4] sm:$0xff]   ;;  %v2096_v54 = vpack.c.b16 %v2080_v22, %v2080_v22  ;;  %v1341_v53 = vrot.slane %v1339_v61, 3  ;;  %v1344_v10 = vrot.slane %v1342_v28, 4  ;;  %5302 = vmatpush.bf16.msra.mxu0 %v11722_v1  ;;  %v862_v0 = vunpack.c.l.b16 %v558_v45 }
 0x133   : > { %v2613_v46 = vor.u32 %v13072_v50, %v13070_v19  ;;  %v1362_v42 = vor.u32 %v1361_v60, %v1358_v48  ;;  %v644_v20 = vunpack.c.h.b16 %v531_v38  ;;  %v12091_v63 = vor.u32 %v12284_v34, %v12090_v36 }
 0x134   : > { %v2133_v51 = vrot.slane %v2096_v54, 5  ;;  %v1345_v17 = vor.u32 %v1344_v10, %v1341_v53  ;;  %v789_v45 = vshrl.u32 %v531_v38, 16 }
 0x135   : > { %v3499_v26 = vpop.f32.mrf.mxu3  ;;  %v1363_v22 = vsel %vm933_vm3, %v1354_v32, %v1362_v42  ;;  %v681_v19 = vpack.c.b16 %v644_v20, %v644_v20  ;;  %v1365_v10 = vshrl.u32 %v12091_v63, 16  ;;  %v1368_v48 = vshll.u32 %v12091_v63, 16  ;;  %v385_v42 = vld [vmem:[#allocation2 + $0xcc] sm:$0x1] }
 0x136   : > { %v3268_v62 = vpop.f32.mrf.mxu2  ;;  %v3500_v49 = vadd.f32 %v3499_v26, %v3267_v52  ;;  %v2134_v52 = vsel %vm884_vm7, %v13042_v25, %v2133_v51  ;;  %v792_v25 = vshll.u32 %v531_v38, 16 }
 0x137   : > { %v3269_v4 = vadd.f32 %v3268_v62, %v12805_v24  ;;  %v2615_v61 = vshrl.u32 %v2134_v52, 16  ;;  %v2618_v28 = vshll.u32 %v2134_v52, 16  ;;  %v1373_v60 = vshrl.u32 %v681_v19, 16 }
 0x138   : > { %v13077_v6 = vpop.f32.mrf.mxu0  ;;  %v3589_v24 = vadd.f32 %v13037_v57, %v3500_v49  ;;  %v878_v57 = vpack.c.b16 %v862_v0, %v862_v0  ;;  %v1376_v26 = vshll.u32 %v681_v19, 16  ;;  %v1370_v49 = vrot.slane %v1368_v48, 4  ;;  %v11759_v0 = vld [vmem:[%s15709_s2 + $0xf8] sm:$0xff] }
 0x139   : > { %v2620_v54 = vrot.slane %v2618_v28, 4  ;;  %v1375_v53 = vrot.slane %v1373_v60, 3  ;;  %v794_v63 = vrot.slane %v792_v25, 5  ;;  %v915_v19 = vrot.slane %v531_v38, 5  ;;  %8281 = vmatpush.bf16.msra.mxu1 %v11759_v0 }
 0x13a   : > { %v13087_v50 = vadd.f32 %v13047_v39, %v3589_v24  ;;  %v13089_v62 = vpop.f32.mrf.mxu1  ;;  %v1367_v39 = vrot.slane %v1365_v10, 3  ;;  %v1378_v24 = vrot.slane %v1376_v26, 4 }
 0x13b   : > { %3310 = vmatmul.bf16.gmra.mxu2 %v2579_v12  ;;  %3632 = vmatmul.bf16.gmra.mxu0 %v1345_v17  ;;  %v2617_v12 = vrot.slane %v2615_v61, 3  ;;  %v791_v17 = vrot.slane %v789_v45, 4  ;;  %v916_v61 = vrot.slane %v878_v57, 5  ;;  %v1391_v60 = vshrl.u32 %v915_v19, 16 }
 0x13c   : > { %15754 = vst [vmem:[#allocation15_spill] sm:$0xff] %v13087_v50  ;;  %v1371_v52 = vor.u32 %v1370_v49, %v1367_v39  ;;  %v1379_v28 = vor.u32 %v1378_v24, %v1375_v53  ;;  %v1394_v26 = vshll.u32 %v915_v19, 16 }
 0x13d   : > { %v3501_v34 = vpop.f32.mrf.mxu3  ;;  %3721 = vmatmul.bf16.gmra.mxu1 %v1363_v22  ;;  %v2621_v20 = vor.u32 %v2620_v54, %v2617_v12  ;;  %v795_v10 = vor.u32 %v794_v63, %v791_v17  ;;  %v917_v48 = vsel %vm884_vm7, %v915_v19, %v916_v61  ;;  %v1393_v25 = vrot.slane %v1391_v60, 3  ;;  %v388_v60 = vld [vmem:[#allocation2 + $0xdc] sm:$0x1] }
 0x13e   : > { %v3271_v32 = vpop.f32.mrf.mxu2  ;;  %v3502_v1 = vadd.f32 %v3501_v34, %v3269_v4  ;;  %v386_v4 = vsel %vm12675_vm6, 0, %v385_v42  ;;  %v1399_v57 = vshrl.u32 %v917_v48, 16  ;;  %v1402_v12 = vshll.u32 %v917_v48, 16 }
 0x13f   : > { %v3272_v36 = vadd.f32 %v3271_v32, %v12828_v35  ;;  %v2622_v22 = vsel %vm933_vm3, %v2613_v46, %v2621_v20  ;;  %387 = vst [vmem:[#allocation2 + $0xcc] sm:$0x1] %v386_v4  ;;  %v12094_v32 = vld [vmem:[#allocation2 + $0xb0] sm:$0x8]  ;;  %v1382_v54 = vshrl.u32 %v795_v10, 16  ;;  %v1385_v45 = vshll.u32 %v795_v10, 16 }
 0x140   : > { %v13092_v51 = vpop.f32.mrf.mxu0  ;;  %v3591_v35 = vadd.f32 %v13052_v56, %v3502_v1  ;;  %v13107_v56 = vsel %vm933_vm3, %v1371_v52, %v1379_v28  ;;  %v1396_v34 = vrot.slane %v1394_v26, 4  ;;  %v1401_v49 = vrot.slane %v1399_v57, 3  ;;  %v12285_v1 = vld [vmem:[#allocation2 + $0xb0] sm:$0xf0]  }
 0x141   : > { %v1404_v53 = vrot.slane %v1402_v12, 4  ;;  %v2135_v42 = vrot.slane %v12577_v23, 5  ;;  %v1384_v17 = vrot.slane %v1382_v54, 3  ;;  %v1387_v0 = vrot.slane %v1385_v45, 4 }
 0x142   : > { %3543 = vmatmul.bf16.gmra.mxu3 %v13058_v55  ;;  %v13104_v38 = vadd.f32 %v13062_v40, %v3591_v35  ;;  %v13109_v46 = vpop.f32.mrf.mxu1  ;;  %v534_v55 = vld [vmem:[#allocation2 + $0xb4] sm:$0xff]   ;;  %v559_v40 = vld [vmem:[#allocation2 + $0xbc] sm:$0x1]  ;;  %v1397_v52 = vor.u32 %v1396_v34, %v1393_v25  ;;  %v12095_v54 = vor.u32 %v12285_v1, %v12094_v32 }
 0x143   : > { %v1405_v61 = vor.u32 %v1404_v53, %v1401_v49  ;;  %v2650_v35 = vshrl.u32 %v2135_v42, 16  ;;  %v2653_v28 = vshll.u32 %v2135_v42, 16  ;;  %v1388_v4 = vor.u32 %v1387_v0, %v1384_v17 }
 0x144   : > { %15755 = vst [vmem:[#allocation16_spill] sm:$0xff] %v13104_v38  ;;  %v647_v10 = vunpack.c.h.b16 %v534_v55  ;;  %v863_v48 = vunpack.c.l.b16 %v559_v40  ;;  %v389_v49 = vsel %vm12675_vm6, 0, %v388_v60  ;;  %v1408_v40 = vshrl.u32 %v12095_v54, 16 }
 0x145   : > { %v3504_v20 = vpop.f32.mrf.mxu3  ;;  %v1406_v26 = vsel %vm933_vm3, %v1397_v52, %v1405_v61  ;;  %v13117_v12 = vrot.slane %v2650_v35, 3  ;;  %390 = vst [vmem:[#allocation2 + $0xdc] sm:$0x1] %v389_v49  ;;  %v797_v17 = vshrl.u32 %v534_v55, 16  ;;  %v918_v0 = vrot.slane %v534_v55, 5 }
 0x146   : > { %v3273_v39 = vpop.f32.mrf.mxu2  ;;  %v3505_v63 = vadd.f32 %v3504_v20, %v3272_v36  ;;  %v1777_v57 = vld [vmem:[#allocation2 + $0xcc] sm:$0x1]  ;;  %v683_v45 = vpack.c.b16 %v647_v10, %v647_v10  ;;  %v1411_v20 = vshll.u32 %v12095_v54, 16  ;;  %v1410_v35 = vrot.slane %v1408_v40, 3 }
 0x147   : > { %v3274_v24 = vadd.f32 %v3273_v39, %v12846_v14  ;;  %v13119_v14 = vrot.slane %v2653_v28, 4  ;;  %v2081_v36 = vunpack.c.l.b16 %v1777_v57  ;;  %v879_v39 = vpack.c.b16 %v863_v48, %v863_v48 }
 0x148   : > { %v13113_v19 = vpop.f32.mrf.mxu0  ;;  %v3594_v23 = vadd.f32 %v13077_v6, %v3505_v63  ;;  %v1419_v1 = vshll.u32 %v683_v45, 16  ;;  %v1413_v28 = vrot.slane %v1411_v20, 4  ;;  %v1434_v40 = vshrl.u32 %v918_v0, 16 }
 0x149   : > { %v2097_v53 = vpack.c.b16 %v2081_v36, %v2081_v36 }
 0x14a   : > { %v13122_v25 = vadd.f32 %v13089_v62, %v3594_v23  ;;  %v13124_v34 = vpop.f32.mrf.mxu1  ;;  %v800_v62 = vshll.u32 %v534_v55, 16  ;;  %v1421_v60 = vrot.slane %v1419_v1, 4  ;;  %v799_v23 = vrot.slane %v797_v17, 4  ;;  %v11705_v1 = vld [vmem:[%s15708_s1 + $0x188] sm:$0xff] }
 0x14b   : > { %3315 = vmatmul.bf16.gmra.mxu2 %v2622_v22  ;;  %3637 = vmatmul.bf16.gmra.mxu0 %v1388_v4  ;;  %v1416_v22 = vshrl.u32 %v683_v45, 16  ;;  %v2136_v61 = vrot.slane %v2097_v53, 5  ;;  %v1414_v36 = vor.u32 %v1413_v28, %v1410_v35  ;;  %v919_v45 = vrot.slane %v879_v39, 5  ;;  %v11713_v17 = vld [vmem:[%s15708_s1 + $0x1c8] sm:$0xff] }
 0x14c   : > { %15756 = vst [vmem:[#allocation17_spill] sm:$0xff] %v13122_v25  ;;  %v802_v54 = vrot.slane %v800_v62, 5  ;;  %5125 = vmatpush.bf16.msra.mxu2 %v11705_v1  ;;  %5214 = vmatpush.bf16.msra.mxu3 %v11713_v17 }
 0x14d   : > { %v3506_v52 = vpop.f32.mrf.mxu3  ;;  %3726 = vmatmul.bf16.gmra.mxu1 %v1406_v26  ;;  %v1418_v48 = vrot.slane %v1416_v22, 3  ;;  %v2137_v57 = vsel %vm884_vm7, %v2135_v42, %v2136_v61  ;;  %v920_v53 = vsel %vm884_vm7, %v918_v0, %v919_v45  ;;  %v12286_v45 = vld [vmem:[#allocation2 + $0xc0] sm:$0xf0]  }
 0x14e   : > { %v3276_v32 = vpop.f32.mrf.mxu2  ;;  %v3507_v4 = vadd.f32 %v3506_v52, %v3274_v24  ;;  %v2658_v49 = vshrl.u32 %v2137_v57, 16  ;;  %v2661_v6 = vshll.u32 %v2137_v57, 16  ;;  %v803_v26 = vor.u32 %v802_v54, %v799_v23  ;;  %v13152_v54 = vld [vmem:[#allocation2 + $0xc4] sm:$0xff]  }
 0x14f   : > { %v3277_v63 = vadd.f32 %v3276_v32, %v12867_v9  ;;  %v1422_v9 = vor.u32 %v1421_v60, %v1418_v48  ;;  %v1437_v24 = vshll.u32 %v918_v0, 16  ;;  %v1442_v61 = vshrl.u32 %v920_v53, 16 }
 0x150   : > { %v13131_v10 = vpop.f32.mrf.mxu0  ;;  %v3596_v55 = vadd.f32 %v13092_v51, %v3507_v4  ;;  %v2660_v22 = vrot.slane %v2658_v49, 3  ;;  %v2663_v42 = vrot.slane %v2661_v6, 4  ;;  %v1778_v51 = vld [vmem:[#allocation2 + $0xdc] sm:$0x1]  ;;  %v1428_v62 = vshll.u32 %v803_v26, 16 }
 0x151   : > { %v13141_v32 = vsel %vm933_vm3, %v1414_v36, %v1422_v9  ;;  %v1439_v0 = vrot.slane %v1437_v24, 4  ;;  %v1445_v35 = vshll.u32 %v920_v53, 16  ;;  %v2082_v28 = vunpack.c.l.b16 %v1778_v51  ;;  %v12098_v4 = vld [vmem:[#allocation2 + $0xc0] sm:$0x8]  ;;  %v560_v24 = vld [vmem:[#allocation2 + $0xcc] sm:$0x1] }
 0x152   : > { %3548 = vmatmul.bf16.gmra.mxu3 %v13107_v56  ;;  %v13138_v20 = vadd.f32 %v13109_v46, %v3596_v55  ;;  %v13143_v39 = vpop.f32.mrf.mxu1  ;;  %v1425_v56 = vshrl.u32 %v803_v26, 16  ;;  %v1436_v46 = vrot.slane %v1434_v40, 3  ;;  %v2664_v6 = vor.u32 %v2663_v42, %v2660_v22 }
 0x153   : > { %v1430_v57 = vrot.slane %v1428_v62, 4  ;;  %v15758_v9 = vor.u32 %v13119_v14, %v13117_v12  ;;  %v1444_v53 = vrot.slane %v1442_v61, 3  ;;  %v1447_v40 = vrot.slane %v1445_v35, 4 }
 0x154   : > { %15757 = vst [vmem:[#allocation18_spill] sm:$0xff] %v13138_v20  ;;  %v1427_v23 = vrot.slane %v1425_v56, 3  ;;  %v1440_v36 = vor.u32 %v1439_v0, %v1436_v46  ;;  %v2098_v42 = vpack.c.b16 %v2082_v28, %v2082_v28  ;;  %v2138_v51 = vrot.slane %v12596_v13, 5 }
 0x155   : > { %v3509_v48 = vpop.f32.mrf.mxu3  ;;  %v2665_v26 = vsel %vm933_vm3, %v15758_v9, %v2664_v6  ;;  %v1448_v1 = vor.u32 %v1447_v40, %v1444_v53  ;;  %v650_v17 = vunpack.c.h.b16 %v13152_v54  ;;  %v864_v62 = vunpack.c.l.b16 %v560_v24 }
 0x156   : > { %v3278_v52 = vpop.f32.mrf.mxu2  ;;  %v3510_v55 = vadd.f32 %v3509_v48, %v3277_v63  ;;  %v1431_v22 = vor.u32 %v1430_v57, %v1427_v23  ;;  %v2139_v12 = vrot.slane %v2098_v42, 5  ;;  %v2693_v14 = vshrl.u32 %v2138_v51, 16 }
 0x157   : > { %v3279_v60 = vadd.f32 %v3278_v52, %v12879_v3  ;;  %v11721_v3 = vld [vmem:[%s15708_s1 + $0x208] sm:$0xff]  ;;  %v2696_v56 = vshll.u32 %v2138_v51, 16  ;;  %v1449_v52 = vsel %vm933_vm3, %v1440_v36, %v1448_v1  ;;  %v12099_v13 = vor.u32 %v12286_v45, %v12098_v4 }
 0x158   : > { %v13154_v49 = vpop.f32.mrf.mxu0  ;;  %v3599_v63 = vadd.f32 %v13113_v19, %v3510_v55  ;;  %5303 = vmatpush.bf16.msra.mxu0 %v11721_v3  ;;  %v685_v6 = vpack.c.b16 %v650_v17, %v650_v17  ;;  %v2140_v19 = vsel %vm884_vm7, %v2138_v51, %v2139_v12  ;;  %v2695_v61 = vrot.slane %v2693_v14, 3  ;;  %v391_v14 = vld [vmem:[#allocation2 + $0xec] sm:$0x1] }
 0x159   : > { %v2698_v35 = vrot.slane %v2696_v56, 4  ;;  %v2701_v48 = vshrl.u32 %v2140_v19, 16  ;;  %v2704_v23 = vshll.u32 %v2140_v19, 16  ;;  %v1451_v57 = vshrl.u32 %v12099_v13, 16 }
 0x15a   : > { %v13167_v46 = vadd.f32 %v13124_v34, %v3599_v63  ;;  %v13169_v0 = vpop.f32.mrf.mxu1  ;;  %v1454_v55 = vshll.u32 %v12099_v13, 16  ;;  %v1459_v53 = vshrl.u32 %v685_v6, 16  ;;  %v1462_v40 = vshll.u32 %v685_v6, 16  ;;  %v12102_v6 = vld [vmem:[#allocation2 + $0xd0] sm:$0x8] }
 0x15b   : > { %3320 = vmatmul.bf16.gmra.mxu2 %v2665_v26  ;;  %3642 = vmatmul.bf16.gmra.mxu0 %v1431_v22  ;;  %v2699_v26 = vor.u32 %v2698_v35, %v2695_v61  ;;  %v2703_v4 = vrot.slane %v2701_v48, 3  ;;  %v2706_v45 = vrot.slane %v2704_v23, 4  ;;  %v1453_v24 = vrot.slane %v1451_v57, 3  ;;  %v11758_v22 = vld [vmem:[%s15709_s2 + $0xf0] sm:$0xff] }
 0x15c   : > { %15759 = vst [vmem:[#allocation19_spill] sm:$0xff] %v13167_v46  ;;  %v1456_v42 = vrot.slane %v1454_v55, 4  ;;  %v1461_v51 = vrot.slane %v1459_v53, 3  ;;  %v1464_v63 = vrot.slane %v1462_v40, 4  ;;  %v805_v1 = vshrl.u32 %v13152_v54, 16  ;;  %8282 = vmatpush.bf16.msra.mxu1 %v11758_v22 }
 0x15d   : > { %v3511_v9 = vpop.f32.mrf.mxu3  ;;  %3731 = vmatmul.bf16.gmra.mxu1 %v1449_v52  ;;  %v2707_v17 = vor.u32 %v2706_v45, %v2703_v4  ;;  %v808_v12 = vshll.u32 %v13152_v54, 16  ;;  %v921_v13 = vrot.slane %v13152_v54, 5  ;;  %v392_v57 = vsel %vm12675_vm6, 0, %v391_v14 }
 0x15e   : > { %v3281_v28 = vpop.f32.mrf.mxu2  ;;  %v3512_v3 = vadd.f32 %v3511_v9, %v3279_v60  ;;  %v880_v60 = vpack.c.b16 %v864_v62, %v864_v62  ;;  %v1457_v56 = vor.u32 %v1456_v42, %v1453_v24  ;;  %v807_v52 = vrot.slane %v805_v1, 4  ;;  %393 = vst [vmem:[#allocation2 + $0xec] sm:$0x1] %v392_v57 }
 0x15f   : > { %v3282_v34 = vadd.f32 %v3281_v28, %v12902_v2  ;;  %v1465_v61 = vor.u32 %v1464_v63, %v1461_v51  ;;  %v810_v35 = vrot.slane %v808_v12, 5  ;;  %v2708_v48 = vsel %vm933_vm3, %v2699_v26, %v2707_v17  ;;  %v540_v51 = vld [vmem:[#allocation2 + $0xd4] sm:$0xff]   ;;  %v561_v12 = vld [vmem:[#allocation2 + $0xdc] sm:$0x1] }
 0x160   : > { %v13174_v36 = vpop.f32.mrf.mxu0  ;;  %v3601_v2 = vadd.f32 %v13131_v10, %v3512_v3  ;;  %v922_v10 = vrot.slane %v880_v60, 5  ;;  %v1477_v62 = vshrl.u32 %v921_v13, 16  ;;  %v1480_v23 = vshll.u32 %v921_v13, 16  ;;  %v12287_v63 = vld [vmem:[#allocation2 + $0xd0] sm:$0xf0]  }
 0x161   : > { %v811_v54 = vor.u32 %v810_v35, %v807_v52  ;;  %v653_v35 = vunpack.c.h.b16 %v540_v51 }
 0x162   : > { %3553 = vmatmul.bf16.gmra.mxu3 %v13141_v32  ;;  %v13185_v19 = vadd.f32 %v13143_v39, %v3601_v2  ;;  %v13187_v28 = vpop.f32.mrf.mxu1  ;;  %v923_v9 = vsel %vm884_vm7, %v921_v13, %v922_v10  ;;  %v13194_v32 = vrot.slane %v12610_v5, 5  ;;  %v1479_v40 = vrot.slane %v1477_v62, 3  ;;  %v394_v10 = vld [vmem:[#allocation2 + $0xfc] sm:$0x1] }
 0x163   : > { %v1482_v3 = vrot.slane %v1480_v23, 4  ;;  %v1485_v4 = vshrl.u32 %v923_v9, 16  ;;  %v1468_v24 = vshrl.u32 %v811_v54, 16  ;;  %v1471_v22 = vshll.u32 %v811_v54, 16 }
 0x164   : > { %15760 = vst [vmem:[#allocation20_spill] sm:$0xff] %v13185_v19  ;;  %v1488_v42 = vshll.u32 %v923_v9, 16  ;;  %v2736_v17 = vshrl.u32 %v13194_v32, 16  ;;  %v2739_v5 = vshll.u32 %v13194_v32, 16  ;;  %v865_v54 = vunpack.c.l.b16 %v561_v12 }
 0x165   : > { %v3514_v39 = vpop.f32.mrf.mxu3  ;;  %v1483_v1 = vor.u32 %v1482_v3, %v1479_v40  ;;  %v1487_v2 = vrot.slane %v1485_v4, 3  ;;  %v1470_v60 = vrot.slane %v1468_v24, 3  ;;  %v1473_v14 = vrot.slane %v1471_v22, 4  ;;  %v1779_v9 = vld [vmem:[#allocation2 + $0xec] sm:$0x1] }
 0x166   : > { %v3283_v55 = vpop.f32.mrf.mxu2  ;;  %v3515_v26 = vadd.f32 %v3514_v39, %v3282_v34  ;;  %v1490_v52 = vrot.slane %v1488_v42, 4  ;;  %v1466_v34 = vsel %vm933_vm3, %v1457_v56, %v1465_v61  ;;  %v13203_v13 = vrot.slane %v2736_v17, 3 }
 0x167   : > { %v3284_v53 = vadd.f32 %v3283_v55, %v12916_v59  ;;  %v1474_v23 = vor.u32 %v1473_v14, %v1470_v60  ;;  %v12103_v39 = vor.u32 %v12287_v63, %v12102_v6  ;;  %v687_v40 = vpack.c.b16 %v653_v35, %v653_v35 }
 0x168   : > { %v13197_v45 = vpop.f32.mrf.mxu0  ;;  %v3604_v59 = vadd.f32 %v13154_v49, %v3515_v26  ;;  %v1491_v55 = vor.u32 %v1490_v52, %v1487_v2  ;;  %v13210_v49 = vrot.slane %v2739_v5, 4  ;;  %v2083_v61 = vunpack.c.l.b16 %v1779_v9 }
 0x169   : > { %v881_v3 = vpack.c.b16 %v865_v54, %v865_v54  ;;  %v1494_v24 = vshrl.u32 %v12103_v39, 16  ;;  %v1497_v22 = vshll.u32 %v12103_v39, 16  ;;  %v1502_v42 = vshrl.u32 %v687_v40, 16 }
 0x16a   : > { %v13206_v62 = vadd.f32 %v13169_v0, %v3604_v59  ;;  %v13208_v57 = vpop.f32.mrf.mxu1  ;;  %v1492_v56 = vsel %vm933_vm3, %v1483_v1, %v1491_v55  ;;  %v395_v0 = vsel %vm12675_vm6, 0, %v394_v10  ;;  %v2099_v63 = vpack.c.b16 %v2083_v61, %v2083_v61 }
 0x16b   : > { %3325 = vmatmul.bf16.gmra.mxu2 %v2708_v48  ;;  %3647 = vmatmul.bf16.gmra.mxu0 %v1474_v23  ;;  %396 = vst [vmem:[#allocation2 + $0xfc] sm:$0x1] %v395_v0  ;;  %v1505_v17 = vshll.u32 %v687_v40, 16  ;;  %v813_v5 = vshrl.u32 %v540_v51, 16  ;;  %v13218_v1 = vrot.slane %v1494_v24, 3  ;;  %v13220_v12 = vrot.slane %v1497_v22, 4 }
 0x16c   : > { %15761 = vst [vmem:[#allocation21_spill] sm:$0xff] %v13206_v62  ;;  %v13222_v59 = vrot.slane %v1502_v42, 3  ;;  %v816_v60 = vshll.u32 %v540_v51, 16  ;;  %v2142_v14 = vrot.slane %v2099_v63, 5  ;;  %v924_v23 = vrot.slane %v540_v51, 5  ;;  %v11712_v51 = vld [vmem:[%s15708_s1 + $0x1c0] sm:$0xff] }
 0x16d   : > { %v3516_v4 = vpop.f32.mrf.mxu3  ;;  %3736 = vmatmul.bf16.gmra.mxu1 %v1492_v56  ;;  %v1507_v52 = vrot.slane %v1505_v17, 4  ;;  %v815_v35 = vrot.slane %v813_v5, 4  ;;  %v925_v55 = vrot.slane %v881_v3, 5  ;;  %v1500_v39 = vor.u32 %v13220_v12, %v13218_v1  ;;  %5215 = vmatpush.bf16.msra.mxu3 %v11712_v51 }
 0x16e   : > { %v3286_v48 = vpop.f32.mrf.mxu2  ;;  %v3517_v2 = vadd.f32 %v3516_v4, %v3284_v53  ;;  %v2742_v53 = vor.u32 %v13210_v49, %v13203_v13  ;;  %v818_v10 = vrot.slane %v816_v60, 5  ;;  %v2143_v9 = vsel %vm884_vm7, %v13194_v32, %v2142_v14  ;;  %v11704_v13 = vld [vmem:[%s15708_s1 + $0x180] sm:$0xff] }
 0x16f   : > { %v3287_v26 = vadd.f32 %v3286_v48, %v12926_v43  ;;  %v926_v32 = vsel %vm884_vm7, %v924_v23, %v925_v55  ;;  %v1520_v56 = vshrl.u32 %v924_v23, 16  ;;  %v1523_v61 = vshll.u32 %v924_v23, 16  ;;  %5126 = vmatpush.bf16.msra.mxu2 %v11704_v13  ;;  %v11720_v60 = vld [vmem:[%s15708_s1 + $0x200] sm:$0xff] }
 0x170   : > { %v13216_v6 = vpop.f32.mrf.mxu0  ;;  %v3606_v43 = vadd.f32 %v13174_v36, %v3517_v2  ;;  %v1508_v36 = vor.u32 %v1507_v52, %v13222_v59  ;;  %v819_v49 = vor.u32 %v818_v10, %v815_v35  ;;  %v1528_v3 = vshrl.u32 %v926_v32, 16  ;;  %v12106_v35 = vld [vmem:[#allocation2 + $0xe0] sm:$0x8]  ;;  %v13254_v55 = vld [vmem:[#allocation2 + $0xe4] sm:$0xff]   ;;  %5304 = vmatpush.bf16.msra.mxu0 %v11720_v60 }
 0x171   : > { %v2144_v0 = vrot.slane %v12682_v30, 5  ;;  %v1522_v12 = vrot.slane %v1520_v56, 3  ;;  %v1525_v59 = vrot.slane %v1523_v61, 4  ;;  %v1531_v52 = vshll.u32 %v926_v32, 16 }
 0x172   : > { %3558 = vmatmul.bf16.gmra.mxu3 %v1466_v34  ;;  %v13228_v54 = vadd.f32 %v13187_v28, %v3606_v43  ;;  %v13235_v40 = vpop.f32.mrf.mxu1  ;;  %v2744_v28 = vshrl.u32 %v2143_v9, 16  ;;  %v2747_v34 = vshll.u32 %v2143_v9, 16  ;;  %v1511_v2 = vshrl.u32 %v819_v49, 16  ;;  %v1780_v63 = vld [vmem:[#allocation2 + $0xfc] sm:$0x1] }
 0x173   : > { %v1514_v1 = vshll.u32 %v819_v49, 16  ;;  %v1530_v14 = vrot.slane %v1528_v3, 3  ;;  %v1526_v23 = vor.u32 %v1525_v59, %v1522_v12  ;;  %v12288_v9 = vld [vmem:[#allocation2 + $0xe0] sm:$0xf0]   ;;  %v1533_v51 = vrot.slane %v1531_v52, 4 }
 0x174   : > { %15762 = vst [vmem:[#allocation22_spill] sm:$0xff] %v13228_v54  ;;  %v2746_v22 = vrot.slane %v2744_v28, 3  ;;  %v2749_v42 = vrot.slane %v2747_v34, 4  ;;  %v1513_v43 = vrot.slane %v1511_v2, 3  ;;  %v2779_v28 = vshrl.u32 %v2144_v0, 16 }
 0x175   : > { %v3519_v4 = vpop.f32.mrf.mxu3  ;;  %v1516_v10 = vrot.slane %v1514_v1, 4  ;;  %v2782_v34 = vshll.u32 %v2144_v0, 16  ;;  %v397_v49 = vld [vmem:[#allocation2 + $0x10c] sm:$0x1]  ;;  %v1509_v61 = vsel %vm933_vm3, %v1500_v39, %v1508_v36  ;;  %v1534_v3 = vor.u32 %v1533_v51, %v1530_v14 }
 0x176   : > { %v3288_v48 = vpop.f32.mrf.mxu2  ;;  %v3520_v17 = vadd.f32 %v3519_v4, %v3287_v26  ;;  %v2750_v30 = vor.u32 %v2749_v42, %v2746_v22  ;;  %v2084_v26 = vunpack.c.l.b16 %v1780_v63  ;;  %v2781_v4 = vrot.slane %v2779_v28, 3  ;;  %v11757_v14 = vld [vmem:[%s15709_s2 + $0xe8] sm:$0xff] }
 0x177   : > { %v3289_v24 = vadd.f32 %v3288_v48, %v12937_v8  ;;  %v1517_v48 = vor.u32 %v1516_v10, %v1513_v43  ;;  %v2784_v2 = vrot.slane %v2782_v34, 4  ;;  %v398_v63 = vsel %vm12675_vm6, 0, %v397_v49  ;;  %8283 = vmatpush.bf16.msra.mxu1 %v11757_v14 }
 0x178   : > { %v13246_v5 = vpop.f32.mrf.mxu0  ;;  %v13252_v8 = vadd.f32 %v13197_v45, %v3520_v17  ;;  %v2751_v13 = vsel %vm933_vm3, %v2742_v53, %v2750_v30  ;;  %v2100_v56 = vpack.c.b16 %v2084_v26, %v2084_v26  ;;  %v562_v45 = vld [vmem:[#allocation2 + $0xec] sm:$0x1]  ;;  %v656_v53 = vunpack.c.h.b16 %v13254_v55  ;;  %399 = vst [vmem:[#allocation2 + $0x10c] sm:$0x1] %v398_v63 }
 0x179   : > { %v1535_v12 = vsel %vm933_vm3, %v1526_v23, %v1534_v3  ;;  %v12107_v59 = vor.u32 %v12288_v9, %v12106_v35  ;;  %v866_v60 = vunpack.c.l.b16 %v562_v45  ;;  %v2785_v34 = vor.u32 %v2784_v2, %v2781_v4  ;;  %v12110_v45 = vld [vmem:[#allocation2 + $0xf0] sm:$0x8] }
 0x17a   : > { %v13257_v32 = vpop.f32.mrf.mxu1  ;;  %v2145_v42 = vrot.slane %v2100_v56, 5  ;;  %v689_v43 = vpack.c.b16 %v656_v53, %v656_v53 }
 0x17b   : > { %3330 = vmatmul.bf16.gmra.mxu2 %v2751_v13  ;;  %3652 = vmatmul.bf16.gmra.mxu0 %v1517_v48  ;;  %v1537_v26 = vshrl.u32 %v12107_v59, 16 }
 0x17c   : > { %v2146_v30 = vsel %vm884_vm7, %v2144_v0, %v2145_v42  ;;  %v1545_v35 = vshrl.u32 %v689_v43, 16  ;;  %v1548_v9 = vshll.u32 %v689_v43, 16  ;;  %v882_v42 = vpack.c.b16 %v866_v60, %v866_v60 }
 0x17d   : > { %v3521_v17 = vpop.f32.mrf.mxu3  ;;  %3741 = vmatmul.bf16.gmra.mxu1 %v1535_v12  ;;  %v2787_v52 = vshrl.u32 %v2146_v30, 16  ;;  %v2790_v10 = vshll.u32 %v2146_v30, 16  ;;  %v1539_v0 = vrot.slane %v1537_v26, 3  ;;  %v927_v12 = vrot.slane %v13254_v55, 5 }
 0x17e   : > { %v3291_v22 = vpop.f32.mrf.mxu2  ;;  %v3522_v39 = vadd.f32 %v3521_v17, %v3289_v24  ;;  %v821_v24 = vshrl.u32 %v13254_v55, 16  ;;  %v1547_v49 = vrot.slane %v1545_v35, 3  ;;  %v1550_v48 = vrot.slane %v1548_v9, 4 }
 0x17f   : > { %v3292_v1 = vadd.f32 %v3291_v22, %v12954_v58  ;;  %v1540_v58 = vshll.u32 %v12107_v59, 16  ;;  %v2789_v13 = vrot.slane %v2787_v52, 3  ;;  %v2792_v51 = vrot.slane %v2790_v10, 4  ;;  %v1781_v59 = vld [vmem:[#allocation2 + $0x10c] sm:$0x1] }
 0x180   : > { %v13265_v36 = vpop.f32.mrf.mxu0  ;;  %v13272_v23 = vadd.f32 %v13216_v6, %v3522_v39  ;;  %v823_v22 = vrot.slane %v821_v24, 4  ;;  %v824_v6 = vshll.u32 %v13254_v55, 16  ;;  %v1551_v17 = vor.u32 %v1550_v48, %v1547_v49  ;;  %v12289_v49 = vld [vmem:[#allocation2 + $0xf0] sm:$0xf0]  }
 0x181   : > { %v1542_v28 = vrot.slane %v1540_v58, 4  ;;  %v2793_v3 = vor.u32 %v2792_v51, %v2789_v13  ;;  %v2147_v39 = vrot.slane %v12709_v15, 5  ;;  %v928_v30 = vrot.slane %v882_v42, 5 }
 0x182   : > { %3563 = vmatmul.bf16.gmra.mxu3 %v1509_v61  ;;  %v13275_v56 = vpop.f32.mrf.mxu1  ;;  %v826_v2 = vrot.slane %v824_v6, 5  ;;  %v1563_v10 = vshrl.u32 %v927_v12, 16  ;;  %v1566_v60 = vshll.u32 %v927_v12, 16  ;;  %v2085_v35 = vunpack.c.l.b16 %v1781_v59 }
 0x183   : > { %v1543_v63 = vor.u32 %v1542_v28, %v1539_v0  ;;  %v2794_v52 = vsel %vm933_vm3, %v2785_v34, %v2793_v3  ;;  %v929_v58 = vsel %vm884_vm7, %v927_v12, %v928_v30  ;;  %v2822_v55 = vshrl.u32 %v2147_v39, 16  ;;  %v546_v28 = vld [vmem:[#allocation2 + $0xf4] sm:$0xff]   ;;  %v563_v34 = vld [vmem:[#allocation2 + $0xfc] sm:$0x1] }
 0x184   : > { %v827_v26 = vor.u32 %v826_v2, %v823_v22  ;;  %v1565_v15 = vrot.slane %v1563_v10, 3  ;;  %v1568_v24 = vrot.slane %v1566_v60, 4  ;;  %v2101_v0 = vpack.c.b16 %v2085_v35, %v2085_v35 }
 0x185   : > { %v3524_v61 = vpop.f32.mrf.mxu3  ;;  %v1552_v48 = vsel %vm933_vm3, %v1543_v63, %v1551_v17  ;;  %v2824_v42 = vrot.slane %v2822_v55, 3  ;;  %v2825_v2 = vshll.u32 %v2147_v39, 16  ;;  %v659_v30 = vunpack.c.h.b16 %v546_v28 }
 0x186   : > { %v3293_v53 = vpop.f32.mrf.mxu2  ;;  %v3525_v43 = vadd.f32 %v3524_v61, %v3292_v1  ;;  %v1554_v13 = vshrl.u32 %v827_v26, 16  ;;  %v1557_v51 = vshll.u32 %v827_v26, 16  ;;  %v1574_v1 = vshll.u32 %v929_v58, 16 }
 0x187   : > { %v3294_v4 = vadd.f32 %v3293_v53, %v12965_v41  ;;  %v1571_v41 = vshrl.u32 %v929_v58, 16  ;;  %v1569_v22 = vor.u32 %v1568_v24, %v1565_v15  ;;  %v2148_v59 = vrot.slane %v2101_v0, 5 }
 0x188   : > { %v13281_v14 = vpop.f32.mrf.mxu0  ;;  %v13286_v9 = vadd.f32 %v13246_v5, %v3525_v43  ;;  %v1556_v5 = vrot.slane %v1554_v13, 3  ;;  %v1559_v53 = vrot.slane %v1557_v51, 4  ;;  %v1576_v12 = vrot.slane %v1574_v1, 4 }
 0x189   : > { %v1573_v6 = vrot.slane %v1571_v41, 3  ;;  %v867_v43 = vunpack.c.l.b16 %v563_v34  ;;  %v2149_v63 = vsel %vm884_vm7, %v2147_v39, %v2148_v59  ;;  %v2827_v35 = vrot.slane %v2825_v2, 4 }
 0x18a   : > { %v13289_v3 = vpop.f32.mrf.mxu1  ;;  %v1560_v60 = vor.u32 %v1559_v53, %v1556_v5  ;;  %v2830_v55 = vshrl.u32 %v2149_v63, 16  ;;  %v2833_v15 = vshll.u32 %v2149_v63, 16  ;;  %v12111_v41 = vor.u32 %v12289_v49, %v12110_v45 }
 0x18b   : > { %3335 = vmatmul.bf16.gmra.mxu2 %v2794_v52  ;;  %v1577_v52 = vor.u32 %v1576_v12, %v1573_v6  ;;  %v691_v13 = vpack.c.b16 %v659_v30, %v659_v30  ;;  %v2828_v1 = vor.u32 %v2827_v35, %v2824_v42  ;;  %v829_v53 = vshrl.u32 %v546_v28, 16 }
 0x18c   : > { %3657 = vmatmul.bf16.gmra.mxu0 %v1560_v60  ;;  %v2835_v0 = vrot.slane %v2833_v15, 4  ;;  %v1580_v34 = vshrl.u32 %v12111_v41, 16  ;;  %v1583_v39 = vshll.u32 %v12111_v41, 16  ;;  %v832_v12 = vshll.u32 %v546_v28, 16  ;;  %v13301_v60 = vld [vmem:[#allocation2 + $0x24] sm:$0xff]  }
 0x18d   : > { %v3526_v10 = vpop.f32.mrf.mxu3  ;;  %v1578_v24 = vsel %vm933_vm3, %v1569_v22, %v1577_v52  ;;  %v1591_v6 = vshll.u32 %v691_v13, 16  ;;  %v831_v2 = vrot.slane %v829_v53, 4  ;;  %v883_v42 = vpack.c.b16 %v867_v43, %v867_v43  ;;  %v12290_v52 = vld [vmem:[#allocation2 + $0x20] sm:$0xf0]  }
 0x18e   : > { %v3296_v61 = vpop.f32.mrf.mxu2  ;;  %v3527_v17 = vadd.f32 %v3526_v10, %v3294_v4  ;;  %3746 = vmatmul.bf16.gmra.mxu1 %v1578_v24  ;;  %v1588_v4 = vshrl.u32 %v691_v13, 16  ;;  %v1582_v22 = vrot.slane %v1580_v34, 3  ;;  %v1585_v45 = vrot.slane %v1583_v39, 4  ;;  %v12114_v10 = vld [vmem:[#allocation2 + $0x20] sm:$0x8] }
 0x18f   : > { %v3297_v26 = vadd.f32 %v3296_v61, %v12978_v33  ;;  %v2832_v33 = vrot.slane %v2830_v55, 3  ;;  %v1593_v61 = vrot.slane %v1591_v6, 4  ;;  %v834_v30 = vrot.slane %v832_v12, 5 }
 0x190   : > { %v13293_v58 = vpop.f32.mrf.mxu0  ;;  %v13297_v51 = vadd.f32 %v13265_v36, %v3527_v17  ;;  %v1590_v49 = vrot.slane %v1588_v4, 3  ;;  %v1586_v35 = vor.u32 %v1585_v45, %v1582_v22  ;;  %v930_v55 = vrot.slane %v546_v28, 5  ;;  %v3806_v28 = vld [vmem:[#allocation2 + $0x2c] sm:$0x1] }
 0x191   : > { %v2836_v5 = vor.u32 %v2835_v0, %v2832_v33  ;;  %v835_v13 = vor.u32 %v834_v30, %v831_v2  ;;  %v931_v33 = vrot.slane %v883_v42, 5  ;;  %v12115_v2 = vor.u32 %v12290_v52, %v12114_v10  ;;  %v11756_v10 = vld [vmem:[%s15709_s2 + $0xe0] sm:$0xff] }
 0x192   : > { %3568 = vmatmul.bf16.gmra.mxu3 %v1552_v48  ;;  %v13299_v59 = vpop.f32.mrf.mxu1  ;;  %v1594_v41 = vor.u32 %v1593_v61, %v1590_v49  ;;  %v1606_v0 = vshrl.u32 %v930_v55, 16  ;;  %v1609_v34 = vshll.u32 %v930_v55, 16  ;;  %v3872_v49 = vunpack.c.h.b16 %v13301_v60  ;;  %8284 = vmatpush.bf16.msra.mxu1 %v11756_v10 }
 0x193   : > { %v2837_v17 = vsel %vm933_vm3, %v2828_v1, %v2836_v5  ;;  %v1597_v39 = vshrl.u32 %v835_v13, 16  ;;  %v1600_v4 = vshll.u32 %v835_v13, 16  ;;  %v932_v6 = vsel %vm884_vm7, %v930_v55, %v931_v33 }
 0x194   : > { %v1611_v53 = vrot.slane %v1609_v34, 4  ;;  %v1614_v1 = vshrl.u32 %v932_v6, 16  ;;  %v1617_v5 = vshll.u32 %v932_v6, 16  ;;  %v4110_v55 = vunpack.c.l.b16 %v3806_v28 }
 0x195   : > { %v3529_v63 = vpop.f32.mrf.mxu3  ;;  %v1599_v12 = vrot.slane %v1597_v39, 3  ;;  %v1602_v22 = vrot.slane %v1600_v4, 4  ;;  %v4191_v33 = vshrl.u32 %v12115_v2, 16  ;;  %v3967_v4 = vshrl.u32 %v13301_v60, 16 }
 0x196   : > { %v3298_v36 = vpop.f32.mrf.mxu2  ;;  %v3530_v15 = vadd.f32 %v3529_v63, %v3297_v26  ;;  %v1595_v26 = vsel %vm933_vm3, %v1586_v35, %v1594_v41  ;;  %v1616_v61 = vrot.slane %v1614_v1, 3  ;;  %v3919_v63 = vpack.c.b16 %v3872_v49, %v3872_v49  ;;  %v13324_v1 = vld [vmem:[#allocation2 + $0x34] sm:$0xff]  }
 0x197   : > { %v3299_v48 = vadd.f32 %v3298_v36, %v12989_v27  ;;  %v1608_v27 = vrot.slane %v1606_v0, 3  ;;  %v1619_v36 = vrot.slane %v1617_v5, 4  ;;  %v1603_v30 = vor.u32 %v1602_v22, %v1599_v12 }
 0x198   : > { %v13305_v24 = vpop.f32.mrf.mxu0  ;;  %v13308_v43 = vadd.f32 %v13281_v14, %v3530_v15  ;;  %v4194_v35 = vshll.u32 %v12115_v2, 16  ;;  %v4199_v34 = vshrl.u32 %v3919_v63, 16  ;;  %v4202_v39 = vshll.u32 %v3919_v63, 16 }
 0x199   : > { %v1612_v14 = vor.u32 %v1611_v53, %v1608_v27  ;;  %v4193_v6 = vrot.slane %v4191_v33, 3  ;;  %v12118_v53 = vld [vmem:[#allocation2 + $0x30] sm:$0x8]  ;;  %v3969_v22 = vrot.slane %v3967_v4, 4  ;;  %v3875_v33 = vunpack.c.h.b16 %v13324_v1 }
 0x19a   : > { %v13312_v45 = vpop.f32.mrf.mxu1  ;;  %v4196_v27 = vrot.slane %v4194_v35, 4  ;;  %v4201_v28 = vrot.slane %v4199_v34, 3  ;;  %v4204_v12 = vrot.slane %v4202_v39, 4 }
 0x19b   : > { %3340 = vmatmul.bf16.gmra.mxu2 %v2837_v17  ;;  %v1620_v17 = vor.u32 %v1619_v36, %v1616_v61  ;;  %v4126_v61 = vpack.c.b16 %v4110_v55, %v4110_v55  ;;  %v4142_v36 = vrot.slane %v13301_v60, 5 }
 0x19c   : > { %3662 = vmatmul.bf16.gmra.mxu0 %v1603_v30  ;;  %v4205_v2 = vor.u32 %v4204_v12, %v4201_v28  ;;  %v3921_v12 = vpack.c.b16 %v3875_v33, %v3875_v33 }
 0x19d   : > { %v3531_v15 = vpop.f32.mrf.mxu3  ;;  %v1621_v52 = vsel %vm933_vm3, %v1612_v14, %v1620_v17  ;;  %v4197_v14 = vor.u32 %v4196_v27, %v4193_v6  ;;  %v4143_v63 = vrot.slane %v4126_v61, 5  ;;  %v4220_v17 = vshll.u32 %v4142_v36, 16 }
 0x19e   : > { %v3301_v42 = vpop.f32.mrf.mxu2  ;;  %v3532_v41 = vadd.f32 %v3531_v15, %v3299_v48  ;;  %v12291_v48 = vld [vmem:[#allocation2 + $0x30] sm:$0xf0]   ;;  %3751 = vmatmul.bf16.gmra.mxu1 %v1621_v52  ;;  %v4217_v15 = vshrl.u32 %v4142_v36, 16 }
 0x19f   : > { %v3302_v13 = vadd.f32 %v3301_v42, %v13017_v16  ;;  %v3970_v16 = vshll.u32 %v13301_v60, 16  ;;  %v12119_v35 = vor.u32 %v12291_v48, %v12118_v53  ;;  %v4144_v60 = vsel %vm884_vm7, %v4142_v36, %v4143_v63 }
 0x1a0   : > { %v13316_v0 = vpop.f32.mrf.mxu0  ;;  %v13327_v5 = vadd.f32 %v13293_v58, %v3532_v41  ;;  %v4219_v52 = vrot.slane %v4217_v15, 3  ;;  %v4222_v6 = vrot.slane %v4220_v17, 4  ;;  %v4225_v27 = vshrl.u32 %v4144_v60, 16 }
 0x1a1   : > { %v3972_v49 = vrot.slane %v3970_v16, 5  ;;  %v4206_v16 = vsel %vm933_vm3, %v4197_v14, %v4205_v2  ;;  %v4228_v28 = vshll.u32 %v4144_v60, 16  ;;  %v4237_v63 = vshll.u32 %v12119_v35, 16 }
 0x1a2   : > { %3573 = vmatmul.bf16.gmra.mxu3 %v1595_v26  ;;  %v13330_v30 = vpop.f32.mrf.mxu1  ;;  %v3807_v26 = vld [vmem:[#allocation2 + $0x3c] sm:$0x1]  ;;  %v4227_v48 = vrot.slane %v4225_v27, 3  ;;  %v4223_v61 = vor.u32 %v4222_v6, %v4219_v52  ;;  %v3975_v15 = vshrl.u32 %v13324_v1, 16  ;;  %v4242_v14 = vshrl.u32 %v3921_v12, 16 }
 0x1a3   : > { %v3973_v42 = vor.u32 %v3972_v49, %v3969_v22  ;;  %v4230_v36 = vrot.slane %v4228_v28, 4  ;;  %v4245_v2 = vshll.u32 %v3921_v12, 16  ;;  %v12122_v52 = vld [vmem:[#allocation2 + $0x40] sm:$0x8]  ;;  %v3765_v12 = vld [vmem:[#allocation2 + $0x44] sm:$0xff]  }
 0x1a4   : > { %v3977_v33 = vrot.slane %v3975_v15, 4 }
 0x1a5   : > { %v3534_v41 = vpop.f32.mrf.mxu3  ;;  %v4208_v55 = vshrl.u32 %v3973_v42, 16  ;;  %v4211_v39 = vshll.u32 %v3973_v42, 16  ;;  %v4234_v42 = vshrl.u32 %v12119_v35, 16  ;;  %v4231_v17 = vor.u32 %v4230_v36, %v4227_v48  ;;  %v12292_v48 = vld [vmem:[#allocation2 + $0x40] sm:$0xf0]  }
 0x1a6   : > { %v3303_v58 = vpop.f32.mrf.mxu2  ;;  %v3535_v4 = vadd.f32 %v3534_v41, %v3302_v13  ;;  %v4239_v36 = vrot.slane %v4237_v63, 4  ;;  %v4247_v15 = vrot.slane %v4245_v2, 4 }
 0x1a7   : > { %v3304_v34 = vadd.f32 %v3303_v58, %v13033_v37  ;;  %v4111_v37 = vunpack.c.l.b16 %v3807_v26  ;;  %v4210_v22 = vrot.slane %v4208_v55, 3  ;;  %v4213_v49 = vrot.slane %v4211_v39, 4 }
 0x1a8   : > { %v13335_v10 = vpop.f32.mrf.mxu0  ;;  %v13339_v53 = vadd.f32 %v13305_v24, %v3535_v4  ;;  %v3978_v58 = vshll.u32 %v13324_v1, 16  ;;  %v4232_v39 = vsel %vm933_vm3, %v4223_v61, %v4231_v17  ;;  %v4236_v27 = vrot.slane %v4234_v42, 3 }
 0x1a9   : > { %v4127_v41 = vpack.c.b16 %v4111_v37, %v4111_v37  ;;  %v4214_v55 = vor.u32 %v4213_v49, %v4210_v22  ;;  %v4244_v37 = vrot.slane %v4242_v14, 3 }
 0x1aa   : > { %v13341_v13 = vpop.f32.mrf.mxu1  ;;  %v3980_v4 = vrot.slane %v3978_v58, 5  ;;  %v3878_v58 = vunpack.c.h.b16 %v3765_v12 }
 0x1ab   : > { %5127 = vmatmul.bf16.vlgmr.msra.gmra.mxu2 %v4206_v16  ;;  %v4145_v16 = vrot.slane %v13324_v1, 5  ;;  %v4146_v28 = vrot.slane %v4127_v41, 5  ;;  %v4248_v41 = vor.u32 %v4247_v15, %v4244_v37 }
 0x1ac   : > { %5305 = vmatmul.bf16.vlgmr.msra.gmra.mxu0 %v4232_v39  ;;  %v3981_v22 = vor.u32 %v3980_v4, %v3977_v33  ;;  %v3923_v54 = vpack.c.b16 %v3878_v58, %v3878_v58  ;;  %v4148_v58 = vrot.slane %v3765_v12, 5 }
 0x1ad   : > { %v3536_v60 = vpop.f32.mrf.mxu3  ;;  %v4260_v61 = vshrl.u32 %v4145_v16, 16 }
 0x1ae   : > { %v3306_v24 = vpop.f32.mrf.mxu2  ;;  %v3537_v6 = vadd.f32 %v3536_v60, %v3304_v34  ;;  %v4263_v34 = vshll.u32 %v4145_v16, 16  ;;  %v4251_v60 = vshrl.u32 %v3981_v22, 16  ;;  %v4254_v63 = vshll.u32 %v3981_v22, 16 }
 0x1af   : > { %v3307_v26 = vadd.f32 %v3306_v24, %v12818_v44  ;;  %v4147_v44 = vsel %vm884_vm7, %v4145_v16, %v4146_v28  ;;  %v4240_v24 = vor.u32 %v4239_v36, %v4236_v27  ;;  %v4262_v2 = vrot.slane %v4260_v61, 3  ;;  %v3808_v16 = vld [vmem:[#allocation2 + $0x4c] sm:$0x1] }
 0x1b0   : > { %v13347_v35 = vpop.f32.mrf.mxu0  ;;  %v13351_v49 = vadd.f32 %v13316_v0, %v3537_v6  ;;  %v4268_v17 = vshrl.u32 %v4147_v44, 16  ;;  %v4271_v42 = vshll.u32 %v4147_v44, 16  ;;  %v4265_v33 = vrot.slane %v4263_v34, 4 }
 0x1b1   : > { %v12123_v28 = vor.u32 %v12292_v48, %v12122_v52  ;;  %v4249_v44 = vsel %vm933_vm3, %v4240_v24, %v4248_v41  ;;  %v4253_v27 = vrot.slane %v4251_v60, 3  ;;  %v4256_v36 = vrot.slane %v4254_v63, 4  ;;  %v12124_v63 = vld [vmem:[#allocation2 + $0x50] sm:$0xf0]  }
 0x1b2   : > { %5216 = vmatmul.bf16.vlgmr.msra.gmra.mxu3 %v4214_v55  ;;  %v13354_v1 = vpop.f32.mrf.mxu1  ;;  %v4270_v39 = vrot.slane %v4268_v17, 3  ;;  %v4273_v0 = vrot.slane %v4271_v42, 4  ;;  %v4266_v15 = vor.u32 %v4265_v33, %v4262_v2  ;;  %v4112_v61 = vunpack.c.l.b16 %v3808_v16 }
 0x1b3   : > { %v4277_v34 = vshrl.u32 %v12123_v28, 16  ;;  %v3983_v17 = vshrl.u32 %v3765_v12, 16  ;;  %v3986_v42 = vshll.u32 %v3765_v12, 16  ;;  %v4285_v52 = vshrl.u32 %v3923_v54, 16  ;;  %v3809_v12 = vld [vmem:[#allocation2 + $0x5c] sm:$0x1] }
 0x1b4   : > { %v4274_v22 = vor.u32 %v4273_v0, %v4270_v39  ;;  %v4128_v48 = vpack.c.b16 %v4112_v61, %v4112_v61  ;;  %v4257_v24 = vor.u32 %v4256_v36, %v4253_v27 }
 0x1b5   : > { %v3539_v4 = vpop.f32.mrf.mxu3  ;;  %v4279_v39 = vrot.slane %v4277_v34, 3  ;;  %v3985_v0 = vrot.slane %v3983_v17, 4 }
 0x1b6   : > { %v3308_v14 = vpop.f32.mrf.mxu2  ;;  %v3540_v18 = vadd.f32 %v3539_v4, %v3307_v26  ;;  %v4280_v26 = vshll.u32 %v12123_v28, 16  ;;  %v4275_v41 = vsel %vm933_vm3, %v4266_v15, %v4274_v22  ;;  %v3988_v4 = vrot.slane %v3986_v42, 5  ;;  %v11857_v22 = vld [vmem:[#allocation2 + $0x50] sm:$0x8] }
 0x1b7   : > { %v3309_v6 = vadd.f32 %v3308_v14, %v12838_v11  ;;  %v4288_v14 = vshll.u32 %v3923_v54, 16  ;;  %v4287_v28 = vrot.slane %v4285_v52, 3  ;;  %v11755_v54 = vld [vmem:[%s15709_s2 + $0xd8] sm:$0xff]  ;;  %v4303_v15 = vshrl.u32 %v4148_v58, 16 }
 0x1b8   : > { %v13357_v55 = vpop.f32.mrf.mxu0  ;;  %v13361_v37 = vadd.f32 %v13335_v10, %v3540_v18  ;;  %v4149_v18 = vrot.slane %v4128_v48, 5  ;;  %v3768_v10 = vld [vmem:[#allocation2 + $0x54] sm:$0xff]   ;;  %8285 = vmatpush.bf16.msra.mxu1 %v11755_v54  ;;  %v4113_v52 = vunpack.c.l.b16 %v3809_v12  ;;  %v11858_v54 = vor.u32 %v12124_v63, %v11857_v22 }
 0x1b9   : > { %v4290_v36 = vrot.slane %v4288_v14, 4 }
 0x1ba   : > { %v13363_v11 = vpop.f32.mrf.mxu1  ;;  %v4150_v61 = vsel %vm884_vm7, %v4148_v58, %v4149_v18  ;;  %v4129_v20 = vpack.c.b16 %v4113_v52, %v4113_v52  ;;  %v4323_v63 = vshll.u32 %v11858_v54, 16 }
 0x1bb   : > { %5132 = vmatmul.bf16.gmra.mxu2 %v4249_v44  ;;  %v4282_v44 = vrot.slane %v4280_v26, 4  ;;  %v4311_v17 = vshrl.u32 %v4150_v61, 16  ;;  %v4314_v42 = vshll.u32 %v4150_v61, 16  ;;  %v3989_v26 = vor.u32 %v3988_v4, %v3985_v0 }
 0x1bc   : > { %5310 = vmatmul.bf16.gmra.mxu0 %v4275_v41  ;;  %v4291_v41 = vor.u32 %v4290_v36, %v4287_v28 }
 0x1bd   : > { %v3541_v2 = vpop.f32.mrf.mxu3  ;;  %v4313_v62 = vrot.slane %v4311_v17, 3  ;;  %v4316_v19 = vrot.slane %v4314_v42, 4  ;;  %v4152_v17 = vrot.slane %v4129_v20, 5 }
 0x1be   : > { %v3311_v60 = vpop.f32.mrf.mxu2  ;;  %v3542_v16 = vadd.f32 %v3541_v2, %v3309_v6  ;;  %v4306_v6 = vshll.u32 %v4148_v58, 16  ;;  %v4305_v2 = vrot.slane %v4303_v15, 3  ;;  %v4297_v58 = vshll.u32 %v3989_v26, 16 }
 0x1bf   : > { %v3312_v33 = vadd.f32 %v3311_v60, %v12857_v21  ;;  %v3881_v21 = vunpack.c.h.b16 %v3768_v10  ;;  %v4283_v60 = vor.u32 %v4282_v44, %v4279_v39  ;;  %v3991_v39 = vshrl.u32 %v3768_v10, 16 }
 0x1c0   : > { %v13371_v27 = vpop.f32.mrf.mxu0  ;;  %v13374_v34 = vadd.f32 %v13347_v35, %v3542_v16  ;;  %v4308_v14 = vrot.slane %v4306_v6, 4  ;;  %v4294_v16 = vshrl.u32 %v3989_v26, 16  ;;  %v3994_v44 = vshll.u32 %v3768_v10, 16 }
 0x1c1   : > { %v3925_v0 = vpack.c.b16 %v3881_v21, %v3881_v21  ;;  %v4317_v36 = vor.u32 %v4316_v19, %v4313_v62  ;;  %v4299_v6 = vrot.slane %v4297_v58, 4  ;;  %v3993_v21 = vrot.slane %v3991_v39, 4  ;;  %v12293_v58 = vld [vmem:[#allocation2 + $0x60] sm:$0xf0]  }
 0x1c2   : > { %5221 = vmatmul.bf16.gmra.mxu3 %v4257_v24  ;;  %v13376_v48 = vpop.f32.mrf.mxu1  ;;  %v4292_v24 = vsel %vm933_vm3, %v4283_v60, %v4291_v41  ;;  %v4309_v12 = vor.u32 %v4308_v14, %v4305_v2  ;;  %v4296_v15 = vrot.slane %v4294_v16, 3  ;;  %v3996_v26 = vrot.slane %v3994_v44, 5  ;;  %v3771_v16 = vld [vmem:[#allocation2 + $0x64] sm:$0xff]  }
 0x1c3   : > { %v4331_v22 = vshll.u32 %v3925_v0, 16  ;;  %v4325_v2 = vrot.slane %v4323_v63, 4 }
 0x1c4   : > { %v4318_v52 = vsel %vm933_vm3, %v4309_v12, %v4317_v36 }
 0x1c5   : > { %v3544_v46 = vpop.f32.mrf.mxu3 }
 0x1c6   : > { %v3313_v18 = vpop.f32.mrf.mxu2  ;;  %v3545_v61 = vadd.f32 %v3544_v46, %v3312_v33  ;;  %v4320_v46 = vshrl.u32 %v11858_v54, 16  ;;  %v4328_v33 = vshrl.u32 %v3925_v0, 16  ;;  %v4333_v0 = vrot.slane %v4331_v22, 4 }
 0x1c7   : > { %v3314_v35 = vadd.f32 %v3313_v18, %v12871_v31  ;;  %v4151_v31 = vrot.slane %v3768_v10, 5  ;;  %v4300_v18 = vor.u32 %v4299_v6, %v4296_v15  ;;  %v3884_v15 = vunpack.c.h.b16 %v3771_v16 }
 0x1c8   : > { %v13379_v4 = vpop.f32.mrf.mxu0  ;;  %v13383_v28 = vadd.f32 %v13357_v55, %v3545_v61  ;;  %v12127_v55 = vld [vmem:[#allocation2 + $0x60] sm:$0x8]  ;;  %v4322_v10 = vrot.slane %v4320_v46, 3  ;;  %v4330_v14 = vrot.slane %v4328_v33, 3  ;;  %v3810_v61 = vld [vmem:[#allocation2 + $0x6c] sm:$0x1] }
 0x1c9   : > { %v4153_v62 = vsel %vm884_vm7, %v4151_v31, %v4152_v17  ;;  %v4346_v39 = vshrl.u32 %v4151_v31, 16  ;;  %v4349_v12 = vshll.u32 %v4151_v31, 16 }
 0x1ca   : > { %v13385_v42 = vpop.f32.mrf.mxu1  ;;  %v4357_v36 = vshll.u32 %v4153_v62, 16  ;;  %v4326_v6 = vor.u32 %v4325_v2, %v4322_v10  ;;  %v4334_v46 = vor.u32 %v4333_v0, %v4330_v14  ;;  %v3927_v14 = vpack.c.b16 %v3884_v15, %v3884_v15 }
 0x1cb   : > { %5137 = vmatmul.bf16.gmra.mxu2 %v4292_v24  ;;  %15763 = vst [vmem:[#allocation23_spill] sm:$0xff] %v13385_v42  ;;  %v3997_v24 = vor.u32 %v3996_v26, %v3993_v21  ;;  %v4348_v22 = vrot.slane %v4346_v39, 3  ;;  %v4351_v21 = vrot.slane %v4349_v12, 4  ;;  %v4002_v39 = vshll.u32 %v3771_v16, 16  ;;  %v13440_v42 = vld [vmem:[#allocation2 + $0x94] sm:$0xff]  }
 0x1cc   : > { %5315 = vmatmul.bf16.gmra.mxu0 %v4318_v52  ;;  %v12128_v52 = vor.u32 %v12293_v58, %v12127_v55  ;;  %v4154_v12 = vrot.slane %v3771_v16, 5 }
 0x1cd   : > { %v3546_v41 = vpop.f32.mrf.mxu3  ;;  %v4337_v63 = vshrl.u32 %v3997_v24, 16  ;;  %v4340_v33 = vshll.u32 %v3997_v24, 16  ;;  %v4352_v55 = vor.u32 %v4351_v21, %v4348_v22  ;;  %v3999_v24 = vshrl.u32 %v3771_v16, 16  ;;  %v15767_v22 = vld [vmem:[#allocation6_spill] sm:$0xff] }
 0x1ce   : > { %v3316_v60 = vpop.f32.mrf.mxu2  ;;  %v3547_v20 = vadd.f32 %v3546_v41, %v3314_v35  ;;  %v4114_v35 = vunpack.c.l.b16 %v3810_v61  ;;  %v4359_v41 = vrot.slane %v4357_v36, 4  ;;  %v4363_v0 = vshrl.u32 %v12128_v52, 16 }
 0x1cf   : > { %v3317_v19 = vadd.f32 %v3316_v60, %v12889_v47  ;;  %v4354_v47 = vshrl.u32 %v4153_v62, 16  ;;  %v4339_v10 = vrot.slane %v4337_v63, 3  ;;  %v4342_v2 = vrot.slane %v4340_v33, 4 }
 0x1d0   : > { %v13390_v54 = vpop.f32.mrf.mxu0  ;;  %v13393_v44 = vadd.f32 %v13371_v27, %v3547_v20  ;;  %v4130_v20 = vpack.c.b16 %v4114_v35, %v4114_v35  ;;  %v4371_v36 = vshrl.u32 %v3927_v14, 16  ;;  %v4374_v35 = vshll.u32 %v3927_v14, 16 }
 0x1d1   : > { %v4356_v26 = vrot.slane %v4354_v47, 3  ;;  %v4343_v15 = vor.u32 %v4342_v2, %v4339_v10  ;;  %v4365_v33 = vrot.slane %v4363_v0, 3  ;;  %v4004_v16 = vrot.slane %v4002_v39, 5  ;;  %v11861_v0 = vld [vmem:[#allocation2 + $0x70] sm:$0x8] }
 0x1d2   : > { %5226 = vmatmul.bf16.gmra.mxu3 %v4300_v18  ;;  %v13395_v17 = vpop.f32.mrf.mxu1  ;;  %v4335_v18 = vsel %vm933_vm3, %v4326_v6, %v4334_v46  ;;  %v4155_v47 = vrot.slane %v4130_v20, 5  ;;  %v13406_v6 = vld [vmem:[#allocation2 + $0x74] sm:$0xff]   ;;  %v4373_v2 = vrot.slane %v4371_v36, 3  ;;  %v4376_v14 = vrot.slane %v4374_v35, 4 }
 0x1d3   : > { %15764 = vst [vmem:[#allocation24_spill] sm:$0xff] %v13395_v17  ;;  %v4360_v58 = vor.u32 %v4359_v41, %v4356_v26  ;;  %v12129_v46 = vld [vmem:[#allocation2 + $0x70] sm:$0xf0]   ;;  %v4001_v26 = vrot.slane %v3999_v24, 4  ;;  %v15770_v17 = vld [vmem:[#allocation7_spill] sm:$0xff] }
 0x1d4   : > { %v4156_v41 = vsel %vm884_vm7, %v4154_v12, %v4155_v47 }
 0x1d5   : > { %v3549_v27 = vpop.f32.mrf.mxu3  ;;  %v4397_v39 = vshrl.u32 %v4156_v41, 16 }
 0x1d6   : > { %v3318_v60 = vpop.f32.mrf.mxu2  ;;  %v3550_v62 = vadd.f32 %v3549_v27, %v3317_v19  ;;  %v4366_v19 = vshll.u32 %v12128_v52, 16  ;;  %v3811_v27 = vld [vmem:[#allocation2 + $0x7c] sm:$0x1] }
 0x1d7   : > { %v3319_v31 = vadd.f32 %v3318_v60, %v12904_v29  ;;  %v4115_v47 = vunpack.c.l.b16 %v3811_v27  ;;  %v4399_v35 = vrot.slane %v4397_v39, 3  ;;  %v11862_v27 = vor.u32 %v12129_v46, %v11861_v0  ;;  %v3777_v46 = vld [vmem:[#allocation2 + $0x84] sm:$0xff]  }
 0x1d8   : > { %v13398_v25 = vpop.f32.mrf.mxu0  ;;  %v13402_v61 = vadd.f32 %v13379_v4, %v3550_v62  ;;  %v4361_v4 = vsel %vm933_vm3, %v4352_v55, %v4360_v58  ;;  %v4368_v52 = vrot.slane %v4366_v19, 4  ;;  %v11754_v62 = vld [vmem:[%s15709_s2 + $0xd0] sm:$0xff]  ;;  %v4389_v55 = vshrl.u32 %v4154_v12, 16 }
 0x1d9   : > { %v4392_v58 = vshll.u32 %v4154_v12, 16  ;;  %8286 = vmatpush.bf16.msra.mxu1 %v11754_v62  ;;  %v4005_v19 = vor.u32 %v4004_v16, %v4001_v26  ;;  %v4131_v12 = vpack.c.b16 %v4115_v47, %v4115_v47  ;;  %v4010_v26 = vshll.u32 %v13406_v6, 16 }
 0x1da   : > { %15765 = vst [vmem:[#allocation25_spill] sm:$0xff] %v13402_v61  ;;  %v13404_v29 = vpop.f32.mrf.mxu1  ;;  %v4409_v47 = vshll.u32 %v11862_v27, 16 }
 0x1db   : > { %5142 = vmatmul.bf16.gmra.mxu2 %v4335_v18  ;;  %15766 = vst [vmem:[#allocation26_spill] sm:$0xff] %v13404_v29  ;;  %v3887_v18 = vunpack.c.h.b16 %v13406_v6  ;;  %v4394_v38 = vrot.slane %v4392_v58, 4 }
 0x1dc   : > { %5320 = vmatmul.bf16.gmra.mxu0 %v4361_v4  ;;  %v4377_v4 = vor.u32 %v4376_v14, %v4373_v2  ;;  %v4157_v14 = vrot.slane %v13406_v6, 5 }
 0x1dd   : > { %v3551_v60 = vpop.f32.mrf.mxu3 }
 0x1de   : > { %v3321_v63 = vpop.f32.mrf.mxu2  ;;  %v3552_v20 = vadd.f32 %v3551_v60, %v3319_v31  ;;  %v4400_v31 = vshll.u32 %v4156_v41, 16  ;;  %v4369_v60 = vor.u32 %v4368_v52, %v4365_v33  ;;  %v3929_v41 = vpack.c.b16 %v3887_v18, %v3887_v18 }
 0x1df   : > { %v3322_v21 = vadd.f32 %v3321_v63, %v15767_v22  ;;  %v4391_v22 = vrot.slane %v4389_v55, 3  ;;  %v4158_v55 = vrot.slane %v4131_v12, 5 }
 0x1e0   : > { %v13415_v10 = vpop.f32.mrf.mxu0  ;;  %v13418_v24 = vadd.f32 %v13390_v54, %v3552_v20  ;;  %v4402_v50 = vrot.slane %v4400_v31, 4  ;;  %v4380_v20 = vshrl.u32 %v4005_v19, 16  ;;  %v4378_v33 = vsel %vm933_vm3, %v4369_v60, %v4377_v4 }
 0x1e1   : > { %v4395_v16 = vor.u32 %v4394_v38, %v4391_v22  ;;  %v4414_v18 = vshrl.u32 %v3929_v41, 16  ;;  %v4406_v31 = vshrl.u32 %v11862_v27, 16  ;;  %v4012_v38 = vrot.slane %v4010_v26, 5  ;;  %v11865_v27 = vld [vmem:[#allocation2 + $0x80] sm:$0x8] }
 0x1e2   : > { %15768 = vst [vmem:[#allocation6_spill] sm:$0xff] %v13418_v24  ;;  %5231 = vmatmul.bf16.gmra.mxu3 %v4343_v15  ;;  %v13420_v63 = vpop.f32.mrf.mxu1  ;;  %v4383_v24 = vshll.u32 %v4005_v19, 16  ;;  %v4007_v15 = vshrl.u32 %v13406_v6, 16  ;;  %v4403_v2 = vor.u32 %v4402_v50, %v4399_v35  ;;  %v4382_v58 = vrot.slane %v4380_v20, 3  ;;  %v3812_v20 = vld [vmem:[#allocation2 + $0x8c] sm:$0x1] }
 0x1e3   : > { %15769 = vst [vmem:[#allocation27_spill] sm:$0xff] %v13420_v63  ;;  %v4159_v50 = vsel %vm884_vm7, %v4157_v14, %v4158_v55  ;;  %v3890_v6 = vunpack.c.h.b16 %v3777_v46  ;;  %v4416_v35 = vrot.slane %v4414_v18, 3  ;;  %v4435_v26 = vshll.u32 %v4157_v14, 16 }
 0x1e4   : > { %v4385_v39 = vrot.slane %v4383_v24, 4  ;;  %v4009_v19 = vrot.slane %v4007_v15, 4  ;;  %v4432_v15 = vshrl.u32 %v4157_v14, 16  ;;  %v4015_v14 = vshrl.u32 %v3777_v46, 16 }
 0x1e5   : > { %v3554_v29 = vpop.f32.mrf.mxu3 }
 0x1e6   : > { %v3323_v36 = vpop.f32.mrf.mxu2  ;;  %v3555_v62 = vadd.f32 %v3554_v29, %v3322_v21  ;;  %v4417_v29 = vshll.u32 %v3929_v41, 16  ;;  %v12130_v21 = vld [vmem:[#allocation2 + $0x80] sm:$0xf0]   ;;  %v4386_v22 = vor.u32 %v4385_v39, %v4382_v58  ;;  %v4013_v63 = vor.u32 %v4012_v38, %v4009_v19 }
 0x1e7   : > { %v3324_v54 = vadd.f32 %v3323_v36, %v15770_v17  ;;  %v15772_v36 = vld [vmem:[#allocation8_spill] sm:$0xff] }
 0x1e8   : > { %v13427_v52 = vadd.f32 %v13398_v25, %v3555_v62  ;;  %v3648_v17 = vpop.f32.mrf.mxu0  ;;  %v4404_v25 = vsel %vm933_vm3, %v4395_v16, %v4403_v2  ;;  %v4419_v12 = vrot.slane %v4417_v29, 4  ;;  %v4408_v62 = vrot.slane %v4406_v31, 3 }
 0x1e9   : > { %v4440_v16 = vshrl.u32 %v4159_v50, 16  ;;  %v4443_v2 = vshll.u32 %v4159_v50, 16  ;;  %v4423_v29 = vshrl.u32 %v4013_v63, 16  ;;  %v4434_v31 = vrot.slane %v4432_v15, 3 }
 0x1ea   : > { %15771 = vst [vmem:[#allocation7_spill] sm:$0xff] %v13427_v52  ;;  %v3737_v0 = vpop.f32.mrf.mxu1  ;;  %v4116_v52 = vunpack.c.l.b16 %v3812_v20  ;;  %v4420_v18 = vor.u32 %v4419_v12, %v4416_v35  ;;  %v11866_v20 = vor.u32 %v12130_v21, %v11865_v27  ;;  %v3931_v12 = vpack.c.b16 %v3890_v6, %v3890_v6 }
 0x1eb   : > { %5147 = vmatmul.bf16.gmra.mxu2 %v4378_v33  ;;  %v4411_v33 = vrot.slane %v4409_v47, 4  ;;  %v4437_v47 = vrot.slane %v4435_v26, 4  ;;  %v4442_v19 = vrot.slane %v4440_v16, 3  ;;  %v4445_v38 = vrot.slane %v4443_v2, 4 }
 0x1ec   : > { %5325 = vmatmul.bf16.gmra.mxu0 %v4404_v25  ;;  %v4132_v50 = vpack.c.b16 %v4116_v52, %v4116_v52  ;;  %v4425_v35 = vrot.slane %v4423_v29, 3  ;;  %v4160_v15 = vrot.slane %v3777_v46, 5  ;;  %v4017_v16 = vrot.slane %v4015_v14, 4  ;;  %v12131_v52 = vld [vmem:[#allocation2 + $0x90] sm:$0xf0]  }
 0x1ed   : > { %v3556_v4 = vpop.f32.mrf.mxu3  ;;  %v4412_v39 = vor.u32 %v4411_v33, %v4408_v62  ;;  %v4438_v62 = vor.u32 %v4437_v47, %v4434_v31  ;;  %v4446_v33 = vor.u32 %v4445_v38, %v4442_v19  ;;  %v4452_v21 = vshll.u32 %v11866_v20, 16  ;;  %v3813_v14 = vld [vmem:[#allocation2 + $0x9c] sm:$0x1] }
 0x1ee   : > { %v3326_v60 = vpop.f32.mrf.mxu2  ;;  %v3557_v41 = vadd.f32 %v3556_v4, %v3324_v54  ;;  %v4018_v4 = vshll.u32 %v3777_v46, 16  ;;  %v4457_v27 = vshrl.u32 %v3931_v12, 16  ;;  %v4460_v6 = vshll.u32 %v3931_v12, 16 }
 0x1ef   : > { %v3327_v24 = vadd.f32 %v3326_v60, %v15772_v36  ;;  %v4426_v60 = vshll.u32 %v4013_v63, 16  ;;  %v4454_v19 = vrot.slane %v4452_v21, 4  ;;  %v4475_v38 = vshrl.u32 %v4160_v15, 16 }
 0x1f0   : > { %v13434_v55 = vadd.f32 %v13415_v10, %v3557_v41  ;;  %v3650_v58 = vpop.f32.mrf.mxu0  ;;  %v15775_v10 = vld [vmem:[#allocation9_spill] sm:$0xff]  ;;  %v4020_v2 = vrot.slane %v4018_v4, 5 }
 0x1f1   : > { %v4428_v63 = vrot.slane %v4426_v60, 4 }
 0x1f2   : > { %15773 = vst [vmem:[#allocation8_spill] sm:$0xff] %v13434_v55  ;;  %5236 = vmatmul.bf16.gmra.mxu3 %v4386_v22  ;;  %v13436_v54 = vpop.f32.mrf.mxu1  ;;  %v4421_v22 = vsel %vm933_vm3, %v4412_v39, %v4420_v18  ;;  %v3893_v39 = vunpack.c.h.b16 %v13440_v42 }
 0x1f3   : > { %15774 = vst [vmem:[#allocation28_spill] sm:$0xff] %v13436_v54  ;;  %v4161_v54 = vrot.slane %v4132_v50, 5  ;;  %v4429_v18 = vor.u32 %v4428_v63, %v4425_v35  ;;  %v15776_v50 = vld [vmem:[#allocation10_spill] sm:$0xff] }
 0x1f4   : > { %v11869_v35 = vld [vmem:[#allocation2 + $0x90] sm:$0x8] }
 0x1f5   : > { %v3559_v36 = vpop.f32.mrf.mxu3  ;;  %v4162_v29 = vsel %vm884_vm7, %v4160_v15, %v4161_v54 }
 0x1f6   : > { %v3328_v25 = vpop.f32.mrf.mxu2  ;;  %v3560_v55 = vadd.f32 %v3559_v36, %v3327_v24  ;;  %v4483_v12 = vshrl.u32 %v4162_v29, 16  ;;  %v4486_v54 = vshll.u32 %v4162_v29, 16 }
 0x1f7   : > { %v3329_v41 = vadd.f32 %v3328_v25, %v15775_v10  ;;  %v4449_v25 = vshrl.u32 %v11866_v20, 16  ;;  %v4459_v10 = vrot.slane %v4457_v27, 3  ;;  %v4462_v20 = vrot.slane %v4460_v6, 4 }
 0x1f8   : > { %v3649_v26 = vadd.f32 %v3648_v17, %v3560_v55  ;;  %v13442_v61 = vpop.f32.mrf.mxu0  ;;  %v4447_v17 = vsel %vm933_vm3, %v4438_v62, %v4446_v33  ;;  %v4021_v55 = vor.u32 %v4020_v2, %v4017_v16  ;;  %v4117_v62 = vunpack.c.l.b16 %v3813_v14 }
 0x1f9   : > { %v4451_v47 = vrot.slane %v4449_v25, 3  ;;  %v4463_v16 = vor.u32 %v4462_v20, %v4459_v10  ;;  %v4477_v2 = vrot.slane %v4475_v38, 3  ;;  %v4485_v21 = vrot.slane %v4483_v12, 3  ;;  %v12132_v38 = vld [vmem:[#allocation2 + $0xa0] sm:$0xf0]  }
 0x1fa   : > { %v13444_v24 = vadd.f32 %v3737_v0, %v3649_v26  ;;  %v13448_v46 = vpop.f32.mrf.mxu1  ;;  %v4478_v0 = vshll.u32 %v4160_v15, 16  ;;  %v4466_v33 = vshrl.u32 %v4021_v55, 16  ;;  %v4469_v15 = vshll.u32 %v4021_v55, 16 }
 0x1fb   : > { %5152 = vmatmul.bf16.gmra.mxu2 %v4421_v22  ;;  %v11753_v22 = vld [vmem:[%s15709_s2 + $0xc8] sm:$0xff]  ;;  %v4455_v26 = vor.u32 %v4454_v19, %v4451_v47  ;;  %v4488_v27 = vrot.slane %v4486_v54, 4  ;;  %v4023_v6 = vshrl.u32 %v13440_v42, 16  ;;  %v4133_v29 = vpack.c.b16 %v4117_v62, %v4117_v62 }
 0x1fc   : > { %5330 = vmatmul.bf16.gmra.mxu0 %v4447_v17  ;;  %8287 = vmatpush.bf16.msra.mxu1 %v11753_v22  ;;  %v4480_v25 = vrot.slane %v4478_v0, 4  ;;  %v4026_v17 = vshll.u32 %v13440_v42, 16  ;;  %v11870_v14 = vor.u32 %v12131_v52, %v11869_v35  ;;  %v3933_v47 = vpack.c.b16 %v3893_v39, %v3893_v39  ;;  %v13465_v19 = vld [vmem:[#allocation2 + $0xa4] sm:$0xff]  }
 0x1fd   : > { %v3561_v60 = vpop.f32.mrf.mxu3  ;;  %v4464_v10 = vsel %vm933_vm3, %v4455_v26, %v4463_v16  ;;  %v4163_v54 = vrot.slane %v13440_v42, 5  ;;  %v4164_v52 = vrot.slane %v4133_v29, 5  ;;  %v3896_v39 = vunpack.c.h.b16 %v13465_v19  ;;  %v15778_v29 = vld [vmem:[#allocation12_spill] sm:$0xff] }
 0x1fe   : > { %v3331_v31 = vpop.f32.mrf.mxu2  ;;  %v3562_v4 = vadd.f32 %v3561_v60, %v3329_v41  ;;  %v4481_v20 = vor.u32 %v4480_v25, %v4477_v2  ;;  %v4028_v12 = vrot.slane %v4026_v17, 5  ;;  %v4492_v35 = vshrl.u32 %v11870_v14, 16 }
 0x1ff   : > { %v3332_v36 = vadd.f32 %v3331_v31, %v15776_v50  ;;  %v4471_v31 = vrot.slane %v4469_v15, 4  ;;  %v4503_v15 = vshll.u32 %v3933_v47, 16  ;;  %v13476_v26 = vadd.f32 %v13235_v40, %v13272_v23 }
 0x200   : > { %v13455_v63 = vadd.f32 %v3650_v58, %v3562_v4  ;;  %v13457_v41 = vpop.f32.mrf.mxu0  ;;  %v13463_v58 = vadd.f32 %v13208_v57, %v13252_v8  ;;  %v15777_v4 = vld [vmem:[#allocation11_spill] sm:$0xff]  ;;  %v4489_v57 = vor.u32 %v4488_v27, %v4485_v21  ;;  %v4025_v8 = vrot.slane %v4023_v6, 4 }
 0x201   : > { %v13480_v16 = vadd.f32 %v13257_v32, %v13286_v9  ;;  %v13484_v42 = vadd.f32 %v13275_v56, %v13297_v51  ;;  %v13491_v2 = vadd.f32 %v13289_v3, %v13308_v43  ;;  %v13495_v40 = vadd.f32 %v13299_v59, %v13327_v5  ;;  %v11873_v9 = vld [vmem:[#allocation2 + $0xa0] sm:$0x8]  ;;  %v3814_v56 = vld [vmem:[#allocation2 + $0xac] sm:$0x1] }
 0x202   : > { %5241 = vmatmul.bf16.gmra.mxu3 %v4429_v18  ;;  %v4468_v18 = vrot.slane %v4466_v33, 3  ;;  %v13469_v22 = vpop.f32.mrf.mxu1  ;;  %v4495_v33 = vshll.u32 %v11870_v14, 16  ;;  %v13499_v32 = vadd.f32 %v13312_v45, %v13339_v53  ;;  %v4029_v23 = vor.u32 %v4028_v12, %v4025_v8 }
 0x203   : > { %v4165_v21 = vsel %vm884_vm7, %v4163_v54, %v4164_v52  ;;  %v4494_v43 = vrot.slane %v4492_v35, 3  ;;  %v4505_v59 = vrot.slane %v4503_v15, 4  ;;  %v4118_v45 = vunpack.c.l.b16 %v3814_v56  ;;  %v13521_v52 = vld [vmem:[#allocation2 + $0xb4] sm:$0xff]  }
 0x204   : > { %v4472_v25 = vor.u32 %v4471_v31, %v4468_v18  ;;  %v4497_v6 = vrot.slane %v4495_v33, 4  ;;  %v4509_v53 = vshrl.u32 %v4029_v23, 16  ;;  %v4521_v14 = vshll.u32 %v4163_v54, 16  ;;  %v12133_v35 = vld [vmem:[#allocation2 + $0xb0] sm:$0xf0]  }
 0x205   : > { %v3564_v60 = vpop.f32.mrf.mxu3 }
 0x206   : > { %v3333_v55 = vpop.f32.mrf.mxu2  ;;  %v3565_v0 = vadd.f32 %v3564_v60, %v3332_v36  ;;  %v4500_v36 = vshrl.u32 %v3933_v47, 16  ;;  %v4526_v47 = vshrl.u32 %v4165_v21, 16  ;;  %v4498_v8 = vor.u32 %v4497_v6, %v4494_v43 }
 0x207   : > { %v3334_v50 = vadd.f32 %v3333_v55, %v15777_v4  ;;  %v4518_v55 = vshrl.u32 %v4163_v54, 16  ;;  %v4529_v4 = vshll.u32 %v4165_v21, 16  ;;  %v11874_v54 = vor.u32 %v12132_v38, %v11873_v9 }
 0x208   : > { %v3654_v62 = vadd.f32 %v13442_v61, %v3565_v0  ;;  %v4502_v17 = vrot.slane %v4500_v36, 3  ;;  %v4512_v0 = vshll.u32 %v4029_v23, 16  ;;  %v4523_v33 = vrot.slane %v4521_v14, 4 }
 0x209   : > { %v3658_v51 = vpop.f32.mrf.mxu0  ;;  %v4166_v38 = vrot.slane %v13465_v19, 5  ;;  %v3899_v9 = vunpack.c.h.b16 %v13521_v52  ;;  %v4535_v43 = vshrl.u32 %v11874_v54, 16 }
 0x20a   : > { %v13487_v61 = vadd.f32 %v13448_v46, %v3654_v62  ;;  %v4490_v46 = vsel %vm933_vm3, %v4481_v20, %v4489_v57  ;;  %v13510_v20 = vadd.f32 %v13330_v30, %v13351_v49  ;;  %v13518_v57 = vadd.f32 %v13354_v1, %v13374_v34 }
 0x20b   : > { %5157 = vmatmul.bf16.gmra.mxu2 %v4464_v10  ;;  %v3747_v31 = vpop.f32.mrf.mxu1  ;;  %v4031_v10 = vshrl.u32 %v13465_v19, 16  ;;  %v4506_v12 = vor.u32 %v4505_v59, %v4502_v17  ;;  %v4134_v62 = vpack.c.b16 %v4118_v45, %v4118_v45  ;;  %v13523_v30 = vrot.slane %v4509_v53, 3 }
 0x20c   : > { %5335 = vmatmul.bf16.gmra.mxu0 %v4490_v46  ;;  %v4520_v49 = vrot.slane %v4518_v55, 3  ;;  %v13525_v36 = vrot.slane %v4512_v0, 4  ;;  %v4528_v1 = vrot.slane %v4526_v47, 3  ;;  %v4531_v34 = vrot.slane %v4529_v4, 4  ;;  %v3815_v46 = vld [vmem:[#allocation2 + $0xbc] sm:$0x1] }
 0x20d   : > { %v3566_v27 = vpop.f32.mrf.mxu3  ;;  %v4033_v15 = vrot.slane %v4031_v10, 4  ;;  %v4167_v6 = vrot.slane %v4134_v62, 5  ;;  %v4538_v17 = vshll.u32 %v11874_v54, 16  ;;  %v4119_v55 = vunpack.c.l.b16 %v3815_v46  ;;  %v11877_v47 = vld [vmem:[#allocation2 + $0xb0] sm:$0x8] }
 0x20e   : > { %v3336_v3 = vpop.f32.mrf.mxu2  ;;  %v3567_v5 = vadd.f32 %v3566_v27, %v3334_v50  ;;  %v13514_v50 = vadd.f32 %v13341_v13, %v13361_v37  ;;  %v3935_v13 = vpack.c.b16 %v3896_v39, %v3896_v39  ;;  %v15779_v27 = vld [vmem:[#allocation13_spill] sm:$0xff]  ;;  %v4507_v39 = vsel %vm933_vm3, %v4498_v8, %v4506_v12 }
 0x20f   : > { %v3337_v60 = vadd.f32 %v3336_v3, %v15778_v29  ;;  %v4524_v45 = vor.u32 %v4523_v33, %v4520_v49  ;;  %v4532_v53 = vor.u32 %v4531_v34, %v4528_v1  ;;  %v4537_v10 = vrot.slane %v4535_v43, 3 }
 0x210   : > { %v13505_v18 = vadd.f32 %v13457_v41, %v3567_v5  ;;  %v4034_v41 = vshll.u32 %v13465_v19, 16  ;;  %v4543_v59 = vshrl.u32 %v3935_v13, 16  ;;  %v4546_v5 = vshll.u32 %v3935_v13, 16 }
 0x211   : > { %v3660_v37 = vpop.f32.mrf.mxu0  ;;  %v13533_v19 = vadd.f32 %v13363_v11, %v13383_v28  ;;  %v4540_v8 = vrot.slane %v4538_v17, 4  ;;  %v4564_v62 = vshll.u32 %v4166_v38, 16  ;;  %v4515_v28 = vor.u32 %v13525_v36, %v13523_v30 }
 0x212   : > { %5246 = vmatmul.bf16.gmra.mxu3 %v4472_v25  ;;  %v4036_v25 = vrot.slane %v4034_v41, 5  ;;  %v4561_v41 = vshrl.u32 %v4166_v38, 16  ;;  %v4545_v12 = vrot.slane %v4543_v59, 3  ;;  %v4548_v54 = vrot.slane %v4546_v5, 4 }
 0x213   : > { %v3749_v4 = vpop.f32.mrf.mxu1  ;;  %v4039_v34 = vshrl.u32 %v13521_v52, 16  ;;  %v4566_v36 = vrot.slane %v4564_v62, 4  ;;  %v4169_v43 = vrot.slane %v13521_v52, 5  ;;  %v3937_v59 = vpack.c.b16 %v3899_v9, %v3899_v9 }
 0x214   : > { %v4037_v14 = vor.u32 %v4036_v25, %v4033_v15  ;;  %v4042_v25 = vshll.u32 %v13521_v52, 16  ;;  %v4549_v46 = vor.u32 %v4548_v54, %v4545_v12  ;;  %v4563_v30 = vrot.slane %v4561_v41, 3 }
 0x215   : > { %v3569_v23 = vpop.f32.mrf.mxu3  ;;  %v4041_v5 = vrot.slane %v4039_v34, 4  ;;  %v11881_v34 = vld [vmem:[#allocation2 + $0xc0] sm:$0x8] }
 0x216   : > { %v3338_v56 = vpop.f32.mrf.mxu2  ;;  %v3570_v21 = vadd.f32 %v3569_v23, %v3337_v60  ;;  %v13537_v60 = vadd.f32 %v13376_v48, %v13393_v44  ;;  %v4533_v48 = vsel %vm933_vm3, %v4524_v45, %v4532_v53  ;;  %v4135_v44 = vpack.c.b16 %v4119_v55, %v4119_v55  ;;  %v15782_v55 = vld [vmem:[#allocation25_spill] sm:$0xff] }
 0x217   : > { %v3339_v3 = vadd.f32 %v3338_v56, %v15779_v27  ;;  %v4552_v33 = vshrl.u32 %v4037_v14, 16  ;;  %v4555_v56 = vshll.u32 %v4037_v14, 16  ;;  %v11878_v27 = vor.u32 %v12133_v35, %v11877_v47  ;;  %v15783_v14 = vld [vmem:[#allocation23_spill] sm:$0xff] }
 0x218   : > { %v3659_v29 = vadd.f32 %v3658_v51, %v3570_v21  ;;  %v4168_v51 = vsel %vm884_vm7, %v4166_v38, %v4167_v6  ;;  %v4541_v38 = vor.u32 %v4540_v8, %v4537_v10  ;;  %v4170_v6 = vrot.slane %v4135_v44, 5  ;;  %v3816_v8 = vld [vmem:[#allocation2 + $0xcc] sm:$0x1] }
 0x219   : > { %v3663_v11 = vpop.f32.mrf.mxu0  ;;  %v4569_v13 = vshrl.u32 %v4168_v51, 16  ;;  %v4572_v1 = vshll.u32 %v4168_v51, 16  ;;  %v4044_v45 = vrot.slane %v4042_v25, 5  ;;  %v13559_v35 = vrot.slane %v4552_v33, 3 }
 0x21a   : > { %v13539_v0 = vadd.f32 %v3747_v31, %v3659_v29  ;;  %v4550_v52 = vsel %vm933_vm3, %v4541_v38, %v4549_v46  ;;  %v13561_v47 = vrot.slane %v4555_v56, 4  ;;  %v4567_v51 = vor.u32 %v4566_v36, %v4563_v30 }
 0x21b   : > { %5162 = vmatmul.bf16.gmra.mxu2 %v4507_v39  ;;  %v4571_v39 = vrot.slane %v4569_v13, 3  ;;  %v4574_v17 = vrot.slane %v4572_v1, 4  ;;  %v3752_v10 = vpop.f32.mrf.mxu1  ;;  %v4578_v41 = vshrl.u32 %v11878_v27, 16  ;;  %v4589_v44 = vshll.u32 %v3937_v59, 16 }
 0x21c   : > { %15780 = vst [vmem:[#allocation9_spill] sm:$0xff] %v13539_v0  ;;  %5340 = vmatmul.bf16.gmra.mxu0 %v4533_v48  ;;  %v4586_v48 = vshrl.u32 %v3937_v59, 16  ;;  %v4045_v33 = vor.u32 %v4044_v45, %v4041_v5  ;;  %v4604_v1 = vshrl.u32 %v4169_v43, 16  ;;  %v4120_v38 = vunpack.c.l.b16 %v3816_v8 }
 0x21d   : > { %v3571_v49 = vpop.f32.mrf.mxu3  ;;  %v4575_v62 = vor.u32 %v4574_v17, %v4571_v39  ;;  %v4580_v30 = vrot.slane %v4578_v41, 3  ;;  %v4591_v39 = vrot.slane %v4589_v44, 4 }
 0x21e   : > { %v3341_v31 = vpop.f32.mrf.mxu2  ;;  %v3572_v15 = vadd.f32 %v3571_v49, %v3339_v3  ;;  %v13549_v3 = vld [vmem:[#allocation2 + $0xc4] sm:$0xff]   ;;  %v4598_v59 = vshll.u32 %v4045_v33, 16  ;;  %v4606_v5 = vrot.slane %v4604_v1, 3 }
 0x21f   : > { %v3342_v23 = vadd.f32 %v3341_v31, %v13035_v7  ;;  %v12134_v7 = vld [vmem:[#allocation2 + $0xc0] sm:$0xf0]   ;;  %v3902_v53 = vunpack.c.h.b16 %v13549_v3  ;;  %v15784_v31 = vld [vmem:[#allocation14_spill] sm:$0xff]  ;;  %v4047_v36 = vshrl.u32 %v13549_v3, 16 }
 0x220   : > { %v3661_v21 = vadd.f32 %v3660_v37, %v3572_v15  ;;  %v13556_v37 = vadd.f32 %v15783_v14, %v15782_v55  ;;  %v4607_v15 = vshll.u32 %v4169_v43, 16  ;;  %v4136_v14 = vpack.c.b16 %v4120_v38, %v4120_v38 }
 0x221   : > { %v3665_v9 = vpop.f32.mrf.mxu0  ;;  %v13585_v38 = vrot.slane %v4598_v59, 4 }
 0x222   : > { %5251 = vmatmul.bf16.gmra.mxu3 %v4515_v28  ;;  %v13551_v29 = vadd.f32 %v3749_v4, %v3661_v21  ;;  %v4171_v4 = vsel %vm884_vm7, %v4169_v43, %v4170_v6  ;;  %v4581_v28 = vshll.u32 %v11878_v27, 16  ;;  %v4050_v21 = vshll.u32 %v13549_v3, 16 }
 0x223   : > { %v4612_v56 = vshrl.u32 %v4171_v4, 16  ;;  %v4615_v25 = vshll.u32 %v4171_v4, 16  ;;  %v4588_v27 = vrot.slane %v4586_v48, 3  ;;  %v4609_v45 = vrot.slane %v4607_v15, 4  ;;  %v15786_v4 = vld [vmem:[#allocation6_spill] sm:$0xff] }
 0x224   : > { %15781 = vst [vmem:[#allocation10_spill] sm:$0xff] %v13551_v29  ;;  %v4583_v6 = vrot.slane %v4581_v28, 4  ;;  %v15788_v28 = vld [vmem:[#allocation7_spill] sm:$0xff]  ;;  %v15789_v48 = vld [vmem:[#allocation26_spill] sm:$0xff]  ;;  %v11882_v15 = vor.u32 %v12134_v7, %v11881_v34  ;;  %v3939_v7 = vpack.c.b16 %v3902_v53, %v3902_v53  ;;  %v15791_v34 = vld [vmem:[#allocation8_spill] sm:$0xff] }
 0x225   : > { %v3574_v12 = vpop.f32.mrf.mxu3  ;;  %v4614_v43 = vrot.slane %v4612_v56, 3  ;;  %v4617_v55 = vrot.slane %v4615_v25, 4  ;;  %v13579_v44 = vadd.f32 %v15789_v48, %v15788_v28  ;;  %v5534_v56 = vld [vmem:[#allocation3 + $0x10] sm:$0x8] }
 0x226   : > { %v3343_v54 = vpop.f32.mrf.mxu2  ;;  %v3575_v49 = vadd.f32 %v3574_v12, %v3342_v23  ;;  %v4595_v23 = vshrl.u32 %v4045_v33, 16  ;;  %v4576_v12 = vsel %vm933_vm3, %v4567_v51, %v4575_v62  ;;  %v4584_v1 = vor.u32 %v4583_v6, %v4580_v30  ;;  %v15792_v30 = vld [vmem:[#allocation27_spill] sm:$0xff] }
 0x227   : > { %v3344_v13 = vadd.f32 %v3343_v54, %v15784_v31  ;;  %v4049_v54 = vrot.slane %v4047_v36, 4  ;;  %v4558_v31 = vor.u32 %v13561_v47, %v13559_v35  ;;  %v4592_v51 = vor.u32 %v4591_v39, %v4588_v27  ;;  %v15793_v27 = vld [vmem:[#allocation28_spill] sm:$0xff] }
 0x228   : > { %v3664_v46 = vadd.f32 %v3663_v11, %v3575_v49  ;;  %v15787_v11 = vld [vmem:[#allocation24_spill] sm:$0xff]  ;;  %v13583_v62 = vrot.slane %v4595_v23, 3  ;;  %v4610_v36 = vor.u32 %v4609_v45, %v4606_v5  ;;  %v13595_v6 = vadd.f32 %v15792_v30, %v15791_v34  ;;  %v3792_v45 = vld [vmem:[#allocation2 + $0xd4] sm:$0xff]  }
 0x229   : > { %v13571_v41 = vadd.f32 %v15787_v11, %v15786_v4  ;;  %v5306_v8 = vpop.f32.mrf.mxu0  ;;  %v4172_v4 = vrot.slane %v13549_v3, 5  ;;  %v4173_v11 = vrot.slane %v4136_v14, 5  ;;  %v13599_v39 = vadd.f32 %v15793_v27, %v13455_v63 }
 0x22a   : > { %v13567_v17 = vadd.f32 %v3752_v10, %v3664_v46  ;;  %v11752_v10 = vld [vmem:[%s15709_s2 + $0xc0] sm:$0xff]  ;;  %v3754_v46 = vpop.f32.mrf.mxu1  ;;  %v13603_v23 = vadd.f32 %v13469_v22, %v13505_v18  ;;  %v4593_v53 = vsel %vm933_vm3, %v4584_v1, %v4592_v51  ;;  %v4624_v5 = vshll.u32 %v11882_v15, 16 }
 0x22b   : > { %5167 = vmatmul.bf16.gmra.mxu2 %v4550_v52  ;;  %v4052_v52 = vrot.slane %v4050_v21, 5  ;;  %8288 = vmatpush.bf16.msra.mxu1 %v11752_v10  ;;  %v4618_v21 = vor.u32 %v4617_v55, %v4614_v43  ;;  %v12135_v43 = vld [vmem:[#allocation2 + $0xd0] sm:$0xf0]   ;;  %v4174_v55 = vsel %vm884_vm7, %v4172_v4, %v4173_v11  ;;  %v3905_v14 = vunpack.c.h.b16 %v3792_v45 }
 0x22c   : > { %15785 = vst [vmem:[#allocation11_spill] sm:$0xff] %v13567_v17  ;;  %5345 = vmatmul.bf16.gmra.mxu0 %v4576_v12  ;;  %v4629_v18 = vshrl.u32 %v3939_v7, 16  ;;  %v4632_v12 = vshll.u32 %v3939_v7, 16  ;;  %v4647_v1 = vshrl.u32 %v4172_v4, 16  ;;  %v4650_v51 = vshll.u32 %v4172_v4, 16 }
 0x22d   : > { %v3576_v49 = vpop.f32.mrf.mxu3  ;;  %v4053_v35 = vor.u32 %v4052_v52, %v4049_v54  ;;  %15794 = vst [vmem:[#allocation12_spill] sm:$0xff] %v13603_v23  ;;  %v4619_v63 = vsel %vm933_vm3, %v4610_v36, %v4618_v21  ;;  %v3817_v52 = vld [vmem:[#allocation2 + $0xdc] sm:$0x1]  ;;  %v4658_v36 = vshll.u32 %v4174_v55, 16  ;;  %v11885_v21 = vld [vmem:[#allocation2 + $0xd0] sm:$0x8] }
 0x22e   : > { %v5128_v33 = vpop.f32.mrf.mxu2  ;;  %v3577_v25 = vadd.f32 %v3576_v49, %v3344_v13  ;;  %v5535_v13 = vsel %vm12400_vm2, 0, %v5534_v56  ;;  %v4121_v56 = vunpack.c.l.b16 %v3817_v52  ;;  %v4055_v11 = vshrl.u32 %v3792_v45, 16 }
 0x22f   : > { %5536 = vst [vmem:[#allocation3 + $0x10] sm:$0x8] %v5535_v13  ;;  %v4638_v10 = vshrl.u32 %v4053_v35, 16  ;;  %v4641_v54 = vshll.u32 %v4053_v35, 16  ;;  %v13619_v35 = vld [vmem:[%s15710_s3] ss:$0 sm:$0xff]  ;;  %v11886_v52 = vor.u32 %v12135_v43, %v11885_v21 }
 0x230   : > { %v3666_v28 = vadd.f32 %v3665_v9, %v3577_v25  ;;  %v4621_v9 = vshrl.u32 %v11882_v15, 16  ;;  %v13614_v25 = vrot.slane %v4624_v5, 4  ;;  %v4137_v13 = vpack.c.b16 %v4121_v56, %v4121_v56  ;;  %v15796_v5 = vld [vmem:[#allocation15_spill] sm:$0xff] }
 0x231   : > { %v5308_v22 = vpop.f32.mrf.mxu0  ;;  %v13621_v34 = vrot.slane %v4629_v18, 3  ;;  %v13623_v30 = vrot.slane %v4632_v12, 4  ;;  %v4057_v27 = vrot.slane %v4055_v11, 4  ;;  %v4652_v18 = vrot.slane %v4650_v51, 4 }
 0x232   : > { %5256 = vmatmul.bf16.gmra.mxu3 %v4558_v31  ;;  %v13605_v3 = vadd.f32 %v3754_v46, %v3666_v28  ;;  %v13612_v31 = vrot.slane %v4621_v9, 3  ;;  %v4655_v46 = vshrl.u32 %v4174_v55, 16  ;;  %v4058_v28 = vshll.u32 %v3792_v45, 16 }
 0x233   : > { %v4175_v9 = vrot.slane %v3792_v45, 5  ;;  %v4176_v56 = vrot.slane %v4137_v13, 5  ;;  %v4660_v12 = vrot.slane %v4658_v36, 4  ;;  %v13636_v45 = vrot.slane %v4638_v10, 3 }
 0x234   : > { %15795 = vst [vmem:[#allocation13_spill] sm:$0xff] %v13605_v3  ;;  %v4060_v4 = vrot.slane %v4058_v28, 5  ;;  %v13638_v28 = vrot.slane %v4641_v54, 4  ;;  %v4635_v43 = vor.u32 %v13623_v30, %v13621_v34  ;;  %v5537_v34 = vld [vmem:[#allocation3 + $0x20] sm:$0x8] }
 0x235   : > { %v5217_v48 = vpop.f32.mrf.mxu3  ;;  %v4177_v10 = vsel %vm884_vm7, %v4175_v9, %v4176_v56 }
 0x236   : > { %v5130_v49 = vpop.f32.mrf.mxu2  ;;  %v5218_v15 = vadd.f32 %v5217_v48, %v5128_v33  ;;  %v13625_v33 = vrot.slane %v4647_v1, 3  ;;  %v3941_v48 = vpack.c.b16 %v3905_v14, %v3905_v14  ;;  %v4061_v59 = vor.u32 %v4060_v4, %v4057_v27 }
 0x237   : > { %v4667_v14 = vshll.u32 %v11886_v52, 16 }
 0x238   : > { %v5307_v7 = vadd.f32 %v5306_v8, %v5218_v15  ;;  %v13631_v8 = vld [vmem:[%s15711_s4] ss:$0 sm:$0xff]  ;;  %v4657_v15 = vrot.slane %v4655_v46, 3  ;;  %v4672_v51 = vshrl.u32 %v3941_v48, 16  ;;  %v4675_v21 = vshll.u32 %v3941_v48, 16 }
 0x239   : > { %v13634_v11 = vpop.f32.mrf.mxu0  ;;  %v4653_v54 = vor.u32 %v4652_v18, %v13625_v33  ;;  %v4681_v27 = vshrl.u32 %v4061_v59, 16  ;;  %v4684_v4 = vshll.u32 %v4061_v59, 16  ;;  %v13649_v30 = vrot.slane %v4667_v14, 4  ;;  %v3795_v18 = vld [vmem:[#allocation2 + $0xe4] sm:$0xff]  }
 0x23a   : > { %v5386_v55 = vadd.f32 %v5307_v7, %v15796_v5  ;;  %v4664_v7 = vshrl.u32 %v11886_v52, 16  ;;  %v4661_v13 = vor.u32 %v4660_v12, %v4657_v15  ;;  %v4674_v52 = vrot.slane %v4672_v51, 3 }
 0x23b   : > { %5172 = vmatmul.bf16.gmra.mxu2 %v4593_v53  ;;  %v4627_v53 = vor.u32 %v13614_v25, %v13612_v31  ;;  %v4690_v25 = vshrl.u32 %v4175_v9, 16  ;;  %v4677_v33 = vrot.slane %v4675_v21, 4  ;;  %v4701_v59 = vshll.u32 %v4177_v10, 16 }
 0x23c   : > { %v5422_v1 = vmul.f32 %v13619_v35, %v5386_v55  ;;  %5350 = vmatmul.bf16.gmra.mxu0 %v4619_v63  ;;  %v13647_v31 = vrot.slane %v4664_v7, 3  ;;  %v15798_v63 = vor.u32 %v13585_v38, %v13583_v62  ;;  %v5538_v14 = vsel %vm12400_vm2, 0, %v5537_v34  ;;  %v11767_v62 = vld [vmem:[%s15709_s2 + $0x138] sm:$0xff] }
 0x23d   : > { %v5219_v5 = vpop.f32.mrf.mxu3  ;;  %v4692_v15 = vrot.slane %v4690_v25, 3  ;;  %v4703_v38 = vrot.slane %v4701_v59, 4  ;;  %v4662_v25 = vsel %vm933_vm3, %v4653_v54, %v4661_v13  ;;  %v13670_v34 = vrot.slane %v4681_v27, 3  ;;  %5539 = vst [vmem:[#allocation3 + $0x20] sm:$0x8] %v5538_v14  ;;  %8370 = vmatpush.bf16.msrb.mxu2 %v11767_v62  ;;  %v15799_v62 = vld [vmem:[#allocation17_spill] sm:$0xff] }
 0x23e   : > { %v5133_v3 = vpop.f32.mrf.mxu2  ;;  %v5458_v46 = vadd.f32 %v13631_v8, %v5422_v1  ;;  %v5220_v36 = vadd.f32 %v5219_v5, %v5130_v49  ;;  %v4693_v1 = vshll.u32 %v4175_v9, 16  ;;  %v4698_v49 = vshrl.u32 %v4177_v10, 16  ;;  %v15797_v5 = vld [vmem:[#allocation16_spill] sm:$0xff] }
 0x23f   : > { %v4636_v10 = vsel %vm933_vm3, %v4627_v53, %v4635_v43  ;;  %v4670_v53 = vor.u32 %v13649_v30, %v13647_v31  ;;  %v4678_v43 = vor.u32 %v4677_v33, %v4674_v52  ;;  %v11889_v54 = vld [vmem:[#allocation2 + $0xe0] sm:$0x8]  ;;  %v4178_v23 = vrot.slane %v3795_v18, 5  ;;  %v11743_v33 = vld [vmem:[%s15709_s2 + $0x78] sm:$0xff] }
 0x240   : > { %v5490_v55 = vmax.f32 %v5458_v46, 0.0  ;;  %v5309_v17 = vadd.f32 %v5308_v22, %v5220_v36  ;;  %v12136_v22 = vld [vmem:[#allocation2 + $0xe0] sm:$0xf0]   ;;  %v4695_v12 = vrot.slane %v4693_v1, 4  ;;  %v4700_v7 = vrot.slane %v4698_v49, 3  ;;  %8781 = vmatpush.bf16.msrb.mxu1 %v11743_v33 }
 0x241   : > { %v13658_v51 = vpop.f32.mrf.mxu0  ;;  %v3908_v46 = vunpack.c.h.b16 %v3795_v18  ;;  %v3818_v1 = vld [vmem:[#allocation2 + $0xec] sm:$0x1] }
 0x242   : > { %v5639_v48 = vpack.c.bf16 %v5490_v55, %v5490_v55  ;;  %v5387_v56 = vadd.f32 %v5309_v17, %v15797_v5  ;;  %5261 = vmatmul.bf16.gmra.mxu3 %v15798_v63  ;;  %v11775_v17 = vld [vmem:[%s15709_s2 + $0x178] sm:$0xff]  ;;  %v13673_v5 = vld [vmem:[#allocation3 + $0x10] sm:$0x8]  ;;  %v4122_v63 = vunpack.c.l.b16 %v3818_v1  ;;  %v4696_v59 = vor.u32 %v4695_v12, %v4692_v15 }
 0x243   : > { %8459 = vmatpush.bf16.msrb.mxu3 %v11775_v17  ;;  %v4704_v14 = vor.u32 %v4703_v38, %v4700_v7  ;;  %v4063_v55 = vshrl.u32 %v3795_v18, 16  ;;  %v3943_v29 = vpack.c.b16 %v3908_v46, %v3908_v46 }
 0x244   : > { %5672 = vst [vmem:[#allocation3 + $0x14] sm:$0xf] %v5639_v48  ;;  %v5423_v9 = vmul.f32 %v13619_v35, %v5387_v56  ;;  %v13675_v56 = vrot.slane %v4684_v4, 4  ;;  %v11890_v4 = vor.u32 %v12136_v22, %v11889_v54  ;;  %v13691_v22 = vsel %vm933_vm3, %v4670_v53, %v4678_v43  ;;  %v13698_v12 = vld [vmem:[#allocation3 + $0x20] sm:$0x8] }
 0x245   : > { %v5222_v36 = vpop.f32.mrf.mxu3  ;;  %v4065_v1 = vrot.slane %v4063_v55, 4  ;;  %v13696_v15 = vsel %vm933_vm3, %v4696_v59, %v4704_v14  ;;  %v4715_v55 = vshrl.u32 %v3943_v29, 16 }
 0x246   : > { %v5135_v21 = vpop.f32.mrf.mxu2  ;;  %v5459_v49 = vadd.f32 %v13631_v8, %v5423_v9  ;;  %v5223_v48 = vadd.f32 %v5222_v36, %v5133_v3  ;;  %v4066_v9 = vshll.u32 %v3795_v18, 16  ;;  %v4138_v3 = vpack.c.b16 %v4122_v63, %v4122_v63 }
 0x247   : > { %v4687_v18 = vor.u32 %v13675_v56, %v13670_v34  ;;  %v4707_v46 = vshrl.u32 %v11890_v4, 16  ;;  %v4718_v63 = vshll.u32 %v3943_v29, 16  ;;  %v11774_v56 = vld [vmem:[%s15709_s2 + $0x170] sm:$0xff] }
 0x248   : > { %v5491_v13 = vmax.f32 %v5459_v49, 0.0  ;;  %v5312_v27 = vadd.f32 %v13634_v11, %v5223_v48  ;;  %v4068_v0 = vrot.slane %v4066_v9, 5  ;;  %v4179_v31 = vrot.slane %v4138_v3, 5  ;;  %v11735_v11 = vld [vmem:[%s15709_s2 + $0x38] sm:$0xff]  ;;  %8460 = vmatpush.bf16.msrb.mxu3 %v11774_v56 }
 0x249   : > { %v13682_v52 = vpop.f32.mrf.mxu0  ;;  %8692 = vmatpush.bf16.msrb.mxu0 %v11735_v11  ;;  %v4709_v43 = vrot.slane %v4707_v46, 3  ;;  %v4720_v9 = vrot.slane %v4718_v63, 4 }
 0x24a   : > { %v5640_v17 = vpack.c.bf16 %v5491_v13, %v5491_v13  ;;  %v5388_v36 = vadd.f32 %v5312_v27, %v15799_v62  ;;  %v4069_v53 = vor.u32 %v4068_v0, %v4065_v1  ;;  %v4717_v13 = vrot.slane %v4715_v55, 3 }
 0x24b   : > { %5177 = vmatmul.bf16.gmra.mxu2 %v4636_v10  ;;  %v4710_v10 = vshll.u32 %v11890_v4, 16  ;;  %v4180_v59 = vsel %vm884_vm7, %v4178_v23, %v4179_v31  ;;  %v4736_v4 = vshll.u32 %v4178_v23, 16  ;;  %v15801_v0 = vor.u32 %v13638_v28, %v13636_v45  ;;  %v12294_v31 = vld [vmem:[#allocation3 + $0x10] sm:$0xf0]   ;;  %v5540_v28 = vld [vmem:[#allocation3 + $0x30] sm:$0x8] }
 0x24c   : > { %5673 = vst [vmem:[#allocation3 + $0x18] sm:$0xf] %v5640_v17  ;;  %v5424_v30 = vmul.f32 %v13619_v35, %v5388_v36  ;;  %5355 = vmatmul.bf16.gmra.mxu0 %v4662_v25  ;;  %v4724_v3 = vshrl.u32 %v4069_v53, 16  ;;  %v4727_v62 = vshll.u32 %v4069_v53, 16  ;;  %v4733_v36 = vshrl.u32 %v4178_v23, 16 }
 0x24d   : > { %v5224_v7 = vpop.f32.mrf.mxu3  ;;  %v4712_v54 = vrot.slane %v4710_v10, 4  ;;  %v4721_v29 = vor.u32 %v4720_v9, %v4717_v13  ;;  %v4741_v46 = vshrl.u32 %v4180_v59, 16 }
 0x24e   : > { %v5138_v38 = vpop.f32.mrf.mxu2  ;;  %v5460_v49 = vadd.f32 %v13631_v8, %v5424_v30  ;;  %v5225_v48 = vadd.f32 %v5224_v7, %v5135_v21  ;;  %v15800_v30 = vld [vmem:[#allocation18_spill] sm:$0xff]  ;;  %v13707_v25 = vrot.slane %v4724_v3, 3  ;;  %v4735_v33 = vrot.slane %v4733_v36, 3 }
 0x24f   : > { %v4713_v17 = vor.u32 %v4712_v54, %v4709_v43  ;;  %v4738_v7 = vrot.slane %v4736_v4, 4  ;;  %v4743_v13 = vrot.slane %v4741_v46, 3  ;;  %v12140_v3 = vor.u32 %v12294_v31, %v13673_v5  ;;  %v12143_v4 = vld [vmem:[#allocation2 + $0xf0] sm:$0x8] }
 0x250   : > { %v5492_v27 = vmax.f32 %v5460_v49, 0.0  ;;  %v5314_v14 = vadd.f32 %v13658_v51, %v5225_v48  ;;  %v13711_v51 = vrot.slane %v4727_v62, 4  ;;  %v13718_v49 = vld [vmem:[#allocation2 + $0xf4] sm:$0xff]   ;;  %v5541_v36 = vsel %vm12400_vm2, 0, %v5540_v28 }
 0x251   : > { %v5318_v10 = vpop.f32.mrf.mxu0  ;;  %v13716_v45 = vsel %vm933_vm3, %v4713_v17, %v4721_v29  ;;  %v12295_v48 = vld [vmem:[#allocation2 + $0xf0] sm:$0xf0]   ;;  %v4739_v54 = vor.u32 %v4738_v7, %v4735_v33  ;;  %5542 = vst [vmem:[#allocation3 + $0x30] sm:$0x8] %v5541_v36  ;;  %v3819_v7 = vld [vmem:[#allocation2 + $0xfc] sm:$0x1] }
 0x252   : > { %v5641_v21 = vpack.c.bf16 %v5492_v27, %v5492_v27  ;;  %v5389_v11 = vadd.f32 %v5314_v14, %v15800_v30  ;;  %5266 = vmatmul.bf16.gmra.mxu3 %v15801_v0  ;;  %v4730_v43 = vor.u32 %v13711_v51, %v13707_v25  ;;  %v4744_v27 = vshll.u32 %v4180_v59, 16 }
 0x253   : > { %v13709_v1 = vld [vmem:[#allocation3 + $0x14] sm:$0xff]   ;;  %v7356_v0 = vshll.u32 %v12140_v3, 16 }
 0x254   : > { %5674 = vst [vmem:[#allocation3 + $0x24] sm:$0xf] %v5641_v21  ;;  %v5425_v23 = vmul.f32 %v13619_v35, %v5389_v11  ;;  %v7034_v55 = vunpack.c.h.b16 %v13709_v1  ;;  %v4746_v17 = vrot.slane %v4744_v27, 4  ;;  %v7353_v11 = vshrl.u32 %v12140_v3, 16  ;;  %v5543_v27 = vld [vmem:[#allocation3 + $0x40] sm:$0x8] }
 0x255   : > { %v5227_v63 = vpop.f32.mrf.mxu3  ;;  %v7358_v31 = vrot.slane %v7356_v0, 4  ;;  %v12144_v3 = vor.u32 %v12295_v48, %v12143_v4 }
 0x256   : > { %v5140_v53 = vpop.f32.mrf.mxu2  ;;  %v5461_v14 = vadd.f32 %v13631_v8, %v5425_v23  ;;  %v5228_v9 = vadd.f32 %v5227_v63, %v5138_v38  ;;  %v7081_v62 = vpack.c.b16 %v7034_v55, %v7034_v55  ;;  %v4747_v59 = vor.u32 %v4746_v17, %v4743_v13  ;;  %v15802_v38 = vld [vmem:[#allocation19_spill] sm:$0xff] }
 0x257   : > { %v7355_v5 = vrot.slane %v7353_v11, 3  ;;  %v4750_v0 = vshrl.u32 %v12144_v3, 16 }
 0x258   : > { %v5493_v21 = vmax.f32 %v5461_v14, 0.0  ;;  %v5317_v30 = vadd.f32 %v13682_v52, %v5228_v9  ;;  %v7361_v29 = vshrl.u32 %v7081_v62, 16  ;;  %v7364_v33 = vshll.u32 %v7081_v62, 16 }
 0x259   : > { %v13730_v63 = vsel %vm933_vm3, %v4739_v54, %v4747_v59  ;;  %v3911_v52 = vunpack.c.h.b16 %v13718_v49  ;;  %v13734_v13 = vpop.f32.mrf.mxu0  ;;  %v7359_v9 = vor.u32 %v7358_v31, %v7355_v5  ;;  %v4123_v62 = vunpack.c.l.b16 %v3819_v7  ;;  %v13741_v59 = vld [vmem:[#allocation3 + $0x30] sm:$0x8] }
 0x25a   : > { %v5642_v46 = vpack.c.bf16 %v5493_v21, %v5493_v21  ;;  %v5390_v23 = vadd.f32 %v5317_v30, %v15802_v38  ;;  %v7363_v55 = vrot.slane %v7361_v29, 3  ;;  %v7366_v28 = vrot.slane %v7364_v33, 4 }
 0x25b   : > { %5182 = vmatmul.bf16.gmra.mxu2 %v13691_v22  ;;  %v3945_v22 = vpack.c.b16 %v3911_v52, %v3911_v52  ;;  %v5544_v30 = vsel %vm12400_vm2, 0, %v5543_v27  ;;  %v4753_v29 = vshll.u32 %v12144_v3, 16  ;;  %v4071_v7 = vshrl.u32 %v13718_v49, 16  ;;  %v15803_v52 = vld [vmem:[#allocation20_spill] sm:$0xff] }
 0x25c   : > { %5675 = vst [vmem:[#allocation3 + $0x28] sm:$0xf] %v5642_v46  ;;  %v5426_v14 = vmul.f32 %v13619_v35, %v5390_v23  ;;  %v7367_v36 = vor.u32 %v7366_v28, %v7363_v55  ;;  %5360 = vmatmul.bf16.gmra.mxu0 %v13696_v15  ;;  %v4752_v23 = vrot.slane %v4750_v0, 3  ;;  %v4074_v15 = vshll.u32 %v13718_v49, 16  ;;  %v13751_v3 = vld [vmem:[#allocation2 + $0x100] sm:$0xf0]  }
 0x25d   : > { %v5229_v17 = vpop.f32.mrf.mxu3  ;;  %5545 = vst [vmem:[#allocation3 + $0x40] sm:$0x8] %v5544_v30  ;;  %v4758_v48 = vshrl.u32 %v3945_v22, 16  ;;  %v4761_v4 = vshll.u32 %v3945_v22, 16  ;;  %v4755_v5 = vrot.slane %v4753_v29, 4  ;;  %v4073_v55 = vrot.slane %v4071_v7, 4 }
 0x25e   : > { %v5143_v21 = vpop.f32.mrf.mxu2  ;;  %v5462_v54 = vadd.f32 %v13631_v8, %v5426_v14  ;;  %v5230_v11 = vadd.f32 %v5229_v17, %v5140_v53  ;;  %v7368_v33 = vsel %vm933_vm3, %v7359_v9, %v7367_v36  ;;  %v4139_v14 = vpack.c.b16 %v4123_v62, %v4123_v62  ;;  %v13749_v9 = vld [vmem:[#allocation2 + $0x104] sm:$0xff]  }
 0x25f   : > { %8289 = vmatmul.bf16.vlgmr.msra.gmra.mxu1 %v7368_v33  ;;  %v4760_v31 = vrot.slane %v4758_v48, 3  ;;  %v4763_v53 = vrot.slane %v4761_v4, 4  ;;  %v12297_v17 = vld [vmem:[#allocation3 + $0x20] sm:$0xf0]   ;;  %v4756_v36 = vor.u32 %v4755_v5, %v4752_v23  ;;  %v4181_v30 = vrot.slane %v13718_v49, 5 }
 0x260   : > { %v5494_v46 = vmax.f32 %v5462_v54, 0.0  ;;  %v5319_v38 = vadd.f32 %v5318_v10, %v5230_v11  ;;  %v4076_v62 = vrot.slane %v4074_v15, 5  ;;  %v4182_v33 = vrot.slane %v4139_v14, 5 }
 0x261   : > { %v4764_v22 = vor.u32 %v4763_v53, %v4760_v31  ;;  %v13757_v11 = vpop.f32.mrf.mxu0  ;;  %v4776_v48 = vshrl.u32 %v4181_v30, 16  ;;  %v4779_v4 = vshll.u32 %v4181_v30, 16 }
 0x262   : > { %v5643_v28 = vpack.c.bf16 %v5494_v46, %v5494_v46  ;;  %v5391_v27 = vadd.f32 %v5319_v38, %v15803_v52  ;;  %5271 = vmatmul.bf16.gmra.mxu3 %v4687_v18  ;;  %v11766_v18 = vld [vmem:[%s15709_s2 + $0x130] sm:$0xff]  ;;  %v12148_v38 = vor.u32 %v12297_v17, %v13698_v12  ;;  %v4077_v5 = vor.u32 %v4076_v62, %v4073_v55  ;;  %v12151_v62 = vld [vmem:[#allocation2 + $0x100] sm:$0x8] }
 0x263   : > { %v13753_v10 = vld [vmem:[#allocation3 + $0x24] sm:$0xff]   ;;  %v13767_v49 = vsel %vm933_vm3, %v4756_v36, %v4764_v22  ;;  %8371 = vmatpush.bf16.msrb.mxu2 %v11766_v18  ;;  %v4183_v31 = vsel %vm884_vm7, %v4181_v30, %v4182_v33  ;;  %v13772_v53 = vrot.slane %v4776_v48, 3 }
 0x264   : > { %5676 = vst [vmem:[#allocation3 + $0x34] sm:$0xf] %v5643_v28  ;;  %v5427_v54 = vmul.f32 %v13619_v35, %v5391_v27  ;;  %v7037_v34 = vunpack.c.h.b16 %v13753_v10  ;;  %v7396_v27 = vshrl.u32 %v12148_v38, 16  ;;  %v7399_v15 = vshll.u32 %v12148_v38, 16  ;;  %v13777_v55 = vld [vmem:[#allocation3 + $0x40] sm:$0x8] }
 0x265   : > { %v5232_v0 = vpop.f32.mrf.mxu3  ;;  %v4767_v22 = vshrl.u32 %v4077_v5, 16  ;;  %v4781_v38 = vrot.slane %v4779_v4, 4 }
 0x266   : > { %v5145_v29 = vpop.f32.mrf.mxu2  ;;  %v5463_v7 = vadd.f32 %v13631_v8, %v5427_v54  ;;  %v5233_v46 = vadd.f32 %v5232_v0, %v5143_v21  ;;  %v7083_v23 = vpack.c.b16 %v7037_v34, %v7037_v34  ;;  %v4770_v54 = vshll.u32 %v4077_v5, 16  ;;  %v15804_v0 = vld [vmem:[#allocation21_spill] sm:$0xff] }
 0x267   : > { %v7398_v17 = vrot.slane %v7396_v27, 3  ;;  %v7401_v34 = vrot.slane %v7399_v15, 4  ;;  %v13779_v18 = vrot.slane %v4767_v22, 3  ;;  %v4787_v15 = vshll.u32 %v4183_v31, 16 }
 0x268   : > { %v5495_v28 = vmax.f32 %v5463_v7, 0.0  ;;  %v5322_v52 = vadd.f32 %v13734_v13, %v5233_v46  ;;  %v7404_v14 = vshrl.u32 %v7083_v23, 16  ;;  %v7407_v36 = vshll.u32 %v7083_v23, 16  ;;  %v11734_v46 = vld [vmem:[%s15709_s2 + $0x30] sm:$0xff] }
 0x269   : > { %v13781_v13 = vrot.slane %v4770_v54, 4  ;;  %v13784_v48 = vpop.f32.mrf.mxu0  ;;  %v7402_v7 = vor.u32 %v7401_v34, %v7398_v17  ;;  %v4784_v23 = vshrl.u32 %v4183_v31, 16  ;;  %8693 = vmatpush.bf16.msrb.mxu0 %v11734_v46  ;;  %v3914_v17 = vunpack.c.h.b16 %v13749_v9  ;;  %v343_v34 = vld [vmem:[#allocation2 + $0x110] sm:$0x8] }
 0x26a   : > { %v5644_v21 = vpack.c.bf16 %v5495_v28, %v5495_v28  ;;  %v5392_v12 = vadd.f32 %v5322_v52, %v15804_v0  ;;  %v7406_v30 = vrot.slane %v7404_v14, 3  ;;  %v7409_v56 = vrot.slane %v7407_v36, 4  ;;  %v3820_v14 = vld [vmem:[#allocation2 + $0x10c] sm:$0x1]  ;;  %v5546_v36 = vld [vmem:[#allocation3 + $0x50] sm:$0x8] }
 0x26b   : > { %5187 = vmatmul.bf16.gmra.mxu2 %v13716_v45  ;;  %v11742_v45 = vld [vmem:[%s15709_s2 + $0x70] sm:$0xff]  ;;  %v4773_v27 = vor.u32 %v13781_v13, %v13779_v18  ;;  %v4786_v0 = vrot.slane %v4784_v23, 3  ;;  %v3947_v46 = vpack.c.b16 %v3914_v17, %v3914_v17 }
 0x26c   : > { %5677 = vst [vmem:[#allocation3 + $0x38] sm:$0xf] %v5644_v21  ;;  %v5428_v33 = vmul.f32 %v13619_v35, %v5392_v12  ;;  %v7410_v28 = vor.u32 %v7409_v56, %v7406_v30  ;;  %8782 = vmatpush.bf16.msrb.mxu1 %v11742_v45  ;;  %v4782_v21 = vor.u32 %v4781_v38, %v13772_v53  ;;  %v4789_v12 = vrot.slane %v4787_v15, 4  ;;  %v15805_v45 = vld [vmem:[#allocation22_spill] sm:$0xff] }
 0x26d   : > { %v5234_v5 = vpop.f32.mrf.mxu3  ;;  %5365 = vmatmul.bf16.gmra.mxu0 %v13730_v63  ;;  %v4124_v56 = vunpack.c.l.b16 %v3820_v14  ;;  %v12152_v53 = vor.u32 %v13751_v3, %v12151_v62  ;;  %v4801_v15 = vshrl.u32 %v3947_v46, 16 }
 0x26e   : > { %v5148_v52 = vpop.f32.mrf.mxu2  ;;  %v5464_v22 = vadd.f32 %v13631_v8, %v5428_v33  ;;  %v5235_v54 = vadd.f32 %v5234_v5, %v5145_v29  ;;  %v7411_v4 = vsel %vm933_vm3, %v7402_v7, %v7410_v28  ;;  %v5547_v29 = vsel %vm12400_vm2, 0, %v5546_v36  ;;  %v12298_v5 = vld [vmem:[#allocation3 + $0x30] sm:$0xf0]  }
 0x26f   : > { %8294 = vmatmul.bf16.gmra.mxu1 %v7411_v4  ;;  %v4790_v33 = vor.u32 %v4789_v12, %v4786_v0  ;;  %5548 = vst [vmem:[#allocation3 + $0x50] sm:$0x8] %v5547_v29  ;;  %v13807_v38 = vpack.c.b16 %v4124_v56, %v4124_v56  ;;  %v4793_v3 = vshrl.u32 %v12152_v53, 16  ;;  %v4796_v62 = vshll.u32 %v12152_v53, 16 }
 0x270   : > { %v5496_v30 = vmax.f32 %v5464_v22, 0.0  ;;  %v5324_v31 = vadd.f32 %v13757_v11, %v5235_v54  ;;  %v344_v11 = vsel %vm12400_vm2, 0, %v343_v34  ;;  %v4803_v4 = vrot.slane %v4801_v15, 3 }
 0x271   : > { %v13814_v28 = vsel %vm933_vm3, %v4782_v21, %v4790_v33  ;;  %345 = vst [vmem:[#allocation2 + $0x110] sm:$0x8] %v344_v11  ;;  %v13817_v25 = vpop.f32.mrf.mxu0  ;;  %v4795_v54 = vrot.slane %v4793_v3, 3  ;;  %v4798_v0 = vrot.slane %v4796_v62, 4  ;;  %v4079_v21 = vshrl.u32 %v13749_v9, 16 }
 0x272   : > { %v5645_v7 = vpack.c.bf16 %v5496_v30, %v5496_v30  ;;  %v5393_v63 = vadd.f32 %v5324_v31, %v15805_v45  ;;  %5276 = vmatmul.bf16.gmra.mxu3 %v4730_v43  ;;  %v4804_v43 = vshll.u32 %v3947_v46, 16  ;;  %v12156_v34 = vor.u32 %v12298_v5, %v13741_v59 }
 0x273   : > { %v13811_v23 = vld [vmem:[#allocation3 + $0x34] sm:$0xff]   ;;  %v4799_v31 = vor.u32 %v4798_v0, %v4795_v54  ;;  %v4081_v29 = vrot.slane %v4079_v21, 4  ;;  %v4082_v3 = vshll.u32 %v13749_v9, 16 }
 0x274   : > { %5678 = vst [vmem:[#allocation3 + $0x44] sm:$0xf] %v5645_v7  ;;  %v5429_v14 = vmul.f32 %v13619_v35, %v5393_v63  ;;  %v7040_v51 = vunpack.c.h.b16 %v13811_v23  ;;  %v4806_v56 = vrot.slane %v4804_v43, 4  ;;  %v7439_v46 = vshrl.u32 %v12156_v34, 16 }
 0x275   : > { %v5237_v36 = vpop.f32.mrf.mxu3  ;;  %v7442_v7 = vshll.u32 %v12156_v34, 16  ;;  %v4084_v54 = vrot.slane %v4082_v3, 5  ;;  %v13859_v3 = vld [vmem:[#allocation2 + $0x114] sm:$0xff]  }
 0x276   : > { %v5150_v22 = vpop.f32.mrf.mxu2  ;;  %v5465_v12 = vadd.f32 %v13631_v8, %v5429_v14  ;;  %v5238_v17 = vadd.f32 %v5237_v36, %v5148_v52  ;;  %v7085_v30 = vpack.c.b16 %v7040_v51, %v7040_v51  ;;  %v4807_v11 = vor.u32 %v4806_v56, %v4803_v4  ;;  %v13825_v62 = vld [vmem:[#allocation3 + $0x50] sm:$0x8]  ;;  %v11765_v14 = vld [vmem:[%s15709_s2 + $0x128] sm:$0xff] }
 0x277   : > { %v7441_v59 = vrot.slane %v7439_v46, 3  ;;  %v7444_v5 = vrot.slane %v7442_v7, 4  ;;  %v11733_v51 = vld [vmem:[%s15709_s2 + $0x28] sm:$0xff]  ;;  %8372 = vmatpush.bf16.msrb.mxu2 %v11765_v14 }
 0x278   : > { %v5497_v33 = vmax.f32 %v5465_v12, 0.0  ;;  %v5327_v53 = vadd.f32 %v13784_v48, %v5238_v17  ;;  %v7447_v45 = vshrl.u32 %v7085_v30, 16  ;;  %v7450_v63 = vshll.u32 %v7085_v30, 16  ;;  %v11773_v48 = vld [vmem:[%s15709_s2 + $0x168] sm:$0xff]  ;;  %v12159_v0 = vld [vmem:[#allocation2 + $0x110] sm:$0x8]  ;;  %8694 = vmatpush.bf16.msrb.mxu0 %v11733_v51 }
 0x279   : > { %v13842_v4 = vpop.f32.mrf.mxu0  ;;  %v7445_v21 = vor.u32 %v7444_v5, %v7441_v59  ;;  %v4184_v12 = vrot.slane %v13749_v9, 5  ;;  %v4185_v17 = vrot.slane %v13807_v38, 5  ;;  %8461 = vmatpush.bf16.msrb.mxu3 %v11773_v48  ;;  %v11772_v9 = vld [vmem:[%s15709_s2 + $0x160] sm:$0xff] }
 0x27a   : > { %v5646_v15 = vpack.c.bf16 %v5497_v33, %v5497_v33  ;;  %v5394_v52 = vadd.f32 %v5327_v53, %v13463_v58  ;;  %v7449_v43 = vrot.slane %v7447_v45, 3  ;;  %v7452_v36 = vrot.slane %v7450_v63, 4  ;;  %v11764_v45 = vld [vmem:[%s15709_s2 + $0x120] sm:$0xff] }
 0x27b   : > { %5192 = vmatmul.bf16.gmra.mxu2 %v13767_v49  ;;  %v13839_v58 = vsel %vm933_vm3, %v4799_v31, %v4807_v11  ;;  %v4085_v33 = vor.u32 %v4084_v54, %v4081_v29  ;;  %v4186_v46 = vsel %vm884_vm7, %v4184_v12, %v4185_v17  ;;  %v4819_v7 = vshrl.u32 %v4184_v12, 16  ;;  %v11732_v38 = vld [vmem:[%s15709_s2 + $0x20] sm:$0xff]  ;;  %v11731_v17 = vld [vmem:[%s15709_s2 + $0x18] sm:$0xff] }
 0x27c   : > { %5679 = vst [vmem:[#allocation3 + $0x48] sm:$0xf] %v5646_v15  ;;  %v5430_v49 = vmul.f32 %v13619_v35, %v5394_v52  ;;  %v7453_v30 = vor.u32 %v7452_v36, %v7449_v43  ;;  %v4822_v11 = vshll.u32 %v4184_v12, 16  ;;  %v12299_v15 = vld [vmem:[#allocation2 + $0x110] sm:$0xf0]   ;;  %v4827_v48 = vshrl.u32 %v4186_v46, 16  ;;  %8373 = vmatpush.bf16.msrb.mxu2 %v11764_v45  ;;  %8695 = vmatpush.bf16.msrb.mxu0 %v11732_v38 }
 0x27d   : > { %v5239_v34 = vpop.f32.mrf.mxu3  ;;  %5370 = vmatmul.bf16.gmra.mxu0 %v13814_v28  ;;  %v4813_v63 = vshll.u32 %v4085_v33, 16  ;;  %v4821_v5 = vrot.slane %v4819_v7, 3  ;;  %v4830_v36 = vshll.u32 %v4186_v46, 16  ;;  %8462 = vmatpush.bf16.msrb.mxu3 %v11772_v9  ;;  %v400_v28 = vld [vmem:[#allocation2 + $0x11c] sm:$0x1]  ;;  %v12160_v46 = vor.u32 %v12299_v15, %v12159_v0  ;;  %v11762_v0 = vld [vmem:[%s15709_s2 + $0x110] sm:$0xff] }
 0x27e   : > { %v5153_v56 = vpop.f32.mrf.mxu2  ;;  %v5466_v31 = vadd.f32 %v13631_v8, %v5430_v49  ;;  %v5240_v53 = vadd.f32 %v5239_v34, %v5150_v22  ;;  %v7454_v29 = vsel %vm933_vm3, %v7445_v21, %v7453_v30  ;;  %v4810_v22 = vshrl.u32 %v4085_v33, 16  ;;  %v11763_v21 = vld [vmem:[%s15709_s2 + $0x118] sm:$0xff]  ;;  %v11770_v15 = vld [vmem:[%s15709_s2 + $0x150] sm:$0xff] }
 0x27f   : > { %8299 = vmatmul.bf16.gmra.mxu1 %v7454_v29  ;;  %v13864_v51 = vrot.slane %v4813_v63, 4  ;;  %v4824_v43 = vrot.slane %v4822_v11, 4  ;;  %v11771_v12 = vld [vmem:[%s15709_s2 + $0x158] sm:$0xff]  ;;  %v3917_v30 = vunpack.c.h.b16 %v13859_v3 }
 0x280   : > { %v5498_v52 = vmax.f32 %v5466_v31, 0.0  ;;  %v5329_v59 = vadd.f32 %v13817_v25, %v5240_v53  ;;  %v13862_v14 = vrot.slane %v4810_v22, 3  ;;  %v4829_v25 = vrot.slane %v4827_v48, 3  ;;  %8374 = vmatpush.bf16.msrb.mxu2 %v11763_v21  ;;  %8696 = vmatpush.bf16.msrb.mxu0 %v11731_v17 }
 0x281   : > { %v4825_v13 = vor.u32 %v4824_v43, %v4821_v5  ;;  %v13885_v31 = vpop.f32.mrf.mxu0  ;;  %v3949_v38 = vpack.c.b16 %v3917_v30, %v3917_v30  ;;  %v401_v22 = vsel %vm12675_vm6, 0, %v400_v28  ;;  %8463 = vmatpush.bf16.msrb.mxu3 %v11771_v12  ;;  %v11730_v5 = vld [vmem:[%s15709_s2 + $0x10] sm:$0xff]  ;;  %v4836_v43 = vshrl.u32 %v12160_v46, 16  ;;  %v11769_v30 = vld [vmem:[%s15709_s2 + $0x148] sm:$0xff] }
 0x282   : > { %v5647_v54 = vpack.c.bf16 %v5498_v52, %v5498_v52  ;;  %v5395_v49 = vadd.f32 %v5329_v59, %v13476_v26  ;;  %5281 = vmatmul.bf16.gmra.mxu3 %v4773_v27  ;;  %v12300_v26 = vld [vmem:[#allocation3 + $0x40] sm:$0xf0]   ;;  %v4816_v18 = vor.u32 %v13864_v51, %v13862_v14  ;;  %v4832_v27 = vrot.slane %v4830_v36, 4  ;;  %402 = vst [vmem:[#allocation2 + $0x11c] sm:$0x1] %v401_v22 }
 0x283   : > { %v13879_v34 = vld [vmem:[#allocation3 + $0x44] sm:$0xff]   ;;  %v12164_v52 = vor.u32 %v12300_v26, %v13777_v55  ;;  %v13903_v21 = vrot.slane %v4836_v43, 3 }
 0x284   : > { %5680 = vst [vmem:[#allocation3 + $0x54] sm:$0xf] %v5647_v54  ;;  %v5431_v33 = vmul.f32 %v13619_v35, %v5395_v49  ;;  %v7043_v53 = vunpack.c.h.b16 %v13879_v34  ;;  %v4833_v9 = vor.u32 %v4832_v27, %v4829_v25  ;;  %8375 = vmatpush.bf16.msrb.mxu2 %v11762_v0  ;;  %8697 = vmatpush.bf16.msrb.mxu0 %v11730_v5 }
 0x285   : > { %v5242_v7 = vpop.f32.mrf.mxu3  ;;  %v7482_v28 = vshrl.u32 %v12164_v52, 16  ;;  %v7485_v54 = vshll.u32 %v12164_v52, 16  ;;  %8464 = vmatpush.bf16.msrb.mxu3 %v11770_v15  ;;  %v4087_v52 = vshrl.u32 %v13859_v3, 16 }
 0x286   : > { %v5155_v45 = vpop.f32.mrf.mxu2  ;;  %v5467_v63 = vadd.f32 %v13631_v8, %v5431_v33  ;;  %v5243_v11 = vadd.f32 %v5242_v7, %v5153_v56  ;;  %v7087_v59 = vpack.c.b16 %v7043_v53, %v7043_v53  ;;  %v4834_v48 = vsel %vm933_vm3, %v4825_v13, %v4833_v9  ;;  %v11729_v33 = vld [vmem:[%s15709_s2 + $0x8] sm:$0xff] }
 0x287   : > { %v4839_v56 = vshll.u32 %v12160_v46, 16  ;;  %v7484_v13 = vrot.slane %v7482_v28, 3  ;;  %v7487_v27 = vrot.slane %v7485_v54, 4  ;;  %v4844_v7 = vshrl.u32 %v3949_v38, 16 }
 0x288   : > { %v5499_v36 = vmax.f32 %v5467_v63, 0.0  ;;  %v5332_v55 = vadd.f32 %v13842_v4, %v5243_v11  ;;  %v7490_v49 = vshrl.u32 %v7087_v59, 16  ;;  %v7493_v25 = vshll.u32 %v7087_v59, 16  ;;  %v11761_v4 = vld [vmem:[%s15709_s2 + $0x108] sm:$0xff]  ;;  %v5549_v59 = vld [vmem:[#allocation3 + $0x60] sm:$0x8]  ;;  %8698 = vmatpush.bf16.msrb.mxu0 %v11729_v33 }
 0x289   : > { %v13905_v12 = vrot.slane %v4839_v56, 4  ;;  %v13921_v9 = vpop.f32.mrf.mxu0  ;;  %v7488_v22 = vor.u32 %v7487_v27, %v7484_v13  ;;  %v11741_v63 = vld [vmem:[%s15709_s2 + $0x68] sm:$0xff]  ;;  %v4847_v11 = vshll.u32 %v3949_v38, 16  ;;  %8376 = vmatpush.bf16.msrb.mxu2 %v11761_v4  ;;  %v4846_v43 = vrot.slane %v4844_v7, 3  ;;  %8465 = vmatpush.bf16.msrb.mxu3 %v11769_v30 }
 0x28a   : > { %v5648_v17 = vpack.c.bf16 %v5499_v36, %v5499_v36  ;;  %v5396_v26 = vadd.f32 %v5332_v55, %v13480_v16  ;;  %v7492_v53 = vrot.slane %v7490_v49, 3  ;;  %v7495_v46 = vrot.slane %v7493_v25, 4  ;;  %v3821_v36 = vld [vmem:[#allocation2 + $0x11c] sm:$0x1]  ;;  %8783 = vmatpush.bf16.msrb.mxu1 %v11741_v63  ;;  %v11760_v49 = vld [vmem:[%s15709_s2 + $0x100] sm:$0xff] }
 0x28b   : > { %5197 = vmatmul.bf16.gmra.mxu2 %v13839_v58  ;;  %v4842_v16 = vor.u32 %v13905_v12, %v13903_v21  ;;  %v4090_v56 = vshll.u32 %v13859_v3, 16  ;;  %v4849_v38 = vrot.slane %v4847_v11, 4  ;;  %v4089_v54 = vrot.slane %v4087_v52, 4  ;;  %v11768_v25 = vld [vmem:[%s15709_s2 + $0x140] sm:$0xff] }
 0x28c   : > { %5681 = vst [vmem:[#allocation3 + $0x58] sm:$0xf] %v5648_v17  ;;  %v5432_v58 = vmul.f32 %v13619_v35, %v5396_v26  ;;  %v7496_v15 = vor.u32 %v7495_v46, %v7492_v53  ;;  %v4187_v35 = vrot.slane %v13859_v3, 5  ;;  %v11728_v3 = vld [vmem:[%s15709_s2] sm:$0xff]  ;;  %v5550_v53 = vsel %vm12400_vm2, 0, %v5549_v59 }
 0x28d   : > { %v5244_v0 = vpop.f32.mrf.mxu3  ;;  %5375 = vmatmul.bf16.gmra.mxu0 %v4834_v48  ;;  %v4850_v13 = vor.u32 %v4849_v38, %v4846_v43  ;;  %8377 = vmatpush.bf16.msrb.mxu2 %v11760_v49  ;;  %5551 = vst [vmem:[#allocation3 + $0x60] sm:$0x8] %v5550_v53  ;;  %v7129_v59 = vshrl.u32 %v13709_v1, 16 }
 0x28e   : > { %v5158_v5 = vpop.f32.mrf.mxu2  ;;  %v5468_v55 = vadd.f32 %v13631_v8, %v5432_v58  ;;  %v5245_v28 = vadd.f32 %v5244_v0, %v5155_v45  ;;  %v7497_v21 = vsel %vm933_vm3, %v7488_v22, %v7496_v15  ;;  %v4092_v8 = vrot.slane %v4090_v56, 5  ;;  %8466 = vmatpush.bf16.msrb.mxu3 %v11768_v25  ;;  %8699 = vmatpush.bf16.msrb.mxu0 %v11728_v3  ;;  %v12301_v22 = vld [vmem:[#allocation3 + $0x50] sm:$0xf0]  }
 0x28f   : > { %v4125_v45 = vunpack.c.l.b16 %v3821_v36  ;;  %v4862_v12 = vshrl.u32 %v4187_v35, 16  ;;  %8304 = vmatmul.bf16.gmra.mxu1 %v7497_v21  ;;  %v4865_v27 = vshll.u32 %v4187_v35, 16  ;;  %v12168_v49 = vor.u32 %v12301_v22, %v13825_v62 }
 0x290   : > { %v5500_v17 = vmax.f32 %v5468_v55, 0.0  ;;  %v5334_v26 = vadd.f32 %v13885_v31, %v5245_v28  ;;  %v4093_v4 = vor.u32 %v4092_v8, %v4089_v54  ;;  %v4851_v31 = vsel %vm933_vm3, %v4842_v16, %v4850_v13  ;;  %v13969_v28 = vld [vmem:[%s15711_s4] ss:$0 sm:$0xff] }
 0x291   : > { %v4141_v30 = vpack.c.b16 %v4125_v45, %v4125_v45  ;;  %v13941_v33 = vrot.slane %v4862_v12, 3  ;;  %v4867_v7 = vrot.slane %v4865_v27, 4  ;;  %v5338_v51 = vpop.f32.mrf.mxu0  ;;  %v7131_v55 = vrot.slane %v7129_v59, 4 }
 0x292   : > { %v5649_v48 = vpack.c.bf16 %v5500_v17, %v5500_v17  ;;  %v5397_v46 = vadd.f32 %v5334_v26, %v13484_v42  ;;  %5286 = vmatmul.bf16.gmra.mxu3 %v4816_v18  ;;  %v4853_v63 = vshrl.u32 %v4093_v4, 16  ;;  %v4856_v11 = vshll.u32 %v4093_v4, 16  ;;  %v13956_v42 = vld [vmem:[%s15710_s3] ss:$0 sm:$0xff]  ;;  %v5588_v26 = vld [vmem:[#allocation3 + $0x1c] sm:$0x1] }
 0x293   : > { %v13950_v58 = vld [vmem:[#allocation3 + $0x54] sm:$0xff]   ;;  %v4188_v52 = vrot.slane %v4141_v30, 5  ;;  %v4868_v16 = vor.u32 %v4867_v7, %v13941_v33  ;;  %v7525_v12 = vshrl.u32 %v12168_v49, 16  ;;  %v7528_v17 = vshll.u32 %v12168_v49, 16 }
 0x294   : > { %5682 = vst [vmem:[#allocation3 + $0x64] sm:$0xf] %v5649_v48  ;;  %v5433_v14 = vmul.f32 %v13956_v42, %v5397_v46  ;;  %v7046_v18 = vunpack.c.h.b16 %v13950_v58  ;;  %v13961_v43 = vrot.slane %v4853_v63, 3  ;;  %v13963_v56 = vrot.slane %v4856_v11, 4  ;;  %v13976_v33 = vld [vmem:[#allocation3 + $0x60] sm:$0x8] }
 0x295   : > { %v5247_v0 = vpop.f32.mrf.mxu3  ;;  %v4189_v36 = vsel %vm884_vm7, %v4187_v35, %v4188_v52  ;;  %v7527_v53 = vrot.slane %v7525_v12, 3  ;;  %v7530_v48 = vrot.slane %v7528_v17, 4  ;;  %v7132_v52 = vshll.u32 %v13709_v1, 16 }
 0x296   : > { %v5160_v15 = vpop.f32.mrf.mxu2  ;;  %v5469_v38 = vadd.f32 %v13969_v28, %v5433_v14  ;;  %v5248_v54 = vadd.f32 %v5247_v0, %v5158_v5  ;;  %v7089_v25 = vpack.c.b16 %v7046_v18, %v7046_v18  ;;  %v4859_v3 = vor.u32 %v13963_v56, %v13961_v43  ;;  %v5531_v14 = vld [vmem:[#allocation3] sm:$0x8] }
 0x297   : > { %v4870_v21 = vshrl.u32 %v4189_v36, 16  ;;  %v4873_v8 = vshll.u32 %v4189_v36, 16  ;;  %v7531_v11 = vor.u32 %v7530_v48, %v7527_v53  ;;  %v5589_v59 = vsel %vm12675_vm6, 0, %v5588_v26  ;;  %v13989_v36 = vld [vmem:[#allocation3 + $0x4] sm:$0xff]  }
 0x298   : > { %v5501_v45 = vmax.f32 %v5469_v38, 0.0  ;;  %v5337_v35 = vadd.f32 %v13921_v9, %v5248_v54  ;;  %v7533_v13 = vshrl.u32 %v7089_v25, 16  ;;  %v7536_v27 = vshll.u32 %v7089_v25, 16  ;;  %5590 = vst [vmem:[#allocation3 + $0x1c] sm:$0x1] %v5589_v59 }
 0x299   : > { %v4872_v4 = vrot.slane %v4870_v21, 3  ;;  %v4875_v30 = vrot.slane %v4873_v8, 4  ;;  %v5341_v63 = vpop.f32.mrf.mxu0  ;;  %v5532_v56 = vsel %vm12400_vm2, 0, %v5531_v14  ;;  %v12169_v38 = vld [vmem:[#allocation3] sm:$0xf0]   ;;  %v7134_v25 = vrot.slane %v7132_v52, 5 }
 0x29a   : > { %v5650_v5 = vpack.c.bf16 %v5501_v45, %v5501_v45  ;;  %v5398_v62 = vadd.f32 %v5337_v35, %v13491_v2  ;;  %v7535_v46 = vrot.slane %v7533_v13, 3  ;;  %v7538_v7 = vrot.slane %v7536_v27, 4  ;;  %5533 = vst [vmem:[#allocation3] sm:$0x8] %v5532_v56 }
 0x29b   : > { %5202 = vmatmul.bf16.gmra.mxu2 %v4851_v31  ;;  %v4876_v22 = vor.u32 %v4875_v30, %v4872_v4  ;;  %v13985_v31 = vrot.slane %v13709_v1, 5  ;;  %v5818_v1 = vunpack.c.h.b16 %v13989_v36  ;;  %v7135_v12 = vor.u32 %v7134_v25, %v7131_v55  ;;  %v12302_v53 = vld [vmem:[#allocation3 + $0x60] sm:$0xf0]  }
 0x29c   : > { %5683 = vst [vmem:[#allocation3 + $0x68] sm:$0xf] %v5650_v5  ;;  %v5434_v9 = vmul.f32 %v13956_v42, %v5398_v62  ;;  %v7539_v0 = vor.u32 %v7538_v7, %v7535_v46  ;;  %v7137_v17 = vshrl.u32 %v13753_v10, 16 }
 0x29d   : > { %v5249_v18 = vpop.f32.mrf.mxu3  ;;  %v4877_v2 = vsel %vm933_vm3, %v4868_v16, %v4876_v22  ;;  %v7379_v16 = vshrl.u32 %v13985_v31, 16  ;;  %v7382_v8 = vshll.u32 %v13985_v31, 16  ;;  %v5865_v13 = vpack.c.b16 %v5818_v1, %v5818_v1 }
 0x29e   : > { %v5163_v43 = vpop.f32.mrf.mxu2  ;;  %v5470_v54 = vadd.f32 %v13969_v28, %v5434_v9  ;;  %v5250_v49 = vadd.f32 %v5249_v18, %v5160_v15  ;;  %v7540_v21 = vsel %vm933_vm3, %v7531_v11, %v7539_v0  ;;  %5380 = vmatmul.bf16.gmra.mxu0 %v4877_v2  ;;  %v7370_v30 = vshrl.u32 %v7135_v12, 16 }
 0x29f   : > { %8309 = vmatmul.bf16.gmra.mxu1 %v7540_v21  ;;  %v13997_v26 = vrot.slane %v7379_v16, 3  ;;  %v13999_v15 = vrot.slane %v7382_v8, 4  ;;  %v7373_v5 = vshll.u32 %v7135_v12, 16  ;;  %v6145_v55 = vshrl.u32 %v5865_v13, 16 }
 0x2a0   : > { %v5502_v45 = vmax.f32 %v5470_v54, 0.0  ;;  %v5339_v35 = vadd.f32 %v5338_v51, %v5250_v49  ;;  %v6148_v48 = vshll.u32 %v5865_v13, 16  ;;  %v14006_v46 = vrot.slane %v7137_v17, 4 }
 0x2a1   : > { %v7385_v51 = vor.u32 %v13999_v15, %v13997_v26  ;;  %v5343_v22 = vpop.f32.mrf.mxu0  ;;  %v7375_v59 = vrot.slane %v7373_v5, 4  ;;  %v11893_v18 = vld [vmem:[#allocation3] sm:$0x8]  ;;  %v14010_v0 = vrot.slane %v6145_v55, 3  ;;  %v12173_v49 = vor.u32 %v12302_v53, %v13976_v33 }
 0x2a2   : > { %v5651_v27 = vpack.c.bf16 %v5502_v45, %v5502_v45  ;;  %v5399_v4 = vadd.f32 %v5339_v35, %v13495_v40  ;;  %5291 = vmatmul.bf16.gmra.mxu3 %v4859_v3  ;;  %v7372_v40 = vrot.slane %v7370_v30, 3  ;;  %v6968_v3 = vld [vmem:[#allocation3 + $0x1c] sm:$0x1]  ;;  %v14012_v2 = vrot.slane %v6148_v48, 4 }
 0x2a3   : > { %v14002_v62 = vld [vmem:[#allocation3 + $0x64] sm:$0xff]   ;;  %v7272_v14 = vunpack.c.l.b16 %v6968_v3  ;;  %v7568_v45 = vshrl.u32 %v12173_v49, 16  ;;  %v7571_v35 = vshll.u32 %v12173_v49, 16  ;;  %v5552_v3 = vld [vmem:[#allocation3 + $0x70] sm:$0x8] }
 0x2a4   : > { %5684 = vst [vmem:[#allocation3 + $0x74] sm:$0xf] %v5651_v27  ;;  %v5435_v7 = vmul.f32 %v13956_v42, %v5399_v4  ;;  %v7049_v9 = vunpack.c.h.b16 %v14002_v62  ;;  %v7376_v21 = vor.u32 %v7375_v59, %v7372_v40  ;;  %v11894_v27 = vor.u32 %v12169_v38, %v11893_v18 }
 0x2a5   : > { %v5252_v11 = vpop.f32.mrf.mxu3  ;;  %v7288_v16 = vpack.c.b16 %v7272_v14, %v7272_v14  ;;  %v7570_v5 = vrot.slane %v7568_v45, 3  ;;  %v7573_v55 = vrot.slane %v7571_v35, 4  ;;  %v6151_v18 = vor.u32 %v14012_v2, %v14010_v0  ;;  %v14032_v2 = vld [vmem:[#allocation3 + $0x14] sm:$0xff]  }
 0x2a6   : > { %v5165_v52 = vpop.f32.mrf.mxu2  ;;  %v5471_v56 = vadd.f32 %v13969_v28, %v5435_v7  ;;  %v5253_v54 = vadd.f32 %v5252_v11, %v5163_v43  ;;  %v7091_v25 = vpack.c.b16 %v7049_v9, %v7049_v9  ;;  %v6137_v53 = vshrl.u32 %v11894_v27, 16 }
 0x2a7   : > { %v7305_v13 = vrot.slane %v7288_v16, 5  ;;  %v7574_v9 = vor.u32 %v7573_v55, %v7570_v5  ;;  %v6140_v14 = vshll.u32 %v11894_v27, 16  ;;  %v5553_v35 = vsel %vm12400_vm2, 0, %v5552_v3 }
 0x2a8   : > { %v5503_v8 = vmax.f32 %v5471_v56, 0.0  ;;  %v5342_v1 = vadd.f32 %v5341_v63, %v5253_v54  ;;  %v7576_v12 = vshrl.u32 %v7091_v25, 16  ;;  %v7579_v17 = vshll.u32 %v7091_v25, 16  ;;  %v5591_v54 = vld [vmem:[#allocation3 + $0x2c] sm:$0x1] }
 0x2a9   : > { %v7306_v33 = vsel %vm884_vm7, %v13985_v31, %v7305_v13  ;;  %v14020_v7 = vpop.f32.mrf.mxu0  ;;  %v6139_v59 = vrot.slane %v6137_v53, 3  ;;  %v11740_v31 = vld [vmem:[%s15709_s2 + $0x60] sm:$0xff]  ;;  %v6142_v45 = vrot.slane %v6140_v14, 4  ;;  %v7140_v0 = vshll.u32 %v13753_v10, 16  ;;  %5554 = vst [vmem:[#allocation3 + $0x70] sm:$0x8] %v5553_v35 }
 0x2aa   : > { %v5652_v4 = vpack.c.bf16 %v5503_v8, %v5503_v8  ;;  %v5400_v30 = vadd.f32 %v5342_v1, %v13499_v32  ;;  %v7578_v43 = vrot.slane %v7576_v12, 3  ;;  %v7581_v48 = vrot.slane %v7579_v17, 4  ;;  %v12177_v8 = vld [vmem:[#allocation3 + $0x10] sm:$0x8]  ;;  %8784 = vmatpush.bf16.msrb.mxu1 %v11740_v31  ;;  %v12303_v12 = vld [vmem:[#allocation3 + $0x10] sm:$0xf0]  }
 0x2ab   : > { %8378 = vmatmul.bf16.vlgmr.msrb.gmra.mxu2 %v7376_v21  ;;  %v7387_v40 = vshrl.u32 %v7306_v33, 16  ;;  %v7390_v38 = vshll.u32 %v7306_v33, 16  ;;  %v14037_v5 = vrot.slane %v13753_v10, 5  ;;  %v12174_v53 = vld [vmem:[#allocation3 + $0x70] sm:$0xf0]   ;;  %v5821_v15 = vunpack.c.h.b16 %v14032_v2 }
 0x2ac   : > { %5685 = vst [vmem:[#allocation3 + $0x78] sm:$0xf] %v5652_v4  ;;  %v5436_v63 = vmul.f32 %v13956_v42, %v5400_v30  ;;  %v7582_v32 = vor.u32 %v7581_v48, %v7578_v43  ;;  %v6143_v4 = vor.u32 %v6142_v45, %v6139_v59  ;;  %v7142_v30 = vrot.slane %v7140_v0, 5 }
 0x2ad   : > { %v5254_v11 = vpop.f32.mrf.mxu3  ;;  %v7389_v21 = vrot.slane %v7387_v40, 3  ;;  %v7392_v16 = vrot.slane %v7390_v38, 4  ;;  %v7425_v10 = vshll.u32 %v14037_v5, 16 }
 0x2ae   : > { %v5168_v56 = vpop.f32.mrf.mxu2  ;;  %v5472_v49 = vadd.f32 %v13969_v28, %v5436_v63  ;;  %v5255_v25 = vadd.f32 %v5254_v11, %v5165_v52  ;;  %v7583_v1 = vsel %vm933_vm3, %v7574_v9, %v7582_v32  ;;  %v5592_v52 = vsel %vm12675_vm6, 0, %v5591_v54 }
 0x2af   : > { %8314 = vmatmul.bf16.gmra.mxu1 %v7583_v1  ;;  %v7393_v27 = vor.u32 %v7392_v16, %v7389_v21  ;;  %5593 = vst [vmem:[#allocation3 + $0x2c] sm:$0x1] %v5592_v52  ;;  %v6152_v48 = vsel %vm933_vm3, %v6143_v4, %v6151_v18  ;;  %v7143_v63 = vor.u32 %v7142_v30, %v14006_v46  ;;  %v7422_v9 = vshrl.u32 %v14037_v5, 16 }
 0x2b0   : > { %v5504_v17 = vmax.f32 %v5472_v49, 0.0  ;;  %v5344_v13 = vadd.f32 %v5343_v22, %v5255_v25  ;;  %8700 = vmatmul.bf16.vlgmr.msrb.gmra.mxu0 %v6152_v48  ;;  %v14055_v46 = vrot.slane %v7425_v10, 4  ;;  %v11897_v31 = vld [vmem:[#allocation3 + $0x70] sm:$0x8]  ;;  %v12178_v21 = vor.u32 %v12303_v12, %v12177_v8 }
 0x2b1   : > { %v7394_v22 = vsel %vm933_vm3, %v7385_v51, %v7393_v27  ;;  %v5348_v40 = vpop.f32.mrf.mxu0  ;;  %v7413_v3 = vshrl.u32 %v7143_v63, 16  ;;  %v7416_v11 = vshll.u32 %v7143_v63, 16  ;;  %v14053_v32 = vrot.slane %v7422_v9, 3 }
 0x2b2   : > { %v5653_v55 = vpack.c.bf16 %v5504_v17, %v5504_v17  ;;  %v5401_v43 = vadd.f32 %v5344_v13, %v13510_v20  ;;  %8467 = vmatmul.bf16.vlgmr.msrb.gmra.mxu3 %v7394_v22  ;;  %v5867_v27 = vpack.c.b16 %v5821_v15, %v5821_v15  ;;  %v11898_v4 = vor.u32 %v12174_v53, %v11897_v31 }
 0x2b3   : > { %v14045_v33 = vld [vmem:[#allocation3 + $0x74] sm:$0xff]   ;;  %v7415_v54 = vrot.slane %v7413_v3, 3  ;;  %v7418_v49 = vrot.slane %v7416_v11, 4  ;;  %v7428_v25 = vor.u32 %v14055_v46, %v14053_v32  ;;  %v6180_v22 = vshrl.u32 %v12178_v21, 16 }
 0x2b4   : > { %5686 = vst [vmem:[#allocation3 + $0x84] sm:$0xf] %v5653_v55  ;;  %v5437_v20 = vmul.f32 %v13956_v42, %v5401_v43  ;;  %v7052_v26 = vunpack.c.h.b16 %v14045_v33  ;;  %v7614_v48 = vshll.u32 %v11898_v4, 16  ;;  %v6183_v63 = vshll.u32 %v12178_v21, 16 }
 0x2b5   : > { %v5257_v51 = vpop.f32.mrf.mxu3  ;;  %v7419_v17 = vor.u32 %v7418_v49, %v7415_v54  ;;  %v6188_v15 = vshrl.u32 %v5867_v27, 16  ;;  %v6191_v54 = vshll.u32 %v5867_v27, 16 }
 0x2b6   : > { %v5170_v38 = vpop.f32.mrf.mxu2  ;;  %v5473_v59 = vadd.f32 %v13969_v28, %v5437_v20  ;;  %v5258_v14 = vadd.f32 %v5257_v51, %v5168_v56  ;;  %v7093_v18 = vpack.c.b16 %v7052_v26, %v7052_v26  ;;  %v6969_v35 = vld [vmem:[#allocation3 + $0x2c] sm:$0x1]  ;;  %v6182_v26 = vrot.slane %v6180_v22, 3 }
 0x2b7   : > { %v7273_v13 = vunpack.c.l.b16 %v6969_v35  ;;  %v7616_v11 = vrot.slane %v7614_v48, 4  ;;  %v6190_v31 = vrot.slane %v6188_v15, 3  ;;  %v12182_v48 = vld [vmem:[#allocation3 + $0x20] sm:$0x8] }
 0x2b8   : > { %v5505_v16 = vmax.f32 %v5473_v59, 0.0  ;;  %v5347_v1 = vadd.f32 %v14020_v7, %v5258_v14  ;;  %v7619_v45 = vshrl.u32 %v7093_v18, 16  ;;  %v7622_v0 = vshll.u32 %v7093_v18, 16  ;;  %v5555_v59 = vld [vmem:[#allocation3 + $0x80] sm:$0x8] }
 0x2b9   : > { %v7289_v43 = vpack.c.b16 %v7273_v13, %v7273_v13  ;;  %v5351_v12 = vpop.f32.mrf.mxu0  ;;  %v7611_v7 = vshrl.u32 %v11898_v4, 16  ;;  %v6185_v18 = vrot.slane %v6183_v63, 4 }
 0x2ba   : > { %v5654_v52 = vpack.c.bf16 %v5505_v16, %v5505_v16  ;;  %v5402_v56 = vadd.f32 %v5347_v1, %v13514_v50  ;;  %v7621_v30 = vrot.slane %v7619_v45, 3  ;;  %v7624_v55 = vrot.slane %v7622_v0, 4 }
 0x2bb   : > { %8383 = vmatmul.bf16.gmra.mxu2 %v7419_v17  ;;  %v7308_v20 = vrot.slane %v7289_v43, 5  ;;  %v7613_v3 = vrot.slane %v7611_v7, 3  ;;  %v6186_v35 = vor.u32 %v6185_v18, %v6182_v26  ;;  %v6193_v0 = vrot.slane %v6191_v54, 4 }
 0x2bc   : > { %5687 = vst [vmem:[#allocation3 + $0x88] sm:$0xf] %v5654_v52  ;;  %v5438_v8 = vmul.f32 %v13956_v42, %v5402_v56  ;;  %v7625_v10 = vor.u32 %v7624_v55, %v7621_v30  ;;  %v5556_v17 = vsel %vm12400_vm2, 0, %v5555_v59  ;;  %v12179_v30 = vld [vmem:[#allocation3 + $0x80] sm:$0xf0]   ;;  %v7145_v55 = vshrl.u32 %v13811_v23, 16 }
 0x2bd   : > { %v5259_v9 = vpop.f32.mrf.mxu3  ;;  %v7309_v14 = vsel %vm884_vm7, %v14037_v5, %v7308_v20  ;;  %v7617_v16 = vor.u32 %v7616_v11, %v7613_v3  ;;  %5557 = vst [vmem:[#allocation3 + $0x80] sm:$0x8] %v5556_v17  ;;  %v6194_v4 = vor.u32 %v6193_v0, %v6190_v31  ;;  %v7148_v43 = vshll.u32 %v13811_v23, 16 }
 0x2be   : > { %v5173_v51 = vpop.f32.mrf.mxu2  ;;  %v5474_v50 = vadd.f32 %v13969_v28, %v5438_v8  ;;  %v5260_v53 = vadd.f32 %v5259_v9, %v5170_v38  ;;  %v7430_v1 = vshrl.u32 %v7309_v14, 16  ;;  %v7433_v45 = vshll.u32 %v7309_v14, 16  ;;  %v5594_v38 = vld [vmem:[#allocation3 + $0x3c] sm:$0x1] }
 0x2bf   : > { %v7626_v56 = vsel %vm933_vm3, %v7617_v16, %v7625_v10  ;;  %v5595_v7 = vsel %vm12675_vm6, 0, %v5594_v38  ;;  %v6195_v9 = vsel %vm933_vm3, %v6186_v35, %v6194_v4  ;;  %v7147_v26 = vrot.slane %v7145_v55, 4  ;;  %v12304_v16 = vld [vmem:[#allocation3 + $0x20] sm:$0xf0]   ;;  %v11739_v4 = vld [vmem:[%s15709_s2 + $0x58] sm:$0xff] }
 0x2c0   : > { %v5506_v49 = vmax.f32 %v5474_v50, 0.0  ;;  %v5349_v21 = vadd.f32 %v5348_v40, %v5260_v53  ;;  %v7432_v5 = vrot.slane %v7430_v1, 3  ;;  %8319 = vmatmul.bf16.gmra.mxu1 %v7626_v56  ;;  %v7435_v27 = vrot.slane %v7433_v45, 4  ;;  %5596 = vst [vmem:[#allocation3 + $0x3c] sm:$0x1] %v5595_v7  ;;  %8705 = vmatmul.bf16.gmra.mxu0 %v6195_v9 }
 0x2c1   : > { %v5353_v8 = vpop.f32.mrf.mxu0  ;;  %v7150_v15 = vrot.slane %v7148_v43, 5  ;;  %v7310_v14 = vrot.slane %v13811_v23, 5  ;;  %8785 = vmatpush.bf16.msrb.mxu1 %v11739_v4 }
 0x2c2   : > { %v5655_v13 = vpack.c.bf16 %v5506_v49, %v5506_v49  ;;  %v5403_v52 = vadd.f32 %v5349_v21, %v13518_v57  ;;  %v7436_v63 = vor.u32 %v7435_v27, %v7432_v5  ;;  %v14085_v21 = vld [vmem:[#allocation3 + $0x24] sm:$0xff]  }
 0x2c3   : > { %v14070_v40 = vld [vmem:[#allocation3 + $0x84] sm:$0xff]   ;;  %v7151_v59 = vor.u32 %v7150_v15, %v7147_v26  ;;  %v7465_v35 = vshrl.u32 %v7310_v14, 16  ;;  %v7468_v0 = vshll.u32 %v7310_v14, 16 }
 0x2c4   : > { %5688 = vst [vmem:[#allocation3 + $0x94] sm:$0xf] %v5655_v13  ;;  %v5439_v22 = vmul.f32 %v13956_v42, %v5403_v52  ;;  %v7055_v57 = vunpack.c.h.b16 %v14070_v40  ;;  %v7437_v11 = vsel %vm933_vm3, %v7428_v25, %v7436_v63  ;;  %v11901_v1 = vld [vmem:[#allocation3 + $0x80] sm:$0x8] }
 0x2c5   : > { %v5262_v10 = vpop.f32.mrf.mxu3  ;;  %8472 = vmatmul.bf16.gmra.mxu3 %v7437_v11  ;;  %v7456_v45 = vshrl.u32 %v7151_v59, 16  ;;  %v14088_v13 = vrot.slane %v7465_v35, 3  ;;  %v11902_v56 = vor.u32 %v12179_v30, %v11901_v1  ;;  %v14091_v27 = vrot.slane %v7468_v0, 4  ;;  %v5558_v35 = vld [vmem:[#allocation3 + $0x90] sm:$0x8] }
 0x2c6   : > { %v5175_v20 = vpop.f32.mrf.mxu2  ;;  %v5475_v50 = vadd.f32 %v13969_v28, %v5439_v22  ;;  %v5263_v53 = vadd.f32 %v5262_v10, %v5173_v51  ;;  %v7095_v3 = vpack.c.b16 %v7055_v57, %v7055_v57  ;;  %v7459_v51 = vshll.u32 %v7151_v59, 16 }
 0x2c7   : > { %v7458_v38 = vrot.slane %v7456_v45, 3  ;;  %v6970_v5 = vld [vmem:[#allocation3 + $0x3c] sm:$0x1]  ;;  %v5824_v57 = vunpack.c.h.b16 %v14085_v21  ;;  %v7654_v10 = vshrl.u32 %v11902_v56, 16  ;;  %v7657_v26 = vshll.u32 %v11902_v56, 16 }
 0x2c8   : > { %v5507_v18 = vmax.f32 %v5475_v50, 0.0  ;;  %v5352_v31 = vadd.f32 %v5351_v12, %v5263_v53  ;;  %v7662_v54 = vshrl.u32 %v7095_v3, 16  ;;  %v7665_v49 = vshll.u32 %v7095_v3, 16 }
 0x2c9   : > { %v7461_v23 = vrot.slane %v7459_v51, 4  ;;  %v5356_v52 = vpop.f32.mrf.mxu0  ;;  %v7274_v22 = vunpack.c.l.b16 %v6970_v5  ;;  %v7471_v15 = vor.u32 %v14091_v27, %v14088_v13  ;;  %v12183_v50 = vor.u32 %v12304_v16, %v12182_v48 }
 0x2ca   : > { %v5656_v17 = vpack.c.bf16 %v5507_v18, %v5507_v18  ;;  %v5404_v32 = vadd.f32 %v5352_v31, %v13533_v19  ;;  %v7664_v46 = vrot.slane %v7662_v54, 3  ;;  %v7667_v25 = vrot.slane %v7665_v49, 4 }
 0x2cb   : > { %v7462_v43 = vor.u32 %v7461_v23, %v7458_v38  ;;  %v7290_v30 = vpack.c.b16 %v7274_v22, %v7274_v22  ;;  %v5869_v53 = vpack.c.b16 %v5824_v57, %v5824_v57  ;;  %v7656_v59 = vrot.slane %v7654_v10, 3  ;;  %v12184_v13 = vld [vmem:[#allocation3 + $0x90] sm:$0xf0]  }
 0x2cc   : > { %5689 = vst [vmem:[#allocation3 + $0x98] sm:$0xf] %v5656_v17  ;;  %v5440_v12 = vmul.f32 %v13956_v42, %v5404_v32  ;;  %v7668_v19 = vor.u32 %v7667_v25, %v7664_v46  ;;  %v7659_v18 = vrot.slane %v7657_v26, 4  ;;  %v6223_v54 = vshrl.u32 %v12183_v50, 16 }
 0x2cd   : > { %v5264_v55 = vpop.f32.mrf.mxu3  ;;  %8388 = vmatmul.bf16.gmra.mxu2 %v7462_v43  ;;  %v7311_v31 = vrot.slane %v7290_v30, 5  ;;  %v6226_v49 = vshll.u32 %v12183_v50, 16  ;;  %v6231_v51 = vshrl.u32 %v5869_v53, 16  ;;  %v6234_v46 = vshll.u32 %v5869_v53, 16  ;;  %v5597_v50 = vld [vmem:[#allocation3 + $0x4c] sm:$0x1] }
 0x2ce   : > { %v5178_v7 = vpop.f32.mrf.mxu2  ;;  %v5476_v63 = vadd.f32 %v13969_v28, %v5440_v12  ;;  %v5265_v9 = vadd.f32 %v5264_v55, %v5175_v20  ;;  %v7660_v45 = vor.u32 %v7659_v18, %v7656_v59  ;;  %v6225_v17 = vrot.slane %v6223_v54, 3  ;;  %v12187_v59 = vld [vmem:[#allocation3 + $0x30] sm:$0x8]  ;;  %v14113_v18 = vld [vmem:[#allocation3 + $0x34] sm:$0xff]  }
 0x2cf   : > { %v7312_v0 = vsel %vm884_vm7, %v7310_v14, %v7311_v31  ;;  %v6228_v32 = vrot.slane %v6226_v49, 4  ;;  %v6233_v12 = vrot.slane %v6231_v51, 3  ;;  %v6236_v56 = vrot.slane %v6234_v46, 4 }
 0x2d0   : > { %v5508_v3 = vmax.f32 %v5476_v63, 0.0  ;;  %v5354_v11 = vadd.f32 %v5353_v8, %v5265_v9  ;;  %v7669_v8 = vsel %vm933_vm3, %v7660_v45, %v7668_v19  ;;  %v7473_v16 = vshrl.u32 %v7312_v0, 16 }
 0x2d1   : > { %v7476_v25 = vshll.u32 %v7312_v0, 16  ;;  %v5358_v38 = vpop.f32.mrf.mxu0  ;;  %8324 = vmatmul.bf16.gmra.mxu1 %v7669_v8  ;;  %v5559_v27 = vsel %vm12400_vm2, 0, %v5558_v35  ;;  %v6237_v22 = vor.u32 %v6236_v56, %v6233_v12  ;;  %v7153_v63 = vshrl.u32 %v13879_v34, 16 }
 0x2d2   : > { %v5657_v1 = vpack.c.bf16 %v5508_v3, %v5508_v3  ;;  %v5405_v20 = vadd.f32 %v5354_v11, %v13537_v60  ;;  %v6229_v60 = vor.u32 %v6228_v32, %v6225_v17  ;;  %v7475_v55 = vrot.slane %v7473_v16, 3  ;;  %5560 = vst [vmem:[#allocation3 + $0x90] sm:$0x8] %v5559_v27 }
 0x2d3   : > { %v14104_v23 = vld [vmem:[#allocation3 + $0x94] sm:$0xff]   ;;  %v7478_v43 = vrot.slane %v7476_v25, 4  ;;  %v7156_v30 = vshll.u32 %v13879_v34, 16  ;;  %v7155_v11 = vrot.slane %v7153_v63, 4  ;;  %v5598_v51 = vsel %vm12675_vm6, 0, %v5597_v50 }
 0x2d4   : > { %5690 = vst [vmem:[#allocation3 + $0xa4] sm:$0xf] %v5657_v1  ;;  %v5441_v48 = vmul.f32 %v13956_v42, %v5405_v20  ;;  %v7058_v57 = vunpack.c.h.b16 %v14104_v23  ;;  %v6238_v53 = vsel %vm933_vm3, %v6229_v60, %v6237_v22  ;;  %v14117_v20 = vld [vmem:[#allocation3 + $0x40] sm:$0x8]  ;;  %v14122_v35 = vrot.slane %v13879_v34, 5 }
 0x2d5   : > { %v5267_v5 = vpop.f32.mrf.mxu3  ;;  %v7479_v10 = vor.u32 %v7478_v43, %v7475_v55  ;;  %8710 = vmatmul.bf16.gmra.mxu0 %v6238_v53  ;;  %v7158_v1 = vrot.slane %v7156_v30, 5  ;;  %5599 = vst [vmem:[#allocation3 + $0x4c] sm:$0x1] %v5598_v51  ;;  %v5827_v16 = vunpack.c.h.b16 %v14113_v18 }
 0x2d6   : > { %v5180_v14 = vpop.f32.mrf.mxu2  ;;  %v5477_v4 = vadd.f32 %v13969_v28, %v5441_v48  ;;  %v5268_v19 = vadd.f32 %v5267_v5, %v5178_v7  ;;  %v7097_v3 = vpack.c.b16 %v7058_v57, %v7058_v57  ;;  %v12305_v7 = vld [vmem:[#allocation3 + $0x30] sm:$0xf0]   ;;  %v7508_v27 = vshrl.u32 %v14122_v35, 16 }
 0x2d7   : > { %v7480_v54 = vsel %vm933_vm3, %v7471_v15, %v7479_v10  ;;  %v7159_v15 = vor.u32 %v7158_v1, %v7155_v11  ;;  %v12188_v10 = vor.u32 %v12305_v7, %v12187_v59  ;;  %v5871_v11 = vpack.c.b16 %v5827_v16, %v5827_v16  ;;  %v5561_v16 = vld [vmem:[#allocation3 + $0xa0] sm:$0x8] }
 0x2d8   : > { %v5509_v9 = vmax.f32 %v5477_v4, 0.0  ;;  %v5357_v26 = vadd.f32 %v5356_v52, %v5268_v19  ;;  %8477 = vmatmul.bf16.gmra.mxu3 %v7480_v54  ;;  %v7705_v52 = vshrl.u32 %v7097_v3, 16  ;;  %v7708_v45 = vshll.u32 %v7097_v3, 16 }
 0x2d9   : > { %v5361_v17 = vpop.f32.mrf.mxu0  ;;  %v11905_v46 = vld [vmem:[#allocation3 + $0x90] sm:$0x8]  ;;  %v7499_v12 = vshrl.u32 %v7159_v15, 16  ;;  %v7502_v5 = vshll.u32 %v7159_v15, 16  ;;  %v7511_v4 = vshll.u32 %v14122_v35, 16  ;;  %v14131_v63 = vrot.slane %v7508_v27, 3 }
 0x2da   : > { %v5658_v31 = vpack.c.bf16 %v5509_v9, %v5509_v9  ;;  %v5406_v49 = vadd.f32 %v5357_v26, %v13556_v37  ;;  %v7707_v48 = vrot.slane %v7705_v52, 3  ;;  %v7710_v8 = vrot.slane %v7708_v45, 4 }
 0x2db   : > { %v11906_v19 = vor.u32 %v12184_v13, %v11905_v46  ;;  %v7501_v22 = vrot.slane %v7499_v12, 3  ;;  %v7504_v57 = vrot.slane %v7502_v5, 4  ;;  %v14133_v9 = vrot.slane %v7511_v4, 4 }
 0x2dc   : > { %5691 = vst [vmem:[#allocation3 + $0xa8] sm:$0xf] %v5658_v31  ;;  %v5442_v0 = vmul.f32 %v13956_v42, %v5406_v49  ;;  %v14125_v32 = vpop.f32.mrf.mxu1  ;;  %v7711_v56 = vor.u32 %v7710_v8, %v7707_v48  ;;  %v6971_v59 = vld [vmem:[#allocation3 + $0x4c] sm:$0x1]  ;;  %v6266_v1 = vshrl.u32 %v12188_v10, 16  ;;  %v6269_v52 = vshll.u32 %v12188_v10, 16 }
 0x2dd   : > { %v5269_v37 = vpop.f32.mrf.mxu3  ;;  %v7697_v30 = vshrl.u32 %v11906_v19, 16  ;;  %v7700_v50 = vshll.u32 %v11906_v19, 16  ;;  %v7505_v53 = vor.u32 %v7504_v57, %v7501_v22  ;;  %v7514_v3 = vor.u32 %v14133_v9, %v14131_v63 }
 0x2de   : > { %v5478_v25 = vadd.f32 %v13969_v28, %v5442_v0  ;;  %v5270_v60 = vadd.f32 %v5269_v37, %v5180_v14  ;;  %v5183_v34 = vpop.f32.mrf.mxu2  ;;  %v6274_v45 = vshrl.u32 %v5871_v11, 16  ;;  %v6277_v46 = vshll.u32 %v5871_v11, 16 }
 0x2df   : > { %v7699_v54 = vrot.slane %v7697_v30, 3  ;;  %v7702_v49 = vrot.slane %v7700_v50, 4  ;;  %8393 = vmatmul.bf16.gmra.mxu2 %v7505_v53  ;;  %v6271_v12 = vrot.slane %v6269_v52, 4  ;;  %v5562_v57 = vsel %vm12400_vm2, 0, %v5561_v16  ;;  %v14167_v16 = vld [vmem:[#allocation3 + $0x44] sm:$0xff]  }
 0x2e0   : > { %v5510_v55 = vmax.f32 %v5478_v25, 0.0  ;;  %v5359_v43 = vadd.f32 %v5358_v38, %v5270_v60  ;;  %v14140_v38 = vld [vmem:[#allocation3 + $0xa0] sm:$0xf0]   ;;  %v6268_v60 = vrot.slane %v6266_v1, 3  ;;  %v6276_v5 = vrot.slane %v6274_v45, 3 }
 0x2e1   : > { %v14143_v7 = vpop.f32.mrf.mxu0  ;;  %v7703_v37 = vor.u32 %v7702_v49, %v7699_v54  ;;  %5563 = vst [vmem:[#allocation3 + $0xa0] sm:$0x8] %v5562_v57  ;;  %v7161_v30 = vshrl.u32 %v13950_v58, 16  ;;  %v5830_v63 = vunpack.c.h.b16 %v14167_v16 }
 0x2e2   : > { %v5659_v26 = vpack.c.bf16 %v5510_v55, %v5510_v55  ;;  %v5407_v14 = vadd.f32 %v5359_v43, %v13571_v41  ;;  %v7275_v41 = vunpack.c.l.b16 %v6971_v59  ;;  %v6279_v55 = vrot.slane %v6277_v46, 4  ;;  %v5600_v59 = vld [vmem:[#allocation3 + $0x5c] sm:$0x1] }
 0x2e3   : > { %v14138_v31 = vld [vmem:[#allocation3 + $0xa4] sm:$0xff]   ;;  %v7712_v4 = vsel %vm933_vm3, %v7703_v37, %v7711_v56  ;;  %v6272_v22 = vor.u32 %v6271_v12, %v6268_v60 }
 0x2e4   : > { %5692 = vst [vmem:[#allocation3 + $0xb4] sm:$0xf] %v5659_v26  ;;  %v5443_v13 = vmul.f32 %v13956_v42, %v5407_v14  ;;  %v14145_v51 = vpop.f32.mrf.mxu1  ;;  %v7291_v25 = vpack.c.b16 %v7275_v41, %v7275_v41  ;;  %8329 = vmatmul.bf16.gmra.mxu1 %v7712_v4  ;;  %v7061_v10 = vunpack.c.h.b16 %v14138_v31  ;;  %v6280_v26 = vor.u32 %v6279_v55, %v6276_v5 }
 0x2e5   : > { %v5272_v0 = vpop.f32.mrf.mxu3  ;;  %v5601_v4 = vsel %vm12675_vm6, 0, %v5600_v59 }
 0x2e6   : > { %v5479_v15 = vadd.f32 %v13969_v28, %v5443_v13  ;;  %v5273_v48 = vadd.f32 %v5272_v0, %v5183_v34  ;;  %v5185_v8 = vpop.f32.mrf.mxu2  ;;  %v7314_v19 = vrot.slane %v7291_v25, 5  ;;  %v7099_v50 = vpack.c.b16 %v7061_v10, %v7061_v10  ;;  %v11738_v0 = vld [vmem:[%s15709_s2 + $0x50] sm:$0xff]  ;;  %v12306_v25 = vld [vmem:[#allocation3 + $0x40] sm:$0xf0]   ;;  %5602 = vst [vmem:[#allocation3 + $0x5c] sm:$0x1] %v5601_v4 }
 0x2e7   : > { %v6281_v13 = vsel %vm933_vm3, %v6272_v22, %v6280_v26  ;;  %8786 = vmatpush.bf16.msrb.mxu1 %v11738_v0  ;;  %v12193_v9 = vor.u32 %v12306_v25, %v14117_v20 }
 0x2e8   : > { %v5511_v27 = vmax.f32 %v5479_v15, 0.0  ;;  %v5362_v43 = vadd.f32 %v5361_v17, %v5273_v48  ;;  %v7315_v56 = vsel %vm884_vm7, %v14122_v35, %v7314_v19  ;;  %v7164_v17 = vshll.u32 %v13950_v58, 16  ;;  %8715 = vmatmul.bf16.gmra.mxu0 %v6281_v13  ;;  %v11909_v22 = vld [vmem:[#allocation3 + $0xa0] sm:$0x8] }
 0x2e9   : > { %v7516_v53 = vshrl.u32 %v7315_v56, 16  ;;  %v7519_v11 = vshll.u32 %v7315_v56, 16  ;;  %v7748_v1 = vshrl.u32 %v7099_v50, 16  ;;  %v7751_v52 = vshll.u32 %v7099_v50, 16  ;;  %v5564_v56 = vld [vmem:[#allocation3 + $0xb0] sm:$0x8] }
 0x2ea   : > { %v5660_v34 = vpack.c.bf16 %v5511_v27, %v5511_v27  ;;  %v5408_v14 = vadd.f32 %v5362_v43, %v13579_v44  ;;  %v14159_v49 = vpop.f32.mrf.mxu0  ;;  %v7163_v35 = vrot.slane %v7161_v30, 4  ;;  %v7166_v45 = vrot.slane %v7164_v17, 5 }
 0x2eb   : > { %v7518_v15 = vrot.slane %v7516_v53, 3  ;;  %v7521_v37 = vrot.slane %v7519_v11, 4  ;;  %v14169_v12 = vrot.slane %v7748_v1, 3  ;;  %v14171_v5 = vrot.slane %v7751_v52, 4 }
 0x2ec   : > { %5693 = vst [vmem:[#allocation3 + $0xb8] sm:$0xf] %v5660_v34  ;;  %v5444_v54 = vmul.f32 %v13956_v42, %v5408_v14  ;;  %v14161_v44 = vpop.f32.mrf.mxu1  ;;  %v7167_v27 = vor.u32 %v7166_v45, %v7163_v35  ;;  %v11910_v11 = vor.u32 %v14140_v38, %v11909_v22  ;;  %v5565_v1 = vsel %vm12400_vm2, 0, %v5564_v56 }
 0x2ed   : > { %v5274_v41 = vpop.f32.mrf.mxu3  ;;  %v7522_v55 = vor.u32 %v7521_v37, %v7518_v15  ;;  %v7754_v57 = vor.u32 %v14171_v5, %v14169_v12  ;;  %v5873_v35 = vpack.c.b16 %v5830_v63, %v5830_v63  ;;  %5566 = vst [vmem:[#allocation3 + $0xb0] sm:$0x8] %v5565_v1  ;;  %v6972_v20 = vld [vmem:[#allocation3 + $0x5c] sm:$0x1]  ;;  %v6309_v15 = vshrl.u32 %v12193_v9, 16 }
 0x2ee   : > { %v5480_v46 = vadd.f32 %v13969_v28, %v5444_v54  ;;  %v5275_v48 = vadd.f32 %v5274_v41, %v5185_v8  ;;  %v5188_v60 = vpop.f32.mrf.mxu2  ;;  %v14177_v8 = vrot.slane %v13950_v58, 5  ;;  %v7542_v10 = vshrl.u32 %v7167_v27, 16 }
 0x2ef   : > { %v7545_v34 = vshll.u32 %v7167_v27, 16  ;;  %v7523_v26 = vsel %vm933_vm3, %v7514_v3, %v7522_v55  ;;  %v7740_v52 = vshrl.u32 %v11910_v11, 16  ;;  %v7743_v38 = vshll.u32 %v11910_v11, 16  ;;  %v12307_v27 = vld [vmem:[#allocation3 + $0xb0] sm:$0xf0]  }
 0x2f0   : > { %v5512_v43 = vmax.f32 %v5480_v46, 0.0  ;;  %v5364_v19 = vadd.f32 %v14143_v7, %v5275_v48  ;;  %8482 = vmatmul.bf16.gmra.mxu3 %v7523_v26  ;;  %v7544_v7 = vrot.slane %v7542_v10, 3  ;;  %v7551_v58 = vshrl.u32 %v14177_v8, 16  ;;  %v5603_v26 = vld [vmem:[#allocation3 + $0x6c] sm:$0x1] }
 0x2f1   : > { %v7547_v50 = vrot.slane %v7545_v34, 4  ;;  %v7554_v17 = vshll.u32 %v14177_v8, 16  ;;  %v6312_v37 = vshll.u32 %v12193_v9, 16  ;;  %v7742_v48 = vrot.slane %v7740_v52, 3 }
 0x2f2   : > { %v5661_v14 = vpack.c.bf16 %v5512_v43, %v5512_v43  ;;  %v5409_v30 = vadd.f32 %v5364_v19, %v13595_v6  ;;  %v5368_v3 = vpop.f32.mrf.mxu0  ;;  %v14192_v6 = vrot.slane %v7551_v58, 3  ;;  %v7745_v25 = vrot.slane %v7743_v38, 4 }
 0x2f3   : > { %v7548_v13 = vor.u32 %v7547_v50, %v7544_v7  ;;  %v14194_v54 = vrot.slane %v7554_v17, 4  ;;  %v7276_v12 = vunpack.c.l.b16 %v6972_v20  ;;  %v14203_v5 = vld [vmem:[#allocation3 + $0xb4] sm:$0xff]   ;;  %v6314_v4 = vrot.slane %v6312_v37, 4  ;;  %v14223_v37 = vld [vmem:[%s15710_s3] ss:$0 sm:$0xff] }
 0x2f4   : > { %5694 = vst [vmem:[#allocation3 + $0xc4] sm:$0xf] %v5661_v14  ;;  %v5445_v53 = vmul.f32 %v13956_v42, %v5409_v30  ;;  %v14196_v59 = vpop.f32.mrf.mxu1  ;;  %v6317_v55 = vshrl.u32 %v5873_v35, 16  ;;  %v6320_v43 = vshll.u32 %v5873_v35, 16  ;;  %v7746_v22 = vor.u32 %v7745_v25, %v7742_v48 }
 0x2f5   : > { %v5277_v41 = vpop.f32.mrf.mxu3  ;;  %8398 = vmatmul.bf16.gmra.mxu2 %v7548_v13  ;;  %v7557_v0 = vor.u32 %v14194_v54, %v14192_v6  ;;  %v7292_v10 = vpack.c.b16 %v7276_v12, %v7276_v12  ;;  %v7169_v13 = vshrl.u32 %v14002_v62, 16 }
 0x2f6   : > { %v5481_v42 = vadd.f32 %v13969_v28, %v5445_v53  ;;  %v5190_v45 = vpop.f32.mrf.mxu2  ;;  %v6311_v28 = vrot.slane %v6309_v15, 3  ;;  %v5278_v34 = vadd.f32 %v5277_v41, %v5188_v60  ;;  %v6319_v30 = vrot.slane %v6317_v55, 3  ;;  %v12196_v60 = vld [vmem:[#allocation3 + $0xb0] sm:$0x8] }
 0x2f7   : > { %v6322_v56 = vrot.slane %v6320_v43, 4  ;;  %v7755_v7 = vsel %vm933_vm3, %v7746_v22, %v7754_v57  ;;  %v7317_v50 = vrot.slane %v7292_v10, 5  ;;  %v7064_v53 = vunpack.c.h.b16 %v14203_v5 }
 0x2f8   : > { %v5513_v46 = vmax.f32 %v5481_v42, 0.0  ;;  %v6315_v14 = vor.u32 %v6314_v4, %v6311_v28  ;;  %v5367_v58 = vadd.f32 %v14159_v49, %v5278_v34  ;;  %8334 = vmatmul.bf16.gmra.mxu1 %v7755_v7  ;;  %v7172_v41 = vshll.u32 %v14002_v62, 16  ;;  %v14229_v28 = vld [vmem:[%s15711_s4] ss:$0 sm:$0xff] }
 0x2f9   : > { %v6323_v11 = vor.u32 %v6322_v56, %v6319_v30  ;;  %v5604_v57 = vsel %vm12675_vm6, 0, %v5603_v26  ;;  %v7318_v49 = vsel %vm884_vm7, %v14177_v8, %v7317_v50  ;;  %v7101_v15 = vpack.c.b16 %v7064_v53, %v7064_v53  ;;  %v12200_v56 = vld [vmem:[#allocation3 + $0x50] sm:$0x8] }
 0x2fa   : > { %v5662_v19 = vpack.c.bf16 %v5513_v46, %v5513_v46  ;;  %v14207_v17 = vpop.f32.mrf.mxu0  ;;  %v5410_v1 = vadd.f32 %v5367_v58, %v13444_v24  ;;  %5605 = vst [vmem:[#allocation3 + $0x6c] sm:$0x1] %v5604_v57  ;;  %v7559_v38 = vshrl.u32 %v7318_v49, 16  ;;  %v7562_v35 = vshll.u32 %v7318_v49, 16 }
 0x2fb   : > { %v6324_v20 = vsel %vm933_vm3, %v6315_v14, %v6323_v11  ;;  %v12197_v8 = vor.u32 %v12307_v27, %v12196_v60  ;;  %v7794_v12 = vshll.u32 %v7101_v15, 16  ;;  %v7174_v58 = vrot.slane %v7172_v41, 5  ;;  %v12308_v60 = vld [vmem:[#allocation3 + $0x50] sm:$0xf0]  }
 0x2fc   : > { %5695 = vst [vmem:[#allocation3 + $0xc8] sm:$0xf] %v5662_v19  ;;  %v14210_v63 = vpop.f32.mrf.mxu1  ;;  %8720 = vmatmul.bf16.gmra.mxu0 %v6324_v20  ;;  %v5446_v46 = vmul.f32 %v14223_v37, %v5410_v1  ;;  %v7561_v25 = vrot.slane %v7559_v38, 3  ;;  %v7564_v24 = vrot.slane %v7562_v35, 4  ;;  %v7319_v11 = vrot.slane %v14002_v62, 5 }
 0x2fd   : > { %v5279_v9 = vpop.f32.mrf.mxu3  ;;  %v7783_v43 = vshrl.u32 %v12197_v8, 16  ;;  %v7786_v19 = vshll.u32 %v12197_v8, 16  ;;  %v7796_v34 = vrot.slane %v7794_v12, 4  ;;  %v12201_v12 = vor.u32 %v12308_v60, %v12200_v56  ;;  %v5567_v56 = vld [vmem:[#allocation3 + $0xc0] sm:$0x8] }
 0x2fe   : > { %v5280_v42 = vadd.f32 %v5279_v9, %v5190_v45  ;;  %v5193_v52 = vpop.f32.mrf.mxu2  ;;  %v7791_v45 = vshrl.u32 %v7101_v15, 16  ;;  %v5482_v4 = vadd.f32 %v14229_v28, %v5446_v46  ;;  %v7565_v22 = vor.u32 %v7564_v24, %v7561_v25  ;;  %v14241_v9 = vld [vmem:[#allocation3 + $0x54] sm:$0xff]  }
 0x2ff   : > { %v7785_v14 = vrot.slane %v7783_v43, 3  ;;  %v7788_v30 = vrot.slane %v7786_v19, 4  ;;  %v7597_v35 = vshll.u32 %v7319_v11, 16 }
 0x300   : > { %v5369_v48 = vadd.f32 %v5368_v3, %v5280_v42  ;;  %v7793_v10 = vrot.slane %v7791_v45, 3  ;;  %v7171_v3 = vrot.slane %v7169_v13, 4  ;;  %v5514_v27 = vmax.f32 %v5482_v4, 0.0 }
 0x301   : > { %v7566_v50 = vsel %vm933_vm3, %v7557_v0, %v7565_v22  ;;  %v6973_v53 = vld [vmem:[#allocation3 + $0x6c] sm:$0x1]  ;;  %v7789_v42 = vor.u32 %v7788_v30, %v7785_v14  ;;  %v7594_v0 = vshrl.u32 %v7319_v11, 16  ;;  %v7599_v8 = vrot.slane %v7597_v35, 4 }
 0x302   : > { %v5411_v55 = vadd.f32 %v5369_v48, %v13599_v39  ;;  %v14234_v7 = vpop.f32.mrf.mxu0  ;;  %v7797_v39 = vor.u32 %v7796_v34, %v7793_v10  ;;  %8487 = vmatmul.bf16.gmra.mxu3 %v7566_v50  ;;  %v5663_v49 = vpack.c.bf16 %v5514_v27, %v5514_v27  ;;  %v7277_v38 = vunpack.c.l.b16 %v6973_v53 }
 0x303   : > { %v7175_v54 = vor.u32 %v7174_v58, %v7171_v3  ;;  %v7596_v48 = vrot.slane %v7594_v0, 3  ;;  %v5833_v45 = vunpack.c.h.b16 %v14241_v9  ;;  %v6352_v34 = vshrl.u32 %v12201_v12, 16 }
 0x304   : > { %v5447_v26 = vmul.f32 %v14223_v37, %v5411_v55  ;;  %v14243_v13 = vpop.f32.mrf.mxu1  ;;  %5696 = vst [vmem:[#allocation3 + $0xd4] sm:$0xf] %v5663_v49  ;;  %v7798_v62 = vsel %vm933_vm3, %v7789_v42, %v7797_v39  ;;  %v7293_v20 = vpack.c.b16 %v7277_v38, %v7277_v38  ;;  %v6355_v30 = vshll.u32 %v12201_v12, 16 }
 0x305   : > { %15807 = vst [vmem:[#allocation25_spill] sm:$0xff] %v14243_v13  ;;  %v5282_v57 = vpop.f32.mrf.mxu3  ;;  %v7585_v15 = vshrl.u32 %v7175_v54, 16  ;;  %v7588_v46 = vshll.u32 %v7175_v54, 16  ;;  %v7600_v43 = vor.u32 %v7599_v8, %v7596_v48  ;;  %v5875_v10 = vpack.c.b16 %v5833_v45, %v5833_v45  ;;  %v15808_v45 = vld [vmem:[#allocation12_spill] sm:$0xff] }
 0x306   : > { %v5483_v1 = vadd.f32 %v14229_v28, %v5447_v26  ;;  %v5195_v6 = vpop.f32.mrf.mxu2  ;;  %v7320_v24 = vrot.slane %v7293_v20, 5  ;;  %v5283_v19 = vadd.f32 %v5282_v57, %v5193_v52  ;;  %v6354_v58 = vrot.slane %v6352_v34, 3  ;;  %v14254_v57 = vld [vmem:[#allocation3 + $0xc4] sm:$0xff]   ;;  %v5606_v20 = vld [vmem:[#allocation3 + $0x7c] sm:$0x1] }
 0x307   : > { %v7587_v4 = vrot.slane %v7585_v15, 3  ;;  %v7590_v55 = vrot.slane %v7588_v46, 4  ;;  %v6360_v53 = vshrl.u32 %v5875_v10, 16  ;;  %v6363_v60 = vshll.u32 %v5875_v10, 16 }
 0x308   : > { %v5515_v41 = vmax.f32 %v5483_v1, 0.0  ;;  %v7321_v22 = vsel %vm884_vm7, %v7319_v11, %v7320_v24  ;;  %8339 = vmatmul.bf16.gmra.mxu1 %v7798_v62  ;;  %v5372_v52 = vadd.f32 %v14207_v17, %v5283_v19  ;;  %v14256_v11 = vld [vmem:[#allocation3 + $0xc0] sm:$0xf0]   ;;  %v6357_v38 = vrot.slane %v6355_v30, 4 }
 0x309   : > { %v7591_v27 = vor.u32 %v7590_v55, %v7587_v4  ;;  %v7602_v26 = vshrl.u32 %v7321_v22, 16  ;;  %v7605_v14 = vshll.u32 %v7321_v22, 16  ;;  %v6362_v0 = vrot.slane %v6360_v53, 3  ;;  %v12205_v55 = vld [vmem:[#allocation3 + $0x60] sm:$0x8] }
 0x30a   : > { %v5664_v25 = vpack.c.bf16 %v5515_v41, %v5515_v41  ;;  %v14249_v3 = vpop.f32.mrf.mxu0  ;;  %v6365_v35 = vrot.slane %v6363_v60, 4  ;;  %v5412_v41 = vadd.f32 %v5372_v52, %v13487_v61  ;;  %v5568_v62 = vsel %vm12400_vm2, 0, %v5567_v56  ;;  %v12309_v30 = vld [vmem:[#allocation3 + $0x60] sm:$0xf0]  }
 0x30b   : > { %8403 = vmatmul.bf16.gmra.mxu2 %v7591_v27  ;;  %v7604_v1 = vrot.slane %v7602_v26, 3  ;;  %v7607_v42 = vrot.slane %v7605_v14, 4  ;;  %v6358_v15 = vor.u32 %v6357_v38, %v6354_v58  ;;  %5569 = vst [vmem:[#allocation3 + $0xc0] sm:$0x8] %v5568_v62  ;;  %v7180_v12 = vshll.u32 %v14045_v33, 16  ;;  %v14280_v14 = vld [vmem:[#allocation3 + $0x64] sm:$0xff]  }
 0x30c   : > { %5697 = vst [vmem:[#allocation3 + $0xd8] sm:$0xf] %v5664_v25  ;;  %v14251_v50 = vpop.f32.mrf.mxu1  ;;  %v6366_v48 = vor.u32 %v6365_v35, %v6362_v0  ;;  %v5448_v8 = vmul.f32 %v14223_v37, %v5412_v41  ;;  %v7067_v25 = vunpack.c.h.b16 %v14254_v57  ;;  %v5607_v4 = vsel %vm12675_vm6, 0, %v5606_v20 }
 0x30d   : > { %v5284_v39 = vpop.f32.mrf.mxu3  ;;  %v7608_v17 = vor.u32 %v7607_v42, %v7604_v1  ;;  %5608 = vst [vmem:[#allocation3 + $0x7c] sm:$0x1] %v5607_v4  ;;  %v7182_v27 = vrot.slane %v7180_v12, 5  ;;  %v14278_v26 = vrot.slane %v14045_v33, 5  ;;  %v11737_v1 = vld [vmem:[%s15709_s2 + $0x48] sm:$0xff] }
 0x30e   : > { %v14258_v49 = vpop.f32.mrf.mxu2  ;;  %v5285_v54 = vadd.f32 %v5284_v39, %v5195_v6  ;;  %v7177_v6 = vshrl.u32 %v14045_v33, 16  ;;  %v5484_v19 = vadd.f32 %v14229_v28, %v5448_v8  ;;  %v7103_v22 = vpack.c.b16 %v7067_v25, %v7067_v25  ;;  %8787 = vmatpush.bf16.msrb.mxu1 %v11737_v1 }
 0x30f   : > { %v7609_v24 = vsel %vm933_vm3, %v7600_v43, %v7608_v17  ;;  %v7637_v33 = vshrl.u32 %v14278_v26, 16  ;;  %v5836_v25 = vunpack.c.h.b16 %v14280_v14 }
 0x310   : > { %v5374_v46 = vadd.f32 %v14234_v7, %v5285_v54  ;;  %v6367_v7 = vsel %vm933_vm3, %v6358_v15, %v6366_v48  ;;  %v7179_v43 = vrot.slane %v7177_v6, 4  ;;  %v5516_v58 = vmax.f32 %v5484_v19, 0.0 }
 0x311   : > { %8725 = vmatmul.bf16.gmra.mxu0 %v6367_v7  ;;  %v7834_v53 = vshrl.u32 %v7103_v22, 16  ;;  %v7837_v60 = vshll.u32 %v7103_v22, 16  ;;  %v7640_v54 = vshll.u32 %v14278_v26, 16  ;;  %v14290_v48 = vrot.slane %v7637_v33, 3 }
 0x312   : > { %v5413_v61 = vadd.f32 %v5374_v46, %v15808_v45  ;;  %v14274_v10 = vpop.f32.mrf.mxu0  ;;  %8492 = vmatmul.bf16.gmra.mxu3 %v7609_v24  ;;  %v7183_v38 = vor.u32 %v7182_v27, %v7179_v43  ;;  %v5665_v0 = vpack.c.bf16 %v5516_v58, %v5516_v58  ;;  %v11913_v35 = vld [vmem:[#allocation3 + $0xc0] sm:$0x8]  ;;  %v12206_v19 = vor.u32 %v12309_v30, %v12205_v55 }
 0x313   : > { %v7836_v41 = vrot.slane %v7834_v53, 3  ;;  %v7839_v62 = vrot.slane %v7837_v60, 4  ;;  %v14292_v8 = vrot.slane %v7640_v54, 4  ;;  %v11914_v24 = vor.u32 %v14256_v11, %v11913_v35  ;;  %v5570_v35 = vld [vmem:[#allocation3 + $0xd0] sm:$0x8] }
 0x314   : > { %v5449_v34 = vmul.f32 %v14223_v37, %v5413_v61  ;;  %v14282_v39 = vpop.f32.mrf.mxu1  ;;  %v7628_v17 = vshrl.u32 %v7183_v38, 16  ;;  %v7631_v15 = vshll.u32 %v7183_v38, 16  ;;  %5698 = vst [vmem:[#allocation3 + $0xe4] sm:$0xf] %v5665_v0  ;;  %v6974_v12 = vld [vmem:[#allocation3 + $0x7c] sm:$0x1]  ;;  %v5877_v22 = vpack.c.b16 %v5836_v25, %v5836_v25 }
 0x315   : > { %15809 = vst [vmem:[#allocation23_spill] sm:$0xff] %v14282_v39  ;;  %v5287_v56 = vpop.f32.mrf.mxu3  ;;  %v7840_v46 = vor.u32 %v7839_v62, %v7836_v41  ;;  %v7278_v4 = vunpack.c.l.b16 %v6974_v12  ;;  %v7643_v7 = vor.u32 %v14292_v8, %v14290_v48  ;;  %v7826_v43 = vshrl.u32 %v11914_v24, 16  ;;  %v14305_v41 = vld [vmem:[#allocation3 + $0xd4] sm:$0xff]  }
 0x316   : > { %v5200_v52 = vpop.f32.mrf.mxu2  ;;  %v5485_v42 = vadd.f32 %v14229_v28, %v5449_v34  ;;  %v7630_v45 = vrot.slane %v7628_v17, 3  ;;  %v7633_v61 = vrot.slane %v7631_v15, 4  ;;  %v7829_v27 = vshll.u32 %v11914_v24, 16  ;;  %v14307_v62 = vld [vmem:[#allocation3 + $0xd0] sm:$0xf0]  }
 0x317   : > { %v7294_v1 = vpack.c.b16 %v7278_v4, %v7278_v4  ;;  %v6395_v11 = vshrl.u32 %v12206_v19, 16  ;;  %v6403_v38 = vshrl.u32 %v5877_v22, 16  ;;  %v7828_v54 = vrot.slane %v7826_v43, 3  ;;  %v12310_v48 = vld [vmem:[#allocation3 + $0x70] sm:$0xf0]  }
 0x318   : > { %v5517_v20 = vmax.f32 %v5485_v42, 0.0  ;;  %v7634_v58 = vor.u32 %v7633_v61, %v7630_v45  ;;  %v6398_v42 = vshll.u32 %v12206_v19, 16  ;;  %v7831_v0 = vrot.slane %v7829_v27, 4  ;;  %v15810_v27 = vld [vmem:[#allocation9_spill] sm:$0xff] }
 0x319   : > { %v6406_v55 = vshll.u32 %v5877_v22, 16  ;;  %v5288_v30 = vadd.f32 %v5287_v56, %v14258_v49  ;;  %v6397_v17 = vrot.slane %v6395_v11, 3  ;;  %v6405_v25 = vrot.slane %v6403_v38, 3 }
 0x31a   : > { %v5666_v6 = vpack.c.bf16 %v5517_v20, %v5517_v20  ;;  %v7323_v20 = vrot.slane %v7294_v1, 5  ;;  %v6400_v15 = vrot.slane %v6398_v42, 4  ;;  %v5571_v49 = vsel %vm12400_vm2, 0, %v5570_v35 }
 0x31b   : > { %v14298_v34 = vpop.f32.mrf.mxu0  ;;  %8408 = vmatmul.bf16.gmra.mxu2 %v7634_v58  ;;  %v6408_v24 = vrot.slane %v6406_v55, 4  ;;  %v5377_v45 = vadd.f32 %v14249_v3, %v5288_v30  ;;  %5572 = vst [vmem:[#allocation3 + $0xd0] sm:$0x8] %v5571_v49  ;;  %v7070_v3 = vunpack.c.h.b16 %v14305_v41 }
 0x31c   : > { %5699 = vst [vmem:[#allocation3 + $0xe8] sm:$0xf] %v5666_v6  ;;  %v14300_v53 = vpop.f32.mrf.mxu1  ;;  %v7832_v6 = vor.u32 %v7831_v0, %v7828_v54  ;;  %v7324_v12 = vsel %vm884_vm7, %v14278_v26, %v7323_v20  ;;  %v6401_v4 = vor.u32 %v6400_v15, %v6397_v17  ;;  %v5609_v26 = vld [vmem:[#allocation3 + $0x8c] sm:$0x1]  ;;  %v15812_v0 = vld [vmem:[#allocation10_spill] sm:$0xff] }
 0x31d   : > { %v5289_v60 = vpop.f32.mrf.mxu3  ;;  %v7645_v19 = vshrl.u32 %v7324_v12, 16  ;;  %v7648_v22 = vshll.u32 %v7324_v12, 16  ;;  %v6409_v43 = vor.u32 %v6408_v24, %v6405_v25  ;;  %v5414_v58 = vadd.f32 %v5377_v45, %v15810_v27 }
 0x31e   : > { %v14302_v33 = vpop.f32.mrf.mxu2  ;;  %v5290_v61 = vadd.f32 %v5289_v60, %v5200_v52  ;;  %v7841_v56 = vsel %vm933_vm3, %v7832_v6, %v7840_v46  ;;  %v7185_v52 = vshrl.u32 %v14070_v40, 16  ;;  %v7188_v46 = vshll.u32 %v14070_v40, 16 }
 0x31f   : > { %8344 = vmatmul.bf16.gmra.mxu1 %v7841_v56  ;;  %v7647_v60 = vrot.slane %v7645_v19, 3  ;;  %v7650_v11 = vrot.slane %v7648_v22, 4  ;;  %v6410_v42 = vsel %vm933_vm3, %v6401_v4, %v6409_v43  ;;  %v5450_v54 = vmul.f32 %v14223_v37, %v5414_v58 }
 0x320   : > { %v5379_v1 = vadd.f32 %v14274_v10, %v5290_v61  ;;  %v7105_v30 = vpack.c.b16 %v7070_v3, %v7070_v3  ;;  %v12210_v10 = vld [vmem:[#allocation3 + $0x70] sm:$0x8]  ;;  %v7187_v17 = vrot.slane %v7185_v52, 4  ;;  %v7190_v15 = vrot.slane %v7188_v46, 5 }
 0x321   : > { %8730 = vmatmul.bf16.gmra.mxu0 %v6410_v42  ;;  %v7651_v20 = vor.u32 %v7650_v11, %v7647_v60  ;;  %v5610_v25 = vsel %vm12675_vm6, 0, %v5609_v26  ;;  %v5486_v24 = vadd.f32 %v14229_v28, %v5450_v54  ;;  %v14336_v19 = vrot.slane %v14070_v40, 5  ;;  %v14340_v60 = vld [vmem:[#allocation3 + $0x74] sm:$0xff]  }
 0x322   : > { %v5415_v55 = vadd.f32 %v5379_v1, %v15812_v0  ;;  %v7877_v61 = vshrl.u32 %v7105_v30, 16  ;;  %v7880_v12 = vshll.u32 %v7105_v30, 16  ;;  %5611 = vst [vmem:[#allocation3 + $0x8c] sm:$0x1] %v5610_v25  ;;  %v7191_v56 = vor.u32 %v7190_v15, %v7187_v17  ;;  %v11917_v27 = vld [vmem:[#allocation3 + $0xd0] sm:$0x8] }
 0x323   : > { %v14327_v6 = vpop.f32.mrf.mxu0  ;;  %v7652_v49 = vsel %vm933_vm3, %v7643_v7, %v7651_v20  ;;  %v5518_v22 = vmax.f32 %v5486_v24, 0.0  ;;  %v7680_v26 = vshrl.u32 %v14336_v19, 16  ;;  %v7683_v40 = vshll.u32 %v14336_v19, 16 }
 0x324   : > { %v14321_v38 = vpop.f32.mrf.mxu1  ;;  %v5451_v45 = vmul.f32 %v14223_v37, %v5415_v55  ;;  %8497 = vmatmul.bf16.gmra.mxu3 %v7652_v49  ;;  %v7879_v58 = vrot.slane %v7877_v61, 3  ;;  %v7882_v1 = vrot.slane %v7880_v12, 4  ;;  %v7671_v3 = vshrl.u32 %v7191_v56, 16 }
 0x325   : > { %15811 = vst [vmem:[#allocation14_spill] sm:$0xff] %v14321_v38  ;;  %v5292_v35 = vpop.f32.mrf.mxu3  ;;  %v7674_v52 = vshll.u32 %v7191_v56, 16  ;;  %v5667_v8 = vpack.c.bf16 %v5518_v22, %v5518_v22  ;;  %v11918_v42 = vor.u32 %v14307_v62, %v11917_v27  ;;  %v14344_v0 = vrot.slane %v7680_v26, 3 }
 0x326   : > { %v5205_v4 = vpop.f32.mrf.mxu2  ;;  %v5487_v43 = vadd.f32 %v14229_v28, %v5451_v45  ;;  %v7883_v11 = vor.u32 %v7882_v1, %v7879_v58  ;;  %v7673_v46 = vrot.slane %v7671_v3, 3  ;;  %v14348_v20 = vrot.slane %v7683_v40, 4  ;;  %v15813_v40 = vld [vmem:[#allocation11_spill] sm:$0xff] }
 0x327   : > { %v7676_v54 = vrot.slane %v7674_v52, 4  ;;  %5700 = vst [vmem:[#allocation3 + $0xf4] sm:$0xf] %v5667_v8  ;;  %v5839_v17 = vunpack.c.h.b16 %v14340_v60  ;;  %v7869_v15 = vshrl.u32 %v11918_v42, 16  ;;  %v7872_v25 = vshll.u32 %v11918_v42, 16 }
 0x328   : > { %v5519_v7 = vmax.f32 %v5487_v43, 0.0  ;;  %v5293_v61 = vadd.f32 %v5292_v35, %v14302_v33  ;;  %v7686_v12 = vor.u32 %v14348_v20, %v14344_v0  ;;  %v12211_v49 = vor.u32 %v12310_v48, %v12210_v10  ;;  %v5573_v48 = vld [vmem:[#allocation3 + $0xe0] sm:$0x8] }
 0x329   : > { %v7677_v24 = vor.u32 %v7676_v54, %v7673_v46  ;;  %v6975_v45 = vld [vmem:[#allocation3 + $0x8c] sm:$0x1]  ;;  %v5879_v56 = vpack.c.b16 %v5839_v17, %v5839_v17  ;;  %v7871_v43 = vrot.slane %v7869_v15, 3  ;;  %v7874_v27 = vrot.slane %v7872_v25, 4  ;;  %v14360_v46 = vld [vmem:[#allocation3 + $0xe4] sm:$0xff]  }
 0x32a   : > { %v5668_v30 = vpack.c.bf16 %v5519_v7, %v5519_v7  ;;  %v7279_v62 = vunpack.c.l.b16 %v6975_v45  ;;  %v5382_v58 = vadd.f32 %v14298_v34, %v5293_v61  ;;  %v6438_v52 = vshrl.u32 %v12211_v49, 16  ;;  %v14362_v54 = vld [vmem:[#allocation3 + $0xe0] sm:$0xf0]  }
 0x32b   : > { %8413 = vmatmul.bf16.gmra.mxu2 %v7677_v24  ;;  %v6441_v26 = vshll.u32 %v12211_v49, 16  ;;  %v6446_v8 = vshrl.u32 %v5879_v56, 16  ;;  %v7875_v35 = vor.u32 %v7874_v27, %v7871_v43  ;;  %v6449_v7 = vshll.u32 %v5879_v56, 16 }
 0x32c   : > { %v14346_v55 = vpop.f32.mrf.mxu1  ;;  %5701 = vst [vmem:[#allocation3 + $0xf8] sm:$0xf] %v5668_v30  ;;  %v7295_v3 = vpack.c.b16 %v7279_v62, %v7279_v62  ;;  %v5416_v42 = vadd.f32 %v5382_v58, %v15813_v40  ;;  %v6440_v34 = vrot.slane %v6438_v52, 3  ;;  %v5574_v49 = vsel %vm12400_vm2, 0, %v5573_v48  ;;  %v15815_v58 = vld [vmem:[#allocation13_spill] sm:$0xff] }
 0x32d   : > { %v5294_v22 = vpop.f32.mrf.mxu3  ;;  %v14355_v1 = vpop.f32.mrf.mxu0  ;;  %v6443_v17 = vrot.slane %v6441_v26, 4  ;;  %v6448_v15 = vrot.slane %v6446_v8, 3  ;;  %v7884_v25 = vsel %vm933_vm3, %v7875_v35, %v7883_v11  ;;  %v6451_v24 = vrot.slane %v6449_v7, 4  ;;  %5575 = vst [vmem:[#allocation3 + $0xe0] sm:$0x8] %v5574_v49  ;;  %v11736_v49 = vld [vmem:[%s15709_s2 + $0x40] sm:$0xff] }
 0x32e   : > { %v14357_v33 = vpop.f32.mrf.mxu2  ;;  %v5295_v10 = vadd.f32 %v5294_v22, %v5205_v4  ;;  %v7326_v30 = vrot.slane %v7295_v3, 5  ;;  %v5452_v45 = vmul.f32 %v14223_v37, %v5416_v42  ;;  %v7193_v52 = vshrl.u32 %v14104_v23, 16  ;;  %v5612_v26 = vld [vmem:[#allocation3 + $0x9c] sm:$0x1]  ;;  %8788 = vmatpush.bf16.msrb.mxu1 %v11736_v49 }
 0x32f   : > { %8349 = vmatmul.bf16.gmra.mxu1 %v7884_v25  ;;  %v6444_v62 = vor.u32 %v6443_v17, %v6440_v34  ;;  %v6452_v27 = vor.u32 %v6451_v24, %v6448_v15  ;;  %v12215_v34 = vld [vmem:[#allocation3 + $0x80] sm:$0x8]  ;;  %v14382_v17 = vld [vmem:[#allocation3 + $0x84] sm:$0xff]  }
 0x330   : > { %v5384_v61 = vadd.f32 %v14327_v6, %v5295_v10  ;;  %v7327_v4 = vsel %vm884_vm7, %v14336_v19, %v7326_v30  ;;  %v5488_v11 = vadd.f32 %v14229_v28, %v5452_v45  ;;  %v7073_v6 = vunpack.c.h.b16 %v14360_v46  ;;  %v12311_v15 = vld [vmem:[#allocation3 + $0x80] sm:$0xf0]  }
 0x331   : > { %v7688_v22 = vshrl.u32 %v7327_v4, 16  ;;  %v7691_v43 = vshll.u32 %v7327_v4, 16  ;;  %v7196_v19 = vshll.u32 %v14104_v23, 16  ;;  %v6453_v7 = vsel %vm933_vm3, %v6444_v62, %v6452_v27 }
 0x332   : > { %v5417_v3 = vadd.f32 %v5384_v61, %v15815_v58  ;;  %v5520_v40 = vmax.f32 %v5488_v11, 0.0  ;;  %8735 = vmatmul.bf16.gmra.mxu0 %v6453_v7  ;;  %v7107_v48 = vpack.c.b16 %v7073_v6, %v7073_v6  ;;  %v7195_v30 = vrot.slane %v7193_v52, 4 }
 0x333   : > { %v7690_v8 = vrot.slane %v7688_v22, 3  ;;  %v7693_v35 = vrot.slane %v7691_v43, 4  ;;  %v7198_v4 = vrot.slane %v7196_v19, 5  ;;  %v5613_v62 = vsel %vm12675_vm6, 0, %v5612_v26 }
 0x334   : > { %v14371_v56 = vpop.f32.mrf.mxu1  ;;  %v5453_v10 = vmul.f32 %v14223_v37, %v5417_v3  ;;  %v5669_v61 = vpack.c.bf16 %v5520_v40, %v5520_v40  ;;  %v7920_v22 = vshrl.u32 %v7107_v48, 16  ;;  %v7923_v43 = vshll.u32 %v7107_v48, 16  ;;  %5614 = vst [vmem:[#allocation3 + $0x9c] sm:$0x1] %v5613_v62  ;;  %v11921_v6 = vld [vmem:[#allocation3 + $0xe0] sm:$0x8] }
 0x335   : > { %15814 = vst [vmem:[#allocation6_spill] sm:$0xff] %v14371_v56  ;;  %v14379_v42 = vpop.f32.mrf.mxu0  ;;  %v8468_v25 = vpop.f32.mrf.mxu3  ;;  %v7694_v45 = vor.u32 %v7693_v35, %v7690_v8  ;;  %v14393_v27 = vrot.slane %v14104_v23, 5  ;;  %v7199_v58 = vor.u32 %v7198_v4, %v7195_v30  ;;  %v5842_v0 = vunpack.c.h.b16 %v14382_v17 }
 0x336   : > { %15816 = vst [vmem:[#allocation24_spill] sm:$0xff] %v14379_v42  ;;  %v14384_v24 = vpop.f32.mrf.mxu2  ;;  %v5489_v37 = vadd.f32 %v14229_v28, %v5453_v10  ;;  %v7922_v52 = vrot.slane %v7920_v22, 3  ;;  %v7925_v19 = vrot.slane %v7923_v43, 4  ;;  %v12216_v30 = vor.u32 %v12311_v15, %v12215_v34  ;;  %v5576_v34 = vld [vmem:[#allocation3 + $0xf0] sm:$0x8] }
 0x337   : > { %v7695_v11 = vsel %vm933_vm3, %v7686_v12, %v7694_v45  ;;  %5702 = vst [vmem:[#allocation3 + $0x104] sm:$0xf] %v5669_v61  ;;  %v7723_v28 = vshrl.u32 %v14393_v27, 16  ;;  %v7714_v26 = vshrl.u32 %v7199_v58, 16  ;;  %v7717_v8 = vshll.u32 %v7199_v58, 16 }
 0x338   : > { %8502 = vmatmul.bf16.gmra.mxu3 %v7695_v11  ;;  %v5521_v3 = vmax.f32 %v5489_v37, 0.0  ;;  %v7726_v23 = vshll.u32 %v14393_v27, 16  ;;  %v7926_v7 = vor.u32 %v7925_v19, %v7922_v52  ;;  %v11922_v12 = vor.u32 %v14362_v54, %v11921_v6 }
 0x339   : > { %v7716_v40 = vrot.slane %v7714_v26, 3  ;;  %v7719_v10 = vrot.slane %v7717_v8, 4  ;;  %v14405_v48 = vrot.slane %v7723_v28, 3  ;;  %v5881_v45 = vpack.c.b16 %v5842_v0, %v5842_v0  ;;  %v14419_v28 = vld [vmem:[#allocation3 + $0xf4] sm:$0xff]  }
 0x33a   : > { %v5670_v35 = vpack.c.bf16 %v5521_v3, %v5521_v3  ;;  %v8380_v61 = vadd.f32 %v14357_v33, %v14125_v32  ;;  %v7912_v4 = vshrl.u32 %v11922_v12, 16  ;;  %v7915_v62 = vshll.u32 %v11922_v12, 16  ;;  %v12217_v26 = vld [vmem:[#allocation3 + $0xf0] sm:$0xf0]  }
 0x33b   : > { %v7720_v49 = vor.u32 %v7719_v10, %v7716_v40  ;;  %v6976_v37 = vld [vmem:[#allocation3 + $0x9c] sm:$0x1]  ;;  %v14409_v22 = vrot.slane %v7726_v23, 4  ;;  %v6481_v58 = vshrl.u32 %v12216_v30, 16  ;;  %v6484_v3 = vshll.u32 %v12216_v30, 16 }
 0x33c   : > { %5703 = vst [vmem:[#allocation3 + $0x108] sm:$0xf] %v5670_v35  ;;  %v7280_v54 = vunpack.c.l.b16 %v6976_v37  ;;  %v6489_v6 = vshrl.u32 %v5881_v45, 16  ;;  %v7914_v15 = vrot.slane %v7912_v4, 3  ;;  %v7917_v19 = vrot.slane %v7915_v62, 4 }
 0x33d   : > { %v14402_v20 = vpop.f32.mrf.mxu1  ;;  %v14411_v43 = vpop.f32.mrf.mxu0  ;;  %8418 = vmatmul.bf16.gmra.mxu2 %v7720_v49  ;;  %v6492_v32 = vshll.u32 %v5881_v45, 16  ;;  %v14417_v33 = vadd.f32 %v8468_v25, %v8380_v61  ;;  %v6483_v23 = vrot.slane %v6481_v58, 3  ;;  %v6486_v35 = vrot.slane %v6484_v3, 4 }
 0x33e   : > { %v14413_v11 = vpop.f32.mrf.mxu2  ;;  %v14415_v52 = vpop.f32.mrf.mxu3  ;;  %v7296_v8 = vpack.c.b16 %v7280_v54, %v7280_v54  ;;  %v6491_v0 = vrot.slane %v6489_v6, 3  ;;  %v7918_v12 = vor.u32 %v7917_v19, %v7914_v15  ;;  %v5577_v10 = vsel %vm12400_vm2, 0, %v5576_v34  ;;  %v5615_v54 = vld [vmem:[#allocation3 + $0xac] sm:$0x1]  ;;  %v12220_v34 = vld [vmem:[#allocation3 + $0x90] sm:$0x8] }
 0x33f   : > { %15817 = vst [vmem:[#allocation7_spill] sm:$0xff] %v14415_v52  ;;  %v6494_v40 = vrot.slane %v6492_v32, 4  ;;  %v6487_v37 = vor.u32 %v6486_v35, %v6483_v23  ;;  %v7076_v4 = vunpack.c.h.b16 %v14419_v28  ;;  %v7729_v61 = vor.u32 %v14409_v22, %v14405_v48  ;;  %v12312_v48 = vld [vmem:[#allocation3 + $0x90] sm:$0xf0]  }
 0x340   : > { %v7329_v30 = vrot.slane %v7296_v8, 5  ;;  %5578 = vst [vmem:[#allocation3 + $0xf0] sm:$0x8] %v5577_v10  ;;  %v7927_v25 = vsel %vm933_vm3, %v7918_v12, %v7926_v7  ;;  %v7201_v49 = vshrl.u32 %v14138_v31, 16  ;;  %v7204_v6 = vshll.u32 %v14138_v31, 16  ;;  %v14434_v8 = vld [vmem:[#allocation3 + $0x94] sm:$0xff]  }
 0x341   : > { %v6495_v62 = vor.u32 %v6494_v40, %v6491_v0  ;;  %8354 = vmatmul.bf16.gmra.mxu1 %v7927_v25  ;;  %v7109_v3 = vpack.c.b16 %v7076_v4, %v7076_v4  ;;  %v5616_v0 = vsel %vm12675_vm6, 0, %v5615_v54  ;;  %v14439_v40 = vrot.slane %v14138_v31, 5 }
 0x342   : > { %v7330_v58 = vsel %vm884_vm7, %v14393_v27, %v7329_v30  ;;  %v7203_v7 = vrot.slane %v7201_v49, 4  ;;  %v7206_v35 = vrot.slane %v7204_v6, 5  ;;  %5617 = vst [vmem:[#allocation3 + $0xac] sm:$0x1] %v5616_v0  ;;  %v5845_v6 = vunpack.c.h.b16 %v14434_v8 }
 0x343   : > { %v7731_v15 = vshrl.u32 %v7330_v58, 16  ;;  %v7734_v19 = vshll.u32 %v7330_v58, 16  ;;  %v6496_v32 = vsel %vm933_vm3, %v6487_v37, %v6495_v62  ;;  %v7963_v22 = vshrl.u32 %v7109_v3, 16 }
 0x344   : > { %8740 = vmatmul.bf16.gmra.mxu0 %v6496_v32  ;;  %v7966_v23 = vshll.u32 %v7109_v3, 16  ;;  %v7207_v25 = vor.u32 %v7206_v35, %v7203_v7  ;;  %v7766_v54 = vshrl.u32 %v14439_v40, 16  ;;  %v7769_v3 = vshll.u32 %v14439_v40, 16 }
 0x345   : > { %v14424_v45 = vpop.f32.mrf.mxu1  ;;  %v7733_v27 = vrot.slane %v7731_v15, 3  ;;  %v7736_v12 = vrot.slane %v7734_v19, 4  ;;  %v14441_v10 = vpop.f32.mrf.mxu0  ;;  %v14445_v37 = vrot.slane %v7963_v22, 3 }
 0x346   : > { %15818 = vst [vmem:[#allocation26_spill] sm:$0xff] %v14441_v10  ;;  %v14443_v30 = vpop.f32.mrf.mxu2  ;;  %v14447_v4 = vrot.slane %v7966_v23, 4  ;;  %v7757_v31 = vshrl.u32 %v7207_v25, 16  ;;  %v7760_v15 = vshll.u32 %v7207_v25, 16  ;;  %v14455_v22 = vrot.slane %v7766_v54, 3 }
 0x347   : > { %v7737_v49 = vor.u32 %v7736_v12, %v7733_v27  ;;  %v11925_v58 = vld [vmem:[#allocation3 + $0xf0] sm:$0x8]  ;;  %v12221_v23 = vor.u32 %v12312_v48, %v12220_v34  ;;  %v5883_v27 = vpack.c.b16 %v5845_v6, %v5845_v6  ;;  %v14459_v38 = vrot.slane %v7769_v3, 4 }
 0x348   : > { %v8473_v62 = vpop.f32.mrf.mxu3  ;;  %v7969_v32 = vor.u32 %v14447_v4, %v14445_v37  ;;  %v11926_v7 = vor.u32 %v12217_v26, %v11925_v58  ;;  %v7759_v35 = vrot.slane %v7757_v31, 3  ;;  %v7762_v0 = vrot.slane %v7760_v15, 4  ;;  %v11751_v37 = vld [vmem:[%s15709_s2 + $0xb8] sm:$0xff]  ;;  %v5579_v31 = vld [vmem:[#allocation3 + $0x100] sm:$0x8]  ;;  %v14470_v15 = vld [vmem:[#allocation3 + $0x104] sm:$0xff]  }
 0x349   : > { %v7738_v19 = vsel %vm933_vm3, %v7729_v61, %v7737_v49  ;;  %v6524_v10 = vshrl.u32 %v12221_v23, 16  ;;  %v6527_v42 = vshll.u32 %v12221_v23, 16  ;;  %v11783_v61 = vld [vmem:[%s15709_s2 + $0x1b8] sm:$0xff]  ;;  %v6977_v25 = vld [vmem:[#allocation3 + $0xac] sm:$0x1]  ;;  %v6532_v49 = vshrl.u32 %v5883_v27, 16  ;;  %8870 = vmatpush.bf16.msra.mxu2 %v11751_v37 }
 0x34a   : > { %8507 = vmatmul.bf16.gmra.mxu3 %v7738_v19  ;;  %v11791_v26 = vld [vmem:[%s15709_s2 + $0x1f8] sm:$0xff]  ;;  %v7955_v34 = vshrl.u32 %v11926_v7, 16  ;;  %v7958_v48 = vshll.u32 %v11926_v7, 16  ;;  %v7763_v4 = vor.u32 %v7762_v0, %v7759_v35  ;;  %v7281_v58 = vunpack.c.l.b16 %v6977_v25  ;;  %v14472_v19 = vld [vmem:[#allocation3 + $0x100] sm:$0xf0]  }
 0x34b   : > { %v6526_v54 = vrot.slane %v6524_v10, 3  ;;  %v6529_v3 = vrot.slane %v6527_v42, 4  ;;  %v6535_v6 = vshll.u32 %v5883_v27, 16  ;;  %10321 = vmatpush.bf16.msra.mxu3 %v11783_v61  ;;  %v6534_v39 = vrot.slane %v6532_v49, 3  ;;  %10410 = vmatpush.bf16.msra.mxu0 %v11791_v26  ;;  %v5618_v27 = vld [vmem:[#allocation3 + $0xbc] sm:$0x1] }
 0x34c   : > { %v7957_v23 = vrot.slane %v7955_v34, 3  ;;  %v7960_v56 = vrot.slane %v7958_v48, 4  ;;  %v8385_v7 = vadd.f32 %v14413_v11, %v14161_v44  ;;  %v7297_v35 = vpack.c.b16 %v7281_v58, %v7281_v58  ;;  %v12225_v49 = vld [vmem:[#allocation3 + $0xa0] sm:$0x8] }
 0x34d   : > { %8423 = vmatmul.bf16.gmra.mxu2 %v7763_v4  ;;  %v6530_v0 = vor.u32 %v6529_v3, %v6526_v54  ;;  %v6537_v10 = vrot.slane %v6535_v6, 4  ;;  %v5580_v37 = vsel %vm12400_vm2, 0, %v5579_v31  ;;  %v7772_v44 = vor.u32 %v14459_v38, %v14455_v22  ;;  %v14497_v22 = vld [vmem:[#allocation3 + $0xa4] sm:$0xff]  }
 0x34e   : > { %v14457_v12 = vpop.f32.mrf.mxu1  ;;  %v7961_v13 = vor.u32 %v7960_v56, %v7957_v23  ;;  %v14480_v52 = vadd.f32 %v8473_v62, %v8385_v7  ;;  %v7332_v34 = vrot.slane %v7297_v35, 5  ;;  %5581 = vst [vmem:[#allocation3 + $0x100] sm:$0x8] %v5580_v37  ;;  %v7079_v26 = vunpack.c.h.b16 %v14470_v15  ;;  %v12313_v54 = vld [vmem:[#allocation3 + $0xa0] sm:$0xf0]  }
 0x34f   : > { %v6538_v11 = vor.u32 %v6537_v10, %v6534_v39  ;;  %v7209_v4 = vshrl.u32 %v14203_v5, 16  ;;  %v7212_v56 = vshll.u32 %v14203_v5, 16  ;;  %v5619_v62 = vsel %vm12675_vm6, 0, %v5618_v27 }
 0x350   : > { %v14478_v25 = vpop.f32.mrf.mxu2  ;;  %v14482_v61 = vpop.f32.mrf.mxu3  ;;  %v7970_v48 = vsel %vm933_vm3, %v7961_v13, %v7969_v32  ;;  %v7333_v58 = vsel %vm884_vm7, %v14439_v40, %v7332_v34  ;;  %v7111_v39 = vpack.c.b16 %v7079_v26, %v7079_v26  ;;  %5620 = vst [vmem:[#allocation3 + $0xbc] sm:$0x1] %v5619_v62  ;;  %v7334_v35 = vrot.slane %v14203_v5, 5  ;;  %v11799_v40 = vld [vmem:[%s15709_s2 + $0x238] sm:$0xff] }
 0x351   : > { %15820 = vst [vmem:[#allocation27_spill] sm:$0xff] %v14482_v61  ;;  %8359 = vmatmul.bf16.gmra.mxu1 %v7970_v48  ;;  %v6539_v38 = vsel %vm933_vm3, %v6530_v0, %v6538_v11  ;;  %v7774_v3 = vshrl.u32 %v7333_v58, 16  ;;  %v7777_v13 = vshll.u32 %v7333_v58, 16  ;;  %v7211_v32 = vrot.slane %v7209_v4, 4 }
 0x352   : > { %v14476_v42 = vpop.f32.mrf.mxu0  ;;  %v7214_v6 = vrot.slane %v7212_v56, 5  ;;  %v8006_v23 = vshrl.u32 %v7111_v39, 16  ;;  %v8009_v7 = vshll.u32 %v7111_v39, 16  ;;  %v7809_v11 = vshrl.u32 %v7334_v35, 16  ;;  %10499 = vmatpush.bf16.msra.mxu1 %v11799_v40 }
 0x353   : > { %15819 = vst [vmem:[#allocation8_spill] sm:$0xff] %v14476_v42  ;;  %v7776_v0 = vrot.slane %v7774_v3, 3  ;;  %v7779_v10 = vrot.slane %v7777_v13, 4  ;;  %v7812_v26 = vshll.u32 %v7334_v35, 16  ;;  %v5848_v58 = vunpack.c.h.b16 %v14497_v22 }
 0x354   : > { %8745 = vmatmul.bf16.gmra.mxu0 %v6539_v38  ;;  %v7215_v27 = vor.u32 %v7214_v6, %v7211_v32  ;;  %v8008_v37 = vrot.slane %v8006_v23, 3  ;;  %v8011_v34 = vrot.slane %v8009_v7, 4  ;;  %v14508_v39 = vrot.slane %v7809_v11, 3 }
 0x355   : > { %v7780_v48 = vor.u32 %v7779_v10, %v7776_v0  ;;  %v11929_v4 = vld [vmem:[#allocation3 + $0x100] sm:$0x8]  ;;  %v12226_v6 = vor.u32 %v12313_v54, %v12225_v49  ;;  %v14514_v0 = vrot.slane %v7812_v26, 4  ;;  %v5885_v10 = vpack.c.b16 %v5848_v58, %v5848_v58 }
 0x356   : > { %v14499_v31 = vpop.f32.mrf.mxu1  ;;  %v7800_v56 = vshrl.u32 %v7215_v27, 16  ;;  %v7803_v62 = vshll.u32 %v7215_v27, 16  ;;  %v8012_v5 = vor.u32 %v8011_v34, %v8008_v37  ;;  %v11930_v7 = vor.u32 %v14472_v19, %v11929_v4 }
 0x357   : > { %v7781_v3 = vsel %vm933_vm3, %v7772_v44, %v7780_v48  ;;  %v6978_v40 = vld [vmem:[#allocation3 + $0xbc] sm:$0x1]  ;;  %v6567_v37 = vshrl.u32 %v12226_v6, 16  ;;  %v6570_v34 = vshll.u32 %v12226_v6, 16  ;;  %v6578_v61 = vshll.u32 %v5885_v10, 16 }
 0x358   : > { %v14510_v47 = vpop.f32.mrf.mxu2  ;;  %v7802_v13 = vrot.slane %v7800_v56, 3  ;;  %v7805_v32 = vrot.slane %v7803_v62, 4  ;;  %v7998_v11 = vshrl.u32 %v11930_v7, 16  ;;  %v8001_v42 = vshll.u32 %v11930_v7, 16 }
 0x359   : > { %15822 = vst [vmem:[#allocation15_spill] sm:$0xff] %v14510_v47  ;;  %v6575_v47 = vshrl.u32 %v5885_v10, 16  ;;  %v6569_v48 = vrot.slane %v6567_v37, 3  ;;  %v6572_v49 = vrot.slane %v6570_v34, 4  ;;  %v8390_v54 = vadd.f32 %v14478_v25, %v14210_v63  ;;  %v12229_v34 = vld [vmem:[#allocation3 + $0xb0] sm:$0x8] }
 0x35a   : > { %v14506_v38 = vpop.f32.mrf.mxu0  ;;  %8512 = vmatmul.bf16.gmra.mxu3 %v7781_v3  ;;  %v7806_v27 = vor.u32 %v7805_v32, %v7802_v13  ;;  %v8000_v26 = vrot.slane %v7998_v11, 3  ;;  %v8003_v4 = vrot.slane %v8001_v42, 4  ;;  %v6580_v62 = vrot.slane %v6578_v61, 4  ;;  %v5621_v61 = vld [vmem:[#allocation3 + $0xcc] sm:$0x1]  ;;  %v14533_v11 = vld [vmem:[#allocation3 + $0xb4] sm:$0xff]  }
 0x35b   : > { %15821 = vst [vmem:[#allocation28_spill] sm:$0xff] %v14506_v38  ;;  %v8478_v23 = vpop.f32.mrf.mxu3  ;;  %v7282_v38 = vunpack.c.l.b16 %v6978_v40  ;;  %v6577_v56 = vrot.slane %v6575_v47, 3  ;;  %v6573_v3 = vor.u32 %v6572_v49, %v6569_v48  ;;  %v5913_v7 = vshrl.u32 %v13989_v36, 16 }
 0x35c   : > { %v14520_v13 = vadd.f32 %v8478_v23, %v8390_v54  ;;  %v8004_v32 = vor.u32 %v8003_v4, %v8000_v26  ;;  %v7815_v63 = vor.u32 %v14514_v0, %v14508_v39  ;;  %v7217_v47 = vshrl.u32 %v14254_v57, 16  ;;  %15825 = vst [vmem:[#allocation18_spill] sm:$0xff] %v14533_v11 }
 0x35d   : > { %8428 = vmatmul.bf16.gmra.mxu2 %v7806_v27  ;;  %v7298_v44 = vpack.c.b16 %v7282_v38, %v7282_v38  ;;  %v6581_v6 = vor.u32 %v6580_v62, %v6577_v56  ;;  %v5916_v38 = vshll.u32 %v13989_v36, 16  ;;  %v7220_v42 = vshll.u32 %v14254_v57, 16 }
 0x35e   : > { %15823 = vst [vmem:[#allocation16_spill] sm:$0xff] %v14520_v13  ;;  %v8013_v23 = vsel %vm933_vm3, %v8004_v32, %v8012_v5  ;;  %v5915_v0 = vrot.slane %v5913_v7, 4  ;;  %v7219_v49 = vrot.slane %v7217_v47, 4  ;;  %v5622_v5 = vsel %vm12675_vm6, 0, %v5621_v61 }
 0x35f   : > { %v7335_v58 = vrot.slane %v7298_v44, 5  ;;  %v6582_v37 = vsel %vm933_vm3, %v6573_v3, %v6581_v6  ;;  %v5918_v48 = vrot.slane %v5916_v38, 5  ;;  %v7222_v54 = vrot.slane %v7220_v42, 5  ;;  %5623 = vst [vmem:[#allocation3 + $0xcc] sm:$0x1] %v5622_v5 }
 0x360   : > { %v14540_v56 = vrot.slane %v14254_v57, 5  ;;  %v5851_v6 = vunpack.c.h.b16 %v14533_v11  ;;  %v7228_v13 = vshll.u32 %v14305_v41, 16 }
 0x361   : > { %v14518_v19 = vpop.f32.mrf.mxu1  ;;  %v7336_v40 = vsel %vm884_vm7, %v7334_v35, %v7335_v58  ;;  %v12314_v35 = vld [vmem:[#allocation3 + $0xb0] sm:$0xf0]   ;;  %8364 = vmatmul.bf16.gmra.mxu1 %v8013_v23  ;;  %v5919_v62 = vor.u32 %v5918_v48, %v5915_v0  ;;  %v7223_v58 = vor.u32 %v7222_v54, %v7219_v49 }
 0x362   : > { %v7817_v10 = vshrl.u32 %v7336_v40, 16  ;;  %v7820_v27 = vshll.u32 %v7336_v40, 16  ;;  %v8394_v44 = vpop.f32.mrf.mxu2  ;;  %v7852_v32 = vshrl.u32 %v14540_v56, 16  ;;  %v12230_v61 = vor.u32 %v12314_v35, %v12229_v34 }
 0x363   : > { %v14535_v39 = vpop.f32.mrf.mxu3  ;;  %v6154_v7 = vshrl.u32 %v5919_v62, 16  ;;  %v6157_v38 = vshll.u32 %v5919_v62, 16  ;;  %v7843_v40 = vshrl.u32 %v7223_v58, 16  ;;  %v7846_v47 = vshll.u32 %v7223_v58, 16 }
 0x364   : > { %8750 = vmatmul.bf16.gmra.mxu0 %v6582_v37  ;;  %15826 = vst [vmem:[#allocation19_spill] sm:$0xff] %v14535_v39  ;;  %v7819_v26 = vrot.slane %v7817_v10, 3  ;;  %v7822_v4 = vrot.slane %v7820_v27, 4  ;;  %v7855_v0 = vshll.u32 %v14540_v56, 16  ;;  %v5887_v48 = vpack.c.b16 %v5851_v6, %v5851_v6 }
 0x365   : > { %v14527_v25 = vpop.f32.mrf.mxu0  ;;  %v6156_v10 = vrot.slane %v6154_v7, 3  ;;  %v6159_v57 = vrot.slane %v6157_v38, 4  ;;  %v7845_v27 = vrot.slane %v7843_v40, 3  ;;  %v7848_v37 = vrot.slane %v7846_v47, 4 }
 0x366   : > { %15824 = vst [vmem:[#allocation17_spill] sm:$0xff] %v14527_v25  ;;  %v7823_v3 = vor.u32 %v7822_v4, %v7819_v26  ;;  %v6610_v49 = vshrl.u32 %v12230_v61, 16  ;;  %v14548_v26 = vrot.slane %v7852_v32, 3  ;;  %v6613_v4 = vshll.u32 %v12230_v61, 16  ;;  %v6979_v35 = vld [vmem:[#allocation3 + $0xcc] sm:$0x1] }
 0x367   : > { %v7849_v54 = vor.u32 %v7848_v37, %v7845_v27  ;;  %v8395_v5 = vadd.f32 %v8394_v44, %v14251_v50  ;;  %v6160_v34 = vor.u32 %v6159_v57, %v6156_v10  ;;  %v6621_v7 = vshll.u32 %v5887_v48, 16  ;;  %v11750_v32 = vld [vmem:[%s15709_s2 + $0xb0] sm:$0xff]  ;;  %v12315_v25 = vld [vmem:[#allocation3 + $0xc0] sm:$0xf0]  }
 0x368   : > { %v7824_v23 = vsel %vm933_vm3, %v7815_v63, %v7823_v3  ;;  %v11782_v63 = vld [vmem:[%s15709_s2 + $0x1b0] sm:$0xff]  ;;  %v6612_v58 = vrot.slane %v6610_v49, 3  ;;  %v6618_v3 = vshrl.u32 %v5887_v48, 16  ;;  %v7283_v6 = vunpack.c.l.b16 %v6979_v35  ;;  %v12233_v48 = vld [vmem:[#allocation3 + $0xc0] sm:$0x8]  ;;  %8871 = vmatpush.bf16.msra.mxu2 %v11750_v32 }
 0x369   : > { %v14544_v42 = vpop.f32.mrf.mxu1  ;;  %v6615_v50 = vrot.slane %v6613_v4, 4  ;;  %v5921_v40 = vshrl.u32 %v14032_v2, 16  ;;  %v5924_v47 = vshll.u32 %v14032_v2, 16  ;;  %10322 = vmatpush.bf16.msra.mxu3 %v11782_v63  ;;  %v11790_v61 = vld [vmem:[%s15709_s2 + $0x1f0] sm:$0xff]  ;;  %v6623_v57 = vrot.slane %v6621_v7, 4 }
 0x36a   : > { %8517 = vmatmul.bf16.gmra.mxu3 %v7824_v23  ;;  %v14556_v38 = vpop.f32.mrf.mxu2  ;;  %v5624_v23 = vld [vmem:[#allocation3 + $0xdc] sm:$0x1]  ;;  %v6620_v10 = vrot.slane %v6618_v3, 3  ;;  %v7225_v37 = vshrl.u32 %v14305_v41, 16  ;;  %v7299_v49 = vpack.c.b16 %v7283_v6, %v7283_v6  ;;  %10411 = vmatpush.bf16.msra.mxu0 %v11790_v61  ;;  %v7857_v7 = vrot.slane %v7855_v0, 4  ;;  %v11798_v0 = vld [vmem:[%s15709_s2 + $0x230] sm:$0xff] }
 0x36b   : > { %15828 = vst [vmem:[#allocation21_spill] sm:$0xff] %v14556_v38  ;;  %v5923_v4 = vrot.slane %v5921_v40, 4  ;;  %v5926_v35 = vrot.slane %v5924_v47, 5  ;;  %v7230_v6 = vrot.slane %v7228_v13, 5  ;;  %10500 = vmatpush.bf16.msra.mxu1 %v11798_v0  ;;  %v12241_v38 = vld [vmem:[#allocation3 + $0xe0] sm:$0x8] }
 0x36c   : > { %v6624_v63 = vor.u32 %v6623_v57, %v6620_v10  ;;  %v7227_v11 = vrot.slane %v7225_v37, 4  ;;  %v7338_v3 = vrot.slane %v7299_v49, 5  ;;  %v7858_v13 = vor.u32 %v7857_v7, %v14548_v26 }
 0x36d   : > { %v14551_v62 = vpop.f32.mrf.mxu0  ;;  %8433 = vmatmul.bf16.gmra.mxu2 %v7849_v54  ;;  %v6616_v54 = vor.u32 %v6615_v50, %v6612_v58  ;;  %v5927_v32 = vor.u32 %v5926_v35, %v5923_v4  ;;  %v14578_v50 = vrot.slane %v14305_v41, 5 }
 0x36e   : > { %15827 = vst [vmem:[#allocation20_spill] sm:$0xff] %v14551_v62  ;;  %v14569_v62 = vld [vmem:[#allocation3 + $0xc4] sm:$0xff]   ;;  %v7339_v40 = vsel %vm884_vm7, %v14540_v56, %v7338_v3  ;;  %v7231_v57 = vor.u32 %v7230_v6, %v7227_v11 }
 0x36f   : > { %15830 = vst [vmem:[#allocation12_spill] sm:$0xff] %v14569_v62  ;;  %v6625_v58 = vsel %vm933_vm3, %v6616_v54, %v6624_v63  ;;  %v6197_v47 = vshrl.u32 %v5927_v32, 16  ;;  %v7860_v61 = vshrl.u32 %v7339_v40, 16  ;;  %v7863_v10 = vshll.u32 %v7339_v40, 16 }
 0x370   : > { %v6200_v41 = vshll.u32 %v5927_v32, 16  ;;  %v7886_v4 = vshrl.u32 %v7231_v57, 16  ;;  %v7895_v35 = vshrl.u32 %v14578_v50, 16  ;;  %v7889_v3 = vshll.u32 %v7231_v57, 16 }
 0x371   : > { %8789 = vmatmul.bf16.vlgmr.msrb.gmra.mxu1 %v6160_v34  ;;  %v12234_v34 = vor.u32 %v12315_v25, %v12233_v48  ;;  %v7862_v49 = vrot.slane %v7860_v61, 3  ;;  %v7865_v56 = vrot.slane %v7863_v10, 4 }
 0x372   : > { %v7888_v26 = vrot.slane %v7886_v4, 3  ;;  %v6202_v32 = vrot.slane %v6200_v41, 4  ;;  %v7891_v25 = vrot.slane %v7889_v3, 4 }
 0x373   : > { %v8483_v44 = vpop.f32.mrf.mxu3  ;;  %v7866_v6 = vor.u32 %v7865_v56, %v7862_v49  ;;  %v6653_v40 = vshrl.u32 %v12234_v34, 16  ;;  %v6656_v0 = vshll.u32 %v12234_v34, 16  ;;  %v5627_v49 = vld [vmem:[#allocation3 + $0xec] sm:$0x1]  ;;  %v5929_v34 = vshrl.u32 %v14085_v21, 16 }
 0x374   : > { %v14566_v27 = vadd.f32 %v8483_v44, %v8395_v5  ;;  %v5625_v5 = vsel %vm12675_vm6, 0, %v5624_v23  ;;  %8755 = vmatmul.bf16.gmra.mxu0 %v6625_v58  ;;  %v5854_v23 = vunpack.c.h.b16 %v14569_v62  ;;  %v7898_v58 = vshll.u32 %v14578_v50, 16 }
 0x375   : > { %v14574_v44 = vpop.f32.mrf.mxu1  ;;  %5626 = vst [vmem:[#allocation3 + $0xdc] sm:$0x1] %v5625_v5  ;;  %v6199_v5 = vrot.slane %v6197_v47, 3  ;;  %v7867_v61 = vsel %vm933_vm3, %v7858_v13, %v7866_v6  ;;  %v6655_v10 = vrot.slane %v6653_v40, 3  ;;  %v7892_v47 = vor.u32 %v7891_v25, %v7888_v26 }
 0x376   : > { %15829 = vst [vmem:[#allocation22_spill] sm:$0xff] %v14566_v27  ;;  %v5889_v11 = vpack.c.b16 %v5854_v23, %v5854_v23  ;;  %v6658_v23 = vrot.slane %v6656_v0, 4  ;;  %v7233_v6 = vshrl.u32 %v14360_v46, 16  ;;  %v5931_v26 = vrot.slane %v5929_v34, 4 }
 0x377   : > { %v5628_v40 = vsel %vm12675_vm6, 0, %v5627_v49  ;;  %v7900_v0 = vrot.slane %v7898_v58, 4 }
 0x378   : > { %v8399_v63 = vpop.f32.mrf.mxu2  ;;  %v6664_v62 = vshll.u32 %v5889_v11, 16  ;;  %v6659_v3 = vor.u32 %v6658_v23, %v6655_v10  ;;  %v7235_v25 = vrot.slane %v7233_v6, 4  ;;  %5629 = vst [vmem:[#allocation3 + $0xec] sm:$0x1] %v5628_v40 }
 0x379   : > { %v14587_v37 = vpop.f32.mrf.mxu0  ;;  %v8400_v41 = vadd.f32 %v8399_v63, %v14300_v53 }
 0x37a   : > { %15831 = vst [vmem:[#allocation9_spill] sm:$0xff] %v14587_v37  ;;  %v6661_v37 = vshrl.u32 %v5889_v11, 16  ;;  %8522 = vmatmul.bf16.gmra.mxu3 %v7867_v61  ;;  %v6666_v4 = vrot.slane %v6664_v62, 4  ;;  %v5932_v11 = vshll.u32 %v14085_v21, 16 }
 0x37b   : > { %v14589_v54 = vpop.f32.mrf.mxu3 }
 0x37c   : > { %15832 = vst [vmem:[#allocation10_spill] sm:$0xff] %v14589_v54  ;;  %v6980_v7 = vld [vmem:[#allocation3 + $0xdc] sm:$0x1]  ;;  %v14596_v54 = vrot.slane %v7895_v35, 3  ;;  %v6663_v56 = vrot.slane %v6661_v37, 3  ;;  %v7236_v35 = vshll.u32 %v14360_v46, 16  ;;  %v6203_v37 = vor.u32 %v6202_v32, %v6199_v5 }
 0x37d   : > { %v7284_v48 = vunpack.c.l.b16 %v6980_v7  ;;  %v14594_v27 = vpop.f32.mrf.mxu1  ;;  %8438 = vmatmul.bf16.gmra.mxu2 %v7892_v47  ;;  %v5934_v63 = vrot.slane %v5932_v11, 5  ;;  %v14617_v32 = vld [vmem:[#allocation3 + $0xd4] sm:$0xff]  }
 0x37e   : > { %v6667_v7 = vor.u32 %v6666_v4, %v6663_v56  ;;  %v7238_v23 = vrot.slane %v7236_v35, 5  ;;  %15836 = vst [vmem:[#allocation30_spill] sm:$0xff] %v14617_v32  ;;  %v12316_v4 = vld [vmem:[#allocation3 + $0xd0] sm:$0xf0]  }
 0x37f   : > { %v7300_v57 = vpack.c.b16 %v7284_v48, %v7284_v48  ;;  %v12237_v48 = vld [vmem:[#allocation3 + $0xd0] sm:$0x8]  ;;  %v5935_v5 = vor.u32 %v5934_v63, %v5931_v26  ;;  %v5857_v26 = vunpack.c.h.b16 %v14617_v32 }
 0x380   : > { %v6668_v56 = vsel %vm933_vm3, %v6659_v3, %v6667_v7  ;;  %v7239_v58 = vor.u32 %v7238_v23, %v7235_v25 }
 0x381   : > { %v7341_v13 = vrot.slane %v7300_v57, 5  ;;  %v14607_v62 = vpop.f32.mrf.mxu0  ;;  %v14609_v57 = vpop.f32.mrf.mxu2  ;;  %8794 = vmatmul.bf16.gmra.mxu1 %v6203_v37  ;;  %v6240_v11 = vshrl.u32 %v5935_v5, 16  ;;  %v6243_v35 = vshll.u32 %v5935_v5, 16  ;;  %v12238_v37 = vor.u32 %v12316_v4, %v12237_v48 }
 0x382   : > { %15833 = vst [vmem:[#allocation11_spill] sm:$0xff] %v14607_v62  ;;  %v7929_v40 = vshrl.u32 %v7239_v58, 16  ;;  %v7932_v3 = vshll.u32 %v7239_v58, 16  ;;  %v5891_v23 = vpack.c.b16 %v5857_v26, %v5857_v26  ;;  %v5630_v26 = vld [vmem:[#allocation3 + $0xfc] sm:$0x1] }
 0x383   : > { %v7342_v53 = vsel %vm884_vm7, %v14578_v50, %v7341_v13  ;;  %15834 = vst [vmem:[#allocation13_spill] sm:$0xff] %v14609_v57  ;;  %v14615_v50 = vrot.slane %v14360_v46, 5  ;;  %v6245_v5 = vrot.slane %v6243_v35, 4  ;;  %v6696_v58 = vshrl.u32 %v12238_v37, 16 }
 0x384   : > { %v7903_v61 = vshrl.u32 %v7342_v53, 16  ;;  %v7906_v10 = vshll.u32 %v7342_v53, 16  ;;  %8760 = vmatmul.bf16.gmra.mxu0 %v6668_v56  ;;  %v7931_v53 = vrot.slane %v7929_v40, 3  ;;  %v7934_v63 = vrot.slane %v7932_v3, 4 }
 0x385   : > { %v8488_v47 = vpop.f32.mrf.mxu3  ;;  %v14619_v6 = vpop.f32.mrf.mxu1  ;;  %v7938_v46 = vshrl.u32 %v14615_v50, 16  ;;  %v7941_v25 = vshll.u32 %v14615_v50, 16  ;;  %v6699_v62 = vshll.u32 %v12238_v37, 16  ;;  %v6704_v40 = vshrl.u32 %v5891_v23, 16 }
 0x386   : > { %v14612_v49 = vadd.f32 %v8488_v47, %v8400_v41  ;;  %v7905_v34 = vrot.slane %v7903_v61, 3  ;;  %v7908_v13 = vrot.slane %v7906_v10, 4  ;;  %v7901_v41 = vor.u32 %v7900_v0, %v14596_v54  ;;  %v6981_v61 = vld [vmem:[#allocation3 + $0xec] sm:$0x1] }
 0x387   : > { %v6242_v10 = vrot.slane %v6240_v11, 3  ;;  %v7285_v47 = vunpack.c.l.b16 %v6981_v61  ;;  %v5937_v54 = vshrl.u32 %v14113_v18, 16  ;;  %v6707_v3 = vshll.u32 %v5891_v23, 16 }
 0x388   : > { %15835 = vst [vmem:[#allocation29_spill] sm:$0xff] %v14612_v49  ;;  %v7909_v7 = vor.u32 %v7908_v13, %v7905_v34  ;;  %v7935_v57 = vor.u32 %v7934_v63, %v7931_v53  ;;  %v6698_v32 = vrot.slane %v6696_v58, 3  ;;  %v6701_v48 = vrot.slane %v6699_v62, 4  ;;  %v11781_v53 = vld [vmem:[%s15709_s2 + $0x1a8] sm:$0xff] }
 0x389   : > { %v7301_v13 = vpack.c.b16 %v7285_v47, %v7285_v47  ;;  %v5940_v11 = vshll.u32 %v14113_v18, 16  ;;  %v6706_v61 = vrot.slane %v6704_v40, 3  ;;  %v6709_v37 = vrot.slane %v6707_v3, 4  ;;  %v11749_v62 = vld [vmem:[%s15709_s2 + $0xa8] sm:$0xff]  ;;  %10323 = vmatpush.bf16.msra.mxu3 %v11781_v53 }
 0x38a   : > { %v7910_v0 = vsel %vm933_vm3, %v7901_v41, %v7909_v7  ;;  %v7241_v41 = vshrl.u32 %v14419_v28, 16  ;;  %v7244_v7 = vshll.u32 %v14419_v28, 16  ;;  %v11789_v63 = vld [vmem:[%s15709_s2 + $0x1e8] sm:$0xff]  ;;  %v6702_v23 = vor.u32 %v6701_v48, %v6698_v32  ;;  %8872 = vmatpush.bf16.msra.mxu2 %v11749_v62 }
 0x38b   : > { %8527 = vmatmul.bf16.gmra.mxu3 %v7910_v0  ;;  %v7344_v35 = vrot.slane %v7301_v13, 5  ;;  %v5942_v49 = vrot.slane %v5940_v11, 5  ;;  %v6710_v40 = vor.u32 %v6709_v37, %v6706_v61  ;;  %10412 = vmatpush.bf16.msra.mxu0 %v11789_v63  ;;  %v7943_v32 = vrot.slane %v7941_v25, 4  ;;  %v14657_v53 = vld [vmem:[#allocation3 + $0xe4] sm:$0xff]  }
 0x38c   : > { %v7243_v11 = vrot.slane %v7241_v41, 4  ;;  %15841 = vst [vmem:[#allocation35_spill] sm:$0xff] %v14657_v53  ;;  %v5860_v63 = vunpack.c.h.b16 %v14657_v53 }
 0x38d   : > { %v14625_v56 = vpop.f32.mrf.mxu3  ;;  %8443 = vmatmul.bf16.gmra.mxu2 %v7935_v57  ;;  %v7345_v47 = vsel %vm884_vm7, %v14615_v50, %v7344_v35  ;;  %v14648_v3 = vpop.f32.mrf.mxu1  ;;  %v7246_v57 = vrot.slane %v7244_v7, 5  ;;  %v6246_v50 = vor.u32 %v6245_v5, %v6242_v10  ;;  %v6711_v7 = vsel %vm933_vm3, %v6702_v23, %v6710_v40  ;;  %v11780_v10 = vld [vmem:[%s15709_s2 + $0x1a0] sm:$0xff] }
 0x38e   : > { %15837 = vst [vmem:[#allocation31_spill] sm:$0xff] %v14625_v56  ;;  %v14629_v34 = vpop.f32.mrf.mxu0  ;;  %v8404_v4 = vpop.f32.mrf.mxu2  ;;  %v5939_v56 = vrot.slane %v5937_v54, 4  ;;  %v5631_v54 = vsel %vm12675_vm6, 0, %v5630_v26  ;;  %v7946_v0 = vshrl.u32 %v7345_v47, 16  ;;  %v7949_v13 = vshll.u32 %v7345_v47, 16  ;;  %v11797_v47 = vld [vmem:[%s15709_s2 + $0x228] sm:$0xff]  ;;  %10324 = vmatpush.bf16.msra.mxu3 %v11780_v10 }
 0x38f   : > { %15838 = vst [vmem:[#allocation32_spill] sm:$0xff] %v14629_v34  ;;  %v8405_v58 = vadd.f32 %v8404_v4, %v14346_v55  ;;  %v7940_v34 = vrot.slane %v7938_v46, 3  ;;  %v14651_v4 = vrot.slane %v14419_v28, 5  ;;  %v7247_v41 = vor.u32 %v7246_v57, %v7243_v11  ;;  %v12317_v46 = vld [vmem:[#allocation3 + $0xe0] sm:$0xf0]   ;;  %10501 = vmatpush.bf16.msra.mxu1 %v11797_v47 }
 0x390   : > { %5632 = vst [vmem:[#allocation3 + $0xfc] sm:$0x1] %v5631_v54  ;;  %v5943_v55 = vor.u32 %v5942_v49, %v5939_v56  ;;  %v7948_v26 = vrot.slane %v7946_v0, 3  ;;  %v7951_v35 = vrot.slane %v7949_v13, 4  ;;  %v11748_v28 = vld [vmem:[%s15709_s2 + $0xa0] sm:$0xff]  ;;  %v12242_v11 = vor.u32 %v12317_v46, %v12241_v38 }
 0x391   : > { %8799 = vmatmul.bf16.gmra.mxu1 %v6246_v50  ;;  %v7972_v49 = vshrl.u32 %v7247_v41, 16  ;;  %v7975_v25 = vshll.u32 %v7247_v41, 16  ;;  %v11788_v56 = vld [vmem:[%s15709_s2 + $0x1e0] sm:$0xff]  ;;  %v7944_v5 = vor.u32 %v7943_v32, %v7940_v34  ;;  %v7981_v13 = vshrl.u32 %v14651_v4, 16  ;;  %8873 = vmatpush.bf16.msra.mxu2 %v11748_v28 }
 0x392   : > { %v7952_v23 = vor.u32 %v7951_v35, %v7948_v26  ;;  %v6286_v54 = vshll.u32 %v5943_v55, 16  ;;  %v5893_v57 = vpack.c.b16 %v5860_v63, %v5860_v63  ;;  %10413 = vmatpush.bf16.msra.mxu0 %v11788_v56  ;;  %v7984_v32 = vshll.u32 %v14651_v4, 16  ;;  %v5633_v63 = vld [vmem:[#allocation3 + $0x10c] sm:$0x1] }
 0x393   : > { %v7974_v34 = vrot.slane %v7972_v49, 3  ;;  %v7977_v50 = vrot.slane %v7975_v25, 4  ;;  %v6742_v35 = vshll.u32 %v12242_v11, 16 }
 0x394   : > { %8765 = vmatmul.bf16.gmra.mxu0 %v6711_v7  ;;  %v6747_v7 = vshrl.u32 %v5893_v57, 16  ;;  %v7953_v28 = vsel %vm933_vm3, %v7944_v5, %v7952_v23  ;;  %v6288_v46 = vrot.slane %v6286_v54, 4  ;;  %v6750_v56 = vshll.u32 %v5893_v57, 16  ;;  %v12245_v23 = vld [vmem:[#allocation3 + $0xf0] sm:$0x8] }
 0x395   : > { %v8493_v48 = vpop.f32.mrf.mxu3  ;;  %v5948_v5 = vshll.u32 %v14167_v16, 16 }
 0x396   : > { %v14653_v61 = vadd.f32 %v8493_v48, %v8405_v58  ;;  %v14655_v37 = vpop.f32.mrf.mxu0  ;;  %v14660_v62 = vpop.f32.mrf.mxu2  ;;  %v6283_v58 = vshrl.u32 %v5943_v55, 16  ;;  %v7249_v48 = vshrl.u32 %v14470_v15, 16  ;;  %v6739_v55 = vshrl.u32 %v12242_v11, 16 }
 0x397   : > { %15840 = vst [vmem:[#allocation34_spill] sm:$0xff] %v14655_v37  ;;  %v6982_v0 = vld [vmem:[#allocation3 + $0xfc] sm:$0x1]  ;;  %v6749_v37 = vrot.slane %v6747_v7, 3  ;;  %v6752_v53 = vrot.slane %v6750_v56, 4  ;;  %v5945_v11 = vshrl.u32 %v14167_v16, 16 }
 0x398   : > { %15839 = vst [vmem:[#allocation33_spill] sm:$0xff] %v14653_v61  ;;  %v7286_v40 = vunpack.c.l.b16 %v6982_v0  ;;  %v6285_v38 = vrot.slane %v6283_v58, 3  ;;  %v6741_v47 = vrot.slane %v6739_v55, 3  ;;  %v6744_v0 = vrot.slane %v6742_v35, 4  ;;  %v12318_v58 = vld [vmem:[#allocation3 + $0xf0] sm:$0xf0]  }
 0x399   : > { %15842 = vst [vmem:[#allocation36_spill] sm:$0xff] %v14660_v62  ;;  %v7251_v57 = vrot.slane %v7249_v48, 4  ;;  %v5634_v55 = vsel %vm12675_vm6, 0, %v5633_v63  ;;  %v11787_v35 = vld [vmem:[%s15709_s2 + $0x1d8] sm:$0xff]  ;;  %v11746_v63 = vld [vmem:[%s15709_s2 + $0x90] sm:$0xff]  ;;  %v5947_v62 = vrot.slane %v5945_v11, 4 }
 0x39a   : > { %v7302_v26 = vpack.c.b16 %v7286_v40, %v7286_v40  ;;  %v7978_v40 = vor.u32 %v7977_v50, %v7974_v34  ;;  %v11747_v34 = vld [vmem:[%s15709_s2 + $0x98] sm:$0xff]  ;;  %5635 = vst [vmem:[#allocation3 + $0x10c] sm:$0x1] %v5634_v55  ;;  %v6745_v7 = vor.u32 %v6744_v0, %v6741_v47  ;;  %10414 = vmatpush.bf16.msra.mxu0 %v11787_v35  ;;  %v7986_v55 = vrot.slane %v7984_v32, 4  ;;  %v11786_v0 = vld [vmem:[%s15709_s2 + $0x1d0] sm:$0xff] }
 0x39b   : > { %8532 = vmatmul.bf16.gmra.mxu3 %v7953_v28  ;;  %v11779_v50 = vld [vmem:[%s15709_s2 + $0x198] sm:$0xff]  ;;  %v6753_v28 = vor.u32 %v6752_v53, %v6749_v37  ;;  %8874 = vmatpush.bf16.msra.mxu2 %v11747_v34 }
 0x39c   : > { %v14678_v41 = vpop.f32.mrf.mxu1  ;;  %v7347_v25 = vrot.slane %v7302_v26, 5  ;;  %v7252_v26 = vshll.u32 %v14470_v15, 16  ;;  %10325 = vmatpush.bf16.msra.mxu3 %v11779_v50 }
 0x39d   : > { %v14681_v10 = vpop.f32.mrf.mxu3  ;;  %8448 = vmatmul.bf16.gmra.mxu2 %v7978_v40  ;;  %v5950_v40 = vrot.slane %v5948_v5, 5  ;;  %v6754_v11 = vsel %vm933_vm3, %v6745_v7, %v6753_v28  ;;  %v11785_v28 = vld [vmem:[%s15709_s2 + $0x1c8] sm:$0xff] }
 0x39e   : > { %15843 = vst [vmem:[#allocation37_spill] sm:$0xff] %v14681_v10  ;;  %v14683_v49 = vpop.f32.mrf.mxu0  ;;  %v8409_v61 = vpop.f32.mrf.mxu2  ;;  %v14687_v10 = vld [vmem:[#allocation3 + $0xf4] sm:$0xff]   ;;  %v7348_v54 = vsel %vm884_vm7, %v14651_v4, %v7347_v25  ;;  %v7254_v56 = vrot.slane %v7252_v26, 5  ;;  %10415 = vmatpush.bf16.msra.mxu0 %v11786_v0  ;;  %v11776_v0 = vld [vmem:[%s15709_s2 + $0x180] sm:$0xff] }
 0x39f   : > { %15844 = vst [vmem:[#allocation38_spill] sm:$0xff] %v14683_v49  ;;  %v7989_v4 = vshrl.u32 %v7348_v54, 16  ;;  %v7992_v48 = vshll.u32 %v7348_v54, 16  ;;  %v11778_v25 = vld [vmem:[%s15709_s2 + $0x190] sm:$0xff]  ;;  %v14709_v49 = vrot.slane %v7981_v13, 3  ;;  %v6289_v54 = vor.u32 %v6288_v46, %v6285_v38  ;;  %8875 = vmatpush.bf16.msra.mxu2 %v11746_v63 }
 0x3a0   : > { %15845 = vst [vmem:[#allocation39_spill] sm:$0xff] %v14687_v10  ;;  %v8410_v37 = vadd.f32 %v8409_v61, %v14402_v20  ;;  %v7255_v53 = vor.u32 %v7254_v56, %v7251_v57  ;;  %v5863_v50 = vunpack.c.h.b16 %v14687_v10  ;;  %v12246_v13 = vor.u32 %v12318_v58, %v12245_v23  ;;  %10326 = vmatpush.bf16.msra.mxu3 %v11778_v25  ;;  %v11745_v20 = vld [vmem:[%s15709_s2 + $0x88] sm:$0xff] }
 0x3a1   : > { %v7991_v26 = vrot.slane %v7989_v4, 3  ;;  %v7994_v34 = vrot.slane %v7992_v48, 4  ;;  %v11777_v61 = vld [vmem:[%s15709_s2 + $0x188] sm:$0xff]  ;;  %8804 = vmatmul.bf16.gmra.mxu1 %v6289_v54  ;;  %v5951_v32 = vor.u32 %v5950_v40, %v5947_v62  ;;  %v14726_v46 = vrot.slane %v14470_v15, 5 }
 0x3a2   : > { %v8015_v35 = vshrl.u32 %v7255_v53, 16  ;;  %v8018_v38 = vshll.u32 %v7255_v53, 16  ;;  %v5895_v23 = vpack.c.b16 %v5863_v50, %v5863_v50  ;;  %v7987_v58 = vor.u32 %v7986_v55, %v14709_v49  ;;  %v6983_v48 = vld [vmem:[#allocation3 + $0x10c] sm:$0x1]  ;;  %v11744_v55 = vld [vmem:[%s15709_s2 + $0x80] sm:$0xff]  ;;  %10416 = vmatpush.bf16.msra.mxu0 %v11785_v28 }
 0x3a3   : > { %v6782_v7 = vshrl.u32 %v12246_v13, 16  ;;  %v5585_v56 = vld [vmem:[#allocation3 + $0xc] sm:$0x1]  ;;  %v7995_v63 = vor.u32 %v7994_v34, %v7991_v26  ;;  %v7287_v62 = vunpack.c.l.b16 %v6983_v48  ;;  %v6785_v15 = vshll.u32 %v12246_v13, 16  ;;  %8876 = vmatpush.bf16.msra.mxu2 %v11745_v20  ;;  %v14744_v13 = vld [vmem:[#allocation3 + $0x24] sm:$0xff]  }
 0x3a4   : > { %v14711_v47 = vpop.f32.mrf.mxu1  ;;  %8770 = vmatmul.bf16.gmra.mxu0 %v6754_v11  ;;  %v8017_v40 = vrot.slane %v8015_v35, 3  ;;  %v8020_v54 = vrot.slane %v8018_v38, 4  ;;  %v6790_v53 = vshrl.u32 %v5895_v23, 16  ;;  %v6793_v49 = vshll.u32 %v5895_v23, 16  ;;  %10327 = vmatpush.bf16.msra.mxu3 %v11777_v61  ;;  %15849 = vst [vmem:[#allocation43_spill] sm:$0xff] %v14744_v13  ;;  %v11784_v23 = vld [vmem:[%s15709_s2 + $0x1c0] sm:$0xff] }
 0x3a5   : > { %15846 = vst [vmem:[#allocation40_spill] sm:$0xff] %v14711_v47  ;;  %v6326_v50 = vshrl.u32 %v5951_v32, 16  ;;  %v6329_v26 = vshll.u32 %v5951_v32, 16  ;;  %v5586_v34 = vsel %vm12675_vm6, 0, %v5585_v56  ;;  %v12247_v11 = vld [vmem:[#allocation3 + $0x20] sm:$0xf0]   ;;  %v7996_v29 = vsel %vm933_vm3, %v7987_v58, %v7995_v63 }
 0x3a6   : > { %v8411_v5 = vpop.f32.mrf.mxu2  ;;  %v14729_v4 = vpop.f32.mrf.mxu0  ;;  %v6784_v38 = vrot.slane %v6782_v7, 3  ;;  %v6787_v20 = vrot.slane %v6785_v15, 4  ;;  %v5953_v61 = vshrl.u32 %v14241_v9, 16  ;;  %5587 = vst [vmem:[#allocation3 + $0xc] sm:$0x1] %v5586_v34  ;;  %v6795_v48 = vrot.slane %v6793_v49, 4  ;;  %10417 = vmatpush.bf16.msra.mxu0 %v11784_v23 }
 0x3a7   : > { %v8498_v57 = vpop.f32.mrf.mxu3  ;;  %15847 = vst [vmem:[#allocation41_spill] sm:$0xff] %v14729_v4  ;;  %v8412_v35 = vadd.f32 %v8411_v5, %v14424_v45  ;;  %v5956_v56 = vshll.u32 %v14241_v9, 16  ;;  %v8021_v45 = vor.u32 %v8020_v54, %v8017_v40  ;;  %v8024_v5 = vshrl.u32 %v14726_v46, 16  ;;  %8877 = vmatpush.bf16.msra.mxu2 %v11744_v55 }
 0x3a8   : > { %v14734_v25 = vadd.f32 %v8498_v57, %v8410_v37  ;;  %v7303_v37 = vpack.c.b16 %v7287_v62, %v7287_v62  ;;  %v6792_v57 = vrot.slane %v6790_v53, 3  ;;  %v11933_v62 = vld [vmem:[#allocation3 + $0x20] sm:$0x8]  ;;  %v8027_v7 = vshll.u32 %v14726_v46, 16  ;;  %10328 = vmatpush.bf16.msra.mxu3 %v11776_v0 }
 0x3a9   : > { %v6088_v53 = vrot.slane %v13989_v36, 5  ;;  %v9074_v49 = vunpack.c.h.b16 %v14744_v13  ;;  %v6328_v58 = vrot.slane %v6326_v50, 3  ;;  %v6331_v63 = vrot.slane %v6329_v26, 4 }
 0x3aa   : > { %15848 = vst [vmem:[#allocation42_spill] sm:$0xff] %v14734_v25  ;;  %v7350_v32 = vrot.slane %v7303_v37, 5  ;;  %v5955_v34 = vrot.slane %v5953_v61, 4  ;;  %v6788_v54 = vor.u32 %v6787_v20, %v6784_v38  ;;  %v6796_v55 = vor.u32 %v6795_v48, %v6792_v57 }
 0x3ab   : > { %8537 = vmatmul.bf16.gmra.mxu3 %v7996_v29  ;;  %v5958_v0 = vrot.slane %v5956_v56, 5  ;;  %v5753_v29 = vld [vmem:[#allocation3 + $0x1c] sm:$0x1]  ;;  %v8026_v25 = vrot.slane %v8024_v5, 3  ;;  %v8029_v36 = vrot.slane %v8027_v7, 4  ;;  %v6163_v39 = vshrl.u32 %v6088_v53, 16 }
 0x3ac   : > { %v14753_v4 = vpop.f32.mrf.mxu1  ;;  %v7351_v28 = vsel %vm884_vm7, %v14726_v46, %v7350_v32  ;;  %v6166_v50 = vshll.u32 %v6088_v53, 16  ;;  %v6057_v26 = vunpack.c.l.b16 %v5753_v29  ;;  %v6332_v61 = vor.u32 %v6331_v63, %v6328_v58 }
 0x3ad   : > { %15850 = vst [vmem:[#allocation44_spill] sm:$0xff] %v14753_v4  ;;  %8453 = vmatmul.bf16.gmra.mxu2 %v8021_v45  ;;  %v8032_v46 = vshrl.u32 %v7351_v28, 16  ;;  %v8035_v32 = vshll.u32 %v7351_v28, 16  ;;  %v5752_v4 = vld [vmem:[#allocation3 + $0xc] sm:$0x1]  ;;  %v5959_v23 = vor.u32 %v5958_v0, %v5955_v34  ;;  %v11934_v45 = vor.u32 %v12247_v11, %v11933_v62 }
 0x3ae   : > { %v8414_v15 = vpop.f32.mrf.mxu2  ;;  %v6056_v47 = vunpack.c.l.b16 %v5752_v4  ;;  %v9169_v48 = vshrl.u32 %v14744_v13, 16  ;;  %v8030_v56 = vor.u32 %v8029_v36, %v8026_v25  ;;  %v6165_v7 = vrot.slane %v6163_v39, 3  ;;  %v11796_v25 = vld [vmem:[%s15709_s2 + $0x220] sm:$0xff] }
 0x3af   : > { %v8500_v37 = vpop.f32.mrf.mxu3  ;;  %v14763_v10 = vpop.f32.mrf.mxu0  ;;  %v8034_v38 = vrot.slane %v8032_v46, 3  ;;  %v8037_v20 = vrot.slane %v8035_v32, 4  ;;  %v8415_v5 = vadd.f32 %v8414_v15, %v14457_v12  ;;  %v9172_v4 = vshll.u32 %v14744_v13, 16  ;;  %10502 = vmatpush.bf16.msra.mxu1 %v11796_v25 }
 0x3b0   : > { %v14761_v40 = vadd.f32 %v8500_v37, %v8412_v35  ;;  %15852 = vst [vmem:[#allocation46_spill] sm:$0xff] %v14763_v10  ;;  %v6797_v35 = vsel %vm933_vm3, %v6788_v54, %v6796_v55  ;;  %v6072_v57 = vpack.c.b16 %v6056_v47, %v6056_v47  ;;  %v6168_v58 = vrot.slane %v6166_v50, 4 }
 0x3b1   : > { %8809 = vmatmul.bf16.gmra.mxu1 %v6332_v61  ;;  %v9171_v63 = vrot.slane %v9169_v48, 4  ;;  %v6073_v34 = vpack.c.b16 %v6057_v26, %v6057_v26  ;;  %v6369_v62 = vshrl.u32 %v5959_v23, 16  ;;  %v6372_v54 = vshll.u32 %v5959_v23, 16 }
 0x3b2   : > { %15851 = vst [vmem:[#allocation45_spill] sm:$0xff] %v14761_v40  ;;  %v6089_v37 = vrot.slane %v6072_v57, 5  ;;  %v9121_v47 = vpack.c.b16 %v9074_v49, %v9074_v49  ;;  %v9174_v55 = vrot.slane %v9172_v4, 5  ;;  %v8038_v0 = vor.u32 %v8037_v20, %v8034_v38 }
 0x3b3   : > { %v9393_v15 = vshrl.u32 %v11934_v45, 16  ;;  %v5961_v29 = vshrl.u32 %v14280_v14, 16  ;;  %v5964_v50 = vshll.u32 %v14280_v14, 16  ;;  %v6169_v26 = vor.u32 %v6168_v58, %v6165_v7 }
 0x3b4   : > { %8775 = vmatmul.bf16.gmra.mxu0 %v6797_v35  ;;  %v14769_v28 = vpop.f32.mrf.mxu1  ;;  %v6090_v39 = vsel %vm884_vm7, %v6088_v53, %v6089_v37  ;;  %v9175_v36 = vor.u32 %v9174_v55, %v9171_v63  ;;  %v9396_v61 = vshll.u32 %v11934_v45, 16  ;;  %v6091_v35 = vrot.slane %v14032_v2, 5  ;;  %v14783_v63 = vld [vmem:[#allocation3 + $0x34] sm:$0xff]  }
 0x3b5   : > { %v6171_v46 = vshrl.u32 %v6090_v39, 16  ;;  %v6174_v32 = vshll.u32 %v6090_v39, 16  ;;  %v6092_v23 = vrot.slane %v6073_v34, 5  ;;  %v8039_v48 = vsel %vm933_vm3, %v8030_v56, %v8038_v0  ;;  %15855 = vst [vmem:[#allocation49_spill] sm:$0xff] %v14783_v63  ;;  %v12248_v55 = vld [vmem:[#allocation3 + $0x30] sm:$0xf0]  }
 0x3b6   : > { %v8416_v11 = vpop.f32.mrf.mxu2  ;;  %v9410_v53 = vshrl.u32 %v9175_v36, 16  ;;  %v9401_v4 = vshrl.u32 %v9121_v47, 16  ;;  %v9404_v37 = vshll.u32 %v9121_v47, 16  ;;  %v9413_v39 = vshll.u32 %v9175_v36, 16 }
 0x3b7   : > { %v14774_v12 = vpop.f32.mrf.mxu0  ;;  %v6173_v20 = vrot.slane %v6171_v46, 3  ;;  %v6176_v57 = vrot.slane %v6174_v32, 4  ;;  %v5963_v7 = vrot.slane %v5961_v29, 4  ;;  %v5966_v45 = vrot.slane %v5964_v50, 5  ;;  %v5754_v46 = vld [vmem:[#allocation3 + $0x2c] sm:$0x1] }
 0x3b8   : > { %15853 = vst [vmem:[#allocation47_spill] sm:$0xff] %v14774_v12  ;;  %v8417_v2 = vadd.f32 %v8416_v11, %v14499_v31  ;;  %v6371_v58 = vrot.slane %v6369_v62, 3  ;;  %v6093_v34 = vsel %vm884_vm7, %v6091_v35, %v6092_v23  ;;  %v9412_v56 = vrot.slane %v9410_v53, 3  ;;  %v11937_v31 = vld [vmem:[#allocation3 + $0x30] sm:$0x8] }
 0x3b9   : > { %v6177_v25 = vor.u32 %v6176_v57, %v6173_v20  ;;  %v9415_v0 = vrot.slane %v9413_v39, 4  ;;  %v9395_v36 = vrot.slane %v9393_v15, 3  ;;  %v9406_v20 = vrot.slane %v9404_v37, 4 }
 0x3ba   : > { %v5967_v50 = vor.u32 %v5966_v45, %v5963_v7  ;;  %v6206_v57 = vshrl.u32 %v6091_v35, 16  ;;  %v9077_v11 = vunpack.c.h.b16 %v14783_v63  ;;  %v6058_v62 = vunpack.c.l.b16 %v5754_v46 }
 0x3bb   : > { %v8503_v49 = vpop.f32.mrf.mxu3  ;;  %8542 = vmatmul.bf16.gmra.mxu3 %v8039_v48  ;;  %v6178_v32 = vsel %vm933_vm3, %v6169_v26, %v6177_v25  ;;  %v9403_v48 = vrot.slane %v9401_v4, 3  ;;  %v6209_v26 = vshll.u32 %v6091_v35, 16  ;;  %v6214_v53 = vshrl.u32 %v6093_v34, 16 }
 0x3bc   : > { %v14780_v38 = vadd.f32 %v8503_v49, %v8415_v5  ;;  %v6374_v5 = vrot.slane %v6372_v54, 4  ;;  %v9398_v49 = vrot.slane %v9396_v61, 4  ;;  %v6217_v39 = vshll.u32 %v6093_v34, 16 }
 0x3bd   : > { %8878 = vmatmul.bf16.vlgmr.msra.gmra.mxu2 %v6178_v32  ;;  %v9416_v15 = vor.u32 %v9415_v0, %v9412_v56  ;;  %v9407_v4 = vor.u32 %v9406_v20, %v9403_v48  ;;  %v6074_v37 = vpack.c.b16 %v6058_v62, %v6058_v62  ;;  %v6412_v7 = vshrl.u32 %v5967_v50, 16  ;;  %v5755_v48 = vld [vmem:[#allocation3 + $0x3c] sm:$0x1] }
 0x3be   : > { %15854 = vst [vmem:[#allocation48_spill] sm:$0xff] %v14780_v38  ;;  %v14788_v47 = vpop.f32.mrf.mxu1  ;;  %v6375_v32 = vor.u32 %v6374_v5, %v6371_v58  ;;  %v9399_v61 = vor.u32 %v9398_v49, %v9395_v36  ;;  %v6208_v45 = vrot.slane %v6206_v57, 3  ;;  %v9177_v12 = vshrl.u32 %v14783_v63, 16 }
 0x3bf   : > { %v9180_v46 = vshll.u32 %v14783_v63, 16  ;;  %v6415_v10 = vshll.u32 %v5967_v50, 16  ;;  %v6216_v35 = vrot.slane %v6214_v53, 3  ;;  %v6219_v38 = vrot.slane %v6217_v39, 4 }
 0x3c0   : > { %v8419_v29 = vpop.f32.mrf.mxu2  ;;  %v9179_v34 = vrot.slane %v9177_v12, 4  ;;  %v6094_v58 = vrot.slane %v14085_v21, 5  ;;  %v6095_v5 = vrot.slane %v6074_v37, 5  ;;  %v9408_v56 = vsel %vm933_vm3, %v9399_v61, %v9407_v4 }
 0x3c1   : > { %v14791_v23 = vpop.f32.mrf.mxu0  ;;  %8814 = vmatmul.bf16.gmra.mxu1 %v6375_v32  ;;  %v11938_v36 = vor.u32 %v12248_v55, %v11937_v31  ;;  %v9123_v49 = vpack.c.b16 %v9077_v11, %v9077_v11  ;;  %v6414_v57 = vrot.slane %v6412_v7, 3  ;;  %v5969_v50 = vshrl.u32 %v14340_v60, 16  ;;  %v14806_v32 = vld [vmem:[#allocation3 + $0x44] sm:$0xff]  }
 0x3c2   : > { %15856 = vst [vmem:[#allocation50_spill] sm:$0xff] %v14791_v23  ;;  %v6211_v23 = vrot.slane %v6209_v26, 4  ;;  %v8420_v12 = vadd.f32 %v8419_v29, %v14518_v19  ;;  %v6417_v21 = vrot.slane %v6415_v10, 4  ;;  %v6220_v39 = vor.u32 %v6219_v38, %v6216_v35 }
 0x3c3   : > { %v8505_v54 = vpop.f32.mrf.mxu3  ;;  %v6096_v11 = vsel %vm884_vm7, %v6094_v58, %v6095_v5  ;;  %v6059_v61 = vunpack.c.l.b16 %v5755_v48  ;;  %v9436_v4 = vshrl.u32 %v11938_v36, 16  ;;  %v9439_v37 = vshll.u32 %v11938_v36, 16 }
 0x3c4   : > { %v14793_v25 = vadd.f32 %v8505_v54, %v8417_v2  ;;  %10418 = vmatmul.bf16.vlgmr.msra.gmra.mxu0 %v9416_v15  ;;  %v9182_v2 = vrot.slane %v9180_v46, 5  ;;  %v5972_v54 = vshll.u32 %v14340_v60, 16  ;;  %v6212_v53 = vor.u32 %v6211_v23, %v6208_v45  ;;  %v12249_v15 = vld [vmem:[#allocation3 + $0x40] sm:$0xf0]   ;;  %v11941_v45 = vld [vmem:[#allocation3 + $0x40] sm:$0x8] }
 0x3c5   : > { %v9444_v7 = vshrl.u32 %v9123_v49, 16  ;;  %v6249_v46 = vshrl.u32 %v6094_v58, 16  ;;  %v5971_v19 = vrot.slane %v5969_v50, 4  ;;  %v6252_v10 = vshll.u32 %v6094_v58, 16 }
 0x3c6   : > { %15857 = vst [vmem:[#allocation51_spill] sm:$0xff] %v14793_v25  ;;  %v14799_v0 = vpop.f32.mrf.mxu1  ;;  %v9183_v62 = vor.u32 %v9182_v2, %v9179_v34  ;;  %v9447_v34 = vshll.u32 %v9123_v49, 16  ;;  %v5974_v29 = vrot.slane %v5972_v54, 5  ;;  %v6257_v23 = vshrl.u32 %v6096_v11, 16 }
 0x3c7   : > { %v6260_v38 = vshll.u32 %v6096_v11, 16  ;;  %v9080_v35 = vunpack.c.h.b16 %v14806_v32  ;;  %v6221_v5 = vsel %vm933_vm3, %v6212_v53, %v6220_v39  ;;  %v6418_v36 = vor.u32 %v6417_v21, %v6414_v57 }
 0x3c8   : > { %v8421_v20 = vpop.f32.mrf.mxu2  ;;  %v9453_v55 = vshrl.u32 %v9183_v62, 16  ;;  %v9456_v31 = vshll.u32 %v9183_v62, 16  ;;  %v9438_v25 = vrot.slane %v9436_v4, 3  ;;  %v6251_v49 = vrot.slane %v6249_v46, 3 }
 0x3c9   : > { %v14804_v26 = vpop.f32.mrf.mxu0  ;;  %v9446_v54 = vrot.slane %v9444_v7, 3  ;;  %v5975_v58 = vor.u32 %v5974_v29, %v5971_v19  ;;  %v9449_v11 = vrot.slane %v9447_v34, 4  ;;  %v6254_v13 = vrot.slane %v6252_v10, 4 }
 0x3ca   : > { %15858 = vst [vmem:[#allocation52_spill] sm:$0xff] %v14804_v26  ;;  %v9455_v48 = vrot.slane %v9453_v55, 3  ;;  %v9458_v62 = vrot.slane %v9456_v31, 4  ;;  %v8422_v53 = vadd.f32 %v8421_v20, %v14544_v42  ;;  %v9185_v57 = vshrl.u32 %v14806_v32, 16  ;;  %v12250_v42 = vld [vmem:[#allocation3 + $0x50] sm:$0xf0]  }
 0x3cb   : > { %10329 = vmatmul.bf16.vlgmr.msra.gmra.mxu3 %v9408_v56  ;;  %v9441_v56 = vrot.slane %v9439_v37, 4  ;;  %v6075_v21 = vpack.c.b16 %v6059_v61, %v6059_v61  ;;  %v9188_v31 = vshll.u32 %v14806_v32, 16  ;;  %v6455_v4 = vshrl.u32 %v5975_v58, 16 }
 0x3cc   : > { %v9459_v39 = vor.u32 %v9458_v62, %v9455_v48  ;;  %v6458_v37 = vshll.u32 %v5975_v58, 16  ;;  %v11942_v7 = vor.u32 %v12249_v15, %v11941_v45  ;;  %v9187_v46 = vrot.slane %v9185_v57, 4  ;;  %v11795_v15 = vld [vmem:[%s15709_s2 + $0x218] sm:$0xff] }
 0x3cd   : > { %v8508_v2 = vpop.f32.mrf.mxu3  ;;  %8883 = vmatmul.bf16.gmra.mxu2 %v6221_v5  ;;  %v9442_v55 = vor.u32 %v9441_v56, %v9438_v25  ;;  %v9450_v19 = vor.u32 %v9449_v11, %v9446_v54  ;;  %v6255_v29 = vor.u32 %v6254_v13, %v6251_v49  ;;  %v6097_v25 = vrot.slane %v14113_v18, 5  ;;  %10503 = vmatpush.bf16.msra.mxu1 %v11795_v15 }
 0x3ce   : > { %v14810_v26 = vadd.f32 %v8508_v2, %v8420_v12  ;;  %v14813_v50 = vpop.f32.mrf.mxu1  ;;  %v6259_v12 = vrot.slane %v6257_v23, 3  ;;  %v6262_v2 = vrot.slane %v6260_v38, 4  ;;  %v9190_v23 = vrot.slane %v9188_v31, 5  ;;  %v14820_v38 = vld [vmem:[#allocation3 + $0x54] sm:$0xff]  }
 0x3cf   : > { %15860 = vst [vmem:[#allocation54_spill] sm:$0xff] %v14820_v38  ;;  %v6098_v61 = vrot.slane %v6075_v21, 5  ;;  %v9125_v5 = vpack.c.b16 %v9080_v35, %v9080_v35  ;;  %v6457_v62 = vrot.slane %v6455_v4, 3  ;;  %v6460_v13 = vrot.slane %v6458_v37, 4 }
 0x3d0   : > { %v8424_v40 = vpop.f32.mrf.mxu2  ;;  %v6263_v10 = vor.u32 %v6262_v2, %v6259_v12  ;;  %v9191_v48 = vor.u32 %v9190_v23, %v9187_v46  ;;  %v9451_v56 = vsel %vm933_vm3, %v9442_v55, %v9450_v19  ;;  %v9482_v18 = vshll.u32 %v11942_v7, 16  ;;  %v11945_v55 = vld [vmem:[#allocation3 + $0x50] sm:$0x8] }
 0x3d1   : > { %v14815_v63 = vpop.f32.mrf.mxu0  ;;  %8819 = vmatmul.bf16.gmra.mxu1 %v6418_v36  ;;  %v9479_v36 = vshrl.u32 %v11942_v7, 16  ;;  %v6099_v12 = vsel %vm884_vm7, %v6097_v25, %v6098_v61  ;;  %v9083_v2 = vunpack.c.h.b16 %v14820_v38  ;;  %v5977_v57 = vshrl.u32 %v14382_v17, 16 }
 0x3d2   : > { %15859 = vst [vmem:[#allocation53_spill] sm:$0xff] %v14815_v63  ;;  %v6264_v58 = vsel %vm933_vm3, %v6255_v29, %v6263_v10  ;;  %v9496_v35 = vshrl.u32 %v9191_v48, 16  ;;  %v9499_v11 = vshll.u32 %v9191_v48, 16  ;;  %v5980_v21 = vshll.u32 %v14382_v17, 16  ;;  %v5756_v29 = vld [vmem:[#allocation3 + $0x4c] sm:$0x1] }
 0x3d3   : > { %v6461_v31 = vor.u32 %v6460_v13, %v6457_v62  ;;  %v9481_v4 = vrot.slane %v9479_v36, 3  ;;  %v9490_v37 = vshll.u32 %v9125_v5, 16  ;;  %v6292_v7 = vshrl.u32 %v6097_v25, 16 }
 0x3d4   : > { %10423 = vmatmul.bf16.gmra.mxu0 %v9459_v39  ;;  %v9487_v39 = vshrl.u32 %v9125_v5, 16  ;;  %v6295_v46 = vshll.u32 %v6097_v25, 16  ;;  %v6303_v19 = vshll.u32 %v6099_v12, 16  ;;  %v9484_v23 = vrot.slane %v9482_v18, 4 }
 0x3d5   : > { %v8510_v34 = vpop.f32.mrf.mxu3  ;;  %v9498_v61 = vrot.slane %v9496_v35, 3  ;;  %v9501_v48 = vrot.slane %v9499_v11, 4  ;;  %v5979_v15 = vrot.slane %v5977_v57, 4  ;;  %v9492_v63 = vrot.slane %v9490_v37, 4 }
 0x3d6   : > { %v14822_v20 = vadd.f32 %v8510_v34, %v8422_v53  ;;  %v14828_v45 = vpop.f32.mrf.mxu1  ;;  %v8425_v53 = vadd.f32 %v8424_v40, %v14574_v44  ;;  %v6300_v34 = vshrl.u32 %v6099_v12, 16  ;;  %v9489_v40 = vrot.slane %v9487_v39, 3 }
 0x3d7   : > { %v9193_v62 = vshrl.u32 %v14820_v38, 16  ;;  %v9196_v5 = vshll.u32 %v14820_v38, 16  ;;  %v6060_v13 = vunpack.c.l.b16 %v5756_v29  ;;  %v6297_v18 = vrot.slane %v6295_v46, 4  ;;  %v14848_v29 = vld [vmem:[#allocation3 + $0x64] sm:$0xff]  }
 0x3d8   : > { %v8426_v54 = vpop.f32.mrf.mxu2  ;;  %v6302_v35 = vrot.slane %v6300_v34, 3  ;;  %v6305_v11 = vrot.slane %v6303_v19, 4  ;;  %v9502_v12 = vor.u32 %v9501_v48, %v9498_v61  ;;  %15864 = vst [vmem:[#allocation58_spill] sm:$0xff] %v14848_v29  ;;  %v12251_v38 = vld [vmem:[#allocation3 + $0x60] sm:$0xf0]   ;;  %v9127_v19 = vpack.c.b16 %v9083_v2, %v9083_v2 }
 0x3d9   : > { %v14831_v49 = vpop.f32.mrf.mxu0  ;;  %v9195_v39 = vrot.slane %v9193_v62, 4  ;;  %v9198_v57 = vrot.slane %v9196_v5, 5  ;;  %v8702_v2 = vadd.f32 %v14355_v1, %v14417_v33  ;;  %v5985_v1 = vshrl.u32 %v14434_v8, 16 }
 0x3da   : > { %15861 = vst [vmem:[#allocation55_spill] sm:$0xff] %v14831_v49  ;;  %v5982_v49 = vrot.slane %v5980_v21, 5  ;;  %v8427_v21 = vadd.f32 %v8426_v54, %v14594_v27  ;;  %v6306_v46 = vor.u32 %v6305_v11, %v6302_v35  ;;  %v11949_v35 = vld [vmem:[#allocation3 + $0x60] sm:$0x8]  ;;  %v5988_v33 = vshll.u32 %v14434_v8, 16 }
 0x3db   : > { %10334 = vmatmul.bf16.gmra.mxu3 %v9451_v56  ;;  %v6294_v56 = vrot.slane %v6292_v7, 3  ;;  %v9199_v48 = vor.u32 %v9198_v57, %v9195_v39  ;;  %v11950_v27 = vor.u32 %v12251_v38, %v11949_v35 }
 0x3dc   : > { %v5983_v37 = vor.u32 %v5982_v49, %v5979_v15 }
 0x3dd   : > { %v8513_v10 = vpop.f32.mrf.mxu3  ;;  %8888 = vmatmul.bf16.gmra.mxu2 %v6264_v58  ;;  %v11946_v58 = vor.u32 %v12250_v42, %v11945_v55  ;;  %v6298_v7 = vor.u32 %v6297_v18, %v6294_v56  ;;  %v9539_v56 = vshrl.u32 %v9199_v48, 16  ;;  %v9542_v18 = vshll.u32 %v9199_v48, 16 }
 0x3de   : > { %v14839_v44 = vadd.f32 %v8513_v10, %v8425_v53  ;;  %v14843_v25 = vpop.f32.mrf.mxu1  ;;  %v6076_v10 = vpack.c.b16 %v6060_v13, %v6060_v13  ;;  %v6498_v55 = vshrl.u32 %v5983_v37, 16  ;;  %v6501_v49 = vshll.u32 %v5983_v37, 16 }
 0x3df   : > { %v9522_v61 = vshrl.u32 %v11946_v58, 16  ;;  %v9525_v54 = vshll.u32 %v11946_v58, 16  ;;  %v9530_v13 = vshrl.u32 %v9127_v19, 16 }
 0x3e0   : > { %15862 = vst [vmem:[#allocation56_spill] sm:$0xff] %v14839_v44  ;;  %v8429_v53 = vpop.f32.mrf.mxu2  ;;  %v9485_v44 = vor.u32 %v9484_v23, %v9481_v4  ;;  %v6101_v15 = vrot.slane %v6076_v10, 5  ;;  %v6307_v23 = vsel %vm933_vm3, %v6298_v7, %v6306_v46  ;;  %v6500_v11 = vrot.slane %v6498_v55, 3 }
 0x3e1   : > { %v14845_v36 = vpop.f32.mrf.mxu0  ;;  %8824 = vmatmul.bf16.gmra.mxu1 %v6461_v31  ;;  %v6100_v31 = vrot.slane %v14167_v16, 5  ;;  %v14862_v5 = vrot.slane %v9522_v61, 3  ;;  %v8430_v16 = vadd.f32 %v8429_v53, %v14619_v6  ;;  %v9541_v10 = vrot.slane %v9539_v56, 3 }
 0x3e2   : > { %15863 = vst [vmem:[#allocation57_spill] sm:$0xff] %v14845_v36  ;;  %v9493_v36 = vor.u32 %v9492_v63, %v9489_v40  ;;  %v9544_v7 = vrot.slane %v9542_v18, 4  ;;  %v9201_v46 = vshrl.u32 %v14848_v29, 16  ;;  %v9204_v6 = vshll.u32 %v14848_v29, 16 }
 0x3e3   : > { %v6102_v58 = vsel %vm884_vm7, %v6100_v31, %v6101_v15  ;;  %v6335_v39 = vshrl.u32 %v6100_v31, 16  ;;  %v6338_v57 = vshll.u32 %v6100_v31, 16  ;;  %v5990_v56 = vrot.slane %v5988_v33, 5 }
 0x3e4   : > { %10428 = vmatmul.bf16.gmra.mxu0 %v9502_v12  ;;  %v9494_v62 = vsel %vm933_vm3, %v9485_v44, %v9493_v36  ;;  %v9533_v44 = vshll.u32 %v9127_v19, 16  ;;  %v6503_v36 = vrot.slane %v6501_v49, 4  ;;  %v9527_v12 = vrot.slane %v9525_v54, 4 }
 0x3e5   : > { %v8515_v34 = vpop.f32.mrf.mxu3  ;;  %v6343_v19 = vshrl.u32 %v6102_v58, 16  ;;  %v6346_v61 = vshll.u32 %v6102_v58, 16  ;;  %v6337_v49 = vrot.slane %v6335_v39, 3  ;;  %v6340_v18 = vrot.slane %v6338_v57, 4  ;;  %v14879_v39 = vld [vmem:[#allocation3 + $0x70] sm:$0xf0]  }
 0x3e6   : > { %v14850_v42 = vadd.f32 %v8515_v34, %v8427_v21  ;;  %v14855_v4 = vpop.f32.mrf.mxu1  ;;  %v5757_v21 = vld [vmem:[#allocation3 + $0x5c] sm:$0x1]  ;;  %v9532_v34 = vrot.slane %v9530_v13, 3  ;;  %v6504_v48 = vor.u32 %v6503_v36, %v6500_v11  ;;  %v9535_v55 = vrot.slane %v9533_v44, 4  ;;  %v14877_v36 = vld [vmem:[#allocation3 + $0x74] sm:$0xff]  }
 0x3e7   : > { %v6061_v54 = vunpack.c.l.b16 %v5757_v21  ;;  %v6345_v58 = vrot.slane %v6343_v19, 3  ;;  %v6348_v11 = vrot.slane %v6346_v61, 4  ;;  %15869 = vst [vmem:[#allocation63_spill] sm:$0xff] %v14877_v36  ;;  %v6341_v35 = vor.u32 %v6340_v18, %v6337_v49 }
 0x3e8   : > { %15865 = vst [vmem:[#allocation59_spill] sm:$0xff] %v14850_v42  ;;  %v8431_v40 = vpop.f32.mrf.mxu2  ;;  %v9545_v42 = vor.u32 %v9544_v7, %v9541_v10  ;;  %v9536_v38 = vor.u32 %v9535_v55, %v9532_v34  ;;  %v15870_v57 = vunpack.c.h.b16 %v14848_v29  ;;  %v9568_v7 = vshll.u32 %v11950_v27, 16 }
 0x3e9   : > { %v14857_v63 = vpop.f32.mrf.mxu0  ;;  %v8432_v13 = vadd.f32 %v8431_v40, %v14648_v3  ;;  %v6077_v44 = vpack.c.b16 %v6061_v54, %v6061_v54  ;;  %v9565_v3 = vshrl.u32 %v11950_v27, 16  ;;  %v6103_v34 = vrot.slane %v14241_v9, 5 }
 0x3ea   : > { %15866 = vst [vmem:[#allocation60_spill] sm:$0xff] %v14857_v63  ;;  %v9129_v21 = vpack.c.b16 %v15870_v57, %v15870_v57 }
 0x3eb   : > { %10339 = vmatmul.bf16.gmra.mxu3 %v9494_v62  ;;  %v5987_v62 = vrot.slane %v5985_v1, 4  ;;  %v9528_v1 = vor.u32 %v9527_v12, %v14862_v5  ;;  %v14892_v5 = vadd.f32 %v14443_v30, %v14196_v59  ;;  %v11794_v12 = vld [vmem:[%s15709_s2 + $0x210] sm:$0xff]  ;;  %v6104_v19 = vrot.slane %v6077_v44, 5 }
 0x3ec   : > { %v9573_v30 = vshrl.u32 %v9129_v21, 16  ;;  %10504 = vmatpush.bf16.msra.mxu1 %v11794_v12  ;;  %v14906_v9 = vrot.slane %v9565_v3, 3  ;;  %v6381_v44 = vshll.u32 %v6103_v34, 16 }
 0x3ed   : > { %v8518_v37 = vpop.f32.mrf.mxu3  ;;  %8893 = vmatmul.bf16.gmra.mxu2 %v6307_v23  ;;  %v9206_v23 = vrot.slane %v9204_v6, 5  ;;  %v8382_v6 = vadd.f32 %v14384_v24, %v14145_v51  ;;  %v9537_v61 = vsel %vm933_vm3, %v9528_v1, %v9536_v38  ;;  %v8707_v51 = vadd.f32 %v14411_v43, %v14480_v52  ;;  %v5758_v1 = vld [vmem:[#allocation3 + $0x6c] sm:$0x1] }
 0x3ee   : > { %v14870_v53 = vadd.f32 %v8518_v37, %v8430_v16  ;;  %v8790_v15 = vpop.f32.mrf.mxu1  ;;  %v9203_v37 = vrot.slane %v9201_v46, 4  ;;  %v5996_v43 = vshll.u32 %v14497_v22, 16  ;;  %v6105_v52 = vsel %vm884_vm7, %v6103_v34, %v6104_v19 }
 0x3ef   : > { %v14874_v63 = vadd.f32 %v8790_v15, %v8702_v2  ;;  %v5991_v2 = vor.u32 %v5990_v56, %v5987_v62  ;;  %v14908_v62 = vrot.slane %v9568_v7, 4  ;;  %v9576_v56 = vshll.u32 %v9129_v21, 16 }
 0x3f0   : > { %15867 = vst [vmem:[#allocation61_spill] sm:$0xff] %v14870_v53  ;;  %v8434_v16 = vpop.f32.mrf.mxu2  ;;  %v9207_v40 = vor.u32 %v9206_v23, %v9203_v37  ;;  %v5993_v37 = vshrl.u32 %v14497_v22, 16  ;;  %v11953_v23 = vld [vmem:[#allocation3 + $0x70] sm:$0x8]  ;;  %v6389_v21 = vshll.u32 %v6105_v52, 16  ;;  %v6062_v7 = vunpack.c.l.b16 %v5758_v1  ;;  %v15876_v1 = vld [vmem:[#allocation40_spill] sm:$0xff] }
 0x3f1   : > { %v14872_v31 = vpop.f32.mrf.mxu0  ;;  %8829 = vmatmul.bf16.gmra.mxu1 %v6504_v48  ;;  %v6541_v24 = vshrl.u32 %v5991_v2, 16  ;;  %v6544_v55 = vshll.u32 %v5991_v2, 16  ;;  %v8435_v18 = vadd.f32 %v8434_v16, %v14678_v41  ;;  %v9575_v41 = vrot.slane %v9573_v30, 3 }
 0x3f2   : > { %15868 = vst [vmem:[#allocation62_spill] sm:$0xff] %v14872_v31  ;;  %v9582_v49 = vshrl.u32 %v9207_v40, 16  ;;  %v9585_v54 = vshll.u32 %v9207_v40, 16  ;;  %v6386_v16 = vshrl.u32 %v6105_v52, 16  ;;  %v5995_v40 = vrot.slane %v5993_v37, 4 }
 0x3f3   : > { %v6391_v37 = vrot.slane %v6389_v21, 4 }
 0x3f4   : > { %10433 = vmatmul.bf16.gmra.mxu0 %v9545_v42  ;;  %v6349_v42 = vor.u32 %v6348_v11, %v6345_v58  ;;  %v6546_v58 = vrot.slane %v6544_v55, 4  ;;  %v6378_v11 = vshrl.u32 %v6103_v34, 16  ;;  %v9584_v38 = vrot.slane %v9582_v49, 3 }
 0x3f5   : > { %v8520_v33 = vpop.f32.mrf.mxu3  ;;  %v9587_v2 = vrot.slane %v9585_v54, 4  ;;  %v6383_v55 = vrot.slane %v6381_v44, 4  ;;  %v15879_v44 = vld [vmem:[#allocation15_spill] sm:$0xff] }
 0x3f6   : > { %v14885_v10 = vadd.f32 %v8520_v33, %v8432_v13  ;;  %v14899_v48 = vpop.f32.mrf.mxu1  ;;  %v6350_v15 = vsel %vm933_vm3, %v6341_v35, %v6349_v42  ;;  %v6543_v13 = vrot.slane %v6541_v24, 3  ;;  %v9209_v35 = vshrl.u32 %v14877_v36, 16 }
 0x3f7   : > { %v9212_v33 = vshll.u32 %v14877_v36, 16  ;;  %v5998_v42 = vrot.slane %v5996_v43, 5  ;;  %v6380_v24 = vrot.slane %v6378_v11, 3  ;;  %v9588_v54 = vor.u32 %v9587_v2, %v9584_v38  ;;  %v15878_v11 = vld [vmem:[#allocation25_spill] sm:$0xff] }
 0x3f8   : > { %15871 = vst [vmem:[#allocation64_spill] sm:$0xff] %v14885_v10  ;;  %v8436_v59 = vpop.f32.mrf.mxu2  ;;  %v6547_v34 = vor.u32 %v6546_v58, %v6543_v13  ;;  %v11954_v43 = vor.u32 %v14879_v39, %v11953_v23  ;;  %v6078_v13 = vpack.c.b16 %v6062_v7, %v6062_v7  ;;  %v8392_v38 = vadd.f32 %v15879_v44, %v15878_v11  ;;  %v14935_v2 = vld [vmem:[#allocation3 + $0x84] sm:$0xff]  }
 0x3f9   : > { %v14901_v27 = vpop.f32.mrf.mxu0  ;;  %v9214_v30 = vrot.slane %v9212_v33, 5  ;;  %v14937_v39 = vld [vmem:[#allocation3 + $0x80] sm:$0xf0]   ;;  %v15881_v23 = vunpack.c.h.b16 %v14877_v36 }
 0x3fa   : > { %15872 = vst [vmem:[#allocation65_spill] sm:$0xff] %v14901_v27  ;;  %v15875_v27 = vld [vmem:[#allocation7_spill] sm:$0xff]  ;;  %v9608_v21 = vshrl.u32 %v11954_v43, 16 }
 0x3fb   : > { %10344 = vmatmul.bf16.gmra.mxu3 %v9537_v61  ;;  %v9578_v61 = vrot.slane %v9576_v56, 4  ;;  %v14923_v52 = vadd.f32 %v15875_v27, %v8382_v6  ;;  %v5999_v56 = vor.u32 %v5998_v42, %v5995_v40  ;;  %v9571_v6 = vor.u32 %v14908_v62, %v14906_v9  ;;  %15880 = vst [vmem:[#allocation7_spill] sm:$0xff] %v14935_v2 }
 0x3fc   : > { %v9611_v40 = vshll.u32 %v11954_v43, 16  ;;  %v6106_v62 = vrot.slane %v14280_v14, 5 }
 0x3fd   : > { %v8523_v57 = vpop.f32.mrf.mxu3  ;;  %8898 = vmatmul.bf16.gmra.mxu2 %v6350_v15  ;;  %v9211_v15 = vrot.slane %v9209_v35, 4  ;;  %v9579_v27 = vor.u32 %v9578_v61, %v9575_v41  ;;  %v9131_v35 = vpack.c.b16 %v15881_v23, %v15881_v23  ;;  %v6584_v9 = vshrl.u32 %v5999_v56, 16  ;;  %v15884_v61 = vld [vmem:[#allocation23_spill] sm:$0xff]  ;;  %v15889_v23 = vld [vmem:[#allocation44_spill] sm:$0xff] }
 0x3fe   : > { %v14916_v3 = vadd.f32 %v8523_v57, %v8435_v18  ;;  %v8795_v12 = vpop.f32.mrf.mxu1  ;;  %v6388_v18 = vrot.slane %v6386_v16, 3  ;;  %v8437_v57 = vadd.f32 %v8436_v59, %v15876_v1  ;;  %v6384_v59 = vor.u32 %v6383_v55, %v6380_v24  ;;  %v15885_v24 = vld [vmem:[#allocation21_spill] sm:$0xff] }
 0x3ff   : > { %v14920_v49 = vadd.f32 %v8795_v12, %v8707_v51  ;;  %v15877_v51 = vld [vmem:[#allocation27_spill] sm:$0xff]  ;;  %v9215_v33 = vor.u32 %v9214_v30, %v9211_v15  ;;  %v6107_v41 = vrot.slane %v6078_v13, 5  ;;  %v8397_v55 = vadd.f32 %v15885_v24, %v15884_v61  ;;  %v15887_v30 = vld [vmem:[#allocation16_spill] sm:$0xff] }
 0x400   : > { %15873 = vst [vmem:[#allocation66_spill] sm:$0xff] %v14916_v3  ;;  %v8439_v46 = vpop.f32.mrf.mxu2  ;;  %v14929_v58 = vadd.f32 %v15877_v51, %v14892_v5  ;;  %v6392_v5 = vor.u32 %v6391_v37, %v6388_v18  ;;  %v15883_v12 = vld [vmem:[#allocation19_spill] sm:$0xff]  ;;  %v15888_v18 = vld [vmem:[#allocation8_spill] sm:$0xff]  ;;  %v6587_v43 = vshll.u32 %v5999_v56, 16  ;;  %v9580_v1 = vsel %vm933_vm3, %v9571_v6, %v9579_v27  ;;  %v15890_v6 = vld [vmem:[#allocation18_spill] sm:$0xff] }
 0x401   : > { %v14918_v19 = vpop.f32.mrf.mxu0  ;;  %8834 = vmatmul.bf16.gmra.mxu1 %v6547_v34  ;;  %v14947_v34 = vadd.f32 %v15883_v12, %v8392_v38  ;;  %v8712_v37 = vadd.f32 %v15888_v18, %v15887_v30  ;;  %v9625_v51 = vshrl.u32 %v9215_v33, 16  ;;  %v9628_v14 = vshll.u32 %v9215_v33, 16  ;;  %v11957_v56 = vld [vmem:[#allocation3 + $0x80] sm:$0x8]  ;;  %v5759_v18 = vld [vmem:[#allocation3 + $0x7c] sm:$0x1] }
 0x402   : > { %15874 = vst [vmem:[#allocation67_spill] sm:$0xff] %v14918_v19  ;;  %v14958_v13 = vrot.slane %v9608_v21, 3  ;;  %v14960_v11 = vrot.slane %v9611_v40, 4  ;;  %v9616_v44 = vshrl.u32 %v9131_v35, 16  ;;  %v9619_v38 = vshll.u32 %v9131_v35, 16 }
 0x403   : > { %v6586_v12 = vrot.slane %v6584_v9, 3  ;;  %v6393_v61 = vsel %vm933_vm3, %v6384_v59, %v6392_v5  ;;  %v6108_v24 = vsel %vm884_vm7, %v6106_v62, %v6107_v41  ;;  %v6589_v30 = vrot.slane %v6587_v43, 4 }
 0x404   : > { %10438 = vmatmul.bf16.gmra.mxu0 %v9588_v54  ;;  %v6001_v27 = vshrl.u32 %v15890_v6, 16  ;;  %v6004_v33 = vshll.u32 %v15890_v6, 16  ;;  %v6421_v21 = vshrl.u32 %v6106_v62, 16  ;;  %v9627_v40 = vrot.slane %v9625_v51, 3 }
 0x405   : > { %v8525_v16 = vpop.f32.mrf.mxu3  ;;  %v9630_v42 = vrot.slane %v9628_v14, 4  ;;  %v9217_v35 = vshrl.u32 %v14935_v2, 16  ;;  %v6424_v9 = vshll.u32 %v6106_v62, 16  ;;  %v6429_v59 = vshrl.u32 %v6108_v24, 16 }
 0x406   : > { %v14943_v7 = vadd.f32 %v8525_v16, %v8437_v57  ;;  %v14951_v54 = vpop.f32.mrf.mxu1  ;;  %v8440_v16 = vadd.f32 %v8439_v46, %v15889_v23  ;;  %v6432_v5 = vshll.u32 %v6108_v24, 16  ;;  %v9618_v43 = vrot.slane %v9616_v44, 3 }
 0x407   : > { %v9621_v23 = vrot.slane %v9619_v38, 4  ;;  %v6003_v51 = vrot.slane %v6001_v27, 4  ;;  %v6006_v14 = vrot.slane %v6004_v33, 5  ;;  %v6423_v29 = vrot.slane %v6421_v21, 3  ;;  %v15893_v38 = vld [vmem:[#allocation10_spill] sm:$0xff] }
 0x408   : > { %15882 = vst [vmem:[#allocation40_spill] sm:$0xff] %v14943_v7  ;;  %v8441_v57 = vpop.f32.mrf.mxu2  ;;  %v6590_v7 = vor.u32 %v6589_v30, %v6586_v12  ;;  %v9631_v3 = vor.u32 %v9630_v42, %v9627_v40  ;;  %v6426_v53 = vrot.slane %v6424_v9, 4  ;;  %v6431_v24 = vrot.slane %v6429_v59, 3  ;;  %v14980_v30 = vld [vmem:[#allocation3 + $0x94] sm:$0xff]  }
 0x409   : > { %v14953_v15 = vpop.f32.mrf.mxu0  ;;  %v11958_v44 = vor.u32 %v14937_v39, %v11957_v56  ;;  %15894 = vst [vmem:[#allocation19_spill] sm:$0xff] %v14980_v30  ;;  %v15895_v42 = vld [vmem:[#allocation6_spill] sm:$0xff]  ;;  %v9614_v33 = vor.u32 %v14960_v11, %v14958_v13  ;;  %v9622_v39 = vor.u32 %v9621_v23, %v9618_v43  ;;  %v6007_v56 = vor.u32 %v6006_v14, %v6003_v51  ;;  %v11793_v13 = vld [vmem:[%s15709_s2 + $0x208] sm:$0xff] }
 0x40a   : > { %15886 = vst [vmem:[#allocation27_spill] sm:$0xff] %v14953_v15  ;;  %v6063_v15 = vunpack.c.l.b16 %v5759_v18  ;;  %v14977_v18 = vadd.f32 %v15893_v38, %v8397_v55  ;;  %v15897_v55 = vld [vmem:[#allocation28_spill] sm:$0xff]  ;;  %v15898_v40 = vunpack.c.h.b16 %v14935_v2  ;;  %v15902_v23 = vld [vmem:[#allocation17_spill] sm:$0xff]  ;;  %10505 = vmatpush.bf16.msra.mxu1 %v11793_v13  ;;  %v9228_v13 = vshll.u32 %v14980_v30, 16 }
 0x40b   : > { %10349 = vmatmul.bf16.gmra.mxu3 %v9580_v1  ;;  %v9220_v1 = vshll.u32 %v14935_v2, 16  ;;  %v8714_v21 = vadd.f32 %v15897_v55, %v14947_v34  ;;  %v9654_v59 = vshll.u32 %v11958_v44, 16  ;;  %v6109_v34 = vrot.slane %v14340_v60, 5 }
 0x40c   : > { %v6079_v12 = vpack.c.b16 %v6063_v15, %v6063_v15  ;;  %v6427_v15 = vor.u32 %v6426_v53, %v6423_v29  ;;  %v15901_v53 = vld [vmem:[#allocation22_spill] sm:$0xff]  ;;  %v6627_v14 = vshrl.u32 %v6007_v56, 16 }
 0x40d   : > { %8903 = vmatmul.bf16.gmra.mxu2 %v6393_v61  ;;  %v9219_v61 = vrot.slane %v9217_v35, 4  ;;  %v9222_v62 = vrot.slane %v9220_v1, 5  ;;  %v9133_v35 = vpack.c.b16 %v15898_v40, %v15898_v40  ;;  %v9651_v1 = vshrl.u32 %v11958_v44, 16 }
 0x40e   : > { %v8528_v46 = vpop.f32.mrf.mxu3  ;;  %v8800_v36 = vpop.f32.mrf.mxu1  ;;  %v6110_v11 = vrot.slane %v6079_v12, 5  ;;  %v8717_v51 = vadd.f32 %v15902_v23, %v15901_v53  ;;  %v6629_v55 = vrot.slane %v6627_v14, 3 }
 0x40f   : > { %v14969_v41 = vadd.f32 %v8528_v46, %v8440_v16  ;;  %v14973_v31 = vadd.f32 %v8800_v36, %v8712_v37  ;;  %v6434_v16 = vrot.slane %v6432_v5, 4  ;;  %v8442_v46 = vadd.f32 %v8441_v57, %v14769_v28  ;;  %v14982_v36 = vld [vmem:[#allocation3 + $0x90] sm:$0xf0]   ;;  %v15896_v37 = vld [vmem:[#allocation36_spill] sm:$0xff] }
 0x410   : > { %v8444_v10 = vpop.f32.mrf.mxu2  ;;  %v14986_v27 = vadd.f32 %v15896_v37, %v15895_v42  ;;  %v9223_v28 = vor.u32 %v9222_v62, %v9219_v61  ;;  %v9623_v5 = vsel %vm933_vm3, %v9614_v33, %v9622_v39  ;;  %v6630_v61 = vshll.u32 %v6007_v56, 16  ;;  %v11961_v56 = vld [vmem:[#allocation3 + $0x90] sm:$0x8] }
 0x411   : > { %15891 = vst [vmem:[#allocation25_spill] sm:$0xff] %v14969_v41  ;;  %v14971_v19 = vpop.f32.mrf.mxu0  ;;  %8839 = vmatmul.bf16.gmra.mxu1 %v6590_v7  ;;  %v6435_v57 = vor.u32 %v6434_v16, %v6431_v24  ;;  %v15010_v60 = vrot.slane %v9651_v1, 3  ;;  %v9662_v12 = vshll.u32 %v9133_v35, 16  ;;  %v8445_v42 = vadd.f32 %v8444_v10, %v14788_v47 }
 0x412   : > { %15892 = vst [vmem:[#allocation15_spill] sm:$0xff] %v14971_v19  ;;  %v9668_v16 = vshrl.u32 %v9223_v28, 16  ;;  %v9671_v44 = vshll.u32 %v9223_v28, 16  ;;  %v15013_v37 = vrot.slane %v9654_v59, 4  ;;  %v6111_v33 = vsel %vm884_vm7, %v6109_v34, %v6110_v11 }
 0x413   : > { %v6436_v38 = vsel %vm933_vm3, %v6427_v15, %v6435_v57  ;;  %v6464_v39 = vshrl.u32 %v6109_v34, 16  ;;  %v5760_v15 = vld [vmem:[#allocation3 + $0x8c] sm:$0x1]  ;;  %v6467_v10 = vshll.u32 %v6109_v34, 16  ;;  %v6472_v59 = vshrl.u32 %v6111_v33, 16 }
 0x414   : > { %10443 = vmatmul.bf16.gmra.mxu0 %v9631_v3  ;;  %v9670_v57 = vrot.slane %v9668_v16, 3  ;;  %v9673_v1 = vrot.slane %v9671_v44, 4  ;;  %v6475_v11 = vshll.u32 %v6111_v33, 16  ;;  %v9664_v53 = vrot.slane %v9662_v12, 4 }
 0x415   : > { %v6064_v23 = vunpack.c.l.b16 %v5760_v15  ;;  %v9230_v34 = vrot.slane %v9228_v13, 5  ;;  %v6469_v41 = vrot.slane %v6467_v10, 4  ;;  %v6474_v33 = vrot.slane %v6472_v59, 3 }
 0x416   : > { %v8530_v7 = vpop.f32.mrf.mxu3  ;;  %v8802_v43 = vpop.f32.mrf.mxu1  ;;  %v9674_v19 = vor.u32 %v9673_v1, %v9670_v57 }
 0x417   : > { %v14996_v9 = vadd.f32 %v8530_v7, %v8442_v46  ;;  %v15007_v62 = vadd.f32 %v8802_v43, %v8714_v21  ;;  %v9659_v46 = vshrl.u32 %v9133_v35, 16  ;;  %v6632_v21 = vrot.slane %v6630_v61, 4  ;;  %v15903_v7 = vld [vmem:[#allocation12_spill] sm:$0xff] }
 0x418   : > { %v8446_v24 = vpop.f32.mrf.mxu2  ;;  %v6009_v28 = vshrl.u32 %v15903_v7, 16  ;;  %v6012_v40 = vshll.u32 %v15903_v7, 16  ;;  %v9225_v35 = vshrl.u32 %v14980_v30, 16 }
 0x419   : > { %15899 = vst [vmem:[#allocation23_spill] sm:$0xff] %v14996_v9  ;;  %v15003_v29 = vpop.f32.mrf.mxu0  ;;  %v9661_v43 = vrot.slane %v9659_v46, 3  ;;  %v6633_v3 = vor.u32 %v6632_v21, %v6629_v55  ;;  %v11962_v46 = vor.u32 %v14982_v36, %v11961_v56  ;;  %v8447_v12 = vadd.f32 %v8446_v24, %v14799_v0 }
 0x41a   : > { %15900 = vst [vmem:[#allocation21_spill] sm:$0xff] %v15003_v29  ;;  %v6011_v16 = vrot.slane %v6009_v28, 4  ;;  %v6014_v44 = vrot.slane %v6012_v40, 5  ;;  %v6466_v29 = vrot.slane %v6464_v39, 3  ;;  %v15906_v55 = vunpack.c.h.b16 %v14980_v30  ;;  %v15033_v28 = vld [vmem:[#allocation3 + $0xa0] sm:$0xf0]  }
 0x41b   : > { %10354 = vmatmul.bf16.gmra.mxu3 %v9623_v5  ;;  %v6080_v39 = vpack.c.b16 %v6064_v23, %v6064_v23  ;;  %v15908_v40 = vld [vmem:[#allocation37_spill] sm:$0xff]  ;;  %v9657_v36 = vor.u32 %v15013_v37, %v15010_v60  ;;  %v9665_v56 = vor.u32 %v9664_v53, %v9661_v43  ;;  %v9694_v13 = vshrl.u32 %v11962_v46, 16  ;;  %v5761_v23 = vld [vmem:[#allocation3 + $0x9c] sm:$0x1] }
 0x41c   : > { %v9135_v21 = vpack.c.b16 %v15906_v55, %v15906_v55  ;;  %v15037_v15 = vadd.f32 %v15908_v40, %v14986_v27  ;;  %v6015_v0 = vor.u32 %v6014_v44, %v6011_v16  ;;  %v6470_v1 = vor.u32 %v6469_v41, %v6466_v29  ;;  %v15912_v53 = vld [vmem:[#allocation9_spill] sm:$0xff] }
 0x41d   : > { %8908 = vmatmul.bf16.gmra.mxu2 %v6436_v38  ;;  %v9227_v38 = vrot.slane %v9225_v35, 4  ;;  %v9666_v60 = vsel %vm933_vm3, %v9657_v36, %v9665_v56  ;;  %v11965_v36 = vld [vmem:[#allocation3 + $0xa0] sm:$0x8] }
 0x41e   : > { %v8533_v47 = vpop.f32.mrf.mxu3  ;;  %v8805_v14 = vpop.f32.mrf.mxu1  ;;  %v9702_v59 = vshrl.u32 %v9135_v21, 16  ;;  %v9705_v27 = vshll.u32 %v9135_v21, 16  ;;  %v6670_v16 = vshrl.u32 %v6015_v0, 16  ;;  %v6673_v41 = vshll.u32 %v6015_v0, 16  ;;  %v15913_v0 = vld [vmem:[#allocation30_spill] sm:$0xff] }
 0x41f   : > { %v15020_v5 = vadd.f32 %v8533_v47, %v8445_v42  ;;  %v15024_v2 = vadd.f32 %v8805_v14, %v8717_v51  ;;  %v6477_v42 = vrot.slane %v6475_v11, 4  ;;  %v15031_v51 = vld [vmem:[#allocation3 + $0xa4] sm:$0xff]   ;;  %v9697_v47 = vshll.u32 %v11962_v46, 16 }
 0x420   : > { %v8449_v9 = vpop.f32.mrf.mxu2  ;;  %15907 = vst [vmem:[#allocation44_spill] sm:$0xff] %v15031_v51  ;;  %v6113_v11 = vrot.slane %v6080_v39, 5  ;;  %v9704_v21 = vrot.slane %v9702_v59, 3  ;;  %v9707_v39 = vrot.slane %v9705_v27, 4  ;;  %v6672_v56 = vrot.slane %v6670_v16, 3 }
 0x421   : > { %15904 = vst [vmem:[#allocation16_spill] sm:$0xff] %v15020_v5  ;;  %v15022_v61 = vpop.f32.mrf.mxu0  ;;  %8844 = vmatmul.bf16.gmra.mxu1 %v6633_v3  ;;  %v9231_v3 = vor.u32 %v9230_v34, %v9227_v38  ;;  %v6478_v35 = vor.u32 %v6477_v42, %v6474_v33  ;;  %v9696_v42 = vrot.slane %v9694_v13, 3  ;;  %v9699_v46 = vrot.slane %v9697_v47, 4  ;;  %v15065_v5 = vld [vmem:[#allocation3 + $0x2c] sm:$0x1] }
 0x422   : > { %15905 = vst [vmem:[#allocation8_spill] sm:$0xff] %v15022_v61  ;;  %v8450_v55 = vadd.f32 %v8449_v9, %v14813_v50 }
 0x423   : > { %v9711_v44 = vshrl.u32 %v9231_v3, 16  ;;  %v9714_v38 = vshll.u32 %v9231_v3, 16  ;;  %v6479_v33 = vsel %vm933_vm3, %v6470_v1, %v6478_v35  ;;  %v6020_v3 = vshll.u32 %v15913_v0, 16 }
 0x424   : > { %10448 = vmatmul.bf16.gmra.mxu0 %v9674_v19  ;;  %v6112_v19 = vrot.slane %v14382_v17, 5  ;;  %v15911_v17 = vld [vmem:[#allocation29_spill] sm:$0xff]  ;;  %v9233_v1 = vshrl.u32 %v15031_v51, 16  ;;  %v9236_v35 = vshll.u32 %v15031_v51, 16  ;;  %v9700_v27 = vor.u32 %v9699_v46, %v9696_v42 }
 0x425   : > { %v8722_v14 = vadd.f32 %v15912_v53, %v15911_v17  ;;  %v6017_v17 = vshrl.u32 %v15913_v0, 16  ;;  %v9713_v53 = vrot.slane %v9711_v44, 3  ;;  %v9716_v24 = vrot.slane %v9714_v38, 4 }
 0x426   : > { %v8535_v57 = vpop.f32.mrf.mxu3  ;;  %v15046_v37 = vpop.f32.mrf.mxu1  ;;  %v6507_v34 = vshrl.u32 %v6112_v19, 16  ;;  %v6114_v40 = vsel %vm884_vm7, %v6112_v19, %v6113_v11  ;;  %v6510_v50 = vshll.u32 %v6112_v19, 16  ;;  %v9708_v44 = vor.u32 %v9707_v39, %v9704_v21  ;;  %v15073_v39 = vld [vmem:[#allocation3 + $0xb4] sm:$0xff]  }
 0x427   : > { %v15043_v10 = vadd.f32 %v8535_v57, %v8447_v12  ;;  %v6065_v12 = vunpack.c.l.b16 %v5761_v23  ;;  %v6675_v57 = vrot.slane %v6673_v41, 4  ;;  %v6515_v9 = vshrl.u32 %v6114_v40, 16 }
 0x428   : > { %v8451_v29 = vpop.f32.mrf.mxu2  ;;  %v6518_v47 = vshll.u32 %v6114_v40, 16  ;;  %v6509_v11 = vrot.slane %v6507_v34, 3  ;;  %v6019_v38 = vrot.slane %v6017_v17, 4  ;;  %v9717_v61 = vor.u32 %v9716_v24, %v9713_v53 }
 0x429   : > { %15909 = vst [vmem:[#allocation18_spill] sm:$0xff] %v15043_v10  ;;  %v15048_v43 = vpop.f32.mrf.mxu0  ;;  %v6081_v23 = vpack.c.b16 %v6065_v12, %v6065_v12  ;;  %v6676_v41 = vor.u32 %v6675_v57, %v6672_v56  ;;  %v9238_v19 = vrot.slane %v9236_v35, 5  ;;  %v6517_v40 = vrot.slane %v6515_v9, 3  ;;  %v15075_v56 = vld [vmem:[#allocation3 + $0xb0] sm:$0xf0]   ;;  %v15917_v57 = vld [vmem:[#allocation24_spill] sm:$0xff] }
 0x42a   : > { %15910 = vst [vmem:[#allocation10_spill] sm:$0xff] %v15048_v43  ;;  %v6022_v43 = vrot.slane %v6020_v3, 5  ;;  %v6520_v42 = vrot.slane %v6518_v47, 4  ;;  %v11966_v34 = vor.u32 %v15033_v28, %v11965_v36  ;;  %v8452_v46 = vadd.f32 %v8451_v29, %v14828_v45  ;;  %v15918_v28 = vld [vmem:[#allocation26_spill] sm:$0xff]  ;;  %v5762_v9 = vld [vmem:[#allocation3 + $0xac] sm:$0x1] }
 0x42b   : > { %10359 = vmatmul.bf16.gmra.mxu3 %v9666_v60  ;;  %v15916_v12 = vunpack.c.h.b16 %v15031_v51  ;;  %v6115_v24 = vrot.slane %v14434_v8, 5  ;;  %v6116_v21 = vrot.slane %v6081_v23, 5  ;;  %v15079_v17 = vadd.f32 %v15917_v57, %v14923_v52 }
 0x42c   : > { %v15083_v45 = vadd.f32 %v15918_v28, %v14929_v58  ;;  %v9709_v36 = vsel %vm933_vm3, %v9700_v27, %v9708_v44  ;;  %v6521_v35 = vor.u32 %v6520_v42, %v6517_v40  ;;  %v11792_v58 = vld [vmem:[%s15709_s2 + $0x200] sm:$0xff] }
 0x42d   : > { %8913 = vmatmul.bf16.gmra.mxu2 %v6479_v33  ;;  %v9235_v33 = vrot.slane %v9233_v1, 4  ;;  %v6550_v44 = vshrl.u32 %v6115_v24, 16  ;;  %10506 = vmatpush.bf16.msra.mxu1 %v11792_v58 }
 0x42e   : > { %v8538_v13 = vpop.f32.mrf.mxu3  ;;  %v8810_v60 = vpop.f32.mrf.mxu1 }
 0x42f   : > { %v15059_v59 = vadd.f32 %v8538_v13, %v8450_v55  ;;  %v15063_v30 = vadd.f32 %v8810_v60, %v8722_v14  ;;  %v6512_v55 = vrot.slane %v6510_v50, 4  ;;  %v9137_v14 = vpack.c.b16 %v15916_v12, %v15916_v12 }
 0x430   : > { %v8454_v10 = vpop.f32.mrf.mxu2  ;;  %v9239_v3 = vor.u32 %v9238_v19, %v9235_v33  ;;  %v9737_v13 = vshrl.u32 %v11966_v34, 16  ;;  %v9740_v50 = vshll.u32 %v11966_v34, 16 }
 0x431   : > { %v15061_v16 = vpop.f32.mrf.mxu0  ;;  %15915 = vst [vmem:[#allocation36_spill] sm:$0xff] %v15063_v30  ;;  %8849 = vmatmul.bf16.gmra.mxu1 %v6676_v41  ;;  %v6513_v1 = vor.u32 %v6512_v55, %v6509_v11  ;;  %v9745_v47 = vshrl.u32 %v9137_v14, 16  ;;  %v9748_v23 = vshll.u32 %v9137_v14, 16  ;;  %v6553_v11 = vshll.u32 %v6115_v24, 16 }
 0x432   : > { %15914 = vst [vmem:[#allocation6_spill] sm:$0xff] %v15061_v16  ;;  %v9754_v33 = vshrl.u32 %v9239_v3, 16  ;;  %v9757_v19 = vshll.u32 %v9239_v3, 16  ;;  %v6066_v55 = vunpack.c.l.b16 %v5762_v9  ;;  %v9739_v34 = vrot.slane %v9737_v13, 3  ;;  %v11969_v9 = vld [vmem:[#allocation3 + $0xb0] sm:$0x8] }
 0x433   : > { %v6522_v42 = vsel %vm933_vm3, %v6513_v1, %v6521_v35  ;;  %v8455_v14 = vadd.f32 %v8454_v10, %v14843_v25  ;;  %v9747_v57 = vrot.slane %v9745_v47, 3  ;;  %v9750_v28 = vrot.slane %v9748_v23, 4  ;;  %v15923_v23 = vld [vmem:[#allocation33_spill] sm:$0xff] }
 0x434   : > { %10453 = vmatmul.bf16.gmra.mxu0 %v9717_v61  ;;  %v6023_v61 = vor.u32 %v6022_v43, %v6019_v38  ;;  %v6117_v43 = vsel %vm884_vm7, %v6115_v24, %v6116_v21  ;;  %v9742_v21 = vrot.slane %v9740_v50, 4  ;;  %v9756_v58 = vrot.slane %v9754_v33, 3 }
 0x435   : > { %v6561_v12 = vshll.u32 %v6117_v43, 16  ;;  %v9759_v8 = vrot.slane %v9757_v19, 4  ;;  %v9241_v1 = vshrl.u32 %v15073_v39, 16  ;;  %v9244_v35 = vshll.u32 %v15073_v39, 16 }
 0x436   : > { %v8540_v53 = vpop.f32.mrf.mxu3  ;;  %v15094_v27 = vpop.f32.mrf.mxu1  ;;  %v6713_v60 = vshrl.u32 %v6023_v61, 16  ;;  %v6716_v41 = vshll.u32 %v6023_v61, 16  ;;  %v6555_v25 = vrot.slane %v6553_v11, 4  ;;  %v9751_v33 = vor.u32 %v9750_v28, %v9747_v57  ;;  %v15120_v57 = vld [vmem:[#allocation3 + $0xc0] sm:$0xf0]  }
 0x437   : > { %v15088_v52 = vadd.f32 %v8540_v53, %v8452_v46  ;;  %15920 = vst [vmem:[#allocation22_spill] sm:$0xff] %v15094_v27  ;;  %v6558_v46 = vshrl.u32 %v6117_v43, 16  ;;  %v15922_v53 = vld [vmem:[#allocation35_spill] sm:$0xff]  ;;  %v6563_v50 = vrot.slane %v6561_v12, 4  ;;  %v15924_v43 = vld [vmem:[#allocation32_spill] sm:$0xff]  ;;  %v9760_v16 = vor.u32 %v9759_v8, %v9756_v58 }
 0x438   : > { %v8456_v38 = vpop.f32.mrf.mxu2  ;;  %v6715_v61 = vrot.slane %v6713_v60, 3  ;;  %v6718_v24 = vrot.slane %v6716_v41, 4  ;;  %v6025_v29 = vshrl.u32 %v15922_v53, 16  ;;  %v6028_v3 = vshll.u32 %v15922_v53, 16  ;;  %v15930_v58 = vld [vmem:[#allocation43_spill] sm:$0xff] }
 0x439   : > { %15919 = vst [vmem:[#allocation28_spill] sm:$0xff] %v15088_v52  ;;  %v15096_v40 = vpop.f32.mrf.mxu0  ;;  %v6560_v10 = vrot.slane %v6558_v46, 3  ;;  %v8727_v60 = vadd.f32 %v15924_v43, %v15923_v23  ;;  %v9743_v41 = vor.u32 %v9742_v21, %v9739_v34  ;;  %v8793_v34 = vadd.f32 %v14899_v48, %v15079_v17  ;;  %v15928_v17 = vld [vmem:[#allocation38_spill] sm:$0xff] }
 0x43a   : > { %15921 = vst [vmem:[#allocation17_spill] sm:$0xff] %v15096_v40  ;;  %v6719_v30 = vor.u32 %v6718_v24, %v6715_v61  ;;  %v6027_v19 = vrot.slane %v6025_v29, 4  ;;  %v6030_v40 = vrot.slane %v6028_v3, 5  ;;  %v8457_v21 = vadd.f32 %v8456_v38, %v14855_v4 }
 0x43b   : > { %10364 = vmatmul.bf16.gmra.mxu3 %v9709_v36  ;;  %v6552_v36 = vrot.slane %v6550_v44, 3  ;;  %v9246_v44 = vrot.slane %v9244_v35, 5  ;;  %v6564_v12 = vor.u32 %v6563_v50, %v6560_v10  ;;  %v11970_v29 = vor.u32 %v15075_v56, %v11969_v9  ;;  %v15927_v56 = vld [vmem:[#allocation42_spill] sm:$0xff] }
 0x43c   : > { %v6118_v8 = vrot.slane %v14497_v22, 5  ;;  %v15925_v28 = vunpack.c.h.b16 %v15073_v39  ;;  %v9752_v4 = vsel %vm933_vm3, %v9743_v41, %v9751_v33  ;;  %v8732_v22 = vadd.f32 %v15928_v17, %v15927_v56 }
 0x43d   : > { %8918 = vmatmul.bf16.gmra.mxu2 %v6522_v42  ;;  %v9243_v42 = vrot.slane %v9241_v1, 4  ;;  %v6556_v46 = vor.u32 %v6555_v25, %v6552_v36  ;;  %v15138_v1 = vrot.slane %v15930_v58, 5  ;;  %v9783_v10 = vshll.u32 %v11970_v29, 16 }
 0x43e   : > { %v8543_v13 = vpop.f32.mrf.mxu3  ;;  %v8815_v27 = vpop.f32.mrf.mxu1 }
 0x43f   : > { %v15104_v47 = vadd.f32 %v8543_v13, %v8455_v14  ;;  %v15108_v51 = vadd.f32 %v8815_v27, %v8727_v60  ;;  %v6082_v14 = vpack.c.b16 %v6066_v55, %v6066_v55  ;;  %v15118_v27 = vld [vmem:[#allocation3 + $0xc4] sm:$0xff]   ;;  %v9139_v55 = vpack.c.b16 %v15925_v28, %v15925_v28 }
 0x440   : > { %v8879_v52 = vpop.f32.mrf.mxu2  ;;  %v9247_v38 = vor.u32 %v9246_v44, %v9243_v42  ;;  %v6565_v24 = vsel %vm933_vm3, %v6556_v46, %v6564_v12  ;;  %v9780_v13 = vshrl.u32 %v11970_v29, 16  ;;  %v15932_v42 = vld [vmem:[#allocation39_spill] sm:$0xff]  ;;  %v6596_v12 = vshll.u32 %v6118_v8, 16 }
 0x441   : > { %v15111_v11 = vadd.f32 %v8879_v52, %v14874_v63  ;;  %8854 = vmatmul.bf16.gmra.mxu1 %v6719_v30  ;;  %v10419_v63 = vpop.f32.mrf.mxu0  ;;  %v6031_v52 = vor.u32 %v6030_v40, %v6027_v19  ;;  %v15926_v30 = vld [vmem:[#allocation34_spill] sm:$0xff]  ;;  %v6119_v3 = vrot.slane %v6082_v14, 5  ;;  %v15929_v40 = vunpack.c.l.b16 %v15065_v5  ;;  %v11973_v14 = vld [vmem:[#allocation3 + $0xc0] sm:$0x8] }
 0x442   : > { %v9788_v50 = vshrl.u32 %v9139_v55, 16  ;;  %v9791_v23 = vshll.u32 %v9139_v55, 16  ;;  %v9797_v5 = vshrl.u32 %v9247_v38, 16  ;;  %v9800_v33 = vshll.u32 %v9247_v38, 16 }
 0x443   : > { %v15135_v9 = vpack.c.b16 %v15929_v40, %v15929_v40  ;;  %v6756_v25 = vshrl.u32 %v6031_v52, 16  ;;  %v6759_v41 = vshll.u32 %v6031_v52, 16  ;;  %v6033_v44 = vshrl.u32 %v15932_v42, 16 }
 0x444   : > { %10458 = vmatmul.bf16.gmra.mxu0 %v9760_v16  ;;  %v8729_v16 = vadd.f32 %v15926_v30, %v15037_v15  ;;  %v6593_v15 = vshrl.u32 %v6118_v8, 16  ;;  %v6120_v46 = vsel %vm884_vm7, %v6118_v8, %v6119_v3  ;;  %v6036_v29 = vshll.u32 %v15932_v42, 16 }
 0x445   : > { %v9249_v28 = vshrl.u32 %v15118_v27, 16  ;;  %v9252_v55 = vshll.u32 %v15118_v27, 16  ;;  %v6758_v30 = vrot.slane %v6756_v25, 3  ;;  %v9785_v52 = vrot.slane %v9783_v10, 4 }
 0x446   : > { %v8545_v61 = vpop.f32.mrf.mxu3  ;;  %v8817_v36 = vpop.f32.mrf.mxu1  ;;  %v9793_v56 = vrot.slane %v9791_v23, 4  ;;  %v9799_v17 = vrot.slane %v9797_v5, 3  ;;  %v9802_v38 = vrot.slane %v9800_v33, 4  ;;  %v6035_v8 = vrot.slane %v6033_v44, 4 }
 0x447   : > { %v15140_v35 = vadd.f32 %v8545_v61, %v8457_v21  ;;  %v15142_v43 = vadd.f32 %v8817_v36, %v8729_v16  ;;  %v9782_v21 = vrot.slane %v9780_v13, 3  ;;  %v9790_v16 = vrot.slane %v9788_v50, 3 }
 0x448   : > { %v8881_v60 = vpop.f32.mrf.mxu2  ;;  %v6601_v3 = vshrl.u32 %v6120_v46, 16  ;;  %v9345_v58 = vrot.slane %v15135_v9, 5  ;;  %v6038_v36 = vrot.slane %v6036_v29, 5  ;;  %v9254_v48 = vrot.slane %v9252_v55, 5  ;;  %v15934_v55 = vld [vmem:[#allocation45_spill] sm:$0xff] }
 0x449   : > { %15931 = vst [vmem:[#allocation12_spill] sm:$0xff] %v15142_v43  ;;  %v15144_v19 = vadd.f32 %v8881_v60, %v8793_v34  ;;  %v6761_v34 = vrot.slane %v6759_v41, 4  ;;  %v10421_v40 = vpop.f32.mrf.mxu0  ;;  %v9251_v60 = vrot.slane %v9249_v28, 4  ;;  %v9786_v10 = vor.u32 %v9785_v52, %v9782_v21 }
 0x44a   : > { %v9794_v50 = vor.u32 %v9793_v56, %v9790_v16  ;;  %v6595_v23 = vrot.slane %v6593_v15, 3  ;;  %v6598_v41 = vrot.slane %v6596_v12, 4  ;;  %v9803_v43 = vor.u32 %v9802_v38, %v9799_v17 }
 0x44b   : > { %10369 = vmatmul.bf16.gmra.mxu3 %v9752_v4  ;;  %v6604_v4 = vshll.u32 %v6120_v46, 16  ;;  %v6762_v33 = vor.u32 %v6761_v34, %v6758_v30  ;;  %v11974_v44 = vor.u32 %v15120_v57, %v11973_v14  ;;  %v15933_v29 = vunpack.c.h.b16 %v15118_v27  ;;  %v15935_v57 = vld [vmem:[#allocation41_spill] sm:$0xff]  ;;  %v15937_v30 = vld [vmem:[#allocation46_spill] sm:$0xff] }
 0x44c   : > { %v8798_v15 = vadd.f32 %v14951_v54, %v15083_v45  ;;  %v9255_v12 = vor.u32 %v9254_v48, %v9251_v60  ;;  %v9795_v21 = vsel %vm933_vm3, %v9786_v10, %v9794_v50  ;;  %v8734_v14 = vadd.f32 %v15935_v57, %v15934_v55  ;;  %v5763_v60 = vld [vmem:[#allocation3 + $0xbc] sm:$0x1]  ;;  %v15180_v10 = vld [vmem:[#allocation3 + $0xd0] sm:$0xf0]  }
 0x44d   : > { %8923 = vmatmul.bf16.gmra.mxu2 %v6565_v24  ;;  %v6606_v9 = vrot.slane %v6604_v4, 4  ;;  %v9141_v28 = vpack.c.b16 %v15933_v29, %v15933_v29  ;;  %v6599_v16 = vor.u32 %v6598_v41, %v6595_v23  ;;  %v9823_v56 = vshrl.u32 %v11974_v44, 16 }
 0x44e   : > { %v10330_v61 = vpop.f32.mrf.mxu3  ;;  %v8820_v25 = vpop.f32.mrf.mxu1  ;;  %v9826_v34 = vshll.u32 %v11974_v44, 16  ;;  %v15172_v17 = vsel %vm884_vm7, %v15138_v1, %v9345_v58  ;;  %v9419_v54 = vshrl.u32 %v15138_v1, 16  ;;  %v9843_v23 = vshll.u32 %v9255_v12, 16 }
 0x44f   : > { %v15152_v13 = vadd.f32 %v10419_v63, %v10330_v61  ;;  %v15154_v5 = vadd.f32 %v8820_v25, %v8732_v22  ;;  %v6603_v63 = vrot.slane %v6601_v3, 3  ;;  %v6039_v22 = vor.u32 %v6038_v36, %v6035_v8  ;;  %v15178_v25 = vld [vmem:[#allocation3 + $0xd4] sm:$0xff]  }
 0x450   : > { %v8884_v24 = vpop.f32.mrf.mxu2  ;;  %v9831_v48 = vshrl.u32 %v9141_v28, 16  ;;  %v9834_v38 = vshll.u32 %v9141_v28, 16  ;;  %v9422_v61 = vshll.u32 %v15138_v1, 16  ;;  %v9840_v36 = vshrl.u32 %v9255_v12, 16 }
 0x451   : > { %v15158_v46 = vadd.f32 %v8884_v24, %v14920_v49  ;;  %8859 = vmatmul.bf16.gmra.mxu1 %v6762_v33  ;;  %v15936_v49 = vld [vmem:[#allocation48_spill] sm:$0xff]  ;;  %v6799_v3 = vshrl.u32 %v6039_v22, 16  ;;  %v6802_v4 = vshll.u32 %v6039_v22, 16  ;;  %v10424_v58 = vpop.f32.mrf.mxu0  ;;  %v6067_v41 = vunpack.c.l.b16 %v5763_v60 }
 0x452   : > { %v8737_v52 = vadd.f32 %v15937_v30, %v15936_v49  ;;  %v9825_v1 = vrot.slane %v9823_v56, 3  ;;  %v9833_v28 = vrot.slane %v9831_v48, 3  ;;  %v6121_v55 = vrot.slane %v15890_v6, 5 }
 0x453   : > { %v6083_v22 = vpack.c.b16 %v6067_v41, %v6067_v41  ;;  %v6801_v57 = vrot.slane %v6799_v3, 3  ;;  %v6804_v12 = vrot.slane %v6802_v4, 4  ;;  %v9836_v49 = vrot.slane %v9834_v38, 4 }
 0x454   : > { %10463 = vmatmul.bf16.gmra.mxu0 %v9803_v43  ;;  %v6607_v43 = vor.u32 %v6606_v9, %v6603_v63  ;;  %v9427_v63 = vshrl.u32 %v15172_v17, 16  ;;  %v9009_v9 = vld [vmem:[#allocation3 + $0x3c] sm:$0x1]  ;;  %v9842_v30 = vrot.slane %v9840_v36, 3  ;;  %v15194_v6 = vrot.slane %v9422_v61, 4 }
 0x455   : > { %v9313_v60 = vunpack.c.l.b16 %v9009_v9  ;;  %v6805_v4 = vor.u32 %v6804_v12, %v6801_v57  ;;  %v9837_v36 = vor.u32 %v9836_v49, %v9833_v28  ;;  %v6639_v61 = vshll.u32 %v6121_v55, 16  ;;  %v15939_v57 = vld [vmem:[#allocation20_spill] sm:$0xff] }
 0x456   : > { %v10332_v45 = vpop.f32.mrf.mxu3  ;;  %v8822_v50 = vpop.f32.mrf.mxu1  ;;  %v6608_v56 = vsel %vm933_vm3, %v6599_v16, %v6607_v43  ;;  %v9429_v16 = vrot.slane %v9427_v63, 3  ;;  %v15209_v12 = vadd.f32 %v15939_v57, %v14977_v18 }
 0x457   : > { %v15176_v8 = vadd.f32 %v10421_v40, %v10332_v45  ;;  %v15183_v24 = vadd.f32 %v8822_v50, %v8734_v14  ;;  %v9828_v40 = vrot.slane %v9826_v34, 4  ;;  %v9845_v45 = vrot.slane %v9843_v23, 4 }
 0x458   : > { %v8886_v44 = vpop.f32.mrf.mxu2  ;;  %v6122_v14 = vrot.slane %v6083_v22, 5  ;;  %v15190_v34 = vrot.slane %v9419_v54, 3  ;;  %v9257_v50 = vshrl.u32 %v15178_v25, 16  ;;  %v11977_v54 = vld [vmem:[#allocation3 + $0xd0] sm:$0x8]  ;;  %v9329_v63 = vpack.c.b16 %v9313_v60, %v9313_v60 }
 0x459   : > { %v15186_v29 = vadd.f32 %v8886_v44, %v8798_v15  ;;  %v9260_v15 = vshll.u32 %v15178_v25, 16  ;;  %v9829_v41 = vor.u32 %v9828_v40, %v9825_v1  ;;  %v9846_v23 = vor.u32 %v9845_v45, %v9842_v30  ;;  %v15941_v45 = vld [vmem:[#allocation51_spill] sm:$0xff] }
 0x45a   : > { %v6123_v38 = vsel %vm884_vm7, %v6121_v55, %v6122_v14  ;;  %v6636_v44 = vshrl.u32 %v6121_v55, 16  ;;  %v9259_v9 = vrot.slane %v9257_v50, 4  ;;  %v10426_v14 = vpop.f32.mrf.mxu0  ;;  %v15940_v55 = vld [vmem:[#allocation49_spill] sm:$0xff]  ;;  %v15942_v50 = vld [vmem:[#allocation47_spill] sm:$0xff] }
 0x45b   : > { %10374 = vmatmul.bf16.gmra.mxu3 %v9795_v21  ;;  %v9430_v21 = vshll.u32 %v15172_v17, 16  ;;  %v9262_v22 = vrot.slane %v9260_v15, 5  ;;  %v6644_v40 = vshrl.u32 %v6123_v38, 16  ;;  %v15202_v17 = vld [vmem:[#allocation3 + $0x4c] sm:$0x1]  ;;  %v9347_v49 = vrot.slane %v15940_v55, 5 }
 0x45c   : > { %v9838_v30 = vsel %vm933_vm3, %v9829_v41, %v9837_v36  ;;  %v8739_v15 = vadd.f32 %v15942_v50, %v15941_v45  ;;  %v6638_v60 = vrot.slane %v6636_v44, 3  ;;  %v15944_v41 = vunpack.c.h.b16 %v15178_v25  ;;  %v5764_v44 = vld [vmem:[#allocation3 + $0xcc] sm:$0x1] }
 0x45d   : > { %8928 = vmatmul.bf16.gmra.mxu2 %v6608_v56  ;;  %v6647_v56 = vshll.u32 %v6123_v38, 16  ;;  %v9432_v28 = vrot.slane %v9430_v21, 4  ;;  %v6641_v21 = vrot.slane %v6639_v61, 4  ;;  %v6646_v38 = vrot.slane %v6644_v40, 3  ;;  %v15226_v61 = vld [vmem:[#allocation3 + $0xe4] sm:$0xff]  }
 0x45e   : > { %v10335_v48 = vpop.f32.mrf.mxu3  ;;  %v8825_v43 = vpop.f32.mrf.mxu1  ;;  %v9143_v36 = vpack.c.b16 %v15944_v41, %v15944_v41  ;;  %v15228_v40 = vld [vmem:[#allocation3 + $0xe0] sm:$0xf0]  }
 0x45f   : > { %v15198_v3 = vadd.f32 %v10424_v58, %v10335_v48  ;;  %v15200_v33 = vadd.f32 %v8825_v43, %v8737_v52  ;;  %v9425_v52 = vor.u32 %v15194_v6, %v15190_v34  ;;  %v6649_v18 = vrot.slane %v6647_v56, 4 }
 0x460   : > { %v8889_v1 = vpop.f32.mrf.mxu2  ;;  %v11978_v34 = vor.u32 %v15180_v10, %v11977_v54  ;;  %v9348_v6 = vrot.slane %v9329_v63, 5  ;;  %v6642_v54 = vor.u32 %v6641_v21, %v6638_v60  ;;  %v9874_v48 = vshrl.u32 %v9143_v36, 16 }
 0x461   : > { %15938 = vst [vmem:[#allocation37_spill] sm:$0xff] %v15200_v33  ;;  %v15205_v58 = vadd.f32 %v8889_v1, %v14973_v31  ;;  %8864 = vmatmul.bf16.gmra.mxu1 %v6805_v4  ;;  %v9263_v31 = vor.u32 %v9262_v22, %v9259_v9  ;;  %v15943_v4 = vld [vmem:[#allocation50_spill] sm:$0xff]  ;;  %v9433_v1 = vor.u32 %v9432_v28, %v9429_v16  ;;  %v9462_v9 = vshrl.u32 %v9347_v49, 16 }
 0x462   : > { %v9465_v22 = vshll.u32 %v9347_v49, 16  ;;  %v6068_v16 = vunpack.c.l.b16 %v5764_v44  ;;  %v9866_v50 = vshrl.u32 %v11978_v34, 16  ;;  %v9869_v41 = vshll.u32 %v11978_v34, 16 }
 0x463   : > { %v9883_v55 = vshrl.u32 %v9263_v31, 16  ;;  %v9877_v33 = vshll.u32 %v9143_v36, 16 }
 0x464   : > { %10468 = vmatmul.bf16.gmra.mxu0 %v9846_v23  ;;  %v8742_v23 = vadd.f32 %v15943_v4, %v14810_v26  ;;  %v9886_v26 = vshll.u32 %v9263_v31, 16  ;;  %v6124_v4 = vrot.slane %v15903_v7, 5  ;;  %v10429_v31 = vpop.f32.mrf.mxu0  ;;  %v9868_v7 = vrot.slane %v9866_v50, 3 }
 0x465   : > { %v9885_v44 = vrot.slane %v9883_v55, 3  ;;  %v9871_v36 = vrot.slane %v9869_v41, 4  ;;  %v9876_v55 = vrot.slane %v9874_v48, 3  ;;  %v15947_v48 = vunpack.c.l.b16 %v15202_v17 }
 0x466   : > { %v10337_v43 = vpop.f32.mrf.mxu3  ;;  %v8827_v56 = vpop.f32.mrf.mxu1 }
 0x467   : > { %v15221_v57 = vadd.f32 %v10426_v14, %v10337_v43  ;;  %v15230_v28 = vadd.f32 %v8827_v56, %v8739_v15  ;;  %v6650_v14 = vor.u32 %v6649_v18, %v6646_v38  ;;  %v6084_v43 = vpack.c.b16 %v6068_v16, %v6068_v16 }
 0x468   : > { %v8891_v10 = vpop.f32.mrf.mxu2  ;;  %v9434_v15 = vsel %vm933_vm3, %v9425_v52, %v9433_v1  ;;  %v9888_v56 = vrot.slane %v9886_v26, 4  ;;  %v9349_v38 = vsel %vm884_vm7, %v9347_v49, %v9348_v6  ;;  %v9265_v18 = vshrl.u32 %v15226_v61, 16 }
 0x469   : > { %15945 = vst [vmem:[#allocation29_spill] sm:$0xff] %v15230_v28  ;;  %v15234_v45 = vadd.f32 %v8891_v10, %v15007_v62  ;;  %v6125_v60 = vrot.slane %v6084_v43, 5  ;;  %v6651_v21 = vsel %vm933_vm3, %v6642_v54, %v6650_v14  ;;  %v15240_v62 = vrot.slane %v9462_v9, 3  ;;  %v11981_v9 = vld [vmem:[#allocation3 + $0xe0] sm:$0x8] }
 0x46a   : > { %v9268_v52 = vshll.u32 %v15226_v61, 16  ;;  %v9879_v26 = vrot.slane %v9877_v33, 4  ;;  %v9889_v49 = vor.u32 %v9888_v56, %v9885_v44  ;;  %v6679_v6 = vshrl.u32 %v6124_v4, 16 }
 0x46b   : > { %10379 = vmatmul.bf16.gmra.mxu3 %v9838_v30  ;;  %v15243_v30 = vrot.slane %v9465_v22, 4  ;;  %v6126_v34 = vsel %vm884_vm7, %v6124_v4, %v6125_v60  ;;  %v9267_v54 = vrot.slane %v9265_v18, 4  ;;  %v6682_v22 = vshll.u32 %v6124_v4, 16 }
 0x46c   : > { %v9270_v14 = vrot.slane %v9268_v52, 5  ;;  %v6690_v63 = vshll.u32 %v6126_v34, 16  ;;  %v9330_v33 = vpack.c.b16 %v15947_v48, %v15947_v48  ;;  %v9872_v41 = vor.u32 %v9871_v36, %v9868_v7 }
 0x46d   : > { %8933 = vmatmul.bf16.gmra.mxu2 %v6651_v21  ;;  %v6687_v21 = vshrl.u32 %v6126_v34, 16  ;;  %v9880_v44 = vor.u32 %v9879_v26, %v9876_v55  ;;  %v9468_v4 = vor.u32 %v15243_v30, %v15240_v62  ;;  %v6681_v18 = vrot.slane %v6679_v6, 3  ;;  %v5765_v55 = vld [vmem:[#allocation3 + $0xdc] sm:$0x1]  ;;  %v15270_v26 = vld [vmem:[#allocation3 + $0xf4] sm:$0xff]  }
 0x46e   : > { %v10340_v16 = vpop.f32.mrf.mxu3  ;;  %v8830_v10 = vpop.f32.mrf.mxu1  ;;  %v9271_v56 = vor.u32 %v9270_v14, %v9267_v54  ;;  %v6692_v52 = vrot.slane %v6690_v63, 4  ;;  %v9351_v7 = vrot.slane %v9330_v33, 5  ;;  %v11982_v30 = vor.u32 %v15228_v40, %v11981_v9  ;;  %v15272_v63 = vld [vmem:[#allocation3 + $0xf0] sm:$0xf0]   ;;  %v9011_v14 = vld [vmem:[#allocation3 + $0x5c] sm:$0x1] }
 0x46f   : > { %v15247_v1 = vadd.f32 %v10429_v31, %v10340_v16  ;;  %v15249_v43 = vadd.f32 %v8830_v10, %v8742_v23  ;;  %v9470_v31 = vshrl.u32 %v9349_v38, 16  ;;  %v9473_v16 = vshll.u32 %v9349_v38, 16  ;;  %v10431_v38 = vpop.f32.mrf.mxu0 }
 0x470   : > { %v8894_v50 = vpop.f32.mrf.mxu2  ;;  %v8808_v23 = vadd.f32 %v15046_v37, %v15209_v12  ;;  %v6689_v34 = vrot.slane %v6687_v21, 3  ;;  %v9881_v37 = vsel %vm933_vm3, %v9872_v41, %v9880_v44  ;;  %v15948_v12 = vld [vmem:[#allocation52_spill] sm:$0xff]  ;;  %v9926_v6 = vshrl.u32 %v9271_v56, 16 }
 0x471   : > { %15946 = vst [vmem:[#allocation9_spill] sm:$0xff] %v15249_v43  ;;  %v15252_v60 = vadd.f32 %v8894_v50, %v15024_v2  ;;  %10507 = vmatmul.bf16.vlgmr.msra.gmra.mxu1 %v9434_v15  ;;  %v6684_v2 = vrot.slane %v6682_v22, 4  ;;  %v9472_v17 = vrot.slane %v9470_v31, 3  ;;  %v9475_v50 = vrot.slane %v9473_v16, 4 }
 0x472   : > { %v15262_v15 = vrot.slane %v14806_v32, 5  ;;  %v8744_v62 = vadd.f32 %v15948_v12, %v14822_v20  ;;  %v9929_v54 = vshll.u32 %v9271_v56, 16  ;;  %v6069_v32 = vunpack.c.l.b16 %v5765_v55 }
 0x473   : > { %v6685_v31 = vor.u32 %v6684_v2, %v6681_v18  ;;  %v6693_v16 = vor.u32 %v6692_v52, %v6689_v34  ;;  %v15950_v40 = vunpack.c.h.b16 %v15226_v61  ;;  %v6127_v41 = vrot.slane %v15913_v0, 5  ;;  %v15952_v18 = vld [vmem:[#allocation53_spill] sm:$0xff] }
 0x474   : > { %10473 = vmatmul.bf16.gmra.mxu0 %v9889_v49  ;;  %v6085_v33 = vpack.c.b16 %v6069_v32, %v6069_v32  ;;  %v9476_v44 = vor.u32 %v9475_v50, %v9472_v17  ;;  %v9352_v56 = vsel %vm884_vm7, %v15262_v15, %v9351_v7  ;;  %v9928_v34 = vrot.slane %v9926_v6, 3 }
 0x475   : > { %v9145_v9 = vpack.c.b16 %v15950_v40, %v15950_v40  ;;  %v9931_v52 = vrot.slane %v9929_v54, 4  ;;  %v6694_v12 = vsel %vm933_vm3, %v6685_v31, %v6693_v16  ;;  %v9912_v55 = vshll.u32 %v11982_v30, 16 }
 0x476   : > { %v10342_v10 = vpop.f32.mrf.mxu3  ;;  %v8832_v49 = vpop.f32.mrf.mxu1  ;;  %v9276_v50 = vshll.u32 %v15270_v26, 16  ;;  %v9477_v7 = vsel %vm933_vm3, %v9468_v4, %v9476_v44  ;;  %v9505_v32 = vshrl.u32 %v15262_v15, 16  ;;  %v9508_v6 = vshll.u32 %v15262_v15, 16 }
 0x477   : > { %v15264_v36 = vadd.f32 %v10431_v38, %v10342_v10  ;;  %v15274_v22 = vadd.f32 %v8832_v49, %v8744_v62  ;;  %v9315_v38 = vunpack.c.l.b16 %v9011_v14  ;;  %v15951_v10 = vld [vmem:[#allocation56_spill] sm:$0xff]  ;;  %v9909_v62 = vshrl.u32 %v11982_v30, 16  ;;  %v11985_v30 = vld [vmem:[#allocation3 + $0xf0] sm:$0x8] }
 0x478   : > { %v8896_v21 = vpop.f32.mrf.mxu2  ;;  %v8747_v2 = vadd.f32 %v15952_v18, %v15951_v10  ;;  %v9273_v49 = vshrl.u32 %v15270_v26, 16  ;;  %v9917_v0 = vshrl.u32 %v9145_v9, 16  ;;  %v9513_v54 = vshrl.u32 %v9352_v56, 16 }
 0x479   : > { %15949 = vst [vmem:[#allocation30_spill] sm:$0xff] %v15274_v22  ;;  %v15277_v20 = vadd.f32 %v8896_v21, %v8808_v23  ;;  %v6128_v23 = vrot.slane %v6085_v33, 5  ;;  %v9932_v21 = vor.u32 %v9931_v52, %v9928_v34  ;;  %v6722_v31 = vshrl.u32 %v6127_v41, 16 }
 0x47a   : > { %v9275_v16 = vrot.slane %v9273_v49, 4  ;;  %v9278_v40 = vrot.slane %v9276_v50, 5  ;;  %v9919_v48 = vrot.slane %v9917_v0, 3  ;;  %v9516_v44 = vshll.u32 %v9352_v56, 16  ;;  %v5766_v56 = vld [vmem:[#allocation3 + $0xec] sm:$0x1] }
 0x47b   : > { %10384 = vmatmul.bf16.gmra.mxu3 %v9881_v37  ;;  %v9920_v37 = vshll.u32 %v9145_v9, 16  ;;  %v6129_v17 = vsel %vm884_vm7, %v6127_v41, %v6128_v23  ;;  %v6725_v9 = vshll.u32 %v6127_v41, 16  ;;  %v9911_v23 = vrot.slane %v9909_v62, 3 }
 0x47c   : > { %v6730_v10 = vshrl.u32 %v6129_v17, 16  ;;  %v6733_v18 = vshll.u32 %v6129_v17, 16  ;;  %v9507_v15 = vrot.slane %v9505_v32, 3  ;;  %v9279_v22 = vor.u32 %v9278_v40, %v9275_v16  ;;  %v15955_v17 = vld [vmem:[#allocation55_spill] sm:$0xff]  ;;  %v15302_v32 = vld [vmem:[#allocation3 + $0x104] sm:$0xff]  }
 0x47d   : > { %8938 = vmatmul.bf16.gmra.mxu2 %v6694_v12  ;;  %v9914_v12 = vrot.slane %v9912_v55, 4  ;;  %v9922_v4 = vrot.slane %v9920_v37, 4  ;;  %v9331_v43 = vpack.c.b16 %v9315_v38, %v9315_v38  ;;  %v6724_v34 = vrot.slane %v6722_v31, 3  ;;  %v15956_v37 = vld [vmem:[#allocation54_spill] sm:$0xff]  ;;  %v15304_v38 = vld [vmem:[#allocation3 + $0x100] sm:$0xf0]  }
 0x47e   : > { %v8835_v14 = vpop.f32.mrf.mxu1  ;;  %v6727_v52 = vrot.slane %v6725_v9, 4  ;;  %v6732_v28 = vrot.slane %v6730_v10, 3  ;;  %v6735_v49 = vrot.slane %v6733_v18, 4  ;;  %v9515_v41 = vrot.slane %v9513_v54, 3 }
 0x47f   : > { %v15294_v33 = vadd.f32 %v8835_v14, %v8747_v2  ;;  %v9915_v50 = vor.u32 %v9914_v12, %v9911_v23  ;;  %v9923_v2 = vor.u32 %v9922_v4, %v9919_v48  ;;  %v9510_v14 = vrot.slane %v9508_v6, 4 }
 0x480   : > { %v9518_v55 = vrot.slane %v9516_v44, 4  ;;  %v11986_v0 = vor.u32 %v15272_v63, %v11985_v30  ;;  %v9969_v31 = vshrl.u32 %v9279_v22, 16  ;;  %v9972_v16 = vshll.u32 %v9279_v22, 16 }
 0x481   : > { %15953 = vst [vmem:[#allocation24_spill] sm:$0xff] %v15294_v33  ;;  %10512 = vmatmul.bf16.gmra.mxu1 %v9477_v7  ;;  %v15954_v33 = vld [vmem:[#allocation59_spill] sm:$0xff]  ;;  %v15300_v7 = vrot.slane %v15956_v37, 5  ;;  %v6070_v48 = vunpack.c.l.b16 %v5766_v56  ;;  %v6728_v54 = vor.u32 %v6727_v52, %v6724_v34  ;;  %v6736_v40 = vor.u32 %v6735_v49, %v6732_v28  ;;  %v15959_v37 = vld [vmem:[#allocation61_spill] sm:$0xff] }
 0x482   : > { %v8749_v62 = vadd.f32 %v15955_v17, %v15954_v33  ;;  %v9924_v63 = vsel %vm933_vm3, %v9915_v50, %v9923_v2  ;;  %v15958_v30 = vunpack.c.h.b16 %v15270_v26  ;;  %v6130_v18 = vrot.slane %v15922_v53, 5 }
 0x483   : > { %v6086_v10 = vpack.c.b16 %v6070_v48, %v6070_v48  ;;  %v9511_v23 = vor.u32 %v9510_v14, %v9507_v15  ;;  %v9519_v12 = vor.u32 %v9518_v55, %v9515_v41  ;;  %v9354_v22 = vrot.slane %v9331_v43, 5  ;;  %v15960_v15 = vld [vmem:[#allocation57_spill] sm:$0xff] }
 0x484   : > { %10478 = vmatmul.bf16.gmra.mxu0 %v9932_v21  ;;  %v9147_v9 = vpack.c.b16 %v15958_v30, %v15958_v30  ;;  %v9971_v4 = vrot.slane %v9969_v31, 3  ;;  %v9974_v44 = vrot.slane %v9972_v16, 4  ;;  %v6737_v28 = vsel %vm933_vm3, %v6728_v54, %v6736_v40 }
 0x485   : > { %v6131_v17 = vrot.slane %v6086_v10, 5  ;;  %v9952_v34 = vshrl.u32 %v11986_v0, 16  ;;  %v9955_v52 = vshll.u32 %v11986_v0, 16  ;;  %v9281_v49 = vshrl.u32 %v15302_v32, 16 }
 0x486   : > { %v8837_v21 = vpop.f32.mrf.mxu1  ;;  %v9960_v50 = vshrl.u32 %v9147_v9, 16  ;;  %v9963_v2 = vshll.u32 %v9147_v9, 16  ;;  %v9284_v53 = vshll.u32 %v15302_v32, 16  ;;  %v8752_v14 = vadd.f32 %v15960_v15, %v15959_v37 }
 0x487   : > { %v15306_v6 = vadd.f32 %v8837_v21, %v8749_v62  ;;  %v6132_v62 = vsel %vm884_vm7, %v6130_v18, %v6131_v17  ;;  %v9520_v43 = vsel %vm933_vm3, %v9511_v23, %v9519_v12  ;;  %v9355_v41 = vsel %vm884_vm7, %v15300_v7, %v9354_v22 }
 0x488   : > { %v9975_v56 = vor.u32 %v9974_v44, %v9971_v4  ;;  %v6765_v0 = vshrl.u32 %v6130_v18, 16  ;;  %v9283_v21 = vrot.slane %v9281_v49, 4  ;;  %v9286_v31 = vrot.slane %v9284_v53, 5  ;;  %v9012_v4 = vld [vmem:[#allocation3 + $0x6c] sm:$0x1] }
 0x489   : > { %15957 = vst [vmem:[#allocation26_spill] sm:$0xff] %v15306_v6  ;;  %v6768_v48 = vshll.u32 %v6130_v18, 16  ;;  %v6773_v54 = vshrl.u32 %v6132_v62, 16  ;;  %v6776_v40 = vshll.u32 %v6132_v62, 16  ;;  %v9954_v30 = vrot.slane %v9952_v34, 3 }
 0x48a   : > { %v9957_v9 = vrot.slane %v9955_v52, 4  ;;  %v9962_v10 = vrot.slane %v9960_v50, 3  ;;  %v9965_v17 = vrot.slane %v9963_v2, 4  ;;  %v9548_v23 = vshrl.u32 %v15300_v7, 16  ;;  %v15962_v52 = vld [vmem:[#allocation64_spill] sm:$0xff] }
 0x48b   : > { %10389 = vmatmul.bf16.gmra.mxu3 %v9924_v63  ;;  %v11989_v63 = vld [vmem:[#allocation3 + $0x100] sm:$0x8]  ;;  %v9551_v12 = vshll.u32 %v15300_v7, 16  ;;  %v9556_v22 = vshrl.u32 %v9355_v41, 16  ;;  %v9559_v44 = vshll.u32 %v9355_v41, 16  ;;  %v6767_v49 = vrot.slane %v6765_v0, 3 }
 0x48c   : > { %v6770_v53 = vrot.slane %v6768_v48, 4  ;;  %v6775_v18 = vrot.slane %v6773_v54, 3  ;;  %v6778_v37 = vrot.slane %v6776_v40, 4  ;;  %v9958_v62 = vor.u32 %v9957_v9, %v9954_v30  ;;  %v15963_v50 = vld [vmem:[#allocation60_spill] sm:$0xff] }
 0x48d   : > { %8943 = vmatmul.bf16.gmra.mxu2 %v6737_v28  ;;  %v9287_v28 = vor.u32 %v9286_v31, %v9283_v21  ;;  %v9966_v15 = vor.u32 %v9965_v17, %v9962_v10  ;;  %v9316_v34 = vunpack.c.l.b16 %v9012_v4  ;;  %v8754_v2 = vadd.f32 %v15963_v50, %v15962_v52 }
 0x48e   : > { %v8840_v55 = vpop.f32.mrf.mxu1  ;;  %v9561_v7 = vrot.slane %v9559_v44, 4  ;;  %v6771_v0 = vor.u32 %v6770_v53, %v6767_v49  ;;  %v6779_v31 = vor.u32 %v6778_v37, %v6775_v18  ;;  %v11990_v48 = vor.u32 %v15304_v38, %v11989_v63  ;;  %v15965_v18 = vld [vmem:[#allocation66_spill] sm:$0xff] }
 0x48f   : > { %v15323_v16 = vadd.f32 %v8840_v55, %v8752_v14  ;;  %v9550_v14 = vrot.slane %v9548_v23, 3  ;;  %v9558_v55 = vrot.slane %v9556_v22, 3  ;;  %v10015_v6 = vshll.u32 %v9287_v28, 16  ;;  %v15966_v37 = vld [vmem:[#allocation62_spill] sm:$0xff] }
 0x490   : > { %v9967_v54 = vsel %vm933_vm3, %v9958_v62, %v9966_v15  ;;  %v15964_v40 = vunpack.c.h.b16 %v15302_v32  ;;  %v6133_v10 = vrot.slane %v15932_v42, 5  ;;  %v9332_v23 = vpack.c.b16 %v9316_v34, %v9316_v34  ;;  %v15967_v42 = vld [vmem:[#allocation58_spill] sm:$0xff] }
 0x491   : > { %15961 = vst [vmem:[#allocation35_spill] sm:$0xff] %v15323_v16  ;;  %10517 = vmatmul.bf16.gmra.mxu1 %v9520_v43  ;;  %v9553_v43 = vrot.slane %v9551_v12, 4  ;;  %v10012_v16 = vshrl.u32 %v9287_v28, 16  ;;  %v9562_v12 = vor.u32 %v9561_v7, %v9558_v55  ;;  %v6780_v44 = vsel %vm933_vm3, %v6771_v0, %v6779_v31 }
 0x492   : > { %v9149_v30 = vpack.c.b16 %v15964_v40, %v15964_v40  ;;  %v9995_v28 = vshrl.u32 %v11990_v48, 16  ;;  %v9998_v38 = vshll.u32 %v11990_v48, 16  ;;  %v8757_v62 = vadd.f32 %v15966_v37, %v15965_v18  ;;  %v9013_v40 = vld [vmem:[#allocation3 + $0x7c] sm:$0x1] }
 0x493   : > { %v9554_v17 = vor.u32 %v9553_v43, %v9550_v14  ;;  %v10014_v22 = vrot.slane %v10012_v16, 3  ;;  %v9356_v15 = vrot.slane %v15967_v42, 5  ;;  %v9357_v52 = vrot.slane %v9332_v23, 5 }
 0x494   : > { %10483 = vmatmul.bf16.gmra.mxu0 %v9975_v56  ;;  %v5767_v56 = vld [vmem:[#allocation3 + $0xfc] sm:$0x1]  ;;  %v10003_v63 = vshrl.u32 %v9149_v30, 16  ;;  %v10006_v49 = vshll.u32 %v9149_v30, 16  ;;  %v6808_v50 = vshrl.u32 %v6133_v10, 16  ;;  %v6811_v14 = vshll.u32 %v6133_v10, 16 }
 0x495   : > { %v6071_v41 = vunpack.c.l.b16 %v5767_v56  ;;  %v9563_v16 = vsel %vm933_vm3, %v9554_v17, %v9562_v12  ;;  %v9997_v56 = vrot.slane %v9995_v28, 3  ;;  %v10000_v7 = vrot.slane %v9998_v38, 4 }
 0x496   : > { %v8842_v33 = vpop.f32.mrf.mxu1  ;;  %v10008_v0 = vrot.slane %v10006_v49, 4  ;;  %v9358_v31 = vsel %vm884_vm7, %v9356_v15, %v9357_v52  ;;  %v9591_v48 = vshrl.u32 %v9356_v15, 16  ;;  %v6810_v30 = vrot.slane %v6808_v50, 3 }
 0x497   : > { %v15329_v21 = vadd.f32 %v8842_v33, %v8754_v2  ;;  %v6087_v9 = vpack.c.b16 %v6071_v41, %v6071_v41  ;;  %v10017_v33 = vrot.slane %v10015_v6, 4  ;;  %v10005_v41 = vrot.slane %v10003_v63, 3 }
 0x498   : > { %v10001_v12 = vor.u32 %v10000_v7, %v9997_v56  ;;  %v9317_v38 = vunpack.c.l.b16 %v9013_v40  ;;  %v15972_v56 = vld [vmem:[#allocation63_spill] sm:$0xff]  ;;  %v9014_v40 = vld [vmem:[#allocation3 + $0x8c] sm:$0x1] }
 0x499   : > { %v6134_v4 = vrot.slane %v6087_v9, 5  ;;  %v10018_v6 = vor.u32 %v10017_v33, %v10014_v22  ;;  %v6813_v9 = vrot.slane %v6811_v14, 4  ;;  %v10009_v22 = vor.u32 %v10008_v0, %v10005_v41  ;;  %v15970_v14 = vld [vmem:[#allocation25_spill] sm:$0xff] }
 0x49a   : > { %v9602_v33 = vshll.u32 %v9358_v31, 16  ;;  %v9359_v7 = vrot.slane %v15972_v56, 5  ;;  %v9015_v56 = vld [vmem:[#allocation3 + $0x9c] sm:$0x1] }
 0x49b   : > { %10394 = vmatmul.bf16.gmra.mxu3 %v9967_v54  ;;  %v6135_v53 = vsel %vm884_vm7, %v6133_v10, %v6134_v4  ;;  %v9594_v54 = vshll.u32 %v9356_v15, 16  ;;  %v9599_v10 = vshrl.u32 %v9358_v31, 16  ;;  %v15968_v4 = vld [vmem:[#allocation40_spill] sm:$0xff]  ;;  %v6814_v18 = vor.u32 %v6813_v9, %v6810_v30 }
 0x49c   : > { %v6816_v43 = vshrl.u32 %v6135_v53, 16  ;;  %v6819_v55 = vshll.u32 %v6135_v53, 16  ;;  %v9593_v53 = vrot.slane %v9591_v48, 3  ;;  %v9604_v52 = vrot.slane %v9602_v33, 4 }
 0x49d   : > { %8948 = vmatmul.bf16.gmra.mxu2 %v6780_v44  ;;  %v15969_v44 = vld [vmem:[#allocation65_spill] sm:$0xff]  ;;  %v9596_v42 = vrot.slane %v9594_v54, 4  ;;  %v9601_v15 = vrot.slane %v9599_v10, 3  ;;  %v9634_v30 = vshrl.u32 %v9359_v7, 16  ;;  %v9637_v9 = vshll.u32 %v9359_v7, 16 }
 0x49e   : > { %v8845_v34 = vpop.f32.mrf.mxu1  ;;  %v6818_v17 = vrot.slane %v6816_v43, 3  ;;  %v6821_v23 = vrot.slane %v6819_v55, 4  ;;  %v8759_v28 = vadd.f32 %v15969_v44, %v15968_v4  ;;  %v15971_v43 = vld [vmem:[#allocation67_spill] sm:$0xff]  ;;  %v9318_v33 = vunpack.c.l.b16 %v9014_v40  ;;  %v15979_v40 = vld [vmem:[#allocation21_spill] sm:$0xff] }
 0x49f   : > { %v15343_v2 = vadd.f32 %v8845_v34, %v8757_v62  ;;  %v10010_v62 = vsel %vm933_vm3, %v10001_v12, %v10009_v22  ;;  %v9333_v34 = vpack.c.b16 %v9317_v38, %v9317_v38  ;;  %v9605_v50 = vor.u32 %v9604_v52, %v9601_v15  ;;  %v15973_v12 = vld [vmem:[#allocation23_spill] sm:$0xff] }
 0x4a0   : > { %v6822_v37 = vor.u32 %v6821_v23, %v6818_v17  ;;  %v8762_v55 = vadd.f32 %v15971_v43, %v15970_v14  ;;  %v15974_v22 = vld [vmem:[#allocation27_spill] sm:$0xff]  ;;  %v9639_v38 = vrot.slane %v9637_v9, 4  ;;  %v9319_v9 = vunpack.c.l.b16 %v9015_v56  ;;  %v15982_v56 = vld [vmem:[#allocation28_spill] sm:$0xff] }
 0x4a1   : > { %10522 = vmatmul.bf16.gmra.mxu1 %v9563_v16  ;;  %v9360_v41 = vrot.slane %v9333_v34, 5  ;;  %v8764_v10 = vadd.f32 %v15974_v22, %v15973_v12  ;;  %v15976_v15 = vld [vmem:[#allocation15_spill] sm:$0xff] }
 0x4a2   : > { %v6823_v16 = vsel %vm933_vm3, %v6814_v18, %v6822_v37  ;;  %v9334_v18 = vpack.c.b16 %v9318_v33, %v9318_v33  ;;  %v15977_v34 = vld [vmem:[#allocation7_spill] sm:$0xff] }
 0x4a3   : > { %v9361_v54 = vsel %vm884_vm7, %v9359_v7, %v9360_v41 }
 0x4a4   : > { %10488 = vmatmul.bf16.gmra.mxu0 %v10018_v6  ;;  %v9597_v6 = vor.u32 %v9596_v42, %v9593_v53  ;;  %v9642_v17 = vshrl.u32 %v9361_v54, 16  ;;  %v9645_v23 = vshll.u32 %v9361_v54, 16  ;;  %v15975_v42 = vld [vmem:[#allocation16_spill] sm:$0xff]  ;;  %v15978_v54 = vld [vmem:[#allocation18_spill] sm:$0xff] }
 0x4a5   : > { %v8767_v52 = vadd.f32 %v15976_v15, %v15975_v42 }
 0x4a6   : > { %v8847_v63 = vpop.f32.mrf.mxu1  ;;  %v9606_v48 = vsel %vm933_vm3, %v9597_v6, %v9605_v50  ;;  %v9647_v53 = vrot.slane %v9645_v23, 4  ;;  %v9363_v6 = vrot.slane %v9334_v18, 5  ;;  %v15981_v18 = vld [vmem:[#allocation19_spill] sm:$0xff] }
 0x4a7   : > { %v15348_v49 = vadd.f32 %v8847_v63, %v8759_v28  ;;  %v9636_v28 = vrot.slane %v9634_v30, 3  ;;  %v9644_v63 = vrot.slane %v9642_v17, 3  ;;  %v8769_v30 = vadd.f32 %v15979_v40, %v15978_v54 }
 0x4a9   : > { %v9640_v37 = vor.u32 %v9639_v38, %v9636_v28 }
 0x4ab   : > { %10399 = vmatmul.bf16.gmra.mxu3 %v10010_v62  ;;  %v9648_v62 = vor.u32 %v9647_v53, %v9644_v63  ;;  %v15980_v63 = vld [vmem:[#allocation8_spill] sm:$0xff] }
 0x4ac   : > { %v8772_v53 = vadd.f32 %v15980_v63, %v15059_v59 }
 0x4ad   : > { %8953 = vmatmul.bf16.gmra.mxu2 %v6823_v16  ;;  %v9362_v16 = vrot.slane %v15977_v34, 5  ;;  %v9649_v43 = vsel %vm933_vm3, %v9640_v37, %v9648_v62  ;;  %v9365_v37 = vrot.slane %v15981_v18, 5 }
 0x4ae   : > { %v8850_v0 = vpop.f32.mrf.mxu1 }
 0x4af   : > { %v15355_v31 = vadd.f32 %v8850_v0, %v8762_v55  ;;  %v9364_v55 = vsel %vm884_vm7, %v9362_v16, %v9363_v6  ;;  %v9677_v7 = vshrl.u32 %v9362_v16, 16  ;;  %v9680_v41 = vshll.u32 %v9362_v16, 16  ;;  %v9016_v16 = vld [vmem:[#allocation3 + $0xac] sm:$0x1] }
 0x4b0   : > { %v9685_v0 = vshrl.u32 %v9364_v55, 16  ;;  %v9720_v6 = vshrl.u32 %v9365_v37, 16  ;;  %v9320_v59 = vunpack.c.l.b16 %v9016_v16 }
 0x4b1   : > { %10527 = vmatmul.bf16.gmra.mxu1 %v9606_v48  ;;  %v9688_v48 = vshll.u32 %v9364_v55, 16  ;;  %v9679_v12 = vrot.slane %v9677_v7, 3  ;;  %v9682_v22 = vrot.slane %v9680_v41, 4  ;;  %v15983_v7 = vld [vmem:[#allocation10_spill] sm:$0xff] }
 0x4b2   : > { %v8774_v41 = vadd.f32 %v15983_v7, %v15982_v56  ;;  %v9722_v54 = vrot.slane %v9720_v6, 3  ;;  %v15986_v6 = vld [vmem:[#allocation17_spill] sm:$0xff] }
 0x4b3   : > { %v9690_v33 = vrot.slane %v9688_v48, 4  ;;  %v9683_v28 = vor.u32 %v9682_v22, %v9679_v12 }
 0x4b6   : > { %v8852_v4 = vpop.f32.mrf.mxu1 }
 0x4b7   : > { %v15361_v44 = vadd.f32 %v8852_v4, %v8764_v10  ;;  %v9687_v10 = vrot.slane %v9685_v0, 3  ;;  %v9335_v4 = vpack.c.b16 %v9319_v9, %v9319_v9 }
 0x4b9   : > { %v9691_v38 = vor.u32 %v9690_v33, %v9687_v10  ;;  %v9366_v62 = vrot.slane %v9335_v4, 5  ;;  %v15984_v10 = vld [vmem:[#allocation6_spill] sm:$0xff]  ;;  %v15985_v4 = vld [vmem:[#allocation44_spill] sm:$0xff] }
 0x4ba   : > { %v8777_v33 = vadd.f32 %v15984_v10, %v15104_v47  ;;  %v15405_v10 = vld [vmem:[%s15712_s5] ss:$0 sm:$0xff] }
 0x4bb   : > { %v9367_v34 = vsel %vm884_vm7, %v9365_v37, %v9366_v62  ;;  %v9017_v62 = vld [vmem:[#allocation3 + $0xbc] sm:$0x1] }
 0x4bc   : > { %v9731_v55 = vshll.u32 %v9367_v34, 16  ;;  %v9321_v47 = vunpack.c.l.b16 %v9017_v62 }
 0x4be   : > { %v8855_v50 = vpop.f32.mrf.mxu1  ;;  %v9733_v9 = vrot.slane %v9731_v55, 4 }
 0x4bf   : > { %v15366_v14 = vadd.f32 %v8855_v50, %v8767_v52  ;;  %v9692_v52 = vsel %vm933_vm3, %v9683_v28, %v9691_v38  ;;  %v9723_v50 = vshll.u32 %v9365_v37, 16  ;;  %v9368_v28 = vrot.slane %v15985_v4, 5 }
 0x4c1   : > { %10532 = vmatmul.bf16.gmra.mxu1 %v9649_v43  ;;  %v9728_v43 = vshrl.u32 %v9367_v34, 16  ;;  %v9725_v40 = vrot.slane %v9723_v50, 4  ;;  %v8779_v50 = vadd.f32 %v15986_v6, %v15140_v35 }
 0x4c3   : > { %v9726_v12 = vor.u32 %v9725_v40, %v9722_v54  ;;  %v15396_v54 = vpop.f32.mrf.mxu0  ;;  %v15398_v40 = vpop.f32.mrf.mxu3 }
 0x4c6   : > { %v8857_v17 = vpop.f32.mrf.mxu1 }
 0x4c7   : > { %v15372_v23 = vadd.f32 %v8857_v17, %v8769_v30  ;;  %v9730_v30 = vrot.slane %v9728_v43, 3  ;;  %v9336_v17 = vpack.c.b16 %v9320_v59, %v9320_v59 }
 0x4c9   : > { %v9734_v22 = vor.u32 %v9733_v9, %v9730_v30  ;;  %v9369_v38 = vrot.slane %v9336_v17, 5  ;;  %v9371_v17 = vrot.slane %v15073_v39, 5 }
 0x4cb   : > { %v9735_v18 = vsel %vm933_vm3, %v9726_v12, %v9734_v22  ;;  %v9370_v37 = vsel %vm884_vm7, %v9368_v28, %v9369_v38  ;;  %v9018_v38 = vld [vmem:[#allocation3 + $0xcc] sm:$0x1] }
 0x4cc   : > { %v9771_v34 = vshrl.u32 %v9370_v37, 16  ;;  %v9774_v16 = vshll.u32 %v9370_v37, 16  ;;  %v9809_v37 = vshll.u32 %v9371_v17, 16 }
 0x4ce   : > { %v8860_v42 = vpop.f32.mrf.mxu1  ;;  %v9776_v59 = vrot.slane %v9774_v16, 4  ;;  %v15420_v16 = vpop.f32.mrf.mxu3 }
 0x4cf   : > { %v15377_v15 = vadd.f32 %v8860_v42, %v8772_v53  ;;  %v9763_v42 = vshrl.u32 %v9368_v28, 16 }
 0x4d1   : > { %10537 = vmatmul.bf16.gmra.mxu1 %v9692_v52  ;;  %v9766_v52 = vshll.u32 %v9368_v28, 16  ;;  %v9765_v56 = vrot.slane %v9763_v42, 3  ;;  %v15412_v28 = vld [vmem:[%s15713_s6] ss:$0 sm:$0xff] }
 0x4d3   : > { %v9768_v7 = vrot.slane %v9766_v52, 4  ;;  %v15417_v52 = vpop.f32.mrf.mxu0 }
 0x4d5   : > { %v9769_v30 = vor.u32 %v9768_v7, %v9765_v56  ;;  %v9811_v56 = vrot.slane %v9809_v37, 4 }
 0x4d6   : > { %v8862_v0 = vpop.f32.mrf.mxu1 }
 0x4d7   : > { %v15383_v48 = vadd.f32 %v8862_v0, %v8774_v41  ;;  %v9773_v41 = vrot.slane %v9771_v34, 3  ;;  %v9337_v0 = vpack.c.b16 %v9321_v47, %v9321_v47  ;;  %v9322_v34 = vunpack.c.l.b16 %v9018_v38  ;;  %v15438_v38 = vpop.f32.mrf.mxu2 }
 0x4d9   : > { %v9777_v9 = vor.u32 %v9776_v59, %v9773_v41  ;;  %v9372_v12 = vrot.slane %v9337_v0, 5 }
 0x4db   : > { %v9373_v39 = vsel %vm884_vm7, %v9371_v17, %v9372_v12 }
 0x4dc   : > { %v9814_v62 = vshrl.u32 %v9373_v39, 16  ;;  %v9817_v42 = vshll.u32 %v9373_v39, 16  ;;  %v15436_v39 = vpop.f32.mrf.mxu0 }
 0x4de   : > { %v8865_v63 = vpop.f32.mrf.mxu1  ;;  %v9816_v7 = vrot.slane %v9814_v62, 3  ;;  %v9819_v41 = vrot.slane %v9817_v42, 4  ;;  %v9019_v42 = vld [vmem:[#allocation3 + $0xdc] sm:$0x1] }
 0x4df   : > { %v15388_v53 = vadd.f32 %v8865_v63, %v8777_v33  ;;  %v9778_v33 = vsel %vm933_vm3, %v9769_v30, %v9777_v9  ;;  %v10620_v63 = vld [vmem:[%s12398_s18] sm:$0xff]  ;;  %v9338_v30 = vpack.c.b16 %v9322_v34, %v9322_v34  ;;  %v10622_v34 = vld [vmem:[%s12398_s18 + $0x10] sm:$0xff] }
 0x4e0   : > { %v9820_v12 = vor.u32 %v9819_v41, %v9816_v7 }
 0x4e1   : > { %10542 = vmatmul.bf16.gmra.mxu1 %v9735_v18  ;;  %v9806_v18 = vshrl.u32 %v9371_v17, 16  ;;  %v10621_v17 = vld [vmem:[%s12398_s18 + $0x8] sm:$0xff] }
 0x4e6   : > { %v8867_v43 = vpop.f32.mrf.mxu1 }
 0x4e7   : > { %v15394_v55 = vadd.f32 %v8867_v43, %v8779_v50  ;;  %v9808_v43 = vrot.slane %v9806_v18, 3 }
 0x4ee   : > { %v10508_v35 = vpop.f32.mrf.mxu1 }
 0x4ef   : > { %v10509_v22 = vadd.f32 %v10508_v35, %v15152_v13 }
 0x4f1   : > { %v10588_v4 = vadd.f32 %v10509_v22, %v15111_v11  ;;  %10547 = vmatmul.bf16.gmra.mxu1 %v9778_v33  ;;  %v9374_v22 = vrot.slane %v15118_v27, 5  ;;  %v9375_v33 = vrot.slane %v9338_v30, 5 }
 0x4f3   : > { %v10656_v13 = vmul.f32 %v15405_v10, %v10588_v4  ;;  %v9376_v27 = vsel %vm884_vm7, %v9374_v22, %v9375_v33 }
 0x4f5   : > { %v10692_v11 = vadd.f32 %v15412_v28, %v10656_v13 }
 0x4f6   : > { %v10510_v6 = vpop.f32.mrf.mxu1 }
 0x4f7   : > { %v10724_v50 = vadd.f32 %v10692_v11, %v10620_v63  ;;  %v10511_v47 = vadd.f32 %v10510_v6, %v15176_v8  ;;  %v9812_v8 = vor.u32 %v9811_v56, %v9808_v43  ;;  %v15441_v63 = vpop.f32.mrf.mxu3  ;;  %v9849_v6 = vshrl.u32 %v9374_v22, 16 }
 0x4f8   : > { %v9860_v43 = vshll.u32 %v9376_v27, 16  ;;  %v9323_v56 = vunpack.c.l.b16 %v9019_v42 }
 0x4f9   : > { %v10756_v59 = vmax.f32 %v10724_v50, 0.0  ;;  %v10589_v0 = vadd.f32 %v10511_v47, %v15144_v19  ;;  %v9821_v18 = vsel %vm933_vm3, %v9812_v8, %v9820_v12  ;;  %v9852_v50 = vshll.u32 %v9374_v22, 16  ;;  %v15453_v8 = vpop.f32.mrf.mxu2 }
 0x4fa   : > { %v9857_v47 = vshrl.u32 %v9376_v27, 16  ;;  %v9339_v22 = vpack.c.b16 %v9323_v56, %v9323_v56 }
 0x4fb   : > { %10788 = vst [vmem:[%s15428_s30] sm:$0xff] %v10756_v59  ;;  %v10657_v9 = vmul.f32 %v15405_v10, %v10589_v0  ;;  %v9851_v59 = vrot.slane %v9849_v6, 3  ;;  %v9854_v0 = vrot.slane %v9852_v50, 4 }
 0x4fc   : > { %v9859_v30 = vrot.slane %v9857_v47, 3  ;;  %v9020_v47 = vld [vmem:[#allocation3 + $0xec] sm:$0x1] }
 0x4fd   : > { %v10693_v35 = vadd.f32 %v15412_v28, %v10657_v9  ;;  %v9862_v9 = vrot.slane %v9860_v43, 4 }
 0x4fe   : > { %v10513_v4 = vpop.f32.mrf.mxu1 }
 0x4ff   : > { %v10725_v19 = vadd.f32 %v10693_v35, %v10621_v17  ;;  %v10514_v13 = vadd.f32 %v10513_v4, %v15198_v3  ;;  %v15451_v17 = vpop.f32.mrf.mxu0  ;;  %v15456_v33 = vpop.f32.mrf.mxu3 }
 0x501   : > { %v10757_v37 = vmax.f32 %v10725_v19, 0.0  ;;  %v10590_v62 = vadd.f32 %v10514_v13, %v15158_v46  ;;  %10552 = vmatmul.bf16.gmra.mxu1 %v9821_v18  ;;  %v10623_v19 = vld [vmem:[%s12398_s18 + $0x18] sm:$0xff]  ;;  %v9855_v13 = vor.u32 %v9854_v0, %v9851_v59  ;;  %v9324_v0 = vunpack.c.l.b16 %v9020_v47 }
 0x503   : > { %10789 = vst [vmem:[%s15428_s30 + $0x8] sm:$0xff] %v10757_v37  ;;  %v10658_v11 = vmul.f32 %v15405_v10, %v10590_v62  ;;  %v9377_v37 = vrot.slane %v15178_v25, 5  ;;  %v9378_v62 = vrot.slane %v9339_v22, 5 }
 0x505   : > { %v10694_v3 = vadd.f32 %v15412_v28, %v10658_v11  ;;  %v9379_v50 = vsel %vm884_vm7, %v9377_v37, %v9378_v62  ;;  %v10625_v62 = vld [vmem:[%s12398_s18 + $0x28] sm:$0xff] }
 0x506   : > { %v10515_v7 = vpop.f32.mrf.mxu1 }
 0x507   : > { %v10726_v41 = vadd.f32 %v10694_v3, %v10622_v34  ;;  %v10516_v46 = vadd.f32 %v10515_v7, %v15221_v57  ;;  %v9863_v57 = vor.u32 %v9862_v9, %v9859_v30  ;;  %v15467_v43 = vpop.f32.mrf.mxu0  ;;  %v15469_v3 = vpop.f32.mrf.mxu2  ;;  %v10624_v7 = vld [vmem:[%s12398_s18 + $0x20] sm:$0xff] }
 0x508   : > { %v15473_v56 = vpop.f32.mrf.mxu3 }
 0x509   : > { %v10758_v12 = vmax.f32 %v10726_v41, 0.0  ;;  %v10591_v35 = vadd.f32 %v10516_v46, %v15186_v29  ;;  %v9864_v11 = vsel %vm933_vm3, %v9855_v13, %v9863_v57  ;;  %v9895_v41 = vshll.u32 %v9377_v37, 16 }
 0x50a   : > { %v9900_v46 = vshrl.u32 %v9379_v50, 16 }
 0x50b   : > { %10790 = vst [vmem:[%s15428_s30 + $0x10] sm:$0xff] %v10758_v12  ;;  %v10659_v4 = vmul.f32 %v15405_v10, %v10591_v35  ;;  %v9897_v22 = vrot.slane %v9895_v41, 4 }
 0x50d   : > { %v10695_v18 = vadd.f32 %v15412_v28, %v10659_v4  ;;  %v9902_v4 = vrot.slane %v9900_v46, 3  ;;  %v9021_v46 = vld [vmem:[#allocation3 + $0xfc] sm:$0x1] }
 0x50e   : > { %v10518_v27 = vpop.f32.mrf.mxu1 }
 0x50f   : > { %v10727_v42 = vadd.f32 %v10695_v18, %v10623_v19  ;;  %v10519_v29 = vadd.f32 %v10518_v27, %v15247_v1  ;;  %v9892_v1 = vshrl.u32 %v9377_v37, 16  ;;  %v9340_v18 = vpack.c.b16 %v9324_v0, %v9324_v0 }
 0x511   : > { %v10759_v34 = vmax.f32 %v10727_v42, 0.0  ;;  %v10592_v6 = vadd.f32 %v10519_v29, %v15205_v58  ;;  %10557 = vmatmul.bf16.gmra.mxu1 %v9864_v11  ;;  %v9903_v58 = vshll.u32 %v9379_v50, 16  ;;  %v9894_v35 = vrot.slane %v9892_v1, 3  ;;  %v15484_v11 = vpop.f32.mrf.mxu0  ;;  %v15490_v50 = vpop.f32.mrf.mxu3 }
 0x512   : > { %v10435_v29 = vadd.f32 %v15396_v54, %v15398_v40 }
 0x513   : > { %10791 = vst [vmem:[%s15428_s30 + $0x18] sm:$0xff] %v10759_v34  ;;  %v10660_v25 = vmul.f32 %v15405_v10, %v10592_v6  ;;  %v9905_v19 = vrot.slane %v9903_v58, 4  ;;  %v9898_v27 = vor.u32 %v9897_v22, %v9894_v35  ;;  %v9381_v6 = vrot.slane %v9340_v18, 5 }
 0x514   : > { %v9325_v22 = vunpack.c.l.b16 %v9021_v46 }
 0x515   : > { %v10696_v59 = vadd.f32 %v15412_v28, %v10660_v25  ;;  %v9906_v42 = vor.u32 %v9905_v19, %v9902_v4 }
 0x516   : > { %v10520_v30 = vpop.f32.mrf.mxu1 }
 0x517   : > { %v10728_v9 = vadd.f32 %v10696_v59, %v10624_v7  ;;  %v10521_v12 = vadd.f32 %v10520_v30, %v15264_v36  ;;  %v15486_v36 = vpop.f32.mrf.mxu2  ;;  %v9907_v1 = vsel %vm933_vm3, %v9898_v27, %v9906_v42  ;;  %v10626_v59 = vld [vmem:[%s12398_s18 + $0x30] sm:$0xff] }
 0x519   : > { %v10760_v13 = vmax.f32 %v10728_v9, 0.0  ;;  %v10593_v57 = vadd.f32 %v10521_v12, %v15234_v45  ;;  %v9380_v45 = vrot.slane %v15226_v61, 5  ;;  %v10437_v12 = vadd.f32 %v15417_v52, %v15420_v16  ;;  %v15501_v4 = vpop.f32.mrf.mxu0  ;;  %v15505_v18 = vpop.f32.mrf.mxu3 }
 0x51a   : > { %v9341_v16 = vpack.c.b16 %v9325_v22, %v9325_v22 }
 0x51b   : > { %10792 = vst [vmem:[%s15428_s30 + $0x20] sm:$0xff] %v10760_v13  ;;  %v10661_v37 = vmul.f32 %v15405_v10, %v10593_v57  ;;  %v9382_v40 = vsel %vm884_vm7, %v9380_v45, %v9381_v6  ;;  %v9935_v61 = vshrl.u32 %v9380_v45, 16  ;;  %v9938_v0 = vshll.u32 %v9380_v45, 16  ;;  %v15988_v45 = vld [vmem:[#allocation13_spill] sm:$0xff] }
 0x51c   : > { %v9943_v30 = vshrl.u32 %v9382_v40, 16  ;;  %v9946_v9 = vshll.u32 %v9382_v40, 16  ;;  %v9383_v40 = vrot.slane %v15270_v26, 5  ;;  %v9384_v46 = vrot.slane %v9341_v16, 5 }
 0x51d   : > { %v10697_v34 = vadd.f32 %v15412_v28, %v10661_v37  ;;  %v9937_v37 = vrot.slane %v9935_v61, 3  ;;  %v15990_v61 = vld [vmem:[#allocation36_spill] sm:$0xff] }
 0x51e   : > { %v10523_v47 = vpop.f32.mrf.mxu1  ;;  %v9945_v27 = vrot.slane %v9943_v30, 3  ;;  %v9948_v42 = vrot.slane %v9946_v9, 4  ;;  %v9385_v26 = vsel %vm884_vm7, %v9383_v40, %v9384_v46 }
 0x51f   : > { %v10729_v25 = vadd.f32 %v10697_v34, %v10625_v62  ;;  %v10524_v7 = vadd.f32 %v10523_v47, %v10435_v29  ;;  %v15503_v19 = vpop.f32.mrf.mxu2  ;;  %v9940_v62 = vrot.slane %v9938_v0, 4  ;;  %v15987_v34 = vld [vmem:[#allocation14_spill] sm:$0xff]  ;;  %v8900_v0 = vadd.f32 %v15438_v38, %v15990_v61 }
 0x520   : > { %v8402_v6 = vadd.f32 %v15988_v45, %v15987_v34  ;;  %v9986_v16 = vshrl.u32 %v9385_v26, 16  ;;  %v9989_v34 = vshll.u32 %v9385_v26, 16  ;;  %v10442_v45 = vadd.f32 %v15451_v17, %v15456_v33 }
 0x521   : > { %v10761_v41 = vmax.f32 %v10729_v25, 0.0  ;;  %v10594_v54 = vadd.f32 %v10524_v7, %v15252_v60  ;;  %10562 = vmatmul.bf16.gmra.mxu1 %v9907_v1  ;;  %v10627_v25 = vld [vmem:[%s12398_s18 + $0x38] sm:$0xff]  ;;  %v9941_v7 = vor.u32 %v9940_v62, %v9937_v37  ;;  %v9949_v1 = vor.u32 %v9948_v42, %v9945_v27  ;;  %v9022_v37 = vld [vmem:[#allocation3 + $0x10c] sm:$0x1]  ;;  %v15992_v42 = vld [vmem:[#allocation22_spill] sm:$0xff] }
 0x522   : > { %v9978_v62 = vshrl.u32 %v9383_v40, 16  ;;  %v9981_v27 = vshll.u32 %v9383_v40, 16  ;;  %v9988_v46 = vrot.slane %v9986_v16, 3  ;;  %v8905_v16 = vadd.f32 %v15469_v3, %v15108_v51  ;;  %v15994_v3 = vld [vmem:[#allocation12_spill] sm:$0xff] }
 0x523   : > { %10793 = vst [vmem:[%s15428_s30 + $0x28] sm:$0xff] %v10761_v41  ;;  %v10662_v58 = vmul.f32 %v15405_v10, %v10594_v54  ;;  %v10440_v41 = vadd.f32 %v15436_v39, %v15441_v63 }
 0x524   : > { %v9983_v40 = vrot.slane %v9981_v27, 4  ;;  %v9386_v27 = vrot.slane %v15302_v32, 5 }
 0x525   : > { %v10698_v35 = vadd.f32 %v15412_v28, %v10662_v58  ;;  %v15989_v58 = vld [vmem:[#allocation31_spill] sm:$0xff] }
 0x526   : > { %v10525_v60 = vpop.f32.mrf.mxu1  ;;  %v10021_v32 = vshrl.u32 %v9386_v27, 16 }
 0x527   : > { %v10730_v13 = vadd.f32 %v10698_v35, %v10626_v59  ;;  %v10526_v57 = vadd.f32 %v10525_v60, %v10437_v12  ;;  %v9950_v12 = vsel %vm933_vm3, %v9941_v7, %v9949_v1  ;;  %v15521_v35 = vpop.f32.mrf.mxu0  ;;  %v15523_v39 = vpop.f32.mrf.mxu2  ;;  %v15991_v60 = vld [vmem:[#allocation11_spill] sm:$0xff] }
 0x529   : > { %v10762_v29 = vmax.f32 %v10730_v13, 0.0  ;;  %v10595_v52 = vadd.f32 %v10526_v57, %v15277_v20  ;;  %v8491_v20 = vadd.f32 %v15989_v58, %v8402_v6  ;;  %v15527_v57 = vpop.f32.mrf.mxu3  ;;  %v9991_v58 = vrot.slane %v9989_v34, 4 }
 0x52b   : > { %10794 = vst [vmem:[%s15428_s30 + $0x30] sm:$0xff] %v10762_v29  ;;  %v10663_v47 = vmul.f32 %v15405_v10, %v10595_v52  ;;  %v8724_v13 = vadd.f32 %v15991_v60, %v8491_v20  ;;  %v10628_v52 = vld [vmem:[%s12398_s18 + $0x40] sm:$0xff]  ;;  %v9992_v26 = vor.u32 %v9991_v58, %v9988_v46  ;;  %v10447_v46 = vadd.f32 %v15484_v11, %v15490_v50  ;;  %v10630_v58 = vld [vmem:[%s12398_s18 + $0x50] sm:$0xff] }
 0x52d   : > { %v10699_v54 = vadd.f32 %v15412_v28, %v10663_v47  ;;  %v8813_v29 = vadd.f32 %v15992_v42, %v8724_v13  ;;  %v9326_v47 = vunpack.c.l.b16 %v9022_v37 }
 0x52e   : > { %v10528_v59 = vpop.f32.mrf.mxu1 }
 0x52f   : > { %v10731_v30 = vadd.f32 %v10699_v54, %v10627_v25  ;;  %v10529_v9 = vadd.f32 %v10528_v59, %v10440_v41  ;;  %v8902_v25 = vadd.f32 %v15453_v8, %v8813_v29  ;;  %v9980_v54 = vrot.slane %v9978_v62, 3  ;;  %v15539_v17 = vpop.f32.mrf.mxu2  ;;  %v5582_v8 = vld [vmem:[#allocation3 + $0x110] sm:$0x8] }
 0x530   : > { %v9342_v61 = vpack.c.b16 %v9326_v47, %v9326_v47  ;;  %v5583_v13 = vsel %vm12400_vm2, 0, %v5582_v8 }
 0x531   : > { %v10763_v63 = vmax.f32 %v10731_v30, 0.0  ;;  %v10596_v22 = vadd.f32 %v10529_v9, %v8900_v0  ;;  %10567 = vmatmul.bf16.gmra.mxu1 %v9950_v12  ;;  %v15537_v0 = vpop.f32.mrf.mxu0  ;;  %v9984_v30 = vor.u32 %v9983_v40, %v9980_v54  ;;  %v15543_v9 = vld [vmem:[#allocation3 + $0x114] sm:$0xff]   ;;  %5584 = vst [vmem:[#allocation3 + $0x110] sm:$0x8] %v5583_v13  ;;  %v8907_v40 = vadd.f32 %v15486_v36, %v15994_v3 }
 0x532   : > { %v12262_v12 = vld [vmem:[#allocation3 + $0x110] sm:$0xf0]   ;;  %v9119_v37 = vunpack.c.h.b16 %v15543_v9  ;;  %v9387_v42 = vrot.slane %v9342_v61, 5  ;;  %v9289_v54 = vshrl.u32 %v15543_v9, 16  ;;  %v9292_v51 = vshll.u32 %v15543_v9, 16 }
 0x533   : > { %10795 = vst [vmem:[%s15428_s30 + $0x38] sm:$0xff] %v10763_v63  ;;  %v10664_v38 = vmul.f32 %v15405_v10, %v10596_v22  ;;  %v15545_v63 = vpop.f32.mrf.mxu3  ;;  %v10629_v22 = vld [vmem:[%s12398_s18 + $0x48] sm:$0xff] }
 0x535   : > { %v10700_v6 = vadd.f32 %v15412_v28, %v10664_v38  ;;  %v10445_v38 = vadd.f32 %v15467_v43, %v15473_v56  ;;  %v9388_v43 = vsel %vm884_vm7, %v9386_v27, %v9387_v42 }
 0x536   : > { %v10530_v7 = vpop.f32.mrf.mxu1  ;;  %v10032_v61 = vshll.u32 %v9388_v43, 16 }
 0x537   : > { %v10732_v1 = vadd.f32 %v10700_v6, %v10628_v52  ;;  %v10531_v41 = vadd.f32 %v10530_v7, %v10442_v45  ;;  %v9151_v52 = vpack.c.b16 %v9119_v37, %v9119_v37  ;;  %v9993_v6 = vsel %vm933_vm3, %v9984_v30, %v9992_v26  ;;  %v15570_v30 = vpop.f32.mrf.mxu2 }
 0x538   : > { %v9294_v26 = vrot.slane %v9292_v51, 5 }
 0x539   : > { %v10764_v20 = vmax.f32 %v10732_v1, 0.0  ;;  %v10597_v59 = vadd.f32 %v10531_v41, %v8902_v25  ;;  %v10046_v56 = vshrl.u32 %v9151_v52, 16  ;;  %v10049_v7 = vshll.u32 %v9151_v52, 16 }
 0x53a   : > { %v10024_v1 = vshll.u32 %v9386_v27, 16  ;;  %v10034_v52 = vrot.slane %v10032_v61, 4 }
 0x53b   : > { %10796 = vst [vmem:[%s15428_s30 + $0x40] sm:$0xff] %v10764_v20  ;;  %v10665_v33 = vmul.f32 %v15405_v10, %v10597_v59  ;;  %v11993_v20 = vld [vmem:[#allocation3 + $0x110] sm:$0x8]  ;;  %v10029_v59 = vshrl.u32 %v9388_v43, 16  ;;  %v15573_v60 = vpop.f32.mrf.mxu3  ;;  %v10048_v37 = vrot.slane %v10046_v56, 3  ;;  %v10051_v36 = vrot.slane %v10049_v7, 4 }
 0x53c   : > { %v10026_v11 = vrot.slane %v10024_v1, 4  ;;  %v11994_v27 = vor.u32 %v12262_v12, %v11993_v20 }
 0x53d   : > { %v10701_v62 = vadd.f32 %v15412_v28, %v10665_v33  ;;  %v15568_v33 = vpop.f32.mrf.mxu0  ;;  %v10052_v1 = vor.u32 %v10051_v36, %v10048_v37 }
 0x53e   : > { %v10533_v29 = vpop.f32.mrf.mxu1 }
 0x53f   : > { %v10733_v34 = vadd.f32 %v10701_v62, %v10629_v22  ;;  %v10534_v45 = vadd.f32 %v10533_v29, %v10445_v38  ;;  %v9291_v22 = vrot.slane %v9289_v54, 4  ;;  %v10023_v38 = vrot.slane %v10021_v32, 3  ;;  %v10631_v54 = vld [vmem:[%s12398_s18 + $0x58] sm:$0xff] }
 0x540   : > { %v10031_v29 = vrot.slane %v10029_v59, 3 }
 0x541   : > { %v10765_v47 = vmax.f32 %v10733_v34, 0.0  ;;  %v10598_v25 = vadd.f32 %v10534_v45, %v8905_v16  ;;  %10572 = vmatmul.bf16.gmra.mxu1 %v9993_v6  ;;  %v9295_v42 = vor.u32 %v9294_v26, %v9291_v22  ;;  %v10038_v45 = vshrl.u32 %v11994_v27, 16 }
 0x542   : > { %v10041_v6 = vshll.u32 %v11994_v27, 16  ;;  %v10035_v12 = vor.u32 %v10034_v52, %v10031_v29  ;;  %v8910_v22 = vadd.f32 %v15503_v19, %v15154_v5  ;;  %v9389_v5 = vrot.slane %v15543_v9, 5 }
 0x543   : > { %10797 = vst [vmem:[%s15428_s30 + $0x48] sm:$0xff] %v10765_v47  ;;  %v10666_v41 = vmul.f32 %v15405_v10, %v10598_v25  ;;  %v10027_v47 = vor.u32 %v10026_v11, %v10023_v38  ;;  %v10055_v25 = vshrl.u32 %v9295_v42, 16  ;;  %v10058_v43 = vshll.u32 %v9295_v42, 16 }
 0x544   : > { %v10040_v7 = vrot.slane %v10038_v45, 3  ;;  %v10043_v32 = vrot.slane %v10041_v6, 4  ;;  %v10452_v42 = vadd.f32 %v15521_v35, %v15527_v57  ;;  %v10067_v45 = vshll.u32 %v9389_v5, 16 }
 0x545   : > { %v10702_v8 = vadd.f32 %v15412_v28, %v10666_v41  ;;  %v5636_v41 = vld [vmem:[#allocation3 + $0x11c] sm:$0x1]  ;;  %v10057_v51 = vrot.slane %v10055_v25, 3  ;;  %v10060_v3 = vrot.slane %v10058_v43, 4  ;;  %v15585_v26 = vpop.f32.mrf.mxu0  ;;  %v8912_v6 = vadd.f32 %v15523_v39, %v15183_v24 }
 0x546   : > { %v10535_v13 = vpop.f32.mrf.mxu1  ;;  %v10044_v59 = vor.u32 %v10043_v32, %v10040_v7  ;;  %v10455_v24 = vadd.f32 %v15537_v0, %v15545_v63 }
 0x547   : > { %v10734_v50 = vadd.f32 %v10702_v8, %v10630_v58  ;;  %v10536_v62 = vadd.f32 %v10535_v13, %v10447_v46  ;;  %v5637_v58 = vsel %vm12675_vm6, 0, %v5636_v41  ;;  %v10061_v8 = vor.u32 %v10060_v3, %v10057_v51  ;;  %v15587_v13 = vpop.f32.mrf.mxu2  ;;  %v10633_v51 = vld [vmem:[%s12398_s18 + $0x68] sm:$0xff] }
 0x548   : > { %5638 = vst [vmem:[#allocation3 + $0x11c] sm:$0x1] %v5637_v58  ;;  %v10053_v38 = vsel %vm933_vm3, %v10044_v59, %v10052_v1  ;;  %v10069_v41 = vrot.slane %v10067_v45, 4 }
 0x549   : > { %v10766_v16 = vmax.f32 %v10734_v50, 0.0  ;;  %v10599_v34 = vadd.f32 %v10536_v62, %v8907_v40  ;;  %v10450_v40 = vadd.f32 %v15501_v4, %v15505_v18  ;;  %v15590_v4 = vpop.f32.mrf.mxu3  ;;  %10404 = vmatmul.bf16.gmra.mxu3 %v10053_v38  ;;  %v10036_v18 = vsel %vm933_vm3, %v10027_v47, %v10035_v12  ;;  %10493 = vmatmul.bf16.gmra.mxu0 %v10061_v8  ;;  %v10632_v62 = vld [vmem:[%s12398_s18 + $0x60] sm:$0xff] }
 0x54b   : > { %10798 = vst [vmem:[%s15428_s30 + $0x50] sm:$0xff] %v10766_v16  ;;  %v10667_v56 = vmul.f32 %v15405_v10, %v10599_v34  ;;  %v10064_v34 = vshrl.u32 %v9389_v5, 16 }
 0x54d   : > { %v10703_v20 = vadd.f32 %v15412_v28, %v10667_v56  ;;  %v10461_v43 = vpop.f32.mrf.mxu0  ;;  %v10066_v57 = vrot.slane %v10064_v34, 3 }
 0x54e   : > { %v10538_v61 = vpop.f32.mrf.mxu1 }
 0x54f   : > { %v10735_v37 = vadd.f32 %v10703_v20, %v10631_v54  ;;  %v10539_v36 = vadd.f32 %v10538_v61, %v10450_v40  ;;  %v9023_v27 = vld [vmem:[#allocation3 + $0x11c] sm:$0x1]  ;;  %v8921_v56 = vpop.f32.mrf.mxu2  ;;  %v10070_v40 = vor.u32 %v10069_v41, %v10066_v57  ;;  %v15996_v61 = vld [vmem:[#allocation37_spill] sm:$0xff] }
 0x550   : > { %v9327_v52 = vunpack.c.l.b16 %v9023_v27  ;;  %v8915_v8 = vadd.f32 %v15539_v17, %v15996_v61  ;;  %v10457_v17 = vadd.f32 %v15568_v33, %v15573_v60 }
 0x551   : > { %v10767_v11 = vmax.f32 %v10735_v37, 0.0  ;;  %v10600_v50 = vadd.f32 %v10539_v36, %v8910_v22  ;;  %10577 = vmatmul.bf16.gmra.mxu1 %v10036_v18  ;;  %v10372_v35 = vpop.f32.mrf.mxu3 }
 0x552   : > { %v9343_v25 = vpack.c.b16 %v9327_v52, %v9327_v52 }
 0x553   : > { %10799 = vst [vmem:[%s15428_s30 + $0x58] sm:$0xff] %v10767_v11  ;;  %v10668_v19 = vmul.f32 %v15405_v10, %v10600_v50 }
 0x554   : > { %v9390_v1 = vrot.slane %v9343_v25, 5 }
 0x555   : > { %v10704_v29 = vadd.f32 %v15412_v28, %v10668_v19  ;;  %v10464_v50 = vpop.f32.mrf.mxu0  ;;  %v10634_v19 = vld [vmem:[%s12398_s18 + $0x70] sm:$0xff] }
 0x556   : > { %v10540_v16 = vpop.f32.mrf.mxu1  ;;  %v9391_v12 = vsel %vm884_vm7, %v9389_v5, %v9390_v1 }
 0x557   : > { %v10736_v9 = vadd.f32 %v10704_v29, %v10632_v62  ;;  %v10541_v47 = vadd.f32 %v10540_v16, %v10452_v42  ;;  %v10072_v3 = vshrl.u32 %v9391_v12, 16  ;;  %v10075_v46 = vshll.u32 %v9391_v12, 16  ;;  %v8924_v0 = vpop.f32.mrf.mxu2  ;;  %v15997_v42 = vld [vmem:[#allocation29_spill] sm:$0xff] }
 0x558   : > { %v8917_v29 = vadd.f32 %v15570_v30, %v15997_v42  ;;  %v15998_v30 = vld [vmem:[#allocation9_spill] sm:$0xff] }
 0x559   : > { %v10768_v7 = vmax.f32 %v10736_v9, 0.0  ;;  %v10601_v32 = vadd.f32 %v10541_v47, %v8912_v6  ;;  %v10074_v20 = vrot.slane %v10072_v3, 3  ;;  %v10077_v59 = vrot.slane %v10075_v46, 4  ;;  %v10375_v5 = vpop.f32.mrf.mxu3  ;;  %v10635_v9 = vld [vmem:[%s12398_s18 + $0x78] sm:$0xff]  ;;  %v10636_v3 = vld [vmem:[%s12398_s18 + $0x80] sm:$0xff] }
 0x55a   : > { %v10460_v47 = vadd.f32 %v15585_v26, %v15590_v4  ;;  %v8920_v1 = vadd.f32 %v15587_v13, %v15998_v30  ;;  %v10462_v26 = vadd.f32 %v10461_v43, %v10372_v35 }
 0x55b   : > { %10800 = vst [vmem:[%s15428_s30 + $0x60] sm:$0xff] %v10768_v7  ;;  %v10669_v54 = vmul.f32 %v15405_v10, %v10601_v32  ;;  %v10078_v36 = vor.u32 %v10077_v59, %v10074_v20 }
 0x55d   : > { %v10705_v39 = vadd.f32 %v15412_v28, %v10669_v54  ;;  %v10079_v11 = vsel %vm933_vm3, %v10070_v40, %v10078_v36  ;;  %v10466_v33 = vpop.f32.mrf.mxu0  ;;  %v10465_v36 = vadd.f32 %v10464_v50, %v10375_v5 }
 0x55e   : > { %v10543_v58 = vpop.f32.mrf.mxu1 }
 0x55f   : > { %v10737_v22 = vadd.f32 %v10705_v39, %v10633_v51  ;;  %v10544_v37 = vadd.f32 %v10543_v58, %v10455_v24  ;;  %v8926_v60 = vpop.f32.mrf.mxu2  ;;  %v15999_v24 = vld [vmem:[#allocation30_spill] sm:$0xff] }
 0x560   : > { %v8922_v39 = vadd.f32 %v8921_v56, %v15999_v24 }
 0x561   : > { %v10769_v38 = vmax.f32 %v10737_v22, 0.0  ;;  %v10602_v18 = vadd.f32 %v10544_v37, %v8915_v8  ;;  %10582 = vmatmul.bf16.gmra.mxu1 %v10079_v11  ;;  %v10377_v7 = vpop.f32.mrf.mxu3  ;;  %v10637_v37 = vld [vmem:[%s12398_s18 + $0x88] sm:$0xff] }
 0x563   : > { %10801 = vst [vmem:[%s15428_s30 + $0x68] sm:$0xff] %v10769_v38  ;;  %v10670_v63 = vmul.f32 %v15405_v10, %v10602_v18  ;;  %v16000_v38 = vld [vmem:[#allocation24_spill] sm:$0xff] }
 0x564   : > { %v8925_v18 = vadd.f32 %v8924_v0, %v16000_v38 }
 0x565   : > { %v10706_v62 = vadd.f32 %v15412_v28, %v10670_v63  ;;  %v10469_v58 = vpop.f32.mrf.mxu0 }
 0x566   : > { %v10545_v27 = vpop.f32.mrf.mxu1 }
 0x567   : > { %v10738_v52 = vadd.f32 %v10706_v62, %v10634_v19  ;;  %v10546_v16 = vadd.f32 %v10545_v27, %v10457_v17  ;;  %v8929_v40 = vpop.f32.mrf.mxu2 }
 0x569   : > { %v10770_v34 = vmax.f32 %v10738_v52, 0.0  ;;  %v10603_v45 = vadd.f32 %v10546_v16, %v8917_v29  ;;  %v10380_v59 = vpop.f32.mrf.mxu3  ;;  %v10638_v29 = vld [vmem:[%s12398_s18 + $0x90] sm:$0xff]  ;;  %v10467_v52 = vadd.f32 %v10466_v33, %v10377_v7 }
 0x56a   : > { %v16001_v16 = vld [vmem:[#allocation26_spill] sm:$0xff] }
 0x56b   : > { %10802 = vst [vmem:[%s15428_s30 + $0x70] sm:$0xff] %v10770_v34  ;;  %v10671_v6 = vmul.f32 %v15405_v10, %v10603_v45  ;;  %v8927_v34 = vadd.f32 %v8926_v60, %v16001_v16 }
 0x56d   : > { %v10707_v25 = vadd.f32 %v15412_v28, %v10671_v6  ;;  %v10471_v63 = vpop.f32.mrf.mxu0 }
 0x56e   : > { %v10548_v32 = vpop.f32.mrf.mxu1 }
 0x56f   : > { %v10739_v57 = vadd.f32 %v10707_v25, %v10635_v9  ;;  %v10549_v41 = vadd.f32 %v10548_v32, %v10460_v47  ;;  %v8931_v19 = vpop.f32.mrf.mxu2 }
 0x571   : > { %v10771_v54 = vmax.f32 %v10739_v57, 0.0  ;;  %v10604_v12 = vadd.f32 %v10549_v41, %v8920_v1  ;;  %v10382_v27 = vpop.f32.mrf.mxu3  ;;  %v10639_v1 = vld [vmem:[%s12398_s18 + $0x98] sm:$0xff]  ;;  %v10470_v57 = vadd.f32 %v10469_v58, %v10380_v59  ;;  %v8932_v59 = vadd.f32 %v8931_v19, %v15329_v21 }
 0x572   : > { %v16002_v41 = vld [vmem:[#allocation35_spill] sm:$0xff] }
 0x573   : > { %10803 = vst [vmem:[%s15428_s30 + $0x78] sm:$0xff] %v10771_v54  ;;  %v10672_v51 = vmul.f32 %v15405_v10, %v10604_v12  ;;  %v8930_v54 = vadd.f32 %v8929_v40, %v16002_v41 }
 0x575   : > { %v10708_v4 = vadd.f32 %v15412_v28, %v10672_v51  ;;  %v10474_v47 = vpop.f32.mrf.mxu0 }
 0x576   : > { %v10550_v46 = vpop.f32.mrf.mxu1 }
 0x577   : > { %v10740_v20 = vadd.f32 %v10708_v4, %v10636_v3  ;;  %v10551_v13 = vadd.f32 %v10550_v46, %v10462_v26  ;;  %v8934_v25 = vpop.f32.mrf.mxu2  ;;  %v10640_v4 = vld [vmem:[%s12398_s18 + $0xa0] sm:$0xff]  ;;  %v10472_v46 = vadd.f32 %v10471_v63, %v10382_v27 }
 0x579   : > { %v10772_v61 = vmax.f32 %v10740_v20, 0.0  ;;  %v10605_v8 = vadd.f32 %v10551_v13, %v8922_v39  ;;  %v10385_v30 = vpop.f32.mrf.mxu3 }
 0x57b   : > { %10804 = vst [vmem:[%s15428_s30 + $0x80] sm:$0xff] %v10772_v61  ;;  %v10673_v22 = vmul.f32 %v15405_v10, %v10605_v8 }
 0x57d   : > { %v10709_v43 = vadd.f32 %v15412_v28, %v10673_v22  ;;  %v10476_v24 = vpop.f32.mrf.mxu0 }
 0x57e   : > { %v10553_v35 = vpop.f32.mrf.mxu1 }
 0x57f   : > { %v10741_v56 = vadd.f32 %v10709_v43, %v10637_v37  ;;  %v10554_v11 = vadd.f32 %v10553_v35, %v10465_v36  ;;  %v8936_v39 = vpop.f32.mrf.mxu2  ;;  %v10641_v36 = vld [vmem:[%s12398_s18 + $0xa8] sm:$0xff]  ;;  %v10475_v43 = vadd.f32 %v10474_v47, %v10385_v30 }
 0x581   : > { %v10773_v17 = vmax.f32 %v10741_v56, 0.0  ;;  %v10606_v62 = vadd.f32 %v10554_v11, %v8925_v18  ;;  %v10387_v20 = vpop.f32.mrf.mxu3  ;;  %v8935_v18 = vadd.f32 %v8934_v25, %v15343_v2  ;;  %v10643_v25 = vld [vmem:[%s12398_s18 + $0xb8] sm:$0xff] }
 0x583   : > { %10805 = vst [vmem:[%s15428_s30 + $0x88] sm:$0xff] %v10773_v17  ;;  %v10674_v42 = vmul.f32 %v15405_v10, %v10606_v62 }
 0x585   : > { %v10710_v50 = vadd.f32 %v15412_v28, %v10674_v42  ;;  %v10479_v56 = vpop.f32.mrf.mxu0  ;;  %v10642_v42 = vld [vmem:[%s12398_s18 + $0xb0] sm:$0xff] }
 0x586   : > { %v10555_v5 = vpop.f32.mrf.mxu1 }
 0x587   : > { %v10742_v0 = vadd.f32 %v10710_v50, %v10638_v29  ;;  %v10556_v45 = vadd.f32 %v10555_v5, %v10467_v52  ;;  %v8939_v11 = vpop.f32.mrf.mxu2  ;;  %v10477_v29 = vadd.f32 %v10476_v24, %v10387_v20  ;;  %v8937_v5 = vadd.f32 %v8936_v39, %v15348_v49 }
 0x589   : > { %v10774_v6 = vmax.f32 %v10742_v0, 0.0  ;;  %v10607_v9 = vadd.f32 %v10556_v45, %v8927_v34  ;;  %v10390_v19 = vpop.f32.mrf.mxu3 }
 0x58b   : > { %10806 = vst [vmem:[%s15428_s30 + $0x90] sm:$0xff] %v10774_v6  ;;  %v10675_v32 = vmul.f32 %v15405_v10, %v10607_v9 }
 0x58d   : > { %v10711_v33 = vadd.f32 %v15412_v28, %v10675_v32  ;;  %v10481_v34 = vpop.f32.mrf.mxu0  ;;  %v10480_v32 = vadd.f32 %v10479_v56, %v10390_v19 }
 0x58e   : > { %v10558_v7 = vpop.f32.mrf.mxu1 }
 0x58f   : > { %v10743_v60 = vadd.f32 %v10711_v33, %v10639_v1  ;;  %v10559_v12 = vadd.f32 %v10558_v7, %v10470_v57  ;;  %v8941_v0 = vpop.f32.mrf.mxu2  ;;  %v8940_v57 = vadd.f32 %v8939_v11, %v15355_v31  ;;  %v10646_v11 = vld [vmem:[%s12398_s18 + $0xd0] sm:$0xff] }
 0x590   : > { %v8942_v24 = vadd.f32 %v8941_v0, %v15361_v44 }
 0x591   : > { %v10775_v51 = vmax.f32 %v10743_v60, 0.0  ;;  %v10608_v3 = vadd.f32 %v10559_v12, %v8930_v54  ;;  %v10392_v9 = vpop.f32.mrf.mxu3 }
 0x593   : > { %10807 = vst [vmem:[%s15428_s30 + $0x98] sm:$0xff] %v10775_v51  ;;  %v10676_v26 = vmul.f32 %v15405_v10, %v10608_v3  ;;  %v10644_v3 = vld [vmem:[%s12398_s18 + $0xc0] sm:$0xff] }
 0x595   : > { %v10712_v58 = vadd.f32 %v15412_v28, %v10676_v26  ;;  %v10484_v54 = vpop.f32.mrf.mxu0  ;;  %v10482_v26 = vadd.f32 %v10481_v34, %v10392_v9 }
 0x596   : > { %v10560_v13 = vpop.f32.mrf.mxu1 }
 0x597   : > { %v10744_v40 = vadd.f32 %v10712_v58, %v10640_v4  ;;  %v10561_v61 = vadd.f32 %v10560_v13, %v10472_v46  ;;  %v8944_v60 = vpop.f32.mrf.mxu2 }
 0x599   : > { %v10776_v8 = vmax.f32 %v10744_v40, 0.0  ;;  %v10609_v22 = vadd.f32 %v10561_v61, %v8932_v59  ;;  %v10395_v51 = vpop.f32.mrf.mxu3  ;;  %v10645_v59 = vld [vmem:[%s12398_s18 + $0xc8] sm:$0xff] }
 0x59a   : > { %v10485_v40 = vadd.f32 %v10484_v54, %v10395_v51 }
 0x59b   : > { %10808 = vst [vmem:[%s15428_s30 + $0xa0] sm:$0xff] %v10776_v8  ;;  %v10677_v37 = vmul.f32 %v15405_v10, %v10609_v22 }
 0x59d   : > { %v10713_v35 = vadd.f32 %v15412_v28, %v10677_v37  ;;  %v10486_v61 = vpop.f32.mrf.mxu0 }
 0x59e   : > { %v10563_v38 = vpop.f32.mrf.mxu1 }
 0x59f   : > { %v10745_v63 = vadd.f32 %v10713_v35, %v10641_v36  ;;  %v10564_v21 = vadd.f32 %v10563_v38, %v10475_v43  ;;  %v8946_v8 = vpop.f32.mrf.mxu2  ;;  %v8945_v43 = vadd.f32 %v8944_v60, %v15366_v14 }
 0x5a1   : > { %v10777_v17 = vmax.f32 %v10745_v63, 0.0  ;;  %v10610_v62 = vadd.f32 %v10564_v21, %v8935_v18  ;;  %v10397_v37 = vpop.f32.mrf.mxu3 }
 0x5a2   : > { %v10487_v63 = vadd.f32 %v10486_v61, %v10397_v37  ;;  %v10650_v37 = vld [vmem:[%s12398_s18 + $0xf0] sm:$0xff] }
 0x5a3   : > { %10809 = vst [vmem:[%s15428_s30 + $0xa8] sm:$0xff] %v10777_v17  ;;  %v10678_v27 = vmul.f32 %v15405_v10, %v10610_v62  ;;  %v8947_v17 = vadd.f32 %v8946_v8, %v15372_v23  ;;  %v11834_v23 = vld [vmem:[%s15713_s6] ss:$0 sm:$0xff] }
 0x5a5   : > { %v10714_v52 = vadd.f32 %v15412_v28, %v10678_v27  ;;  %v10489_v62 = vpop.f32.mrf.mxu0 }
 0x5a6   : > { %v10565_v50 = vpop.f32.mrf.mxu1 }
 0x5a7   : > { %v10746_v2 = vadd.f32 %v10714_v52, %v10642_v42  ;;  %v10566_v16 = vadd.f32 %v10565_v50, %v10477_v29  ;;  %v8949_v14 = vpop.f32.mrf.mxu2 }
 0x5a8   : > { %v8950_v0 = vadd.f32 %v8949_v14, %v15377_v15 }
 0x5a9   : > { %v10778_v45 = vmax.f32 %v10746_v2, 0.0  ;;  %v10611_v6 = vadd.f32 %v10566_v16, %v8937_v5  ;;  %v10400_v29 = vpop.f32.mrf.mxu3  ;;  %v10647_v2 = vld [vmem:[%s12398_s18 + $0xd8] sm:$0xff] }
 0x5ab   : > { %10810 = vst [vmem:[%s15428_s30 + $0xb0] sm:$0xff] %v10778_v45  ;;  %v10679_v47 = vmul.f32 %v15405_v10, %v10611_v6 }
 0x5ad   : > { %v10715_v30 = vadd.f32 %v15412_v28, %v10679_v47  ;;  %v10491_v9 = vpop.f32.mrf.mxu0 }
 0x5ae   : > { %v10568_v1 = vpop.f32.mrf.mxu1 }
 0x5af   : > { %v10747_v49 = vadd.f32 %v10715_v30, %v10643_v25  ;;  %v10569_v33 = vadd.f32 %v10568_v1, %v10480_v32  ;;  %v8951_v32 = vpop.f32.mrf.mxu2 }
 0x5b1   : > { %v10779_v7 = vmax.f32 %v10747_v49, 0.0  ;;  %v10612_v41 = vadd.f32 %v10569_v33, %v8940_v57  ;;  %v10402_v30 = vpop.f32.mrf.mxu3  ;;  %v10648_v57 = vld [vmem:[%s12398_s18 + $0xe0] sm:$0xff] }
 0x5b2   : > { %v10492_v49 = vadd.f32 %v10491_v9, %v10402_v30 }
 0x5b3   : > { %10811 = vst [vmem:[%s15428_s30 + $0xb8] sm:$0xff] %v10779_v7  ;;  %v10680_v12 = vmul.f32 %v15405_v10, %v10612_v41  ;;  %v8952_v41 = vadd.f32 %v8951_v32, %v15383_v48 }
 0x5b5   : > { %v10716_v4 = vadd.f32 %v15412_v28, %v10680_v12 }
 0x5b6   : > { %v10570_v46 = vpop.f32.mrf.mxu1 }
 0x5b7   : > { %v10748_v31 = vadd.f32 %v10716_v4, %v10644_v3  ;;  %v10571_v39 = vadd.f32 %v10570_v46, %v10482_v26  ;;  %v8954_v4 = vpop.f32.mrf.mxu2  ;;  %v10649_v46 = vld [vmem:[%s12398_s18 + $0xe8] sm:$0xff] }
 0x5b9   : > { %v10780_v58 = vmax.f32 %v10748_v31, 0.0  ;;  %v10613_v20 = vadd.f32 %v10571_v39, %v8942_v24 }
 0x5bb   : > { %10812 = vst [vmem:[%s15428_s30 + $0xc0] sm:$0xff] %v10780_v58  ;;  %v10681_v13 = vmul.f32 %v15405_v10, %v10613_v20  ;;  %v8955_v20 = vadd.f32 %v8954_v4, %v15388_v53 }
 0x5bd   : > { %v10717_v22 = vadd.f32 %v15412_v28, %v10681_v13 }
 0x5be   : > { %v10573_v36 = vpop.f32.mrf.mxu1 }
 0x5bf   : > { %v10749_v44 = vadd.f32 %v10717_v22, %v10645_v59  ;;  %v10574_v35 = vadd.f32 %v10573_v36, %v10485_v40  ;;  %v8956_v22 = vpop.f32.mrf.mxu2 }
 0x5c1   : > { %v10781_v38 = vmax.f32 %v10749_v44, 0.0  ;;  %v10614_v18 = vadd.f32 %v10574_v35, %v8945_v43  ;;  %v8957_v35 = vadd.f32 %v8956_v22, %v15394_v55 }
 0x5c3   : > { %10813 = vst [vmem:[%s15428_s30 + $0xc8] sm:$0xff] %v10781_v38  ;;  %v10682_v56 = vmul.f32 %v15405_v10, %v10614_v18  ;;  %v11833_v10 = vld [vmem:[%s15712_s5] ss:$0 sm:$0xff] }
 0x5c5   : > { %v10718_v21 = vadd.f32 %v15412_v28, %v10682_v56  ;;  %v10490_v28 = vadd.f32 %v10489_v62, %v10400_v29 }
 0x5c6   : > { %v10575_v19 = vpop.f32.mrf.mxu1  ;;  %v10494_v3 = vpop.f32.mrf.mxu0 }
 0x5c7   : > { %v10750_v27 = vadd.f32 %v10718_v21, %v10646_v11  ;;  %v10576_v42 = vadd.f32 %v10575_v19, %v10487_v63  ;;  %v10651_v63 = vld [vmem:[%s12398_s18 + $0xf8] sm:$0xff] }
 0x5c9   : > { %v10782_v52 = vmax.f32 %v10750_v27, 0.0  ;;  %v10615_v50 = vadd.f32 %v10576_v42, %v8947_v17 }
 0x5cb   : > { %10814 = vst [vmem:[%s15428_s30 + $0xd0] sm:$0xff] %v10782_v52  ;;  %v10683_v5 = vmul.f32 %v11833_v10, %v10615_v50 }
 0x5cc   : > { %v10405_v51 = vpop.f32.mrf.mxu3 }
 0x5cd   : > { %v10719_v16 = vadd.f32 %v11834_v23, %v10683_v5  ;;  %v10495_v24 = vadd.f32 %v10494_v3, %v10405_v51 }
 0x5ce   : > { %v10578_v34 = vpop.f32.mrf.mxu1  ;;  %v10496_v61 = vpop.f32.mrf.mxu0 }
 0x5cf   : > { %v10751_v45 = vadd.f32 %v10719_v16, %v10647_v2  ;;  %v10579_v6 = vadd.f32 %v10578_v34, %v10490_v28 }
 0x5d1   : > { %v10783_v47 = vmax.f32 %v10751_v45, 0.0  ;;  %v10616_v25 = vadd.f32 %v10579_v6, %v8950_v0 }
 0x5d3   : > { %10815 = vst [vmem:[%s15428_s30 + $0xd8] sm:$0xff] %v10783_v47  ;;  %v10684_v1 = vmul.f32 %v11833_v10, %v10616_v25 }
 0x5d4   : > { %v10407_v40 = vpop.f32.mrf.mxu3 }
 0x5d5   : > { %v10720_v33 = vadd.f32 %v11834_v23, %v10684_v1  ;;  %v10497_v36 = vadd.f32 %v10496_v61, %v10407_v40 }
 0x5d6   : > { %v10580_v7 = vpop.f32.mrf.mxu1 }
 0x5d7   : > { %v10752_v54 = vadd.f32 %v10720_v33, %v10648_v57  ;;  %v10581_v60 = vadd.f32 %v10580_v7, %v10492_v49 }
 0x5d9   : > { %v10784_v15 = vmax.f32 %v10752_v54, 0.0  ;;  %v10617_v12 = vadd.f32 %v10581_v60, %v8952_v41 }
 0x5db   : > { %10816 = vst [vmem:[%s15428_s30 + $0xe0] sm:$0xff] %v10784_v15  ;;  %v10685_v26 = vmul.f32 %v11833_v10, %v10617_v12 }
 0x5dd   : > { %v10721_v31 = vadd.f32 %v11834_v23, %v10685_v26 }
 0x5de   : > { %v10583_v58 = vpop.f32.mrf.mxu1 }
 0x5df   : > { %v10753_v39 = vadd.f32 %v10721_v31, %v10649_v46  ;;  %v10584_v48 = vadd.f32 %v10583_v58, %v10495_v24 }
 0x5e1   : > { %v10785_v13 = vmax.f32 %v10753_v39, 0.0  ;;  %v10618_v59 = vadd.f32 %v10584_v48, %v8955_v20 }
 0x5e3   : > { %10817 = vst [vmem:[%s15428_s30 + $0xe8] sm:$0xff] %v10785_v13  ;;  %v10686_v8 = vmul.f32 %v11833_v10, %v10618_v59 }
 0x5e5   : > { %v10722_v43 = vadd.f32 %v11834_v23, %v10686_v8 }
 0x5e6   : > { %v10585_v44 = vpop.f32.mrf.mxu1 }
 0x5e7   : > { %v10754_v38 = vadd.f32 %v10722_v43, %v10650_v37  ;;  %v10586_v18 = vadd.f32 %v10585_v44, %v10497_v36 }
 0x5e9   : > { %v10786_v53 = vmax.f32 %v10754_v38, 0.0  ;;  %v10619_v56 = vadd.f32 %v10586_v18, %v8957_v35 }
 0x5eb   : > { %10818 = vst [vmem:[%s15428_s30 + $0xf0] sm:$0xff] %v10786_v53  ;;  %v10687_v11 = vmul.f32 %v11833_v10, %v10619_v56 }
 0x5ed   : > { %v10723_v21 = vadd.f32 %v11834_v23, %v10687_v11 }
 0x5ef   : > { %v10755_v19 = vadd.f32 %v10723_v21, %v10651_v63 }
 0x5f1   : > { %v10787_v17 = vmax.f32 %v10755_v19, 0.0 }
 0x5f3   : > { %10819 = vst [vmem:[%s15428_s30 + $0xf8] sm:$0xff] %v10787_v17 }
 0x5f4 PF: > { %s17_s24 = sadd.s32 1, %s12321_s24  }
 0x5f5   : > { %p14_p4 = scmp.ge.s32.totalorder %s17_s24, 4  }
 0x5f7   :  { %16 = sbr.rel (!%p14_p4) target bundleno = 1 (0x1), region = 88 }

</bundles_post_ra>
